<compile_context>
chip_gen: v5e
topology: v5e:2x2
jax: 0.10.0
libtpu: 0.0.40
codegen_flags: <defaults>
</compile_context>

<pallas_src>
import functools
import math

import jax
import jax.numpy as jnp
from jax.experimental import pallas as pl
from jax.experimental.pallas import tpu as pltpu


def _vmem_limit_bytes():
    """Generation-aware VMEM budget: ~3/4 of physical, capped at 100 MiB."""
    try:
        cap = pltpu.get_tpu_info().vmem_capacity_bytes
    except Exception:                       # no TPU info (e.g. interpret mode)
        cap = 64 * 1024 * 1024
    return int(min(cap * 3 // 4, 100 * 1024 * 1024))


# ----------------------------------------------------------------------------
# Fused multi-layer GRU + decoder + softmax kernel.
#
# PyTorch GRU cell (gate order r, z, n):
#   r = sigmoid(x W_ir^T + b_ir + h W_hr^T + b_hr)
#   z = sigmoid(x W_iz^T + b_iz + h W_hz^T + b_hz)
#   n = tanh   (x W_in^T + b_in + r * (h W_hn^T + b_hn))
#   h' = (1 - z) * n + z * h
# Weights are stored pre-transposed and gate-fused: columns [0:H)=r, [H:2H)=z,
# [2H:3H)=n, so x @ w gives all three gate pre-activations in one MXU call.
# ----------------------------------------------------------------------------
def _gru_decoder_kernel(x_ref, h0_ref, w_ih_ref, w_hh_ref, b_ih_ref, b_hh_ref,
                        w_dec_ref, b_dec_ref, out_ref, hT_ref, act_ref, gi_ref,
                        *, num_layers, hidden, batch, t_block, seq_len,
                        seq_len_pad, unroll):
    H, B = hidden, batch
    tb = pl.program_id(0)

    # hT_ref is the resident hidden-state carrier (constant output block index
    # over the sequential "arbitrary" time-block axis).
    @pl.when(tb == 0)
    def _():
        hT_ref[...] = h0_ref[...]

    for layer in range(num_layers):          # static unroll over layers
        src_ref = x_ref if layer == 0 else act_ref
        w_ih = w_ih_ref[layer]               # (H, 3H) bf16, VMEM resident
        w_hh = w_hh_ref[layer]               # (H, 3H) bf16, VMEM resident
        b_ih = b_ih_ref[layer]               # (1, 3H) f32
        b_hh = b_hh_ref[layer]               # (1, 3H) f32

        # Hoisted input projection: one (t_block*B, H) @ (H, 3H) MXU call per
        # (layer, time block), off the per-timestep serial path.  Stored bf16
        # to halve the largest scratch.
        gi_ref[...] = (
            jnp.dot(src_ref[...], w_ih, preferred_element_type=jnp.float32)
            + b_ih
        ).astype(gi_ref.dtype)

        def step(i, h):
            rows = pl.ds(pl.multiple_of(i * B, 8), B)
            gi = gi_ref[rows, :].astype(jnp.float32)
            gh = jnp.dot(h.astype(jnp.bfloat16), w_hh,
                         preferred_element_type=jnp.float32) + b_hh
            r = jax.nn.sigmoid(gi[:, 0:H] + gh[:, 0:H])
            z = jax.nn.sigmoid(gi[:, H:2 * H] + gh[:, H:2 * H])
            n = jnp.tanh(gi[:, 2 * H:3 * H] + r * gh[:, 2 * H:3 * H])
            h_new = (1.0 - z) * n + z * h
            if seq_len_pad != seq_len:       # only traced when padding exists
                valid = (tb * t_block + i) < seq_len
                h_new = jnp.where(valid, h_new, h)
            act_ref[rows, :] = h_new.astype(act_ref.dtype)
            return h_new

        hT_ref[layer] = jax.lax.fori_loop(0, t_block, step, hT_ref[layer],
                                          unroll=unroll)

    # Fused decoder + softmax over the whole time block (lane-dense A_pad
    # output).  Padded alphabet lanes carry a -1e30 bias -> exactly zero
    # probability.  Padded timesteps / batch rows are dropped in the wrapper.
    logits = jnp.dot(act_ref[...], w_dec_ref[...],
                     preferred_element_type=jnp.float32) + b_dec_ref[...]
    m = jnp.max(logits, axis=-1, keepdims=True)
    e = jnp.exp(logits - m)
    # Exact divide (NOT pl.reciprocal(approx=True)): rows must sum to 1.
    out_ref[...] = (e / jnp.sum(e, axis=-1, keepdims=True)).astype(out_ref.dtype)


def _gru_decoder_call(x2d, h0, w_ih, w_hh, b_ih, b_hh, w_dec, b_dec, *,
                      seq_len, batch, t_block, single_buffer_resident=True):
    """x2d: (L_pad*B_pad, H) time-major bf16 rows.  h0: (NL, B_pad, H) f32.
    Returns (probs (L_pad*B_pad, A_pad) f32, h_final (NL, B_pad, H) f32)."""
    NB, H = x2d.shape
    NL = w_ih.shape[0]
    A_pad = w_dec.shape[1]
    L_pad = NB // batch
    n_blocks = L_pad // t_block
    rows = t_block * batch
    unroll = True if t_block <= 32 else 8

    kernel = functools.partial(
        _gru_decoder_kernel, num_layers=NL, hidden=H, batch=batch,
        t_block=t_block, seq_len=seq_len, seq_len_pad=L_pad, unroll=unroll)

    def resident_spec(shape):
        # Constant index map -> never re-fetched; single-buffer it to halve the
        # resident weight VMEM footprint.
        index_map = lambda *_: (0,) * len(shape)
        if single_buffer_resident:
            return pl.BlockSpec(shape, index_map, pipeline_mode=pl.Buffered(1))
        return pl.BlockSpec(shape, index_map)

    grid_spec = pltpu.PrefetchScalarGridSpec(
        num_scalar_prefetch=0,
        grid=(n_blocks,),
        in_specs=[
            pl.BlockSpec((rows, H), lambda t: (t, 0)),       # x time block
            resident_spec((NL, batch, H)),                   # h0
            resident_spec((NL, H, 3 * H)),                   # W_ih
            resident_spec((NL, H, 3 * H)),                   # W_hh
            resident_spec((NL, 1, 3 * H)),                   # b_ih
            resident_spec((NL, 1, 3 * H)),                   # b_hh
            resident_spec((H, A_pad)),                       # W_dec (padded)
            resident_spec((1, A_pad)),                       # b_dec (padded)
        ],
        out_specs=[
            pl.BlockSpec((rows, A_pad), lambda t: (t, 0)),   # probs block
            pl.BlockSpec((NL, batch, H), lambda t: (0, 0, 0)),  # resident hT
        ],
        scratch_shapes=[
            pltpu.VMEM((rows, H), jnp.bfloat16),        # inter-layer activations
            pltpu.VMEM((rows, 3 * H), jnp.bfloat16),    # hoisted gate pre-acts
        ],
    )
    probs, hT = pl.pallas_call(
        kernel,
        out_shape=(
            jax.ShapeDtypeStruct((NB, A_pad), jnp.float32),
            jax.ShapeDtypeStruct((NL, batch, H), jnp.float32),
        ),
        grid_spec=grid_spec,
        compiler_params=pltpu.CompilerParams(
            dimension_semantics=("arbitrary",),          # recurrent over time
            vmem_limit_bytes=_vmem_limit_bytes()),
    )(x2d, h0, w_ih, w_hh, b_ih, b_hh, w_dec, b_dec)
    return probs, hT


# ----------------------------------------------------------------------------
# Full CharRnnCore forward.
# ----------------------------------------------------------------------------
def char_rnn_forward(params, tokens, memory=None, *, t_block=64,
                     single_buffer_resident=True):
    """tokens: (B, L) int32.  memory: (num_layers, B, H) f32 or None.
    Returns (output (B, L, A) softmax probs, new_memory (num_layers, B, H))."""
    emb = params["embedding"]                        # (A, H) bf16
    w_ih, w_hh = params["w_ih"], params["w_hh"]
    b_ih, b_hh = params["b_ih"], params["b_hh"]
    w_dec, b_dec = params["decoder_w"], params["decoder_b"]   # pre-padded
    A = params["alphabet_size"]
    NL, H = w_ih.shape[0], w_ih.shape[1]
    A_pad = w_dec.shape[1]
    B, L = tokens.shape

    if memory is None:
        memory = jnp.zeros((NL, B, H), jnp.float32)

    B_pad = ((B + 7) // 8) * 8                       # sublane-dense batch
    t_block = max(1, min(t_block, L))
    L_pad = pl.cdiv(L, t_block) * t_block

    # Embedding gather, directly time-major (no (B,L,H) transpose copy).
    # TODO(synk): fuse the gather into the GRU kernel (scalar-prefetch tokens,
    #             DMA rows from an HBM-resident table) once the recurrence is
    #             no longer the dominant wall-clock term.
    x = jnp.take(emb, tokens.T, axis=0)              # (L, B, H) bf16
    x = jnp.pad(x, ((0, L_pad - L), (0, B_pad - B), (0, 0)))
    x2d = x.reshape(L_pad * B_pad, H)                # 2D time-major rows
    h0 = jnp.pad(memory, ((0, 0), (0, B_pad - B), (0, 0)))

    probs2d, hT = _gru_decoder_call(
        x2d, h0, w_ih, w_hh, b_ih, b_hh, w_dec, b_dec,
        seq_len=L, batch=B_pad, t_block=t_block,
        single_buffer_resident=single_buffer_resident)

    probs = probs2d.reshape(L_pad, B_pad, A_pad)[:L, :B, :A]
    output = probs.transpose(1, 0, 2)                # (B, L, A)
    return output, hT[:, :B, :]


# ----------------------------------------------------------------------------
# Pure-JAX reference (same dtypes/casts as the kernel) for correctness checks.
# ----------------------------------------------------------------------------
def char_rnn_reference(params, tokens, memory=None):
    emb = params["embedding"]
    w_ih, w_hh = params["w_ih"], params["w_hh"]
    b_ih, b_hh = params["b_ih"], params["b_hh"]
    A = params["alphabet_size"]
    NL, H = w_ih.shape[0], w_ih.shape[1]
    B, L = tokens.shape
    if memory is None:
        memory = jnp.zeros((NL, B, H), jnp.float32)

    x = jnp.take(emb, tokens.T, axis=0)              # (L, B, H) bf16
    new_mem = []
    for l in range(NL):
        gi_all = (jnp.dot(x.reshape(L * B, H), w_ih[l],
                          preferred_element_type=jnp.float32)
                  + b_ih[l]).astype(jnp.bfloat16).reshape(L, B, 3 * H)

        def step(h, gi, l=l):
            gi = gi.astype(jnp.float32)
            gh = jnp.dot(h.astype(jnp.bfloat16), w_hh[l],
                         preferred_element_type=jnp.float32) + b_hh[l]
            r = jax.nn.sigmoid(gi[:, 0:H] + gh[:, 0:H])
            z = jax.nn.sigmoid(gi[:, H:2 * H] + gh[:, H:2 * H])
            n = jnp.tanh(gi[:, 2 * H:3 * H] + r * gh[:, 2 * H:3 * H])
            h_new = (1.0 - z) * n + z * h
            return h_new, h_new.astype(jnp.bfloat16)

        h_final, y = jax.lax.scan(step, memory[l], gi_all)
        new_mem.append(h_final)
        x = y
    new_memory = jnp.stack(new_mem, axis=0)

    logits = (jnp.dot(x.reshape(L * B, H), params["decoder_w"],
                      preferred_element_type=jnp.float32)
              + params["decoder_b"])
    probs = jax.nn.softmax(logits, axis=-1)[:, :A]
    return probs.reshape(L, B, A).transpose(1, 0, 2), new_memory


# ----------------------------------------------------------------------------
# Deterministic parameter init (synthetic, mimics PyTorch shapes; gate-fused
# layout: columns [0:H)=r, [H:2H)=z, [2H:3H)=n of the transposed nn.GRU
# weights).  Decoder weights/bias are padded to a lane-dense A_pad here, once,
# instead of per forward call.
# ----------------------------------------------------------------------------
def init_params(key, alphabet_size, hidden_size, num_layers):
    H, A, NL = hidden_size, alphabet_size, num_layers
    A_pad = ((A + 127) // 128) * 128
    s = 1.0 / math.sqrt(H)
    k = jax.random.split(key, 7)
    w_dec = jax.random.uniform(k[5], (H, A), jnp.float32, -s, s)
    b_dec = jax.random.uniform(k[6], (1, A), jnp.float32, -s, s)
    w_dec_pad = jnp.zeros((H, A_pad), jnp.float32).at[:, :A].set(w_dec)
    b_dec_pad = jnp.full((1, A_pad), -1e30, jnp.float32).at[:, :A].set(b_dec)
    return {
        "alphabet_size": A,
        "embedding": jax.random.normal(k[0], (A, H), jnp.float32).astype(jnp.bfloat16),
        "w_ih": jax.random.uniform(k[1], (NL, H, 3 * H), jnp.float32, -s, s).astype(jnp.bfloat16),
        "w_hh": jax.random.uniform(k[2], (NL, H, 3 * H), jnp.float32, -s, s).astype(jnp.bfloat16),
        "b_ih": jax.random.uniform(k[3], (NL, 1, 3 * H), jnp.float32, -s, s),
        "b_hh": jax.random.uniform(k[4], (NL, 1, 3 * H), jnp.float32, -s, s),
        "decoder_w": w_dec_pad.astype(jnp.bfloat16),
        "decoder_b": b_dec_pad,
    }


if __name__ == "__main__":
    ALPHABET, HIDDEN, NUM_LAYERS = 16, 32, 2
    BATCH, LENGTH = 2, 8

    key = jax.random.PRNGKey(0)
    k_params, k_tokens = jax.random.split(key)
    params = init_params(k_params, ALPHABET, HIDDEN, NUM_LAYERS)
    tokens = jax.random.randint(k_tokens, (BATCH, LENGTH), 0, ALPHABET,
                                dtype=jnp.int32)

    try:
        fwd = jax.jit(functools.partial(char_rnn_forward, params))
        output, new_memory = fwd(tokens)
        jax.block_until_ready((output, new_memory))
    except Exception:
        # Fallback if this JAX build rejects pipeline_mode=pl.Buffered(1) on
        # the resident-operand BlockSpecs: rerun with default double-buffering.
        fwd = jax.jit(functools.partial(char_rnn_forward, params,
                                        single_buffer_resident=False))
        output, new_memory = fwd(tokens)
        jax.block_until_ready((output, new_memory))

    assert output.shape == (BATCH, LENGTH, ALPHABET)
    assert new_memory.shape == (NUM_LAYERS, BATCH, HIDDEN)
    assert bool(jnp.all(jnp.isfinite(output)))
    # Exact-divide softmax: rows sum to 1 up to f32 rounding.
    assert jnp.allclose(jnp.sum(output, axis=-1), 1.0, atol=2e-3)

    # Compare against a pure-JAX reference with matching dtypes/casts.
    ref_out, ref_mem = jax.jit(functools.partial(char_rnn_reference, params))(tokens)
    jax.block_until_ready((ref_out, ref_mem))
    assert jnp.allclose(output, ref_out, rtol=3e-3, atol=3e-3)
    assert jnp.allclose(new_memory, ref_mem, rtol=3e-3, atol=3e-3)

    print("KERNEL_OK")
</pallas_src>

<mosaic_0001>
module attributes {stable_mosaic.version = 11 : i64} {
  func.func @_gru_decoder_kernel(%arg0: i32, %arg1: memref<64x32xbf16, #tpu.memory_space<vmem>>, %arg2: memref<2x8x32xf32, #tpu.memory_space<vmem>>, %arg3: memref<2x32x96xbf16, #tpu.memory_space<vmem>>, %arg4: memref<2x32x96xbf16, #tpu.memory_space<vmem>>, %arg5: memref<2x1x96xf32, #tpu.memory_space<vmem>>, %arg6: memref<2x1x96xf32, #tpu.memory_space<vmem>>, %arg7: memref<32x128xbf16, #tpu.memory_space<vmem>>, %arg8: memref<1x128xf32, #tpu.memory_space<vmem>>, %arg9: memref<64x128xf32, #tpu.memory_space<vmem>>, %arg10: memref<2x8x32xf32, #tpu.memory_space<vmem>>, %arg11: memref<64x32xbf16, #tpu.memory_space<vmem>>, %arg12: memref<64x96xbf16, #tpu.memory_space<vmem>>) attributes {dimension_semantics = [#tpu.dimension_semantics<arbitrary>], iteration_bounds = array<i64: 1>, scalar_prefetch = 0 : i64, scratch_operands = 2 : i64, tpu.core_type = #tpu.core_type<tc>, window_params = [{transform_indices = @transform_0, window_bounds = array<i64: 64, 32>}, {pipeline_mode = #tpu.pipeline_mode<synchronous>, transform_indices = @transform_1, window_bounds = array<i64: 2, 8, 32>}, {pipeline_mode = #tpu.pipeline_mode<synchronous>, transform_indices = @transform_2, window_bounds = array<i64: 2, 32, 96>}, {pipeline_mode = #tpu.pipeline_mode<synchronous>, transform_indices = @transform_3, window_bounds = array<i64: 2, 32, 96>}, {pipeline_mode = #tpu.pipeline_mode<synchronous>, transform_indices = @transform_4, window_bounds = array<i64: 2, 1, 96>}, {pipeline_mode = #tpu.pipeline_mode<synchronous>, transform_indices = @transform_5, window_bounds = array<i64: 2, 1, 96>}, {pipeline_mode = #tpu.pipeline_mode<synchronous>, transform_indices = @transform_6, window_bounds = array<i64: 32, 128>}, {pipeline_mode = #tpu.pipeline_mode<synchronous>, transform_indices = @transform_7, window_bounds = array<i64: 1, 128>}, {transform_indices = @transform_8, window_bounds = array<i64: 64, 128>}, {pipeline_mode = #tpu.pipeline_mode<synchronous>, transform_indices = @transform_9, window_bounds = array<i64: 2, 8, 32>}]} {
    %c0_i32 = arith.constant 0 : i32
    %0 = arith.cmpi eq, %arg0, %c0_i32 : i32
    %1 = arith.extui %0 : i1 to i32
    %c0_i32_0 = arith.constant 0 : i32
    %2 = arith.cmpi ne, %1, %c0_i32_0 : i32
    scf.if %2 {
      %c0_177 = arith.constant 0 : index
      %c0_178 = arith.constant 0 : index
      %c0_179 = arith.constant 0 : index
      %665 = vector.load %arg2[%c0_177, %c0_178, %c0_179] : memref<2x8x32xf32, #tpu.memory_space<vmem>>, vector<2x8x32xf32>
      %c0_180 = arith.constant 0 : index
      %c0_181 = arith.constant 0 : index
      %c0_182 = arith.constant 0 : index
      %666 = vector.load %arg10[%c0_180, %c0_181, %c0_182] : memref<2x8x32xf32, #tpu.memory_space<vmem>>, vector<2x8x32xf32>
      tpu.vector_store %arg10[%c0_180, %c0_181, %c0_182], %665 {strides = array<i32>} : memref<2x8x32xf32, #tpu.memory_space<vmem>>, vector<2x8x32xf32>,
    } else {
    }
    %c0 = arith.constant 0 : index
    %c0_1 = arith.constant 0 : index
    %c0_2 = arith.constant 0 : index
    %3 = vector.load %arg3[%c0, %c0_1, %c0_2] : memref<2x32x96xbf16, #tpu.memory_space<vmem>>, vector<1x32x96xbf16>
    %4 = vector.shape_cast %3 : vector<1x32x96xbf16> to vector<32x96xbf16>
    %c0_3 = arith.constant 0 : index
    %c0_4 = arith.constant 0 : index
    %c0_5 = arith.constant 0 : index
    %5 = vector.load %arg4[%c0_3, %c0_4, %c0_5] : memref<2x32x96xbf16, #tpu.memory_space<vmem>>, vector<1x32x96xbf16>
    %6 = vector.shape_cast %5 : vector<1x32x96xbf16> to vector<32x96xbf16>
    %c0_6 = arith.constant 0 : index
    %c0_7 = arith.constant 0 : index
    %c0_8 = arith.constant 0 : index
    %7 = vector.load %arg5[%c0_6, %c0_7, %c0_8] : memref<2x1x96xf32, #tpu.memory_space<vmem>>, vector<1x1x96xf32>
    %8 = vector.shape_cast %7 : vector<1x1x96xf32> to vector<1x96xf32>
    %c0_9 = arith.constant 0 : index
    %c0_10 = arith.constant 0 : index
    %c0_11 = arith.constant 0 : index
    %9 = vector.load %arg6[%c0_9, %c0_10, %c0_11] : memref<2x1x96xf32, #tpu.memory_space<vmem>>, vector<1x1x96xf32>
    %10 = vector.shape_cast %9 : vector<1x1x96xf32> to vector<1x96xf32>
    %c0_12 = arith.constant 0 : index
    %c0_13 = arith.constant 0 : index
    %11 = vector.load %arg1[%c0_12, %c0_13] : memref<64x32xbf16, #tpu.memory_space<vmem>>, vector<64x32xbf16>
    %cst = arith.constant dense<0.000000e+00> : vector<64x96xf32>
    %12 = tpu.matmul %11, %4, %cst {dimension_numbers = #tpu.dot_dimension_numbers<[1], [0], [0], [1], [0, 0, 1, 1], [], []>} : vector<64x32xbf16>, vector<32x96xbf16>, vector<64x96xf32> -> vector<64x96xf32>
    %13 = vector.broadcast %8 : vector<1x96xf32> to vector<64x96xf32>
    %14 = arith.addf %12, %13 : vector<64x96xf32>
    %15 = arith.truncf %14 : vector<64x96xf32> to vector<64x96xbf16>
    %c0_14 = arith.constant 0 : index
    %c0_15 = arith.constant 0 : index
    %16 = vector.load %arg12[%c0_14, %c0_15] : memref<64x96xbf16, #tpu.memory_space<vmem>>, vector<64x96xbf16>
    tpu.vector_store %arg12[%c0_14, %c0_15], %15 {strides = array<i32>} : memref<64x96xbf16, #tpu.memory_space<vmem>>, vector<64x96xbf16>,
    %c0_16 = arith.constant 0 : index
    %c0_17 = arith.constant 0 : index
    %c0_18 = arith.constant 0 : index
    %17 = vector.load %arg10[%c0_16, %c0_17, %c0_18] : memref<2x8x32xf32, #tpu.memory_space<vmem>>, vector<1x8x32xf32>
    %18 = vector.shape_cast %17 : vector<1x8x32xf32> to vector<8x32xf32>
    %c0_i32_19 = arith.constant 0 : i32
    %c8_i32 = arith.constant 8 : i32
    %19 = arith.muli %c0_i32_19, %c8_i32 : i32
    %20 = tpu.assume_multiple %19, 8 : i32
    %21 = arith.index_cast %20 : i32 to index
    %c0_20 = arith.constant 0 : index
    %22 = vector.load %arg12[%21, %c0_20] : memref<64x96xbf16, #tpu.memory_space<vmem>>, vector<8x96xbf16>
    %23 = arith.extf %22 : vector<8x96xbf16> to vector<8x96xf32>
    %24 = arith.truncf %18 : vector<8x32xf32> to vector<8x32xbf16>
    %cst_21 = arith.constant dense<0.000000e+00> : vector<8x96xf32>
    %25 = tpu.matmul %24, %6, %cst_21 {dimension_numbers = #tpu.dot_dimension_numbers<[1], [0], [0], [1], [0, 0, 1, 1], [], []>} : vector<8x32xbf16>, vector<32x96xbf16>, vector<8x96xf32> -> vector<8x96xf32>
    %26 = vector.broadcast %10 : vector<1x96xf32> to vector<8x96xf32>
    %27 = arith.addf %25, %26 : vector<8x96xf32>
    %28 = vector.extract_strided_slice %23 {offsets = [0, 0], sizes = [8, 32], strides = [1, 1]} : vector<8x96xf32> to vector<8x32xf32>
    %29 = vector.extract_strided_slice %27 {offsets = [0, 0], sizes = [8, 32], strides = [1, 1]} : vector<8x96xf32> to vector<8x32xf32>
    %30 = arith.addf %28, %29 : vector<8x32xf32>
    %31 = arith.negf %30 : vector<8x32xf32>
    %32 = math.exp %31 : vector<8x32xf32>
    %cst_22 = arith.constant 1.000000e+00 : f32
    %33 = vector.broadcast %cst_22 : f32 to vector<8x32xf32>
    %34 = arith.addf %33, %32 : vector<8x32xf32>
    %35 = arith.divf %33, %34 : vector<8x32xf32>
    %36 = vector.extract_strided_slice %23 {offsets = [0, 32], sizes = [8, 32], strides = [1, 1]} : vector<8x96xf32> to vector<8x32xf32>
    %37 = vector.extract_strided_slice %27 {offsets = [0, 32], sizes = [8, 32], strides = [1, 1]} : vector<8x96xf32> to vector<8x32xf32>
    %38 = arith.addf %36, %37 : vector<8x32xf32>
    %39 = arith.negf %38 : vector<8x32xf32>
    %40 = math.exp %39 : vector<8x32xf32>
    %cst_23 = arith.constant 1.000000e+00 : f32
    %41 = vector.broadcast %cst_23 : f32 to vector<8x32xf32>
    %42 = arith.addf %41, %40 : vector<8x32xf32>
    %43 = arith.divf %41, %42 : vector<8x32xf32>
    %44 = vector.extract_strided_slice %23 {offsets = [0, 64], sizes = [8, 32], strides = [1, 1]} : vector<8x96xf32> to vector<8x32xf32>
    %45 = vector.extract_strided_slice %27 {offsets = [0, 64], sizes = [8, 32], strides = [1, 1]} : vector<8x96xf32> to vector<8x32xf32>
    %46 = arith.mulf %35, %45 : vector<8x32xf32>
    %47 = arith.addf %44, %46 : vector<8x32xf32>
    %48 = math.tanh %47 : vector<8x32xf32>
    %cst_24 = arith.constant 1.000000e+00 : f32
    %49 = vector.broadcast %cst_24 : f32 to vector<8x32xf32>
    %50 = arith.subf %49, %43 : vector<8x32xf32>
    %51 = arith.mulf %50, %48 : vector<8x32xf32>
    %52 = arith.mulf %43, %18 : vector<8x32xf32>
    %53 = arith.addf %51, %52 : vector<8x32xf32>
    %54 = arith.truncf %53 : vector<8x32xf32> to vector<8x32xbf16>
    %55 = arith.index_cast %20 : i32 to index
    %c0_25 = arith.constant 0 : index
    %56 = vector.load %arg11[%55, %c0_25] : memref<64x32xbf16, #tpu.memory_space<vmem>>, vector<8x32xbf16>
    tpu.vector_store %arg11[%55, %c0_25], %54 {strides = array<i32>} : memref<64x32xbf16, #tpu.memory_space<vmem>>, vector<8x32xbf16>,
    %c1_i32 = arith.constant 1 : i32
    %c8_i32_26 = arith.constant 8 : i32
    %57 = arith.muli %c1_i32, %c8_i32_26 : i32
    %58 = tpu.assume_multiple %57, 8 : i32
    %59 = arith.index_cast %58 : i32 to index
    %c0_27 = arith.constant 0 : index
    %60 = vector.load %arg12[%59, %c0_27] : memref<64x96xbf16, #tpu.memory_space<vmem>>, vector<8x96xbf16>
    %61 = arith.extf %60 : vector<8x96xbf16> to vector<8x96xf32>
    %62 = arith.truncf %53 : vector<8x32xf32> to vector<8x32xbf16>
    %cst_28 = arith.constant dense<0.000000e+00> : vector<8x96xf32>
    %63 = tpu.matmul %62, %6, %cst_28 {dimension_numbers = #tpu.dot_dimension_numbers<[1], [0], [0], [1], [0, 0, 1, 1], [], []>} : vector<8x32xbf16>, vector<32x96xbf16>, vector<8x96xf32> -> vector<8x96xf32>
    %64 = vector.broadcast %10 : vector<1x96xf32> to vector<8x96xf32>
    %65 = arith.addf %63, %64 : vector<8x96xf32>
    %66 = vector.extract_strided_slice %61 {offsets = [0, 0], sizes = [8, 32], strides = [1, 1]} : vector<8x96xf32> to vector<8x32xf32>
    %67 = vector.extract_strided_slice %65 {offsets = [0, 0], sizes = [8, 32], strides = [1, 1]} : vector<8x96xf32> to vector<8x32xf32>
    %68 = arith.addf %66, %67 : vector<8x32xf32>
    %69 = arith.negf %68 : vector<8x32xf32>
    %70 = math.exp %69 : vector<8x32xf32>
    %cst_29 = arith.constant 1.000000e+00 : f32
    %71 = vector.broadcast %cst_29 : f32 to vector<8x32xf32>
    %72 = arith.addf %71, %70 : vector<8x32xf32>
    %73 = arith.divf %71, %72 : vector<8x32xf32>
    %74 = vector.extract_strided_slice %61 {offsets = [0, 32], sizes = [8, 32], strides = [1, 1]} : vector<8x96xf32> to vector<8x32xf32>
    %75 = vector.extract_strided_slice %65 {offsets = [0, 32], sizes = [8, 32], strides = [1, 1]} : vector<8x96xf32> to vector<8x32xf32>
    %76 = arith.addf %74, %75 : vector<8x32xf32>
    %77 = arith.negf %76 : vector<8x32xf32>
    %78 = math.exp %77 : vector<8x32xf32>
    %cst_30 = arith.constant 1.000000e+00 : f32
    %79 = vector.broadcast %cst_30 : f32 to vector<8x32xf32>
    %80 = arith.addf %79, %78 : vector<8x32xf32>
    %81 = arith.divf %79, %80 : vector<8x32xf32>
    %82 = vector.extract_strided_slice %61 {offsets = [0, 64], sizes = [8, 32], strides = [1, 1]} : vector<8x96xf32> to vector<8x32xf32>
    %83 = vector.extract_strided_slice %65 {offsets = [0, 64], sizes = [8, 32], strides = [1, 1]} : vector<8x96xf32> to vector<8x32xf32>
    %84 = arith.mulf %73, %83 : vector<8x32xf32>
    %85 = arith.addf %82, %84 : vector<8x32xf32>
    %86 = math.tanh %85 : vector<8x32xf32>
    %cst_31 = arith.constant 1.000000e+00 : f32
    %87 = vector.broadcast %cst_31 : f32 to vector<8x32xf32>
    %88 = arith.subf %87, %81 : vector<8x32xf32>
    %89 = arith.mulf %88, %86 : vector<8x32xf32>
    %90 = arith.mulf %81, %53 : vector<8x32xf32>
    %91 = arith.addf %89, %90 : vector<8x32xf32>
    %92 = arith.truncf %91 : vector<8x32xf32> to vector<8x32xbf16>
    %93 = arith.index_cast %58 : i32 to index
    %c0_32 = arith.constant 0 : index
    %94 = vector.load %arg11[%93, %c0_32] : memref<64x32xbf16, #tpu.memory_space<vmem>>, vector<8x32xbf16>
    tpu.vector_store %arg11[%93, %c0_32], %92 {strides = array<i32>} : memref<64x32xbf16, #tpu.memory_space<vmem>>, vector<8x32xbf16>,
    %c2_i32 = arith.constant 2 : i32
    %c8_i32_33 = arith.constant 8 : i32
    %95 = arith.muli %c2_i32, %c8_i32_33 : i32
    %96 = tpu.assume_multiple %95, 8 : i32
    %97 = arith.index_cast %96 : i32 to index
    %c0_34 = arith.constant 0 : index
    %98 = vector.load %arg12[%97, %c0_34] : memref<64x96xbf16, #tpu.memory_space<vmem>>, vector<8x96xbf16>
    %99 = arith.extf %98 : vector<8x96xbf16> to vector<8x96xf32>
    %100 = arith.truncf %91 : vector<8x32xf32> to vector<8x32xbf16>
    %cst_35 = arith.constant dense<0.000000e+00> : vector<8x96xf32>
    %101 = tpu.matmul %100, %6, %cst_35 {dimension_numbers = #tpu.dot_dimension_numbers<[1], [0], [0], [1], [0, 0, 1, 1], [], []>} : vector<8x32xbf16>, vector<32x96xbf16>, vector<8x96xf32> -> vector<8x96xf32>
    %102 = vector.broadcast %10 : vector<1x96xf32> to vector<8x96xf32>
    %103 = arith.addf %101, %102 : vector<8x96xf32>
    %104 = vector.extract_strided_slice %99 {offsets = [0, 0], sizes = [8, 32], strides = [1, 1]} : vector<8x96xf32> to vector<8x32xf32>
    %105 = vector.extract_strided_slice %103 {offsets = [0, 0], sizes = [8, 32], strides = [1, 1]} : vector<8x96xf32> to vector<8x32xf32>
    %106 = arith.addf %104, %105 : vector<8x32xf32>
    %107 = arith.negf %106 : vector<8x32xf32>
    %108 = math.exp %107 : vector<8x32xf32>
    %cst_36 = arith.constant 1.000000e+00 : f32
    %109 = vector.broadcast %cst_36 : f32 to vector<8x32xf32>
    %110 = arith.addf %109, %108 : vector<8x32xf32>
    %111 = arith.divf %109, %110 : vector<8x32xf32>
    %112 = vector.extract_strided_slice %99 {offsets = [0, 32], sizes = [8, 32], strides = [1, 1]} : vector<8x96xf32> to vector<8x32xf32>
    %113 = vector.extract_strided_slice %103 {offsets = [0, 32], sizes = [8, 32], strides = [1, 1]} : vector<8x96xf32> to vector<8x32xf32>
    %114 = arith.addf %112, %113 : vector<8x32xf32>
    %115 = arith.negf %114 : vector<8x32xf32>
    %116 = math.exp %115 : vector<8x32xf32>
    %cst_37 = arith.constant 1.000000e+00 : f32
    %117 = vector.broadcast %cst_37 : f32 to vector<8x32xf32>
    %118 = arith.addf %117, %116 : vector<8x32xf32>
    %119 = arith.divf %117, %118 : vector<8x32xf32>
    %120 = vector.extract_strided_slice %99 {offsets = [0, 64], sizes = [8, 32], strides = [1, 1]} : vector<8x96xf32> to vector<8x32xf32>
    %121 = vector.extract_strided_slice %103 {offsets = [0, 64], sizes = [8, 32], strides = [1, 1]} : vector<8x96xf32> to vector<8x32xf32>
    %122 = arith.mulf %111, %121 : vector<8x32xf32>
    %123 = arith.addf %120, %122 : vector<8x32xf32>
    %124 = math.tanh %123 : vector<8x32xf32>
    %cst_38 = arith.constant 1.000000e+00 : f32
    %125 = vector.broadcast %cst_38 : f32 to vector<8x32xf32>
    %126 = arith.subf %125, %119 : vector<8x32xf32>
    %127 = arith.mulf %126, %124 : vector<8x32xf32>
    %128 = arith.mulf %119, %91 : vector<8x32xf32>
    %129 = arith.addf %127, %128 : vector<8x32xf32>
    %130 = arith.truncf %129 : vector<8x32xf32> to vector<8x32xbf16>
    %131 = arith.index_cast %96 : i32 to index
    %c0_39 = arith.constant 0 : index
    %132 = vector.load %arg11[%131, %c0_39] : memref<64x32xbf16, #tpu.memory_space<vmem>>, vector<8x32xbf16>
    tpu.vector_store %arg11[%131, %c0_39], %130 {strides = array<i32>} : memref<64x32xbf16, #tpu.memory_space<vmem>>, vector<8x32xbf16>,
    %c3_i32 = arith.constant 3 : i32
    %c8_i32_40 = arith.constant 8 : i32
    %133 = arith.muli %c3_i32, %c8_i32_40 : i32
    %134 = tpu.assume_multiple %133, 8 : i32
    %135 = arith.index_cast %134 : i32 to index
    %c0_41 = arith.constant 0 : index
    %136 = vector.load %arg12[%135, %c0_41] : memref<64x96xbf16, #tpu.memory_space<vmem>>, vector<8x96xbf16>
    %137 = arith.extf %136 : vector<8x96xbf16> to vector<8x96xf32>
    %138 = arith.truncf %129 : vector<8x32xf32> to vector<8x32xbf16>
    %cst_42 = arith.constant dense<0.000000e+00> : vector<8x96xf32>
    %139 = tpu.matmul %138, %6, %cst_42 {dimension_numbers = #tpu.dot_dimension_numbers<[1], [0], [0], [1], [0, 0, 1, 1], [], []>} : vector<8x32xbf16>, vector<32x96xbf16>, vector<8x96xf32> -> vector<8x96xf32>
    %140 = vector.broadcast %10 : vector<1x96xf32> to vector<8x96xf32>
    %141 = arith.addf %139, %140 : vector<8x96xf32>
    %142 = vector.extract_strided_slice %137 {offsets = [0, 0], sizes = [8, 32], strides = [1, 1]} : vector<8x96xf32> to vector<8x32xf32>
    %143 = vector.extract_strided_slice %141 {offsets = [0, 0], sizes = [8, 32], strides = [1, 1]} : vector<8x96xf32> to vector<8x32xf32>
    %144 = arith.addf %142, %143 : vector<8x32xf32>
    %145 = arith.negf %144 : vector<8x32xf32>
    %146 = math.exp %145 : vector<8x32xf32>
    %cst_43 = arith.constant 1.000000e+00 : f32
    %147 = vector.broadcast %cst_43 : f32 to vector<8x32xf32>
    %148 = arith.addf %147, %146 : vector<8x32xf32>
    %149 = arith.divf %147, %148 : vector<8x32xf32>
    %150 = vector.extract_strided_slice %137 {offsets = [0, 32], sizes = [8, 32], strides = [1, 1]} : vector<8x96xf32> to vector<8x32xf32>
    %151 = vector.extract_strided_slice %141 {offsets = [0, 32], sizes = [8, 32], strides = [1, 1]} : vector<8x96xf32> to vector<8x32xf32>
    %152 = arith.addf %150, %151 : vector<8x32xf32>
    %153 = arith.negf %152 : vector<8x32xf32>
    %154 = math.exp %153 : vector<8x32xf32>
    %cst_44 = arith.constant 1.000000e+00 : f32
    %155 = vector.broadcast %cst_44 : f32 to vector<8x32xf32>
    %156 = arith.addf %155, %154 : vector<8x32xf32>
    %157 = arith.divf %155, %156 : vector<8x32xf32>
    %158 = vector.extract_strided_slice %137 {offsets = [0, 64], sizes = [8, 32], strides = [1, 1]} : vector<8x96xf32> to vector<8x32xf32>
    %159 = vector.extract_strided_slice %141 {offsets = [0, 64], sizes = [8, 32], strides = [1, 1]} : vector<8x96xf32> to vector<8x32xf32>
    %160 = arith.mulf %149, %159 : vector<8x32xf32>
    %161 = arith.addf %158, %160 : vector<8x32xf32>
    %162 = math.tanh %161 : vector<8x32xf32>
    %cst_45 = arith.constant 1.000000e+00 : f32
    %163 = vector.broadcast %cst_45 : f32 to vector<8x32xf32>
    %164 = arith.subf %163, %157 : vector<8x32xf32>
    %165 = arith.mulf %164, %162 : vector<8x32xf32>
    %166 = arith.mulf %157, %129 : vector<8x32xf32>
    %167 = arith.addf %165, %166 : vector<8x32xf32>
    %168 = arith.truncf %167 : vector<8x32xf32> to vector<8x32xbf16>
    %169 = arith.index_cast %134 : i32 to index
    %c0_46 = arith.constant 0 : index
    %170 = vector.load %arg11[%169, %c0_46] : memref<64x32xbf16, #tpu.memory_space<vmem>>, vector<8x32xbf16>
    tpu.vector_store %arg11[%169, %c0_46], %168 {strides = array<i32>} : memref<64x32xbf16, #tpu.memory_space<vmem>>, vector<8x32xbf16>,
    %c4_i32 = arith.constant 4 : i32
    %c8_i32_47 = arith.constant 8 : i32
    %171 = arith.muli %c4_i32, %c8_i32_47 : i32
    %172 = tpu.assume_multiple %171, 8 : i32
    %173 = arith.index_cast %172 : i32 to index
    %c0_48 = arith.constant 0 : index
    %174 = vector.load %arg12[%173, %c0_48] : memref<64x96xbf16, #tpu.memory_space<vmem>>, vector<8x96xbf16>
    %175 = arith.extf %174 : vector<8x96xbf16> to vector<8x96xf32>
    %176 = arith.truncf %167 : vector<8x32xf32> to vector<8x32xbf16>
    %cst_49 = arith.constant dense<0.000000e+00> : vector<8x96xf32>
    %177 = tpu.matmul %176, %6, %cst_49 {dimension_numbers = #tpu.dot_dimension_numbers<[1], [0], [0], [1], [0, 0, 1, 1], [], []>} : vector<8x32xbf16>, vector<32x96xbf16>, vector<8x96xf32> -> vector<8x96xf32>
    %178 = vector.broadcast %10 : vector<1x96xf32> to vector<8x96xf32>
    %179 = arith.addf %177, %178 : vector<8x96xf32>
    %180 = vector.extract_strided_slice %175 {offsets = [0, 0], sizes = [8, 32], strides = [1, 1]} : vector<8x96xf32> to vector<8x32xf32>
    %181 = vector.extract_strided_slice %179 {offsets = [0, 0], sizes = [8, 32], strides = [1, 1]} : vector<8x96xf32> to vector<8x32xf32>
    %182 = arith.addf %180, %181 : vector<8x32xf32>
    %183 = arith.negf %182 : vector<8x32xf32>
    %184 = math.exp %183 : vector<8x32xf32>
    %cst_50 = arith.constant 1.000000e+00 : f32
    %185 = vector.broadcast %cst_50 : f32 to vector<8x32xf32>
    %186 = arith.addf %185, %184 : vector<8x32xf32>
    %187 = arith.divf %185, %186 : vector<8x32xf32>
    %188 = vector.extract_strided_slice %175 {offsets = [0, 32], sizes = [8, 32], strides = [1, 1]} : vector<8x96xf32> to vector<8x32xf32>
    %189 = vector.extract_strided_slice %179 {offsets = [0, 32], sizes = [8, 32], strides = [1, 1]} : vector<8x96xf32> to vector<8x32xf32>
    %190 = arith.addf %188, %189 : vector<8x32xf32>
    %191 = arith.negf %190 : vector<8x32xf32>
    %192 = math.exp %191 : vector<8x32xf32>
    %cst_51 = arith.constant 1.000000e+00 : f32
    %193 = vector.broadcast %cst_51 : f32 to vector<8x32xf32>
    %194 = arith.addf %193, %192 : vector<8x32xf32>
    %195 = arith.divf %193, %194 : vector<8x32xf32>
    %196 = vector.extract_strided_slice %175 {offsets = [0, 64], sizes = [8, 32], strides = [1, 1]} : vector<8x96xf32> to vector<8x32xf32>
    %197 = vector.extract_strided_slice %179 {offsets = [0, 64], sizes = [8, 32], strides = [1, 1]} : vector<8x96xf32> to vector<8x32xf32>
    %198 = arith.mulf %187, %197 : vector<8x32xf32>
    %199 = arith.addf %196, %198 : vector<8x32xf32>
    %200 = math.tanh %199 : vector<8x32xf32>
    %cst_52 = arith.constant 1.000000e+00 : f32
    %201 = vector.broadcast %cst_52 : f32 to vector<8x32xf32>
    %202 = arith.subf %201, %195 : vector<8x32xf32>
    %203 = arith.mulf %202, %200 : vector<8x32xf32>
    %204 = arith.mulf %195, %167 : vector<8x32xf32>
    %205 = arith.addf %203, %204 : vector<8x32xf32>
    %206 = arith.truncf %205 : vector<8x32xf32> to vector<8x32xbf16>
    %207 = arith.index_cast %172 : i32 to index
    %c0_53 = arith.constant 0 : index
    %208 = vector.load %arg11[%207, %c0_53] : memref<64x32xbf16, #tpu.memory_space<vmem>>, vector<8x32xbf16>
    tpu.vector_store %arg11[%207, %c0_53], %206 {strides = array<i32>} : memref<64x32xbf16, #tpu.memory_space<vmem>>, vector<8x32xbf16>,
    %c5_i32 = arith.constant 5 : i32
    %c8_i32_54 = arith.constant 8 : i32
    %209 = arith.muli %c5_i32, %c8_i32_54 : i32
    %210 = tpu.assume_multiple %209, 8 : i32
    %211 = arith.index_cast %210 : i32 to index
    %c0_55 = arith.constant 0 : index
    %212 = vector.load %arg12[%211, %c0_55] : memref<64x96xbf16, #tpu.memory_space<vmem>>, vector<8x96xbf16>
    %213 = arith.extf %212 : vector<8x96xbf16> to vector<8x96xf32>
    %214 = arith.truncf %205 : vector<8x32xf32> to vector<8x32xbf16>
    %cst_56 = arith.constant dense<0.000000e+00> : vector<8x96xf32>
    %215 = tpu.matmul %214, %6, %cst_56 {dimension_numbers = #tpu.dot_dimension_numbers<[1], [0], [0], [1], [0, 0, 1, 1], [], []>} : vector<8x32xbf16>, vector<32x96xbf16>, vector<8x96xf32> -> vector<8x96xf32>
    %216 = vector.broadcast %10 : vector<1x96xf32> to vector<8x96xf32>
    %217 = arith.addf %215, %216 : vector<8x96xf32>
    %218 = vector.extract_strided_slice %213 {offsets = [0, 0], sizes = [8, 32], strides = [1, 1]} : vector<8x96xf32> to vector<8x32xf32>
    %219 = vector.extract_strided_slice %217 {offsets = [0, 0], sizes = [8, 32], strides = [1, 1]} : vector<8x96xf32> to vector<8x32xf32>
    %220 = arith.addf %218, %219 : vector<8x32xf32>
    %221 = arith.negf %220 : vector<8x32xf32>
    %222 = math.exp %221 : vector<8x32xf32>
    %cst_57 = arith.constant 1.000000e+00 : f32
    %223 = vector.broadcast %cst_57 : f32 to vector<8x32xf32>
    %224 = arith.addf %223, %222 : vector<8x32xf32>
    %225 = arith.divf %223, %224 : vector<8x32xf32>
    %226 = vector.extract_strided_slice %213 {offsets = [0, 32], sizes = [8, 32], strides = [1, 1]} : vector<8x96xf32> to vector<8x32xf32>
    %227 = vector.extract_strided_slice %217 {offsets = [0, 32], sizes = [8, 32], strides = [1, 1]} : vector<8x96xf32> to vector<8x32xf32>
    %228 = arith.addf %226, %227 : vector<8x32xf32>
    %229 = arith.negf %228 : vector<8x32xf32>
    %230 = math.exp %229 : vector<8x32xf32>
    %cst_58 = arith.constant 1.000000e+00 : f32
    %231 = vector.broadcast %cst_58 : f32 to vector<8x32xf32>
    %232 = arith.addf %231, %230 : vector<8x32xf32>
    %233 = arith.divf %231, %232 : vector<8x32xf32>
    %234 = vector.extract_strided_slice %213 {offsets = [0, 64], sizes = [8, 32], strides = [1, 1]} : vector<8x96xf32> to vector<8x32xf32>
    %235 = vector.extract_strided_slice %217 {offsets = [0, 64], sizes = [8, 32], strides = [1, 1]} : vector<8x96xf32> to vector<8x32xf32>
    %236 = arith.mulf %225, %235 : vector<8x32xf32>
    %237 = arith.addf %234, %236 : vector<8x32xf32>
    %238 = math.tanh %237 : vector<8x32xf32>
    %cst_59 = arith.constant 1.000000e+00 : f32
    %239 = vector.broadcast %cst_59 : f32 to vector<8x32xf32>
    %240 = arith.subf %239, %233 : vector<8x32xf32>
    %241 = arith.mulf %240, %238 : vector<8x32xf32>
    %242 = arith.mulf %233, %205 : vector<8x32xf32>
    %243 = arith.addf %241, %242 : vector<8x32xf32>
    %244 = arith.truncf %243 : vector<8x32xf32> to vector<8x32xbf16>
    %245 = arith.index_cast %210 : i32 to index
    %c0_60 = arith.constant 0 : index
    %246 = vector.load %arg11[%245, %c0_60] : memref<64x32xbf16, #tpu.memory_space<vmem>>, vector<8x32xbf16>
    tpu.vector_store %arg11[%245, %c0_60], %244 {strides = array<i32>} : memref<64x32xbf16, #tpu.memory_space<vmem>>, vector<8x32xbf16>,
    %c6_i32 = arith.constant 6 : i32
    %c8_i32_61 = arith.constant 8 : i32
    %247 = arith.muli %c6_i32, %c8_i32_61 : i32
    %248 = tpu.assume_multiple %247, 8 : i32
    %249 = arith.index_cast %248 : i32 to index
    %c0_62 = arith.constant 0 : index
    %250 = vector.load %arg12[%249, %c0_62] : memref<64x96xbf16, #tpu.memory_space<vmem>>, vector<8x96xbf16>
    %251 = arith.extf %250 : vector<8x96xbf16> to vector<8x96xf32>
    %252 = arith.truncf %243 : vector<8x32xf32> to vector<8x32xbf16>
    %cst_63 = arith.constant dense<0.000000e+00> : vector<8x96xf32>
    %253 = tpu.matmul %252, %6, %cst_63 {dimension_numbers = #tpu.dot_dimension_numbers<[1], [0], [0], [1], [0, 0, 1, 1], [], []>} : vector<8x32xbf16>, vector<32x96xbf16>, vector<8x96xf32> -> vector<8x96xf32>
    %254 = vector.broadcast %10 : vector<1x96xf32> to vector<8x96xf32>
    %255 = arith.addf %253, %254 : vector<8x96xf32>
    %256 = vector.extract_strided_slice %251 {offsets = [0, 0], sizes = [8, 32], strides = [1, 1]} : vector<8x96xf32> to vector<8x32xf32>
    %257 = vector.extract_strided_slice %255 {offsets = [0, 0], sizes = [8, 32], strides = [1, 1]} : vector<8x96xf32> to vector<8x32xf32>
    %258 = arith.addf %256, %257 : vector<8x32xf32>
    %259 = arith.negf %258 : vector<8x32xf32>
    %260 = math.exp %259 : vector<8x32xf32>
    %cst_64 = arith.constant 1.000000e+00 : f32
    %261 = vector.broadcast %cst_64 : f32 to vector<8x32xf32>
    %262 = arith.addf %261, %260 : vector<8x32xf32>
    %263 = arith.divf %261, %262 : vector<8x32xf32>
    %264 = vector.extract_strided_slice %251 {offsets = [0, 32], sizes = [8, 32], strides = [1, 1]} : vector<8x96xf32> to vector<8x32xf32>
    %265 = vector.extract_strided_slice %255 {offsets = [0, 32], sizes = [8, 32], strides = [1, 1]} : vector<8x96xf32> to vector<8x32xf32>
    %266 = arith.addf %264, %265 : vector<8x32xf32>
    %267 = arith.negf %266 : vector<8x32xf32>
    %268 = math.exp %267 : vector<8x32xf32>
    %cst_65 = arith.constant 1.000000e+00 : f32
    %269 = vector.broadcast %cst_65 : f32 to vector<8x32xf32>
    %270 = arith.addf %269, %268 : vector<8x32xf32>
    %271 = arith.divf %269, %270 : vector<8x32xf32>
    %272 = vector.extract_strided_slice %251 {offsets = [0, 64], sizes = [8, 32], strides = [1, 1]} : vector<8x96xf32> to vector<8x32xf32>
    %273 = vector.extract_strided_slice %255 {offsets = [0, 64], sizes = [8, 32], strides = [1, 1]} : vector<8x96xf32> to vector<8x32xf32>
    %274 = arith.mulf %263, %273 : vector<8x32xf32>
    %275 = arith.addf %272, %274 : vector<8x32xf32>
    %276 = math.tanh %275 : vector<8x32xf32>
    %cst_66 = arith.constant 1.000000e+00 : f32
    %277 = vector.broadcast %cst_66 : f32 to vector<8x32xf32>
    %278 = arith.subf %277, %271 : vector<8x32xf32>
    %279 = arith.mulf %278, %276 : vector<8x32xf32>
    %280 = arith.mulf %271, %243 : vector<8x32xf32>
    %281 = arith.addf %279, %280 : vector<8x32xf32>
    %282 = arith.truncf %281 : vector<8x32xf32> to vector<8x32xbf16>
    %283 = arith.index_cast %248 : i32 to index
    %c0_67 = arith.constant 0 : index
    %284 = vector.load %arg11[%283, %c0_67] : memref<64x32xbf16, #tpu.memory_space<vmem>>, vector<8x32xbf16>
    tpu.vector_store %arg11[%283, %c0_67], %282 {strides = array<i32>} : memref<64x32xbf16, #tpu.memory_space<vmem>>, vector<8x32xbf16>,
    %c7_i32 = arith.constant 7 : i32
    %c8_i32_68 = arith.constant 8 : i32
    %285 = arith.muli %c7_i32, %c8_i32_68 : i32
    %286 = tpu.assume_multiple %285, 8 : i32
    %287 = arith.index_cast %286 : i32 to index
    %c0_69 = arith.constant 0 : index
    %288 = vector.load %arg12[%287, %c0_69] : memref<64x96xbf16, #tpu.memory_space<vmem>>, vector<8x96xbf16>
    %289 = arith.extf %288 : vector<8x96xbf16> to vector<8x96xf32>
    %290 = arith.truncf %281 : vector<8x32xf32> to vector<8x32xbf16>
    %cst_70 = arith.constant dense<0.000000e+00> : vector<8x96xf32>
    %291 = tpu.matmul %290, %6, %cst_70 {dimension_numbers = #tpu.dot_dimension_numbers<[1], [0], [0], [1], [0, 0, 1, 1], [], []>} : vector<8x32xbf16>, vector<32x96xbf16>, vector<8x96xf32> -> vector<8x96xf32>
    %292 = vector.broadcast %10 : vector<1x96xf32> to vector<8x96xf32>
    %293 = arith.addf %291, %292 : vector<8x96xf32>
    %294 = vector.extract_strided_slice %289 {offsets = [0, 0], sizes = [8, 32], strides = [1, 1]} : vector<8x96xf32> to vector<8x32xf32>
    %295 = vector.extract_strided_slice %293 {offsets = [0, 0], sizes = [8, 32], strides = [1, 1]} : vector<8x96xf32> to vector<8x32xf32>
    %296 = arith.addf %294, %295 : vector<8x32xf32>
    %297 = arith.negf %296 : vector<8x32xf32>
    %298 = math.exp %297 : vector<8x32xf32>
    %cst_71 = arith.constant 1.000000e+00 : f32
    %299 = vector.broadcast %cst_71 : f32 to vector<8x32xf32>
    %300 = arith.addf %299, %298 : vector<8x32xf32>
    %301 = arith.divf %299, %300 : vector<8x32xf32>
    %302 = vector.extract_strided_slice %289 {offsets = [0, 32], sizes = [8, 32], strides = [1, 1]} : vector<8x96xf32> to vector<8x32xf32>
    %303 = vector.extract_strided_slice %293 {offsets = [0, 32], sizes = [8, 32], strides = [1, 1]} : vector<8x96xf32> to vector<8x32xf32>
    %304 = arith.addf %302, %303 : vector<8x32xf32>
    %305 = arith.negf %304 : vector<8x32xf32>
    %306 = math.exp %305 : vector<8x32xf32>
    %cst_72 = arith.constant 1.000000e+00 : f32
    %307 = vector.broadcast %cst_72 : f32 to vector<8x32xf32>
    %308 = arith.addf %307, %306 : vector<8x32xf32>
    %309 = arith.divf %307, %308 : vector<8x32xf32>
    %310 = vector.extract_strided_slice %289 {offsets = [0, 64], sizes = [8, 32], strides = [1, 1]} : vector<8x96xf32> to vector<8x32xf32>
    %311 = vector.extract_strided_slice %293 {offsets = [0, 64], sizes = [8, 32], strides = [1, 1]} : vector<8x96xf32> to vector<8x32xf32>
    %312 = arith.mulf %301, %311 : vector<8x32xf32>
    %313 = arith.addf %310, %312 : vector<8x32xf32>
    %314 = math.tanh %313 : vector<8x32xf32>
    %cst_73 = arith.constant 1.000000e+00 : f32
    %315 = vector.broadcast %cst_73 : f32 to vector<8x32xf32>
    %316 = arith.subf %315, %309 : vector<8x32xf32>
    %317 = arith.mulf %316, %314 : vector<8x32xf32>
    %318 = arith.mulf %309, %281 : vector<8x32xf32>
    %319 = arith.addf %317, %318 : vector<8x32xf32>
    %320 = arith.truncf %319 : vector<8x32xf32> to vector<8x32xbf16>
    %321 = arith.index_cast %286 : i32 to index
    %c0_74 = arith.constant 0 : index
    %322 = vector.load %arg11[%321, %c0_74] : memref<64x32xbf16, #tpu.memory_space<vmem>>, vector<8x32xbf16>
    tpu.vector_store %arg11[%321, %c0_74], %320 {strides = array<i32>} : memref<64x32xbf16, #tpu.memory_space<vmem>>, vector<8x32xbf16>,
    %c8_i32_75 = arith.constant 8 : i32
    %c0_76 = arith.constant 0 : index
    %c0_77 = arith.constant 0 : index
    %c0_78 = arith.constant 0 : index
    %323 = vector.load %arg10[%c0_76, %c0_77, %c0_78] : memref<2x8x32xf32, #tpu.memory_space<vmem>>, vector<1x8x32xf32>
    %324 = vector.shape_cast %323 : vector<1x8x32xf32> to vector<8x32xf32>
    %325 = vector.shape_cast %319 : vector<8x32xf32> to vector<1x8x32xf32>
    tpu.vector_store %arg10[%c0_76, %c0_77, %c0_78], %325 {strides = array<i32>} : memref<2x8x32xf32, #tpu.memory_space<vmem>>, vector<1x8x32xf32>,
    %c1 = arith.constant 1 : index
    %c0_79 = arith.constant 0 : index
    %c0_80 = arith.constant 0 : index
    %326 = vector.load %arg3[%c1, %c0_79, %c0_80] : memref<2x32x96xbf16, #tpu.memory_space<vmem>>, vector<1x32x96xbf16>
    %327 = vector.shape_cast %326 : vector<1x32x96xbf16> to vector<32x96xbf16>
    %c1_81 = arith.constant 1 : index
    %c0_82 = arith.constant 0 : index
    %c0_83 = arith.constant 0 : index
    %328 = vector.load %arg4[%c1_81, %c0_82, %c0_83] : memref<2x32x96xbf16, #tpu.memory_space<vmem>>, vector<1x32x96xbf16>
    %329 = vector.shape_cast %328 : vector<1x32x96xbf16> to vector<32x96xbf16>
    %c1_84 = arith.constant 1 : index
    %c0_85 = arith.constant 0 : index
    %c0_86 = arith.constant 0 : index
    %330 = vector.load %arg5[%c1_84, %c0_85, %c0_86] : memref<2x1x96xf32, #tpu.memory_space<vmem>>, vector<1x1x96xf32>
    %331 = vector.shape_cast %330 : vector<1x1x96xf32> to vector<1x96xf32>
    %c1_87 = arith.constant 1 : index
    %c0_88 = arith.constant 0 : index
    %c0_89 = arith.constant 0 : index
    %332 = vector.load %arg6[%c1_87, %c0_88, %c0_89] : memref<2x1x96xf32, #tpu.memory_space<vmem>>, vector<1x1x96xf32>
    %333 = vector.shape_cast %332 : vector<1x1x96xf32> to vector<1x96xf32>
    %c0_90 = arith.constant 0 : index
    %c0_91 = arith.constant 0 : index
    %334 = vector.load %arg11[%c0_90, %c0_91] : memref<64x32xbf16, #tpu.memory_space<vmem>>, vector<64x32xbf16>
    %cst_92 = arith.constant dense<0.000000e+00> : vector<64x96xf32>
    %335 = tpu.matmul %334, %327, %cst_92 {dimension_numbers = #tpu.dot_dimension_numbers<[1], [0], [0], [1], [0, 0, 1, 1], [], []>} : vector<64x32xbf16>, vector<32x96xbf16>, vector<64x96xf32> -> vector<64x96xf32>
    %336 = vector.broadcast %331 : vector<1x96xf32> to vector<64x96xf32>
    %337 = arith.addf %335, %336 : vector<64x96xf32>
    %338 = arith.truncf %337 : vector<64x96xf32> to vector<64x96xbf16>
    %c0_93 = arith.constant 0 : index
    %c0_94 = arith.constant 0 : index
    %339 = vector.load %arg12[%c0_93, %c0_94] : memref<64x96xbf16, #tpu.memory_space<vmem>>, vector<64x96xbf16>
    tpu.vector_store %arg12[%c0_93, %c0_94], %338 {strides = array<i32>} : memref<64x96xbf16, #tpu.memory_space<vmem>>, vector<64x96xbf16>,
    %c1_95 = arith.constant 1 : index
    %c0_96 = arith.constant 0 : index
    %c0_97 = arith.constant 0 : index
    %340 = vector.load %arg10[%c1_95, %c0_96, %c0_97] : memref<2x8x32xf32, #tpu.memory_space<vmem>>, vector<1x8x32xf32>
    %341 = vector.shape_cast %340 : vector<1x8x32xf32> to vector<8x32xf32>
    %c0_i32_98 = arith.constant 0 : i32
    %c8_i32_99 = arith.constant 8 : i32
    %342 = arith.muli %c0_i32_98, %c8_i32_99 : i32
    %343 = tpu.assume_multiple %342, 8 : i32
    %344 = arith.index_cast %343 : i32 to index
    %c0_100 = arith.constant 0 : index
    %345 = vector.load %arg12[%344, %c0_100] : memref<64x96xbf16, #tpu.memory_space<vmem>>, vector<8x96xbf16>
    %346 = arith.extf %345 : vector<8x96xbf16> to vector<8x96xf32>
    %347 = arith.truncf %341 : vector<8x32xf32> to vector<8x32xbf16>
    %cst_101 = arith.constant dense<0.000000e+00> : vector<8x96xf32>
    %348 = tpu.matmul %347, %329, %cst_101 {dimension_numbers = #tpu.dot_dimension_numbers<[1], [0], [0], [1], [0, 0, 1, 1], [], []>} : vector<8x32xbf16>, vector<32x96xbf16>, vector<8x96xf32> -> vector<8x96xf32>
    %349 = vector.broadcast %333 : vector<1x96xf32> to vector<8x96xf32>
    %350 = arith.addf %348, %349 : vector<8x96xf32>
    %351 = vector.extract_strided_slice %346 {offsets = [0, 0], sizes = [8, 32], strides = [1, 1]} : vector<8x96xf32> to vector<8x32xf32>
    %352 = vector.extract_strided_slice %350 {offsets = [0, 0], sizes = [8, 32], strides = [1, 1]} : vector<8x96xf32> to vector<8x32xf32>
    %353 = arith.addf %351, %352 : vector<8x32xf32>
    %354 = arith.negf %353 : vector<8x32xf32>
    %355 = math.exp %354 : vector<8x32xf32>
    %cst_102 = arith.constant 1.000000e+00 : f32
    %356 = vector.broadcast %cst_102 : f32 to vector<8x32xf32>
    %357 = arith.addf %356, %355 : vector<8x32xf32>
    %358 = arith.divf %356, %357 : vector<8x32xf32>
    %359 = vector.extract_strided_slice %346 {offsets = [0, 32], sizes = [8, 32], strides = [1, 1]} : vector<8x96xf32> to vector<8x32xf32>
    %360 = vector.extract_strided_slice %350 {offsets = [0, 32], sizes = [8, 32], strides = [1, 1]} : vector<8x96xf32> to vector<8x32xf32>
    %361 = arith.addf %359, %360 : vector<8x32xf32>
    %362 = arith.negf %361 : vector<8x32xf32>
    %363 = math.exp %362 : vector<8x32xf32>
    %cst_103 = arith.constant 1.000000e+00 : f32
    %364 = vector.broadcast %cst_103 : f32 to vector<8x32xf32>
    %365 = arith.addf %364, %363 : vector<8x32xf32>
    %366 = arith.divf %364, %365 : vector<8x32xf32>
    %367 = vector.extract_strided_slice %346 {offsets = [0, 64], sizes = [8, 32], strides = [1, 1]} : vector<8x96xf32> to vector<8x32xf32>
    %368 = vector.extract_strided_slice %350 {offsets = [0, 64], sizes = [8, 32], strides = [1, 1]} : vector<8x96xf32> to vector<8x32xf32>
    %369 = arith.mulf %358, %368 : vector<8x32xf32>
    %370 = arith.addf %367, %369 : vector<8x32xf32>
    %371 = math.tanh %370 : vector<8x32xf32>
    %cst_104 = arith.constant 1.000000e+00 : f32
    %372 = vector.broadcast %cst_104 : f32 to vector<8x32xf32>
    %373 = arith.subf %372, %366 : vector<8x32xf32>
    %374 = arith.mulf %373, %371 : vector<8x32xf32>
    %375 = arith.mulf %366, %341 : vector<8x32xf32>
    %376 = arith.addf %374, %375 : vector<8x32xf32>
    %377 = arith.truncf %376 : vector<8x32xf32> to vector<8x32xbf16>
    %378 = arith.index_cast %343 : i32 to index
    %c0_105 = arith.constant 0 : index
    %379 = vector.load %arg11[%378, %c0_105] : memref<64x32xbf16, #tpu.memory_space<vmem>>, vector<8x32xbf16>
    tpu.vector_store %arg11[%378, %c0_105], %377 {strides = array<i32>} : memref<64x32xbf16, #tpu.memory_space<vmem>>, vector<8x32xbf16>,
    %c1_i32_106 = arith.constant 1 : i32
    %c8_i32_107 = arith.constant 8 : i32
    %380 = arith.muli %c1_i32_106, %c8_i32_107 : i32
    %381 = tpu.assume_multiple %380, 8 : i32
    %382 = arith.index_cast %381 : i32 to index
    %c0_108 = arith.constant 0 : index
    %383 = vector.load %arg12[%382, %c0_108] : memref<64x96xbf16, #tpu.memory_space<vmem>>, vector<8x96xbf16>
    %384 = arith.extf %383 : vector<8x96xbf16> to vector<8x96xf32>
    %385 = arith.truncf %376 : vector<8x32xf32> to vector<8x32xbf16>
    %cst_109 = arith.constant dense<0.000000e+00> : vector<8x96xf32>
    %386 = tpu.matmul %385, %329, %cst_109 {dimension_numbers = #tpu.dot_dimension_numbers<[1], [0], [0], [1], [0, 0, 1, 1], [], []>} : vector<8x32xbf16>, vector<32x96xbf16>, vector<8x96xf32> -> vector<8x96xf32>
    %387 = vector.broadcast %333 : vector<1x96xf32> to vector<8x96xf32>
    %388 = arith.addf %386, %387 : vector<8x96xf32>
    %389 = vector.extract_strided_slice %384 {offsets = [0, 0], sizes = [8, 32], strides = [1, 1]} : vector<8x96xf32> to vector<8x32xf32>
    %390 = vector.extract_strided_slice %388 {offsets = [0, 0], sizes = [8, 32], strides = [1, 1]} : vector<8x96xf32> to vector<8x32xf32>
    %391 = arith.addf %389, %390 : vector<8x32xf32>
    %392 = arith.negf %391 : vector<8x32xf32>
    %393 = math.exp %392 : vector<8x32xf32>
    %cst_110 = arith.constant 1.000000e+00 : f32
    %394 = vector.broadcast %cst_110 : f32 to vector<8x32xf32>
    %395 = arith.addf %394, %393 : vector<8x32xf32>
    %396 = arith.divf %394, %395 : vector<8x32xf32>
    %397 = vector.extract_strided_slice %384 {offsets = [0, 32], sizes = [8, 32], strides = [1, 1]} : vector<8x96xf32> to vector<8x32xf32>
    %398 = vector.extract_strided_slice %388 {offsets = [0, 32], sizes = [8, 32], strides = [1, 1]} : vector<8x96xf32> to vector<8x32xf32>
    %399 = arith.addf %397, %398 : vector<8x32xf32>
    %400 = arith.negf %399 : vector<8x32xf32>
    %401 = math.exp %400 : vector<8x32xf32>
    %cst_111 = arith.constant 1.000000e+00 : f32
    %402 = vector.broadcast %cst_111 : f32 to vector<8x32xf32>
    %403 = arith.addf %402, %401 : vector<8x32xf32>
    %404 = arith.divf %402, %403 : vector<8x32xf32>
    %405 = vector.extract_strided_slice %384 {offsets = [0, 64], sizes = [8, 32], strides = [1, 1]} : vector<8x96xf32> to vector<8x32xf32>
    %406 = vector.extract_strided_slice %388 {offsets = [0, 64], sizes = [8, 32], strides = [1, 1]} : vector<8x96xf32> to vector<8x32xf32>
    %407 = arith.mulf %396, %406 : vector<8x32xf32>
    %408 = arith.addf %405, %407 : vector<8x32xf32>
    %409 = math.tanh %408 : vector<8x32xf32>
    %cst_112 = arith.constant 1.000000e+00 : f32
    %410 = vector.broadcast %cst_112 : f32 to vector<8x32xf32>
    %411 = arith.subf %410, %404 : vector<8x32xf32>
    %412 = arith.mulf %411, %409 : vector<8x32xf32>
    %413 = arith.mulf %404, %376 : vector<8x32xf32>
    %414 = arith.addf %412, %413 : vector<8x32xf32>
    %415 = arith.truncf %414 : vector<8x32xf32> to vector<8x32xbf16>
    %416 = arith.index_cast %381 : i32 to index
    %c0_113 = arith.constant 0 : index
    %417 = vector.load %arg11[%416, %c0_113] : memref<64x32xbf16, #tpu.memory_space<vmem>>, vector<8x32xbf16>
    tpu.vector_store %arg11[%416, %c0_113], %415 {strides = array<i32>} : memref<64x32xbf16, #tpu.memory_space<vmem>>, vector<8x32xbf16>,
    %c2_i32_114 = arith.constant 2 : i32
    %c8_i32_115 = arith.constant 8 : i32
    %418 = arith.muli %c2_i32_114, %c8_i32_115 : i32
    %419 = tpu.assume_multiple %418, 8 : i32
    %420 = arith.index_cast %419 : i32 to index
    %c0_116 = arith.constant 0 : index
    %421 = vector.load %arg12[%420, %c0_116] : memref<64x96xbf16, #tpu.memory_space<vmem>>, vector<8x96xbf16>
    %422 = arith.extf %421 : vector<8x96xbf16> to vector<8x96xf32>
    %423 = arith.truncf %414 : vector<8x32xf32> to vector<8x32xbf16>
    %cst_117 = arith.constant dense<0.000000e+00> : vector<8x96xf32>
    %424 = tpu.matmul %423, %329, %cst_117 {dimension_numbers = #tpu.dot_dimension_numbers<[1], [0], [0], [1], [0, 0, 1, 1], [], []>} : vector<8x32xbf16>, vector<32x96xbf16>, vector<8x96xf32> -> vector<8x96xf32>
    %425 = vector.broadcast %333 : vector<1x96xf32> to vector<8x96xf32>
    %426 = arith.addf %424, %425 : vector<8x96xf32>
    %427 = vector.extract_strided_slice %422 {offsets = [0, 0], sizes = [8, 32], strides = [1, 1]} : vector<8x96xf32> to vector<8x32xf32>
    %428 = vector.extract_strided_slice %426 {offsets = [0, 0], sizes = [8, 32], strides = [1, 1]} : vector<8x96xf32> to vector<8x32xf32>
    %429 = arith.addf %427, %428 : vector<8x32xf32>
    %430 = arith.negf %429 : vector<8x32xf32>
    %431 = math.exp %430 : vector<8x32xf32>
    %cst_118 = arith.constant 1.000000e+00 : f32
    %432 = vector.broadcast %cst_118 : f32 to vector<8x32xf32>
    %433 = arith.addf %432, %431 : vector<8x32xf32>
    %434 = arith.divf %432, %433 : vector<8x32xf32>
    %435 = vector.extract_strided_slice %422 {offsets = [0, 32], sizes = [8, 32], strides = [1, 1]} : vector<8x96xf32> to vector<8x32xf32>
    %436 = vector.extract_strided_slice %426 {offsets = [0, 32], sizes = [8, 32], strides = [1, 1]} : vector<8x96xf32> to vector<8x32xf32>
    %437 = arith.addf %435, %436 : vector<8x32xf32>
    %438 = arith.negf %437 : vector<8x32xf32>
    %439 = math.exp %438 : vector<8x32xf32>
    %cst_119 = arith.constant 1.000000e+00 : f32
    %440 = vector.broadcast %cst_119 : f32 to vector<8x32xf32>
    %441 = arith.addf %440, %439 : vector<8x32xf32>
    %442 = arith.divf %440, %441 : vector<8x32xf32>
    %443 = vector.extract_strided_slice %422 {offsets = [0, 64], sizes = [8, 32], strides = [1, 1]} : vector<8x96xf32> to vector<8x32xf32>
    %444 = vector.extract_strided_slice %426 {offsets = [0, 64], sizes = [8, 32], strides = [1, 1]} : vector<8x96xf32> to vector<8x32xf32>
    %445 = arith.mulf %434, %444 : vector<8x32xf32>
    %446 = arith.addf %443, %445 : vector<8x32xf32>
    %447 = math.tanh %446 : vector<8x32xf32>
    %cst_120 = arith.constant 1.000000e+00 : f32
    %448 = vector.broadcast %cst_120 : f32 to vector<8x32xf32>
    %449 = arith.subf %448, %442 : vector<8x32xf32>
    %450 = arith.mulf %449, %447 : vector<8x32xf32>
    %451 = arith.mulf %442, %414 : vector<8x32xf32>
    %452 = arith.addf %450, %451 : vector<8x32xf32>
    %453 = arith.truncf %452 : vector<8x32xf32> to vector<8x32xbf16>
    %454 = arith.index_cast %419 : i32 to index
    %c0_121 = arith.constant 0 : index
    %455 = vector.load %arg11[%454, %c0_121] : memref<64x32xbf16, #tpu.memory_space<vmem>>, vector<8x32xbf16>
    tpu.vector_store %arg11[%454, %c0_121], %453 {strides = array<i32>} : memref<64x32xbf16, #tpu.memory_space<vmem>>, vector<8x32xbf16>,
    %c3_i32_122 = arith.constant 3 : i32
    %c8_i32_123 = arith.constant 8 : i32
    %456 = arith.muli %c3_i32_122, %c8_i32_123 : i32
    %457 = tpu.assume_multiple %456, 8 : i32
    %458 = arith.index_cast %457 : i32 to index
    %c0_124 = arith.constant 0 : index
    %459 = vector.load %arg12[%458, %c0_124] : memref<64x96xbf16, #tpu.memory_space<vmem>>, vector<8x96xbf16>
    %460 = arith.extf %459 : vector<8x96xbf16> to vector<8x96xf32>
    %461 = arith.truncf %452 : vector<8x32xf32> to vector<8x32xbf16>
    %cst_125 = arith.constant dense<0.000000e+00> : vector<8x96xf32>
    %462 = tpu.matmul %461, %329, %cst_125 {dimension_numbers = #tpu.dot_dimension_numbers<[1], [0], [0], [1], [0, 0, 1, 1], [], []>} : vector<8x32xbf16>, vector<32x96xbf16>, vector<8x96xf32> -> vector<8x96xf32>
    %463 = vector.broadcast %333 : vector<1x96xf32> to vector<8x96xf32>
    %464 = arith.addf %462, %463 : vector<8x96xf32>
    %465 = vector.extract_strided_slice %460 {offsets = [0, 0], sizes = [8, 32], strides = [1, 1]} : vector<8x96xf32> to vector<8x32xf32>
    %466 = vector.extract_strided_slice %464 {offsets = [0, 0], sizes = [8, 32], strides = [1, 1]} : vector<8x96xf32> to vector<8x32xf32>
    %467 = arith.addf %465, %466 : vector<8x32xf32>
    %468 = arith.negf %467 : vector<8x32xf32>
    %469 = math.exp %468 : vector<8x32xf32>
    %cst_126 = arith.constant 1.000000e+00 : f32
    %470 = vector.broadcast %cst_126 : f32 to vector<8x32xf32>
    %471 = arith.addf %470, %469 : vector<8x32xf32>
    %472 = arith.divf %470, %471 : vector<8x32xf32>
    %473 = vector.extract_strided_slice %460 {offsets = [0, 32], sizes = [8, 32], strides = [1, 1]} : vector<8x96xf32> to vector<8x32xf32>
    %474 = vector.extract_strided_slice %464 {offsets = [0, 32], sizes = [8, 32], strides = [1, 1]} : vector<8x96xf32> to vector<8x32xf32>
    %475 = arith.addf %473, %474 : vector<8x32xf32>
    %476 = arith.negf %475 : vector<8x32xf32>
    %477 = math.exp %476 : vector<8x32xf32>
    %cst_127 = arith.constant 1.000000e+00 : f32
    %478 = vector.broadcast %cst_127 : f32 to vector<8x32xf32>
    %479 = arith.addf %478, %477 : vector<8x32xf32>
    %480 = arith.divf %478, %479 : vector<8x32xf32>
    %481 = vector.extract_strided_slice %460 {offsets = [0, 64], sizes = [8, 32], strides = [1, 1]} : vector<8x96xf32> to vector<8x32xf32>
    %482 = vector.extract_strided_slice %464 {offsets = [0, 64], sizes = [8, 32], strides = [1, 1]} : vector<8x96xf32> to vector<8x32xf32>
    %483 = arith.mulf %472, %482 : vector<8x32xf32>
    %484 = arith.addf %481, %483 : vector<8x32xf32>
    %485 = math.tanh %484 : vector<8x32xf32>
    %cst_128 = arith.constant 1.000000e+00 : f32
    %486 = vector.broadcast %cst_128 : f32 to vector<8x32xf32>
    %487 = arith.subf %486, %480 : vector<8x32xf32>
    %488 = arith.mulf %487, %485 : vector<8x32xf32>
    %489 = arith.mulf %480, %452 : vector<8x32xf32>
    %490 = arith.addf %488, %489 : vector<8x32xf32>
    %491 = arith.truncf %490 : vector<8x32xf32> to vector<8x32xbf16>
    %492 = arith.index_cast %457 : i32 to index
    %c0_129 = arith.constant 0 : index
    %493 = vector.load %arg11[%492, %c0_129] : memref<64x32xbf16, #tpu.memory_space<vmem>>, vector<8x32xbf16>
    tpu.vector_store %arg11[%492, %c0_129], %491 {strides = array<i32>} : memref<64x32xbf16, #tpu.memory_space<vmem>>, vector<8x32xbf16>,
    %c4_i32_130 = arith.constant 4 : i32
    %c8_i32_131 = arith.constant 8 : i32
    %494 = arith.muli %c4_i32_130, %c8_i32_131 : i32
    %495 = tpu.assume_multiple %494, 8 : i32
    %496 = arith.index_cast %495 : i32 to index
    %c0_132 = arith.constant 0 : index
    %497 = vector.load %arg12[%496, %c0_132] : memref<64x96xbf16, #tpu.memory_space<vmem>>, vector<8x96xbf16>
    %498 = arith.extf %497 : vector<8x96xbf16> to vector<8x96xf32>
    %499 = arith.truncf %490 : vector<8x32xf32> to vector<8x32xbf16>
    %cst_133 = arith.constant dense<0.000000e+00> : vector<8x96xf32>
    %500 = tpu.matmul %499, %329, %cst_133 {dimension_numbers = #tpu.dot_dimension_numbers<[1], [0], [0], [1], [0, 0, 1, 1], [], []>} : vector<8x32xbf16>, vector<32x96xbf16>, vector<8x96xf32> -> vector<8x96xf32>
    %501 = vector.broadcast %333 : vector<1x96xf32> to vector<8x96xf32>
    %502 = arith.addf %500, %501 : vector<8x96xf32>
    %503 = vector.extract_strided_slice %498 {offsets = [0, 0], sizes = [8, 32], strides = [1, 1]} : vector<8x96xf32> to vector<8x32xf32>
    %504 = vector.extract_strided_slice %502 {offsets = [0, 0], sizes = [8, 32], strides = [1, 1]} : vector<8x96xf32> to vector<8x32xf32>
    %505 = arith.addf %503, %504 : vector<8x32xf32>
    %506 = arith.negf %505 : vector<8x32xf32>
    %507 = math.exp %506 : vector<8x32xf32>
    %cst_134 = arith.constant 1.000000e+00 : f32
    %508 = vector.broadcast %cst_134 : f32 to vector<8x32xf32>
    %509 = arith.addf %508, %507 : vector<8x32xf32>
    %510 = arith.divf %508, %509 : vector<8x32xf32>
    %511 = vector.extract_strided_slice %498 {offsets = [0, 32], sizes = [8, 32], strides = [1, 1]} : vector<8x96xf32> to vector<8x32xf32>
    %512 = vector.extract_strided_slice %502 {offsets = [0, 32], sizes = [8, 32], strides = [1, 1]} : vector<8x96xf32> to vector<8x32xf32>
    %513 = arith.addf %511, %512 : vector<8x32xf32>
    %514 = arith.negf %513 : vector<8x32xf32>
    %515 = math.exp %514 : vector<8x32xf32>
    %cst_135 = arith.constant 1.000000e+00 : f32
    %516 = vector.broadcast %cst_135 : f32 to vector<8x32xf32>
    %517 = arith.addf %516, %515 : vector<8x32xf32>
    %518 = arith.divf %516, %517 : vector<8x32xf32>
    %519 = vector.extract_strided_slice %498 {offsets = [0, 64], sizes = [8, 32], strides = [1, 1]} : vector<8x96xf32> to vector<8x32xf32>
    %520 = vector.extract_strided_slice %502 {offsets = [0, 64], sizes = [8, 32], strides = [1, 1]} : vector<8x96xf32> to vector<8x32xf32>
    %521 = arith.mulf %510, %520 : vector<8x32xf32>
    %522 = arith.addf %519, %521 : vector<8x32xf32>
    %523 = math.tanh %522 : vector<8x32xf32>
    %cst_136 = arith.constant 1.000000e+00 : f32
    %524 = vector.broadcast %cst_136 : f32 to vector<8x32xf32>
    %525 = arith.subf %524, %518 : vector<8x32xf32>
    %526 = arith.mulf %525, %523 : vector<8x32xf32>
    %527 = arith.mulf %518, %490 : vector<8x32xf32>
    %528 = arith.addf %526, %527 : vector<8x32xf32>
    %529 = arith.truncf %528 : vector<8x32xf32> to vector<8x32xbf16>
    %530 = arith.index_cast %495 : i32 to index
    %c0_137 = arith.constant 0 : index
    %531 = vector.load %arg11[%530, %c0_137] : memref<64x32xbf16, #tpu.memory_space<vmem>>, vector<8x32xbf16>
    tpu.vector_store %arg11[%530, %c0_137], %529 {strides = array<i32>} : memref<64x32xbf16, #tpu.memory_space<vmem>>, vector<8x32xbf16>,
    %c5_i32_138 = arith.constant 5 : i32
    %c8_i32_139 = arith.constant 8 : i32
    %532 = arith.muli %c5_i32_138, %c8_i32_139 : i32
    %533 = tpu.assume_multiple %532, 8 : i32
    %534 = arith.index_cast %533 : i32 to index
    %c0_140 = arith.constant 0 : index
    %535 = vector.load %arg12[%534, %c0_140] : memref<64x96xbf16, #tpu.memory_space<vmem>>, vector<8x96xbf16>
    %536 = arith.extf %535 : vector<8x96xbf16> to vector<8x96xf32>
    %537 = arith.truncf %528 : vector<8x32xf32> to vector<8x32xbf16>
    %cst_141 = arith.constant dense<0.000000e+00> : vector<8x96xf32>
    %538 = tpu.matmul %537, %329, %cst_141 {dimension_numbers = #tpu.dot_dimension_numbers<[1], [0], [0], [1], [0, 0, 1, 1], [], []>} : vector<8x32xbf16>, vector<32x96xbf16>, vector<8x96xf32> -> vector<8x96xf32>
    %539 = vector.broadcast %333 : vector<1x96xf32> to vector<8x96xf32>
    %540 = arith.addf %538, %539 : vector<8x96xf32>
    %541 = vector.extract_strided_slice %536 {offsets = [0, 0], sizes = [8, 32], strides = [1, 1]} : vector<8x96xf32> to vector<8x32xf32>
    %542 = vector.extract_strided_slice %540 {offsets = [0, 0], sizes = [8, 32], strides = [1, 1]} : vector<8x96xf32> to vector<8x32xf32>
    %543 = arith.addf %541, %542 : vector<8x32xf32>
    %544 = arith.negf %543 : vector<8x32xf32>
    %545 = math.exp %544 : vector<8x32xf32>
    %cst_142 = arith.constant 1.000000e+00 : f32
    %546 = vector.broadcast %cst_142 : f32 to vector<8x32xf32>
    %547 = arith.addf %546, %545 : vector<8x32xf32>
    %548 = arith.divf %546, %547 : vector<8x32xf32>
    %549 = vector.extract_strided_slice %536 {offsets = [0, 32], sizes = [8, 32], strides = [1, 1]} : vector<8x96xf32> to vector<8x32xf32>
    %550 = vector.extract_strided_slice %540 {offsets = [0, 32], sizes = [8, 32], strides = [1, 1]} : vector<8x96xf32> to vector<8x32xf32>
    %551 = arith.addf %549, %550 : vector<8x32xf32>
    %552 = arith.negf %551 : vector<8x32xf32>
    %553 = math.exp %552 : vector<8x32xf32>
    %cst_143 = arith.constant 1.000000e+00 : f32
    %554 = vector.broadcast %cst_143 : f32 to vector<8x32xf32>
    %555 = arith.addf %554, %553 : vector<8x32xf32>
    %556 = arith.divf %554, %555 : vector<8x32xf32>
    %557 = vector.extract_strided_slice %536 {offsets = [0, 64], sizes = [8, 32], strides = [1, 1]} : vector<8x96xf32> to vector<8x32xf32>
    %558 = vector.extract_strided_slice %540 {offsets = [0, 64], sizes = [8, 32], strides = [1, 1]} : vector<8x96xf32> to vector<8x32xf32>
    %559 = arith.mulf %548, %558 : vector<8x32xf32>
    %560 = arith.addf %557, %559 : vector<8x32xf32>
    %561 = math.tanh %560 : vector<8x32xf32>
    %cst_144 = arith.constant 1.000000e+00 : f32
    %562 = vector.broadcast %cst_144 : f32 to vector<8x32xf32>
    %563 = arith.subf %562, %556 : vector<8x32xf32>
    %564 = arith.mulf %563, %561 : vector<8x32xf32>
    %565 = arith.mulf %556, %528 : vector<8x32xf32>
    %566 = arith.addf %564, %565 : vector<8x32xf32>
    %567 = arith.truncf %566 : vector<8x32xf32> to vector<8x32xbf16>
    %568 = arith.index_cast %533 : i32 to index
    %c0_145 = arith.constant 0 : index
    %569 = vector.load %arg11[%568, %c0_145] : memref<64x32xbf16, #tpu.memory_space<vmem>>, vector<8x32xbf16>
    tpu.vector_store %arg11[%568, %c0_145], %567 {strides = array<i32>} : memref<64x32xbf16, #tpu.memory_space<vmem>>, vector<8x32xbf16>,
    %c6_i32_146 = arith.constant 6 : i32
    %c8_i32_147 = arith.constant 8 : i32
    %570 = arith.muli %c6_i32_146, %c8_i32_147 : i32
    %571 = tpu.assume_multiple %570, 8 : i32
    %572 = arith.index_cast %571 : i32 to index
    %c0_148 = arith.constant 0 : index
    %573 = vector.load %arg12[%572, %c0_148] : memref<64x96xbf16, #tpu.memory_space<vmem>>, vector<8x96xbf16>
    %574 = arith.extf %573 : vector<8x96xbf16> to vector<8x96xf32>
    %575 = arith.truncf %566 : vector<8x32xf32> to vector<8x32xbf16>
    %cst_149 = arith.constant dense<0.000000e+00> : vector<8x96xf32>
    %576 = tpu.matmul %575, %329, %cst_149 {dimension_numbers = #tpu.dot_dimension_numbers<[1], [0], [0], [1], [0, 0, 1, 1], [], []>} : vector<8x32xbf16>, vector<32x96xbf16>, vector<8x96xf32> -> vector<8x96xf32>
    %577 = vector.broadcast %333 : vector<1x96xf32> to vector<8x96xf32>
    %578 = arith.addf %576, %577 : vector<8x96xf32>
    %579 = vector.extract_strided_slice %574 {offsets = [0, 0], sizes = [8, 32], strides = [1, 1]} : vector<8x96xf32> to vector<8x32xf32>
    %580 = vector.extract_strided_slice %578 {offsets = [0, 0], sizes = [8, 32], strides = [1, 1]} : vector<8x96xf32> to vector<8x32xf32>
    %581 = arith.addf %579, %580 : vector<8x32xf32>
    %582 = arith.negf %581 : vector<8x32xf32>
    %583 = math.exp %582 : vector<8x32xf32>
    %cst_150 = arith.constant 1.000000e+00 : f32
    %584 = vector.broadcast %cst_150 : f32 to vector<8x32xf32>
    %585 = arith.addf %584, %583 : vector<8x32xf32>
    %586 = arith.divf %584, %585 : vector<8x32xf32>
    %587 = vector.extract_strided_slice %574 {offsets = [0, 32], sizes = [8, 32], strides = [1, 1]} : vector<8x96xf32> to vector<8x32xf32>
    %588 = vector.extract_strided_slice %578 {offsets = [0, 32], sizes = [8, 32], strides = [1, 1]} : vector<8x96xf32> to vector<8x32xf32>
    %589 = arith.addf %587, %588 : vector<8x32xf32>
    %590 = arith.negf %589 : vector<8x32xf32>
    %591 = math.exp %590 : vector<8x32xf32>
    %cst_151 = arith.constant 1.000000e+00 : f32
    %592 = vector.broadcast %cst_151 : f32 to vector<8x32xf32>
    %593 = arith.addf %592, %591 : vector<8x32xf32>
    %594 = arith.divf %592, %593 : vector<8x32xf32>
    %595 = vector.extract_strided_slice %574 {offsets = [0, 64], sizes = [8, 32], strides = [1, 1]} : vector<8x96xf32> to vector<8x32xf32>
    %596 = vector.extract_strided_slice %578 {offsets = [0, 64], sizes = [8, 32], strides = [1, 1]} : vector<8x96xf32> to vector<8x32xf32>
    %597 = arith.mulf %586, %596 : vector<8x32xf32>
    %598 = arith.addf %595, %597 : vector<8x32xf32>
    %599 = math.tanh %598 : vector<8x32xf32>
    %cst_152 = arith.constant 1.000000e+00 : f32
    %600 = vector.broadcast %cst_152 : f32 to vector<8x32xf32>
    %601 = arith.subf %600, %594 : vector<8x32xf32>
    %602 = arith.mulf %601, %599 : vector<8x32xf32>
    %603 = arith.mulf %594, %566 : vector<8x32xf32>
    %604 = arith.addf %602, %603 : vector<8x32xf32>
    %605 = arith.truncf %604 : vector<8x32xf32> to vector<8x32xbf16>
    %606 = arith.index_cast %571 : i32 to index
    %c0_153 = arith.constant 0 : index
    %607 = vector.load %arg11[%606, %c0_153] : memref<64x32xbf16, #tpu.memory_space<vmem>>, vector<8x32xbf16>
    tpu.vector_store %arg11[%606, %c0_153], %605 {strides = array<i32>} : memref<64x32xbf16, #tpu.memory_space<vmem>>, vector<8x32xbf16>,
    %c7_i32_154 = arith.constant 7 : i32
    %c8_i32_155 = arith.constant 8 : i32
    %608 = arith.muli %c7_i32_154, %c8_i32_155 : i32
    %609 = tpu.assume_multiple %608, 8 : i32
    %610 = arith.index_cast %609 : i32 to index
    %c0_156 = arith.constant 0 : index
    %611 = vector.load %arg12[%610, %c0_156] : memref<64x96xbf16, #tpu.memory_space<vmem>>, vector<8x96xbf16>
    %612 = arith.extf %611 : vector<8x96xbf16> to vector<8x96xf32>
    %613 = arith.truncf %604 : vector<8x32xf32> to vector<8x32xbf16>
    %cst_157 = arith.constant dense<0.000000e+00> : vector<8x96xf32>
    %614 = tpu.matmul %613, %329, %cst_157 {dimension_numbers = #tpu.dot_dimension_numbers<[1], [0], [0], [1], [0, 0, 1, 1], [], []>} : vector<8x32xbf16>, vector<32x96xbf16>, vector<8x96xf32> -> vector<8x96xf32>
    %615 = vector.broadcast %333 : vector<1x96xf32> to vector<8x96xf32>
    %616 = arith.addf %614, %615 : vector<8x96xf32>
    %617 = vector.extract_strided_slice %612 {offsets = [0, 0], sizes = [8, 32], strides = [1, 1]} : vector<8x96xf32> to vector<8x32xf32>
    %618 = vector.extract_strided_slice %616 {offsets = [0, 0], sizes = [8, 32], strides = [1, 1]} : vector<8x96xf32> to vector<8x32xf32>
    %619 = arith.addf %617, %618 : vector<8x32xf32>
    %620 = arith.negf %619 : vector<8x32xf32>
    %621 = math.exp %620 : vector<8x32xf32>
    %cst_158 = arith.constant 1.000000e+00 : f32
    %622 = vector.broadcast %cst_158 : f32 to vector<8x32xf32>
    %623 = arith.addf %622, %621 : vector<8x32xf32>
    %624 = arith.divf %622, %623 : vector<8x32xf32>
    %625 = vector.extract_strided_slice %612 {offsets = [0, 32], sizes = [8, 32], strides = [1, 1]} : vector<8x96xf32> to vector<8x32xf32>
    %626 = vector.extract_strided_slice %616 {offsets = [0, 32], sizes = [8, 32], strides = [1, 1]} : vector<8x96xf32> to vector<8x32xf32>
    %627 = arith.addf %625, %626 : vector<8x32xf32>
    %628 = arith.negf %627 : vector<8x32xf32>
    %629 = math.exp %628 : vector<8x32xf32>
    %cst_159 = arith.constant 1.000000e+00 : f32
    %630 = vector.broadcast %cst_159 : f32 to vector<8x32xf32>
    %631 = arith.addf %630, %629 : vector<8x32xf32>
    %632 = arith.divf %630, %631 : vector<8x32xf32>
    %633 = vector.extract_strided_slice %612 {offsets = [0, 64], sizes = [8, 32], strides = [1, 1]} : vector<8x96xf32> to vector<8x32xf32>
    %634 = vector.extract_strided_slice %616 {offsets = [0, 64], sizes = [8, 32], strides = [1, 1]} : vector<8x96xf32> to vector<8x32xf32>
    %635 = arith.mulf %624, %634 : vector<8x32xf32>
    %636 = arith.addf %633, %635 : vector<8x32xf32>
    %637 = math.tanh %636 : vector<8x32xf32>
    %cst_160 = arith.constant 1.000000e+00 : f32
    %638 = vector.broadcast %cst_160 : f32 to vector<8x32xf32>
    %639 = arith.subf %638, %632 : vector<8x32xf32>
    %640 = arith.mulf %639, %637 : vector<8x32xf32>
    %641 = arith.mulf %632, %604 : vector<8x32xf32>
    %642 = arith.addf %640, %641 : vector<8x32xf32>
    %643 = arith.truncf %642 : vector<8x32xf32> to vector<8x32xbf16>
    %644 = arith.index_cast %609 : i32 to index
    %c0_161 = arith.constant 0 : index
    %645 = vector.load %arg11[%644, %c0_161] : memref<64x32xbf16, #tpu.memory_space<vmem>>, vector<8x32xbf16>
    tpu.vector_store %arg11[%644, %c0_161], %643 {strides = array<i32>} : memref<64x32xbf16, #tpu.memory_space<vmem>>, vector<8x32xbf16>,
    %c8_i32_162 = arith.constant 8 : i32
    %c1_163 = arith.constant 1 : index
    %c0_164 = arith.constant 0 : index
    %c0_165 = arith.constant 0 : index
    %646 = vector.load %arg10[%c1_163, %c0_164, %c0_165] : memref<2x8x32xf32, #tpu.memory_space<vmem>>, vector<1x8x32xf32>
    %647 = vector.shape_cast %646 : vector<1x8x32xf32> to vector<8x32xf32>
    %648 = vector.shape_cast %642 : vector<8x32xf32> to vector<1x8x32xf32>
    tpu.vector_store %arg10[%c1_163, %c0_164, %c0_165], %648 {strides = array<i32>} : memref<2x8x32xf32, #tpu.memory_space<vmem>>, vector<1x8x32xf32>,
    %c0_166 = arith.constant 0 : index
    %c0_167 = arith.constant 0 : index
    %649 = vector.load %arg11[%c0_166, %c0_167] : memref<64x32xbf16, #tpu.memory_space<vmem>>, vector<64x32xbf16>
    %c0_168 = arith.constant 0 : index
    %c0_169 = arith.constant 0 : index
    %650 = vector.load %arg7[%c0_168, %c0_169] : memref<32x128xbf16, #tpu.memory_space<vmem>>, vector<32x128xbf16>
    %cst_170 = arith.constant dense<0.000000e+00> : vector<64x128xf32>
    %651 = tpu.matmul %649, %650, %cst_170 {dimension_numbers = #tpu.dot_dimension_numbers<[1], [0], [0], [1], [0, 0, 1, 1], [], []>} : vector<64x32xbf16>, vector<32x128xbf16>, vector<64x128xf32> -> vector<64x128xf32>
    %c0_171 = arith.constant 0 : index
    %c0_172 = arith.constant 0 : index
    %652 = vector.load %arg8[%c0_171, %c0_172] : memref<1x128xf32, #tpu.memory_space<vmem>>, vector<1x128xf32>
    %653 = vector.broadcast %652 : vector<1x128xf32> to vector<64x128xf32>
    %654 = arith.addf %651, %653 : vector<64x128xf32>
    %cst_173 = arith.constant dense<0xFF800000> : vector<64xf32>
    %655 = vector.multi_reduction <maximumf>, %654, %cst_173 [1] : vector<64x128xf32> to vector<64xf32>
    %656 = vector.shape_cast %655 : vector<64xf32> to vector<64x1xf32>
    %657 = vector.broadcast %656 : vector<64x1xf32> to vector<64x128xf32>
    %658 = arith.subf %654, %657 : vector<64x128xf32>
    %659 = math.exp %658 : vector<64x128xf32>
    %cst_174 = arith.constant dense<0.000000e+00> : vector<64xf32>
    %660 = vector.multi_reduction <add>, %659, %cst_174 [1] : vector<64x128xf32> to vector<64xf32>
    %661 = vector.shape_cast %660 : vector<64xf32> to vector<64x1xf32>
    %662 = vector.broadcast %661 : vector<64x1xf32> to vector<64x128xf32>
    %663 = arith.divf %659, %662 : vector<64x128xf32>
    %c0_175 = arith.constant 0 : index
    %c0_176 = arith.constant 0 : index
    %664 = vector.load %arg9[%c0_175, %c0_176] : memref<64x128xf32, #tpu.memory_space<vmem>>, vector<64x128xf32>
    tpu.vector_store %arg9[%c0_175, %c0_176], %663 {strides = array<i32>} : memref<64x128xf32, #tpu.memory_space<vmem>>, vector<64x128xf32>,
    return
  }
  func.func @transform_0(%arg0: i32) -> (i32, i32) {
    %c0_i32 = arith.constant 0 : i32
    %c0_i32_0 = arith.constant 0 : i32
    return %arg0, %c0_i32 : i32, i32
  }
  func.func @transform_1(%arg0: i32) -> (i32, i32, i32) {
    %c0_i32 = arith.constant 0 : i32
    %c0_i32_0 = arith.constant 0 : i32
    %c0_i32_1 = arith.constant 0 : i32
    %c0_i32_2 = arith.constant 0 : i32
    return %c0_i32, %c0_i32_0, %c0_i32_1 : i32, i32, i32
  }
  func.func @transform_2(%arg0: i32) -> (i32, i32, i32) {
    %c0_i32 = arith.constant 0 : i32
    %c0_i32_0 = arith.constant 0 : i32
    %c0_i32_1 = arith.constant 0 : i32
    %c0_i32_2 = arith.constant 0 : i32
    return %c0_i32, %c0_i32_0, %c0_i32_1 : i32, i32, i32
  }
  func.func @transform_3(%arg0: i32) -> (i32, i32, i32) {
    %c0_i32 = arith.constant 0 : i32
    %c0_i32_0 = arith.constant 0 : i32
    %c0_i32_1 = arith.constant 0 : i32
    %c0_i32_2 = arith.constant 0 : i32
    return %c0_i32, %c0_i32_0, %c0_i32_1 : i32, i32, i32
  }
  func.func @transform_4(%arg0: i32) -> (i32, i32, i32) {
    %c0_i32 = arith.constant 0 : i32
    %c0_i32_0 = arith.constant 0 : i32
    %c0_i32_1 = arith.constant 0 : i32
    %c0_i32_2 = arith.constant 0 : i32
    return %c0_i32, %c0_i32_0, %c0_i32_1 : i32, i32, i32
  }
  func.func @transform_5(%arg0: i32) -> (i32, i32, i32) {
    %c0_i32 = arith.constant 0 : i32
    %c0_i32_0 = arith.constant 0 : i32
    %c0_i32_1 = arith.constant 0 : i32
    %c0_i32_2 = arith.constant 0 : i32
    return %c0_i32, %c0_i32_0, %c0_i32_1 : i32, i32, i32
  }
  func.func @transform_6(%arg0: i32) -> (i32, i32) {
    %c0_i32 = arith.constant 0 : i32
    %c0_i32_0 = arith.constant 0 : i32
    %c0_i32_1 = arith.constant 0 : i32
    return %c0_i32, %c0_i32_0 : i32, i32
  }
  func.func @transform_7(%arg0: i32) -> (i32, i32) {
    %c0_i32 = arith.constant 0 : i32
    %c0_i32_0 = arith.constant 0 : i32
    %c0_i32_1 = arith.constant 0 : i32
    return %c0_i32, %c0_i32_0 : i32, i32
  }
  func.func @transform_8(%arg0: i32) -> (i32, i32) {
    %c0_i32 = arith.constant 0 : i32
    %c0_i32_0 = arith.constant 0 : i32
    return %arg0, %c0_i32 : i32, i32
  }
  func.func @transform_9(%arg0: i32) -> (i32, i32, i32) {
    %c0_i32 = arith.constant 0 : i32
    %c0_i32_0 = arith.constant 0 : i32
    %c0_i32_1 = arith.constant 0 : i32
    %c0_i32_2 = arith.constant 0 : i32
    return %c0_i32, %c0_i32_0, %c0_i32_1 : i32, i32, i32
  }
}

module attributes {stable_mosaic.version = 11 : i64} {
  func.func @_gru_decoder_kernel(%arg0: i32, %arg1: memref<64x32xbf16, #tpu.memory_space<vmem>>, %arg2: memref<2x8x32xf32, #tpu.memory_space<vmem>>, %arg3: memref<2x32x96xbf16, #tpu.memory_space<vmem>>, %arg4: memref<2x32x96xbf16, #tpu.memory_space<vmem>>, %arg5: memref<2x1x96xf32, #tpu.memory_space<vmem>>, %arg6: memref<2x1x96xf32, #tpu.memory_space<vmem>>, %arg7: memref<32x128xbf16, #tpu.memory_space<vmem>>, %arg8: memref<1x128xf32, #tpu.memory_space<vmem>>, %arg9: memref<64x128xf32, #tpu.memory_space<vmem>>, %arg10: memref<2x8x32xf32, #tpu.memory_space<vmem>>, %arg11: memref<64x32xbf16, #tpu.memory_space<vmem>>, %arg12: memref<64x96xbf16, #tpu.memory_space<vmem>>) attributes {dimension_semantics = [#tpu.dimension_semantics<arbitrary>], iteration_bounds = array<i64: 1>, scalar_prefetch = 0 : i64, scratch_operands = 2 : i64, tpu.core_type = #tpu.core_type<tc>, window_params = [{transform_indices = @transform_0, window_bounds = array<i64: 64, 32>}, {pipeline_mode = #tpu.pipeline_mode<synchronous>, transform_indices = @transform_1, window_bounds = array<i64: 2, 8, 32>}, {pipeline_mode = #tpu.pipeline_mode<synchronous>, transform_indices = @transform_2, window_bounds = array<i64: 2, 32, 96>}, {pipeline_mode = #tpu.pipeline_mode<synchronous>, transform_indices = @transform_3, window_bounds = array<i64: 2, 32, 96>}, {pipeline_mode = #tpu.pipeline_mode<synchronous>, transform_indices = @transform_4, window_bounds = array<i64: 2, 1, 96>}, {pipeline_mode = #tpu.pipeline_mode<synchronous>, transform_indices = @transform_5, window_bounds = array<i64: 2, 1, 96>}, {pipeline_mode = #tpu.pipeline_mode<synchronous>, transform_indices = @transform_6, window_bounds = array<i64: 32, 128>}, {pipeline_mode = #tpu.pipeline_mode<synchronous>, transform_indices = @transform_7, window_bounds = array<i64: 1, 128>}, {transform_indices = @transform_8, window_bounds = array<i64: 64, 128>}, {pipeline_mode = #tpu.pipeline_mode<synchronous>, transform_indices = @transform_9, window_bounds = array<i64: 2, 8, 32>}]} {
    %c0_i32 = arith.constant 0 : i32
    %0 = arith.cmpi eq, %arg0, %c0_i32 : i32
    %1 = arith.extui %0 : i1 to i32
    %c0_i32_0 = arith.constant 0 : i32
    %2 = arith.cmpi ne, %1, %c0_i32_0 : i32
    scf.if %2 {
      %c0_177 = arith.constant 0 : index
      %c0_178 = arith.constant 0 : index
      %c0_179 = arith.constant 0 : index
      %665 = vector.load %arg2[%c0_177, %c0_178, %c0_179] : memref<2x8x32xf32, #tpu.memory_space<vmem>>, vector<2x8x32xf32>
      %c0_180 = arith.constant 0 : index
      %c0_181 = arith.constant 0 : index
      %c0_182 = arith.constant 0 : index
      %666 = vector.load %arg10[%c0_180, %c0_181, %c0_182] : memref<2x8x32xf32, #tpu.memory_space<vmem>>, vector<2x8x32xf32>
      tpu.vector_store %arg10[%c0_180, %c0_181, %c0_182], %665 {strides = array<i32>} : memref<2x8x32xf32, #tpu.memory_space<vmem>>, vector<2x8x32xf32>,
    } else {
    }
    %c0 = arith.constant 0 : index
    %c0_1 = arith.constant 0 : index
    %c0_2 = arith.constant 0 : index
    %3 = vector.load %arg3[%c0, %c0_1, %c0_2] : memref<2x32x96xbf16, #tpu.memory_space<vmem>>, vector<1x32x96xbf16>
    %4 = vector.shape_cast %3 : vector<1x32x96xbf16> to vector<32x96xbf16>
    %c0_3 = arith.constant 0 : index
    %c0_4 = arith.constant 0 : index
    %c0_5 = arith.constant 0 : index
    %5 = vector.load %arg4[%c0_3, %c0_4, %c0_5] : memref<2x32x96xbf16, #tpu.memory_space<vmem>>, vector<1x32x96xbf16>
    %6 = vector.shape_cast %5 : vector<1x32x96xbf16> to vector<32x96xbf16>
    %c0_6 = arith.constant 0 : index
    %c0_7 = arith.constant 0 : index
    %c0_8 = arith.constant 0 : index
    %7 = vector.load %arg5[%c0_6, %c0_7, %c0_8] : memref<2x1x96xf32, #tpu.memory_space<vmem>>, vector<1x1x96xf32>
    %8 = vector.shape_cast %7 : vector<1x1x96xf32> to vector<1x96xf32>
    %c0_9 = arith.constant 0 : index
    %c0_10 = arith.constant 0 : index
    %c0_11 = arith.constant 0 : index
    %9 = vector.load %arg6[%c0_9, %c0_10, %c0_11] : memref<2x1x96xf32, #tpu.memory_space<vmem>>, vector<1x1x96xf32>
    %10 = vector.shape_cast %9 : vector<1x1x96xf32> to vector<1x96xf32>
    %c0_12 = arith.constant 0 : index
    %c0_13 = arith.constant 0 : index
    %11 = vector.load %arg1[%c0_12, %c0_13] : memref<64x32xbf16, #tpu.memory_space<vmem>>, vector<64x32xbf16>
    %cst = arith.constant dense<0.000000e+00> : vector<64x96xf32>
    %12 = tpu.matmul %11, %4, %cst {dimension_numbers = #tpu.dot_dimension_numbers<[1], [0], [0], [1], [0, 0, 1, 1], [], []>} : vector<64x32xbf16>, vector<32x96xbf16>, vector<64x96xf32> -> vector<64x96xf32>
    %13 = vector.broadcast %8 : vector<1x96xf32> to vector<64x96xf32>
    %14 = arith.addf %12, %13 : vector<64x96xf32>
    %15 = arith.truncf %14 : vector<64x96xf32> to vector<64x96xbf16>
    %c0_14 = arith.constant 0 : index
    %c0_15 = arith.constant 0 : index
    %16 = vector.load %arg12[%c0_14, %c0_15] : memref<64x96xbf16, #tpu.memory_space<vmem>>, vector<64x96xbf16>
    tpu.vector_store %arg12[%c0_14, %c0_15], %15 {strides = array<i32>} : memref<64x96xbf16, #tpu.memory_space<vmem>>, vector<64x96xbf16>,
    %c0_16 = arith.constant 0 : index
    %c0_17 = arith.constant 0 : index
    %c0_18 = arith.constant 0 : index
    %17 = vector.load %arg10[%c0_16, %c0_17, %c0_18] : memref<2x8x32xf32, #tpu.memory_space<vmem>>, vector<1x8x32xf32>
    %18 = vector.shape_cast %17 : vector<1x8x32xf32> to vector<8x32xf32>
    %c0_i32_19 = arith.constant 0 : i32
    %c8_i32 = arith.constant 8 : i32
    %19 = arith.muli %c0_i32_19, %c8_i32 : i32
    %20 = tpu.assume_multiple %19, 8 : i32
    %21 = arith.index_cast %20 : i32 to index
    %c0_20 = arith.constant 0 : index
    %22 = vector.load %arg12[%21, %c0_20] : memref<64x96xbf16, #tpu.memory_space<vmem>>, vector<8x96xbf16>
    %23 = arith.extf %22 : vector<8x96xbf16> to vector<8x96xf32>
    %24 = arith.truncf %18 : vector<8x32xf32> to vector<8x32xbf16>
    %cst_21 = arith.constant dense<0.000000e+00> : vector<8x96xf32>
    %25 = tpu.matmul %24, %6, %cst_21 {dimension_numbers = #tpu.dot_dimension_numbers<[1], [0], [0], [1], [0, 0, 1, 1], [], []>} : vector<8x32xbf16>, vector<32x96xbf16>, vector<8x96xf32> -> vector<8x96xf32>
    %26 = vector.broadcast %10 : vector<1x96xf32> to vector<8x96xf32>
    %27 = arith.addf %25, %26 : vector<8x96xf32>
    %28 = vector.extract_strided_slice %23 {offsets = [0, 0], sizes = [8, 32], strides = [1, 1]} : vector<8x96xf32> to vector<8x32xf32>
    %29 = vector.extract_strided_slice %27 {offsets = [0, 0], sizes = [8, 32], strides = [1, 1]} : vector<8x96xf32> to vector<8x32xf32>
    %30 = arith.addf %28, %29 : vector<8x32xf32>
    %31 = arith.negf %30 : vector<8x32xf32>
    %32 = math.exp %31 : vector<8x32xf32>
    %cst_22 = arith.constant 1.000000e+00 : f32
    %33 = vector.broadcast %cst_22 : f32 to vector<8x32xf32>
    %34 = arith.addf %33, %32 : vector<8x32xf32>
    %35 = arith.divf %33, %34 : vector<8x32xf32>
    %36 = vector.extract_strided_slice %23 {offsets = [0, 32], sizes = [8, 32], strides = [1, 1]} : vector<8x96xf32> to vector<8x32xf32>
    %37 = vector.extract_strided_slice %27 {offsets = [0, 32], sizes = [8, 32], strides = [1, 1]} : vector<8x96xf32> to vector<8x32xf32>
    %38 = arith.addf %36, %37 : vector<8x32xf32>
    %39 = arith.negf %38 : vector<8x32xf32>
    %40 = math.exp %39 : vector<8x32xf32>
    %cst_23 = arith.constant 1.000000e+00 : f32
    %41 = vector.broadcast %cst_23 : f32 to vector<8x32xf32>
    %42 = arith.addf %41, %40 : vector<8x32xf32>
    %43 = arith.divf %41, %42 : vector<8x32xf32>
    %44 = vector.extract_strided_slice %23 {offsets = [0, 64], sizes = [8, 32], strides = [1, 1]} : vector<8x96xf32> to vector<8x32xf32>
    %45 = vector.extract_strided_slice %27 {offsets = [0, 64], sizes = [8, 32], strides = [1, 1]} : vector<8x96xf32> to vector<8x32xf32>
    %46 = arith.mulf %35, %45 : vector<8x32xf32>
    %47 = arith.addf %44, %46 : vector<8x32xf32>
    %48 = math.tanh %47 : vector<8x32xf32>
    %cst_24 = arith.constant 1.000000e+00 : f32
    %49 = vector.broadcast %cst_24 : f32 to vector<8x32xf32>
    %50 = arith.subf %49, %43 : vector<8x32xf32>
    %51 = arith.mulf %50, %48 : vector<8x32xf32>
    %52 = arith.mulf %43, %18 : vector<8x32xf32>
    %53 = arith.addf %51, %52 : vector<8x32xf32>
    %54 = arith.truncf %53 : vector<8x32xf32> to vector<8x32xbf16>
    %55 = arith.index_cast %20 : i32 to index
    %c0_25 = arith.constant 0 : index
    %56 = vector.load %arg11[%55, %c0_25] : memref<64x32xbf16, #tpu.memory_space<vmem>>, vector<8x32xbf16>
    tpu.vector_store %arg11[%55, %c0_25], %54 {strides = array<i32>} : memref<64x32xbf16, #tpu.memory_space<vmem>>, vector<8x32xbf16>,
    %c1_i32 = arith.constant 1 : i32
    %c8_i32_26 = arith.constant 8 : i32
    %57 = arith.muli %c1_i32, %c8_i32_26 : i32
    %58 = tpu.assume_multiple %57, 8 : i32
    %59 = arith.index_cast %58 : i32 to index
    %c0_27 = arith.constant 0 : index
    %60 = vector.load %arg12[%59, %c0_27] : memref<64x96xbf16, #tpu.memory_space<vmem>>, vector<8x96xbf16>
    %61 = arith.extf %60 : vector<8x96xbf16> to vector<8x96xf32>
    %62 = arith.truncf %53 : vector<8x32xf32> to vector<8x32xbf16>
    %cst_28 = arith.constant dense<0.000000e+00> : vector<8x96xf32>
    %63 = tpu.matmul %62, %6, %cst_28 {dimension_numbers = #tpu.dot_dimension_numbers<[1], [0], [0], [1], [0, 0, 1, 1], [], []>} : vector<8x32xbf16>, vector<32x96xbf16>, vector<8x96xf32> -> vector<8x96xf32>
    %64 = vector.broadcast %10 : vector<1x96xf32> to vector<8x96xf32>
    %65 = arith.addf %63, %64 : vector<8x96xf32>
    %66 = vector.extract_strided_slice %61 {offsets = [0, 0], sizes = [8, 32], strides = [1, 1]} : vector<8x96xf32> to vector<8x32xf32>
    %67 = vector.extract_strided_slice %65 {offsets = [0, 0], sizes = [8, 32], strides = [1, 1]} : vector<8x96xf32> to vector<8x32xf32>
    %68 = arith.addf %66, %67 : vector<8x32xf32>
    %69 = arith.negf %68 : vector<8x32xf32>
    %70 = math.exp %69 : vector<8x32xf32>
    %cst_29 = arith.constant 1.000000e+00 : f32
    %71 = vector.broadcast %cst_29 : f32 to vector<8x32xf32>
    %72 = arith.addf %71, %70 : vector<8x32xf32>
    %73 = arith.divf %71, %72 : vector<8x32xf32>
    %74 = vector.extract_strided_slice %61 {offsets = [0, 32], sizes = [8, 32], strides = [1, 1]} : vector<8x96xf32> to vector<8x32xf32>
    %75 = vector.extract_strided_slice %65 {offsets = [0, 32], sizes = [8, 32], strides = [1, 1]} : vector<8x96xf32> to vector<8x32xf32>
    %76 = arith.addf %74, %75 : vector<8x32xf32>
    %77 = arith.negf %76 : vector<8x32xf32>
    %78 = math.exp %77 : vector<8x32xf32>
    %cst_30 = arith.constant 1.000000e+00 : f32
    %79 = vector.broadcast %cst_30 : f32 to vector<8x32xf32>
    %80 = arith.addf %79, %78 : vector<8x32xf32>
    %81 = arith.divf %79, %80 : vector<8x32xf32>
    %82 = vector.extract_strided_slice %61 {offsets = [0, 64], sizes = [8, 32], strides = [1, 1]} : vector<8x96xf32> to vector<8x32xf32>
    %83 = vector.extract_strided_slice %65 {offsets = [0, 64], sizes = [8, 32], strides = [1, 1]} : vector<8x96xf32> to vector<8x32xf32>
    %84 = arith.mulf %73, %83 : vector<8x32xf32>
    %85 = arith.addf %82, %84 : vector<8x32xf32>
    %86 = math.tanh %85 : vector<8x32xf32>
    %cst_31 = arith.constant 1.000000e+00 : f32
    %87 = vector.broadcast %cst_31 : f32 to vector<8x32xf32>
    %88 = arith.subf %87, %81 : vector<8x32xf32>
    %89 = arith.mulf %88, %86 : vector<8x32xf32>
    %90 = arith.mulf %81, %53 : vector<8x32xf32>
    %91 = arith.addf %89, %90 : vector<8x32xf32>
    %92 = arith.truncf %91 : vector<8x32xf32> to vector<8x32xbf16>
    %93 = arith.index_cast %58 : i32 to index
    %c0_32 = arith.constant 0 : index
    %94 = vector.load %arg11[%93, %c0_32] : memref<64x32xbf16, #tpu.memory_space<vmem>>, vector<8x32xbf16>
    tpu.vector_store %arg11[%93, %c0_32], %92 {strides = array<i32>} : memref<64x32xbf16, #tpu.memory_space<vmem>>, vector<8x32xbf16>,
    %c2_i32 = arith.constant 2 : i32
    %c8_i32_33 = arith.constant 8 : i32
    %95 = arith.muli %c2_i32, %c8_i32_33 : i32
    %96 = tpu.assume_multiple %95, 8 : i32
    %97 = arith.index_cast %96 : i32 to index
    %c0_34 = arith.constant 0 : index
    %98 = vector.load %arg12[%97, %c0_34] : memref<64x96xbf16, #tpu.memory_space<vmem>>, vector<8x96xbf16>
    %99 = arith.extf %98 : vector<8x96xbf16> to vector<8x96xf32>
    %100 = arith.truncf %91 : vector<8x32xf32> to vector<8x32xbf16>
    %cst_35 = arith.constant dense<0.000000e+00> : vector<8x96xf32>
    %101 = tpu.matmul %100, %6, %cst_35 {dimension_numbers = #tpu.dot_dimension_numbers<[1], [0], [0], [1], [0, 0, 1, 1], [], []>} : vector<8x32xbf16>, vector<32x96xbf16>, vector<8x96xf32> -> vector<8x96xf32>
    %102 = vector.broadcast %10 : vector<1x96xf32> to vector<8x96xf32>
    %103 = arith.addf %101, %102 : vector<8x96xf32>
    %104 = vector.extract_strided_slice %99 {offsets = [0, 0], sizes = [8, 32], strides = [1, 1]} : vector<8x96xf32> to vector<8x32xf32>
    %105 = vector.extract_strided_slice %103 {offsets = [0, 0], sizes = [8, 32], strides = [1, 1]} : vector<8x96xf32> to vector<8x32xf32>
    %106 = arith.addf %104, %105 : vector<8x32xf32>
    %107 = arith.negf %106 : vector<8x32xf32>
    %108 = math.exp %107 : vector<8x32xf32>
    %cst_36 = arith.constant 1.000000e+00 : f32
    %109 = vector.broadcast %cst_36 : f32 to vector<8x32xf32>
    %110 = arith.addf %109, %108 : vector<8x32xf32>
    %111 = arith.divf %109, %110 : vector<8x32xf32>
    %112 = vector.extract_strided_slice %99 {offsets = [0, 32], sizes = [8, 32], strides = [1, 1]} : vector<8x96xf32> to vector<8x32xf32>
    %113 = vector.extract_strided_slice %103 {offsets = [0, 32], sizes = [8, 32], strides = [1, 1]} : vector<8x96xf32> to vector<8x32xf32>
    %114 = arith.addf %112, %113 : vector<8x32xf32>
    %115 = arith.negf %114 : vector<8x32xf32>
    %116 = math.exp %115 : vector<8x32xf32>
    %cst_37 = arith.constant 1.000000e+00 : f32
    %117 = vector.broadcast %cst_37 : f32 to vector<8x32xf32>
    %118 = arith.addf %117, %116 : vector<8x32xf32>
    %119 = arith.divf %117, %118 : vector<8x32xf32>
    %120 = vector.extract_strided_slice %99 {offsets = [0, 64], sizes = [8, 32], strides = [1, 1]} : vector<8x96xf32> to vector<8x32xf32>
    %121 = vector.extract_strided_slice %103 {offsets = [0, 64], sizes = [8, 32], strides = [1, 1]} : vector<8x96xf32> to vector<8x32xf32>
    %122 = arith.mulf %111, %121 : vector<8x32xf32>
    %123 = arith.addf %120, %122 : vector<8x32xf32>
    %124 = math.tanh %123 : vector<8x32xf32>
    %cst_38 = arith.constant 1.000000e+00 : f32
    %125 = vector.broadcast %cst_38 : f32 to vector<8x32xf32>
    %126 = arith.subf %125, %119 : vector<8x32xf32>
    %127 = arith.mulf %126, %124 : vector<8x32xf32>
    %128 = arith.mulf %119, %91 : vector<8x32xf32>
    %129 = arith.addf %127, %128 : vector<8x32xf32>
    %130 = arith.truncf %129 : vector<8x32xf32> to vector<8x32xbf16>
    %131 = arith.index_cast %96 : i32 to index
    %c0_39 = arith.constant 0 : index
    %132 = vector.load %arg11[%131, %c0_39] : memref<64x32xbf16, #tpu.memory_space<vmem>>, vector<8x32xbf16>
    tpu.vector_store %arg11[%131, %c0_39], %130 {strides = array<i32>} : memref<64x32xbf16, #tpu.memory_space<vmem>>, vector<8x32xbf16>,
    %c3_i32 = arith.constant 3 : i32
    %c8_i32_40 = arith.constant 8 : i32
    %133 = arith.muli %c3_i32, %c8_i32_40 : i32
    %134 = tpu.assume_multiple %133, 8 : i32
    %135 = arith.index_cast %134 : i32 to index
    %c0_41 = arith.constant 0 : index
    %136 = vector.load %arg12[%135, %c0_41] : memref<64x96xbf16, #tpu.memory_space<vmem>>, vector<8x96xbf16>
    %137 = arith.extf %136 : vector<8x96xbf16> to vector<8x96xf32>
    %138 = arith.truncf %129 : vector<8x32xf32> to vector<8x32xbf16>
    %cst_42 = arith.constant dense<0.000000e+00> : vector<8x96xf32>
    %139 = tpu.matmul %138, %6, %cst_42 {dimension_numbers = #tpu.dot_dimension_numbers<[1], [0], [0], [1], [0, 0, 1, 1], [], []>} : vector<8x32xbf16>, vector<32x96xbf16>, vector<8x96xf32> -> vector<8x96xf32>
    %140 = vector.broadcast %10 : vector<1x96xf32> to vector<8x96xf32>
    %141 = arith.addf %139, %140 : vector<8x96xf32>
    %142 = vector.extract_strided_slice %137 {offsets = [0, 0], sizes = [8, 32], strides = [1, 1]} : vector<8x96xf32> to vector<8x32xf32>
    %143 = vector.extract_strided_slice %141 {offsets = [0, 0], sizes = [8, 32], strides = [1, 1]} : vector<8x96xf32> to vector<8x32xf32>
    %144 = arith.addf %142, %143 : vector<8x32xf32>
    %145 = arith.negf %144 : vector<8x32xf32>
    %146 = math.exp %145 : vector<8x32xf32>
    %cst_43 = arith.constant 1.000000e+00 : f32
    %147 = vector.broadcast %cst_43 : f32 to vector<8x32xf32>
    %148 = arith.addf %147, %146 : vector<8x32xf32>
    %149 = arith.divf %147, %148 : vector<8x32xf32>
    %150 = vector.extract_strided_slice %137 {offsets = [0, 32], sizes = [8, 32], strides = [1, 1]} : vector<8x96xf32> to vector<8x32xf32>
    %151 = vector.extract_strided_slice %141 {offsets = [0, 32], sizes = [8, 32], strides = [1, 1]} : vector<8x96xf32> to vector<8x32xf32>
    %152 = arith.addf %150, %151 : vector<8x32xf32>
    %153 = arith.negf %152 : vector<8x32xf32>
    %154 = math.exp %153 : vector<8x32xf32>
    %cst_44 = arith.constant 1.000000e+00 : f32
    %155 = vector.broadcast %cst_44 : f32 to vector<8x32xf32>
    %156 = arith.addf %155, %154 : vector<8x32xf32>
    %157 = arith.divf %155, %156 : vector<8x32xf32>
    %158 = vector.extract_strided_slice %137 {offsets = [0, 64], sizes = [8, 32], strides = [1, 1]} : vector<8x96xf32> to vector<8x32xf32>
    %159 = vector.extract_strided_slice %141 {offsets = [0, 64], sizes = [8, 32], strides = [1, 1]} : vector<8x96xf32> to vector<8x32xf32>
    %160 = arith.mulf %149, %159 : vector<8x32xf32>
    %161 = arith.addf %158, %160 : vector<8x32xf32>
    %162 = math.tanh %161 : vector<8x32xf32>
    %cst_45 = arith.constant 1.000000e+00 : f32
    %163 = vector.broadcast %cst_45 : f32 to vector<8x32xf32>
    %164 = arith.subf %163, %157 : vector<8x32xf32>
    %165 = arith.mulf %164, %162 : vector<8x32xf32>
    %166 = arith.mulf %157, %129 : vector<8x32xf32>
    %167 = arith.addf %165, %166 : vector<8x32xf32>
    %168 = arith.truncf %167 : vector<8x32xf32> to vector<8x32xbf16>
    %169 = arith.index_cast %134 : i32 to index
    %c0_46 = arith.constant 0 : index
    %170 = vector.load %arg11[%169, %c0_46] : memref<64x32xbf16, #tpu.memory_space<vmem>>, vector<8x32xbf16>
    tpu.vector_store %arg11[%169, %c0_46], %168 {strides = array<i32>} : memref<64x32xbf16, #tpu.memory_space<vmem>>, vector<8x32xbf16>,
    %c4_i32 = arith.constant 4 : i32
    %c8_i32_47 = arith.constant 8 : i32
    %171 = arith.muli %c4_i32, %c8_i32_47 : i32
    %172 = tpu.assume_multiple %171, 8 : i32
    %173 = arith.index_cast %172 : i32 to index
    %c0_48 = arith.constant 0 : index
    %174 = vector.load %arg12[%173, %c0_48] : memref<64x96xbf16, #tpu.memory_space<vmem>>, vector<8x96xbf16>
    %175 = arith.extf %174 : vector<8x96xbf16> to vector<8x96xf32>
    %176 = arith.truncf %167 : vector<8x32xf32> to vector<8x32xbf16>
    %cst_49 = arith.constant dense<0.000000e+00> : vector<8x96xf32>
    %177 = tpu.matmul %176, %6, %cst_49 {dimension_numbers = #tpu.dot_dimension_numbers<[1], [0], [0], [1], [0, 0, 1, 1], [], []>} : vector<8x32xbf16>, vector<32x96xbf16>, vector<8x96xf32> -> vector<8x96xf32>
    %178 = vector.broadcast %10 : vector<1x96xf32> to vector<8x96xf32>
    %179 = arith.addf %177, %178 : vector<8x96xf32>
    %180 = vector.extract_strided_slice %175 {offsets = [0, 0], sizes = [8, 32], strides = [1, 1]} : vector<8x96xf32> to vector<8x32xf32>
    %181 = vector.extract_strided_slice %179 {offsets = [0, 0], sizes = [8, 32], strides = [1, 1]} : vector<8x96xf32> to vector<8x32xf32>
    %182 = arith.addf %180, %181 : vector<8x32xf32>
    %183 = arith.negf %182 : vector<8x32xf32>
    %184 = math.exp %183 : vector<8x32xf32>
    %cst_50 = arith.constant 1.000000e+00 : f32
    %185 = vector.broadcast %cst_50 : f32 to vector<8x32xf32>
    %186 = arith.addf %185, %184 : vector<8x32xf32>
    %187 = arith.divf %185, %186 : vector<8x32xf32>
    %188 = vector.extract_strided_slice %175 {offsets = [0, 32], sizes = [8, 32], strides = [1, 1]} : vector<8x96xf32> to vector<8x32xf32>
    %189 = vector.extract_strided_slice %179 {offsets = [0, 32], sizes = [8, 32], strides = [1, 1]} : vector<8x96xf32> to vector<8x32xf32>
    %190 = arith.addf %188, %189 : vector<8x32xf32>
    %191 = arith.negf %190 : vector<8x32xf32>
    %192 = math.exp %191 : vector<8x32xf32>
    %cst_51 = arith.constant 1.000000e+00 : f32
    %193 = vector.broadcast %cst_51 : f32 to vector<8x32xf32>
    %194 = arith.addf %193, %192 : vector<8x32xf32>
    %195 = arith.divf %193, %194 : vector<8x32xf32>
    %196 = vector.extract_strided_slice %175 {offsets = [0, 64], sizes = [8, 32], strides = [1, 1]} : vector<8x96xf32> to vector<8x32xf32>
    %197 = vector.extract_strided_slice %179 {offsets = [0, 64], sizes = [8, 32], strides = [1, 1]} : vector<8x96xf32> to vector<8x32xf32>
    %198 = arith.mulf %187, %197 : vector<8x32xf32>
    %199 = arith.addf %196, %198 : vector<8x32xf32>
    %200 = math.tanh %199 : vector<8x32xf32>
    %cst_52 = arith.constant 1.000000e+00 : f32
    %201 = vector.broadcast %cst_52 : f32 to vector<8x32xf32>
    %202 = arith.subf %201, %195 : vector<8x32xf32>
    %203 = arith.mulf %202, %200 : vector<8x32xf32>
    %204 = arith.mulf %195, %167 : vector<8x32xf32>
    %205 = arith.addf %203, %204 : vector<8x32xf32>
    %206 = arith.truncf %205 : vector<8x32xf32> to vector<8x32xbf16>
    %207 = arith.index_cast %172 : i32 to index
    %c0_53 = arith.constant 0 : index
    %208 = vector.load %arg11[%207, %c0_53] : memref<64x32xbf16, #tpu.memory_space<vmem>>, vector<8x32xbf16>
    tpu.vector_store %arg11[%207, %c0_53], %206 {strides = array<i32>} : memref<64x32xbf16, #tpu.memory_space<vmem>>, vector<8x32xbf16>,
    %c5_i32 = arith.constant 5 : i32
    %c8_i32_54 = arith.constant 8 : i32
    %209 = arith.muli %c5_i32, %c8_i32_54 : i32
    %210 = tpu.assume_multiple %209, 8 : i32
    %211 = arith.index_cast %210 : i32 to index
    %c0_55 = arith.constant 0 : index
    %212 = vector.load %arg12[%211, %c0_55] : memref<64x96xbf16, #tpu.memory_space<vmem>>, vector<8x96xbf16>
    %213 = arith.extf %212 : vector<8x96xbf16> to vector<8x96xf32>
    %214 = arith.truncf %205 : vector<8x32xf32> to vector<8x32xbf16>
    %cst_56 = arith.constant dense<0.000000e+00> : vector<8x96xf32>
    %215 = tpu.matmul %214, %6, %cst_56 {dimension_numbers = #tpu.dot_dimension_numbers<[1], [0], [0], [1], [0, 0, 1, 1], [], []>} : vector<8x32xbf16>, vector<32x96xbf16>, vector<8x96xf32> -> vector<8x96xf32>
    %216 = vector.broadcast %10 : vector<1x96xf32> to vector<8x96xf32>
    %217 = arith.addf %215, %216 : vector<8x96xf32>
    %218 = vector.extract_strided_slice %213 {offsets = [0, 0], sizes = [8, 32], strides = [1, 1]} : vector<8x96xf32> to vector<8x32xf32>
    %219 = vector.extract_strided_slice %217 {offsets = [0, 0], sizes = [8, 32], strides = [1, 1]} : vector<8x96xf32> to vector<8x32xf32>
    %220 = arith.addf %218, %219 : vector<8x32xf32>
    %221 = arith.negf %220 : vector<8x32xf32>
    %222 = math.exp %221 : vector<8x32xf32>
    %cst_57 = arith.constant 1.000000e+00 : f32
    %223 = vector.broadcast %cst_57 : f32 to vector<8x32xf32>
    %224 = arith.addf %223, %222 : vector<8x32xf32>
    %225 = arith.divf %223, %224 : vector<8x32xf32>
    %226 = vector.extract_strided_slice %213 {offsets = [0, 32], sizes = [8, 32], strides = [1, 1]} : vector<8x96xf32> to vector<8x32xf32>
    %227 = vector.extract_strided_slice %217 {offsets = [0, 32], sizes = [8, 32], strides = [1, 1]} : vector<8x96xf32> to vector<8x32xf32>
    %228 = arith.addf %226, %227 : vector<8x32xf32>
    %229 = arith.negf %228 : vector<8x32xf32>
    %230 = math.exp %229 : vector<8x32xf32>
    %cst_58 = arith.constant 1.000000e+00 : f32
    %231 = vector.broadcast %cst_58 : f32 to vector<8x32xf32>
    %232 = arith.addf %231, %230 : vector<8x32xf32>
    %233 = arith.divf %231, %232 : vector<8x32xf32>
    %234 = vector.extract_strided_slice %213 {offsets = [0, 64], sizes = [8, 32], strides = [1, 1]} : vector<8x96xf32> to vector<8x32xf32>
    %235 = vector.extract_strided_slice %217 {offsets = [0, 64], sizes = [8, 32], strides = [1, 1]} : vector<8x96xf32> to vector<8x32xf32>
    %236 = arith.mulf %225, %235 : vector<8x32xf32>
    %237 = arith.addf %234, %236 : vector<8x32xf32>
    %238 = math.tanh %237 : vector<8x32xf32>
    %cst_59 = arith.constant 1.000000e+00 : f32
    %239 = vector.broadcast %cst_59 : f32 to vector<8x32xf32>
    %240 = arith.subf %239, %233 : vector<8x32xf32>
    %241 = arith.mulf %240, %238 : vector<8x32xf32>
    %242 = arith.mulf %233, %205 : vector<8x32xf32>
    %243 = arith.addf %241, %242 : vector<8x32xf32>
    %244 = arith.truncf %243 : vector<8x32xf32> to vector<8x32xbf16>
    %245 = arith.index_cast %210 : i32 to index
    %c0_60 = arith.constant 0 : index
    %246 = vector.load %arg11[%245, %c0_60] : memref<64x32xbf16, #tpu.memory_space<vmem>>, vector<8x32xbf16>
    tpu.vector_store %arg11[%245, %c0_60], %244 {strides = array<i32>} : memref<64x32xbf16, #tpu.memory_space<vmem>>, vector<8x32xbf16>,
    %c6_i32 = arith.constant 6 : i32
    %c8_i32_61 = arith.constant 8 : i32
    %247 = arith.muli %c6_i32, %c8_i32_61 : i32
    %248 = tpu.assume_multiple %247, 8 : i32
    %249 = arith.index_cast %248 : i32 to index
    %c0_62 = arith.constant 0 : index
    %250 = vector.load %arg12[%249, %c0_62] : memref<64x96xbf16, #tpu.memory_space<vmem>>, vector<8x96xbf16>
    %251 = arith.extf %250 : vector<8x96xbf16> to vector<8x96xf32>
    %252 = arith.truncf %243 : vector<8x32xf32> to vector<8x32xbf16>
    %cst_63 = arith.constant dense<0.000000e+00> : vector<8x96xf32>
    %253 = tpu.matmul %252, %6, %cst_63 {dimension_numbers = #tpu.dot_dimension_numbers<[1], [0], [0], [1], [0, 0, 1, 1], [], []>} : vector<8x32xbf16>, vector<32x96xbf16>, vector<8x96xf32> -> vector<8x96xf32>
    %254 = vector.broadcast %10 : vector<1x96xf32> to vector<8x96xf32>
    %255 = arith.addf %253, %254 : vector<8x96xf32>
    %256 = vector.extract_strided_slice %251 {offsets = [0, 0], sizes = [8, 32], strides = [1, 1]} : vector<8x96xf32> to vector<8x32xf32>
    %257 = vector.extract_strided_slice %255 {offsets = [0, 0], sizes = [8, 32], strides = [1, 1]} : vector<8x96xf32> to vector<8x32xf32>
    %258 = arith.addf %256, %257 : vector<8x32xf32>
    %259 = arith.negf %258 : vector<8x32xf32>
    %260 = math.exp %259 : vector<8x32xf32>
    %cst_64 = arith.constant 1.000000e+00 : f32
    %261 = vector.broadcast %cst_64 : f32 to vector<8x32xf32>
    %262 = arith.addf %261, %260 : vector<8x32xf32>
    %263 = arith.divf %261, %262 : vector<8x32xf32>
    %264 = vector.extract_strided_slice %251 {offsets = [0, 32], sizes = [8, 32], strides = [1, 1]} : vector<8x96xf32> to vector<8x32xf32>
    %265 = vector.extract_strided_slice %255 {offsets = [0, 32], sizes = [8, 32], strides = [1, 1]} : vector<8x96xf32> to vector<8x32xf32>
    %266 = arith.addf %264, %265 : vector<8x32xf32>
    %267 = arith.negf %266 : vector<8x32xf32>
    %268 = math.exp %267 : vector<8x32xf32>
    %cst_65 = arith.constant 1.000000e+00 : f32
    %269 = vector.broadcast %cst_65 : f32 to vector<8x32xf32>
    %270 = arith.addf %269, %268 : vector<8x32xf32>
    %271 = arith.divf %269, %270 : vector<8x32xf32>
    %272 = vector.extract_strided_slice %251 {offsets = [0, 64], sizes = [8, 32], strides = [1, 1]} : vector<8x96xf32> to vector<8x32xf32>
    %273 = vector.extract_strided_slice %255 {offsets = [0, 64], sizes = [8, 32], strides = [1, 1]} : vector<8x96xf32> to vector<8x32xf32>
    %274 = arith.mulf %263, %273 : vector<8x32xf32>
    %275 = arith.addf %272, %274 : vector<8x32xf32>
    %276 = math.tanh %275 : vector<8x32xf32>
    %cst_66 = arith.constant 1.000000e+00 : f32
    %277 = vector.broadcast %cst_66 : f32 to vector<8x32xf32>
    %278 = arith.subf %277, %271 : vector<8x32xf32>
    %279 = arith.mulf %278, %276 : vector<8x32xf32>
    %280 = arith.mulf %271, %243 : vector<8x32xf32>
    %281 = arith.addf %279, %280 : vector<8x32xf32>
    %282 = arith.truncf %281 : vector<8x32xf32> to vector<8x32xbf16>
    %283 = arith.index_cast %248 : i32 to index
    %c0_67 = arith.constant 0 : index
    %284 = vector.load %arg11[%283, %c0_67] : memref<64x32xbf16, #tpu.memory_space<vmem>>, vector<8x32xbf16>
    tpu.vector_store %arg11[%283, %c0_67], %282 {strides = array<i32>} : memref<64x32xbf16, #tpu.memory_space<vmem>>, vector<8x32xbf16>,
    %c7_i32 = arith.constant 7 : i32
    %c8_i32_68 = arith.constant 8 : i32
    %285 = arith.muli %c7_i32, %c8_i32_68 : i32
    %286 = tpu.assume_multiple %285, 8 : i32
    %287 = arith.index_cast %286 : i32 to index
    %c0_69 = arith.constant 0 : index
    %288 = vector.load %arg12[%287, %c0_69] : memref<64x96xbf16, #tpu.memory_space<vmem>>, vector<8x96xbf16>
    %289 = arith.extf %288 : vector<8x96xbf16> to vector<8x96xf32>
    %290 = arith.truncf %281 : vector<8x32xf32> to vector<8x32xbf16>
    %cst_70 = arith.constant dense<0.000000e+00> : vector<8x96xf32>
    %291 = tpu.matmul %290, %6, %cst_70 {dimension_numbers = #tpu.dot_dimension_numbers<[1], [0], [0], [1], [0, 0, 1, 1], [], []>} : vector<8x32xbf16>, vector<32x96xbf16>, vector<8x96xf32> -> vector<8x96xf32>
    %292 = vector.broadcast %10 : vector<1x96xf32> to vector<8x96xf32>
    %293 = arith.addf %291, %292 : vector<8x96xf32>
    %294 = vector.extract_strided_slice %289 {offsets = [0, 0], sizes = [8, 32], strides = [1, 1]} : vector<8x96xf32> to vector<8x32xf32>
    %295 = vector.extract_strided_slice %293 {offsets = [0, 0], sizes = [8, 32], strides = [1, 1]} : vector<8x96xf32> to vector<8x32xf32>
    %296 = arith.addf %294, %295 : vector<8x32xf32>
    %297 = arith.negf %296 : vector<8x32xf32>
    %298 = math.exp %297 : vector<8x32xf32>
    %cst_71 = arith.constant 1.000000e+00 : f32
    %299 = vector.broadcast %cst_71 : f32 to vector<8x32xf32>
    %300 = arith.addf %299, %298 : vector<8x32xf32>
    %301 = arith.divf %299, %300 : vector<8x32xf32>
    %302 = vector.extract_strided_slice %289 {offsets = [0, 32], sizes = [8, 32], strides = [1, 1]} : vector<8x96xf32> to vector<8x32xf32>
    %303 = vector.extract_strided_slice %293 {offsets = [0, 32], sizes = [8, 32], strides = [1, 1]} : vector<8x96xf32> to vector<8x32xf32>
    %304 = arith.addf %302, %303 : vector<8x32xf32>
    %305 = arith.negf %304 : vector<8x32xf32>
    %306 = math.exp %305 : vector<8x32xf32>
    %cst_72 = arith.constant 1.000000e+00 : f32
    %307 = vector.broadcast %cst_72 : f32 to vector<8x32xf32>
    %308 = arith.addf %307, %306 : vector<8x32xf32>
    %309 = arith.divf %307, %308 : vector<8x32xf32>
    %310 = vector.extract_strided_slice %289 {offsets = [0, 64], sizes = [8, 32], strides = [1, 1]} : vector<8x96xf32> to vector<8x32xf32>
    %311 = vector.extract_strided_slice %293 {offsets = [0, 64], sizes = [8, 32], strides = [1, 1]} : vector<8x96xf32> to vector<8x32xf32>
    %312 = arith.mulf %301, %311 : vector<8x32xf32>
    %313 = arith.addf %310, %312 : vector<8x32xf32>
    %314 = math.tanh %313 : vector<8x32xf32>
    %cst_73 = arith.constant 1.000000e+00 : f32
    %315 = vector.broadcast %cst_73 : f32 to vector<8x32xf32>
    %316 = arith.subf %315, %309 : vector<8x32xf32>
    %317 = arith.mulf %316, %314 : vector<8x32xf32>
    %318 = arith.mulf %309, %281 : vector<8x32xf32>
    %319 = arith.addf %317, %318 : vector<8x32xf32>
    %320 = arith.truncf %319 : vector<8x32xf32> to vector<8x32xbf16>
    %321 = arith.index_cast %286 : i32 to index
    %c0_74 = arith.constant 0 : index
    %322 = vector.load %arg11[%321, %c0_74] : memref<64x32xbf16, #tpu.memory_space<vmem>>, vector<8x32xbf16>
    tpu.vector_store %arg11[%321, %c0_74], %320 {strides = array<i32>} : memref<64x32xbf16, #tpu.memory_space<vmem>>, vector<8x32xbf16>,
    %c8_i32_75 = arith.constant 8 : i32
    %c0_76 = arith.constant 0 : index
    %c0_77 = arith.constant 0 : index
    %c0_78 = arith.constant 0 : index
    %323 = vector.load %arg10[%c0_76, %c0_77, %c0_78] : memref<2x8x32xf32, #tpu.memory_space<vmem>>, vector<1x8x32xf32>
    %324 = vector.shape_cast %323 : vector<1x8x32xf32> to vector<8x32xf32>
    %325 = vector.shape_cast %319 : vector<8x32xf32> to vector<1x8x32xf32>
    tpu.vector_store %arg10[%c0_76, %c0_77, %c0_78], %325 {strides = array<i32>} : memref<2x8x32xf32, #tpu.memory_space<vmem>>, vector<1x8x32xf32>,
    %c1 = arith.constant 1 : index
    %c0_79 = arith.constant 0 : index
    %c0_80 = arith.constant 0 : index
    %326 = vector.load %arg3[%c1, %c0_79, %c0_80] : memref<2x32x96xbf16, #tpu.memory_space<vmem>>, vector<1x32x96xbf16>
    %327 = vector.shape_cast %326 : vector<1x32x96xbf16> to vector<32x96xbf16>
    %c1_81 = arith.constant 1 : index
    %c0_82 = arith.constant 0 : index
    %c0_83 = arith.constant 0 : index
    %328 = vector.load %arg4[%c1_81, %c0_82, %c0_83] : memref<2x32x96xbf16, #tpu.memory_space<vmem>>, vector<1x32x96xbf16>
    %329 = vector.shape_cast %328 : vector<1x32x96xbf16> to vector<32x96xbf16>
    %c1_84 = arith.constant 1 : index
    %c0_85 = arith.constant 0 : index
    %c0_86 = arith.constant 0 : index
    %330 = vector.load %arg5[%c1_84, %c0_85, %c0_86] : memref<2x1x96xf32, #tpu.memory_space<vmem>>, vector<1x1x96xf32>
    %331 = vector.shape_cast %330 : vector<1x1x96xf32> to vector<1x96xf32>
    %c1_87 = arith.constant 1 : index
    %c0_88 = arith.constant 0 : index
    %c0_89 = arith.constant 0 : index
    %332 = vector.load %arg6[%c1_87, %c0_88, %c0_89] : memref<2x1x96xf32, #tpu.memory_space<vmem>>, vector<1x1x96xf32>
    %333 = vector.shape_cast %332 : vector<1x1x96xf32> to vector<1x96xf32>
    %c0_90 = arith.constant 0 : index
    %c0_91 = arith.constant 0 : index
    %334 = vector.load %arg11[%c0_90, %c0_91] : memref<64x32xbf16, #tpu.memory_space<vmem>>, vector<64x32xbf16>
    %cst_92 = arith.constant dense<0.000000e+00> : vector<64x96xf32>
    %335 = tpu.matmul %334, %327, %cst_92 {dimension_numbers = #tpu.dot_dimension_numbers<[1], [0], [0], [1], [0, 0, 1, 1], [], []>} : vector<64x32xbf16>, vector<32x96xbf16>, vector<64x96xf32> -> vector<64x96xf32>
    %336 = vector.broadcast %331 : vector<1x96xf32> to vector<64x96xf32>
    %337 = arith.addf %335, %336 : vector<64x96xf32>
    %338 = arith.truncf %337 : vector<64x96xf32> to vector<64x96xbf16>
    %c0_93 = arith.constant 0 : index
    %c0_94 = arith.constant 0 : index
    %339 = vector.load %arg12[%c0_93, %c0_94] : memref<64x96xbf16, #tpu.memory_space<vmem>>, vector<64x96xbf16>
    tpu.vector_store %arg12[%c0_93, %c0_94], %338 {strides = array<i32>} : memref<64x96xbf16, #tpu.memory_space<vmem>>, vector<64x96xbf16>,
    %c1_95 = arith.constant 1 : index
    %c0_96 = arith.constant 0 : index
    %c0_97 = arith.constant 0 : index
    %340 = vector.load %arg10[%c1_95, %c0_96, %c0_97] : memref<2x8x32xf32, #tpu.memory_space<vmem>>, vector<1x8x32xf32>
    %341 = vector.shape_cast %340 : vector<1x8x32xf32> to vector<8x32xf32>
    %c0_i32_98 = arith.constant 0 : i32
    %c8_i32_99 = arith.constant 8 : i32
    %342 = arith.muli %c0_i32_98, %c8_i32_99 : i32
    %343 = tpu.assume_multiple %342, 8 : i32
    %344 = arith.index_cast %343 : i32 to index
    %c0_100 = arith.constant 0 : index
    %345 = vector.load %arg12[%344, %c0_100] : memref<64x96xbf16, #tpu.memory_space<vmem>>, vector<8x96xbf16>
    %346 = arith.extf %345 : vector<8x96xbf16> to vector<8x96xf32>
    %347 = arith.truncf %341 : vector<8x32xf32> to vector<8x32xbf16>
    %cst_101 = arith.constant dense<0.000000e+00> : vector<8x96xf32>
    %348 = tpu.matmul %347, %329, %cst_101 {dimension_numbers = #tpu.dot_dimension_numbers<[1], [0], [0], [1], [0, 0, 1, 1], [], []>} : vector<8x32xbf16>, vector<32x96xbf16>, vector<8x96xf32> -> vector<8x96xf32>
    %349 = vector.broadcast %333 : vector<1x96xf32> to vector<8x96xf32>
    %350 = arith.addf %348, %349 : vector<8x96xf32>
    %351 = vector.extract_strided_slice %346 {offsets = [0, 0], sizes = [8, 32], strides = [1, 1]} : vector<8x96xf32> to vector<8x32xf32>
    %352 = vector.extract_strided_slice %350 {offsets = [0, 0], sizes = [8, 32], strides = [1, 1]} : vector<8x96xf32> to vector<8x32xf32>
    %353 = arith.addf %351, %352 : vector<8x32xf32>
    %354 = arith.negf %353 : vector<8x32xf32>
    %355 = math.exp %354 : vector<8x32xf32>
    %cst_102 = arith.constant 1.000000e+00 : f32
    %356 = vector.broadcast %cst_102 : f32 to vector<8x32xf32>
    %357 = arith.addf %356, %355 : vector<8x32xf32>
    %358 = arith.divf %356, %357 : vector<8x32xf32>
    %359 = vector.extract_strided_slice %346 {offsets = [0, 32], sizes = [8, 32], strides = [1, 1]} : vector<8x96xf32> to vector<8x32xf32>
    %360 = vector.extract_strided_slice %350 {offsets = [0, 32], sizes = [8, 32], strides = [1, 1]} : vector<8x96xf32> to vector<8x32xf32>
    %361 = arith.addf %359, %360 : vector<8x32xf32>
    %362 = arith.negf %361 : vector<8x32xf32>
    %363 = math.exp %362 : vector<8x32xf32>
    %cst_103 = arith.constant 1.000000e+00 : f32
    %364 = vector.broadcast %cst_103 : f32 to vector<8x32xf32>
    %365 = arith.addf %364, %363 : vector<8x32xf32>
    %366 = arith.divf %364, %365 : vector<8x32xf32>
    %367 = vector.extract_strided_slice %346 {offsets = [0, 64], sizes = [8, 32], strides = [1, 1]} : vector<8x96xf32> to vector<8x32xf32>
    %368 = vector.extract_strided_slice %350 {offsets = [0, 64], sizes = [8, 32], strides = [1, 1]} : vector<8x96xf32> to vector<8x32xf32>
    %369 = arith.mulf %358, %368 : vector<8x32xf32>
    %370 = arith.addf %367, %369 : vector<8x32xf32>
    %371 = math.tanh %370 : vector<8x32xf32>
    %cst_104 = arith.constant 1.000000e+00 : f32
    %372 = vector.broadcast %cst_104 : f32 to vector<8x32xf32>
    %373 = arith.subf %372, %366 : vector<8x32xf32>
    %374 = arith.mulf %373, %371 : vector<8x32xf32>
    %375 = arith.mulf %366, %341 : vector<8x32xf32>
    %376 = arith.addf %374, %375 : vector<8x32xf32>
    %377 = arith.truncf %376 : vector<8x32xf32> to vector<8x32xbf16>
    %378 = arith.index_cast %343 : i32 to index
    %c0_105 = arith.constant 0 : index
    %379 = vector.load %arg11[%378, %c0_105] : memref<64x32xbf16, #tpu.memory_space<vmem>>, vector<8x32xbf16>
    tpu.vector_store %arg11[%378, %c0_105], %377 {strides = array<i32>} : memref<64x32xbf16, #tpu.memory_space<vmem>>, vector<8x32xbf16>,
    %c1_i32_106 = arith.constant 1 : i32
    %c8_i32_107 = arith.constant 8 : i32
    %380 = arith.muli %c1_i32_106, %c8_i32_107 : i32
    %381 = tpu.assume_multiple %380, 8 : i32
    %382 = arith.index_cast %381 : i32 to index
    %c0_108 = arith.constant 0 : index
    %383 = vector.load %arg12[%382, %c0_108] : memref<64x96xbf16, #tpu.memory_space<vmem>>, vector<8x96xbf16>
    %384 = arith.extf %383 : vector<8x96xbf16> to vector<8x96xf32>
    %385 = arith.truncf %376 : vector<8x32xf32> to vector<8x32xbf16>
    %cst_109 = arith.constant dense<0.000000e+00> : vector<8x96xf32>
    %386 = tpu.matmul %385, %329, %cst_109 {dimension_numbers = #tpu.dot_dimension_numbers<[1], [0], [0], [1], [0, 0, 1, 1], [], []>} : vector<8x32xbf16>, vector<32x96xbf16>, vector<8x96xf32> -> vector<8x96xf32>
    %387 = vector.broadcast %333 : vector<1x96xf32> to vector<8x96xf32>
    %388 = arith.addf %386, %387 : vector<8x96xf32>
    %389 = vector.extract_strided_slice %384 {offsets = [0, 0], sizes = [8, 32], strides = [1, 1]} : vector<8x96xf32> to vector<8x32xf32>
    %390 = vector.extract_strided_slice %388 {offsets = [0, 0], sizes = [8, 32], strides = [1, 1]} : vector<8x96xf32> to vector<8x32xf32>
    %391 = arith.addf %389, %390 : vector<8x32xf32>
    %392 = arith.negf %391 : vector<8x32xf32>
    %393 = math.exp %392 : vector<8x32xf32>
    %cst_110 = arith.constant 1.000000e+00 : f32
    %394 = vector.broadcast %cst_110 : f32 to vector<8x32xf32>
    %395 = arith.addf %394, %393 : vector<8x32xf32>
    %396 = arith.divf %394, %395 : vector<8x32xf32>
    %397 = vector.extract_strided_slice %384 {offsets = [0, 32], sizes = [8, 32], strides = [1, 1]} : vector<8x96xf32> to vector<8x32xf32>
    %398 = vector.extract_strided_slice %388 {offsets = [0, 32], sizes = [8, 32], strides = [1, 1]} : vector<8x96xf32> to vector<8x32xf32>
    %399 = arith.addf %397, %398 : vector<8x32xf32>
    %400 = arith.negf %399 : vector<8x32xf32>
    %401 = math.exp %400 : vector<8x32xf32>
    %cst_111 = arith.constant 1.000000e+00 : f32
    %402 = vector.broadcast %cst_111 : f32 to vector<8x32xf32>
    %403 = arith.addf %402, %401 : vector<8x32xf32>
    %404 = arith.divf %402, %403 : vector<8x32xf32>
    %405 = vector.extract_strided_slice %384 {offsets = [0, 64], sizes = [8, 32], strides = [1, 1]} : vector<8x96xf32> to vector<8x32xf32>
    %406 = vector.extract_strided_slice %388 {offsets = [0, 64], sizes = [8, 32], strides = [1, 1]} : vector<8x96xf32> to vector<8x32xf32>
    %407 = arith.mulf %396, %406 : vector<8x32xf32>
    %408 = arith.addf %405, %407 : vector<8x32xf32>
    %409 = math.tanh %408 : vector<8x32xf32>
    %cst_112 = arith.constant 1.000000e+00 : f32
    %410 = vector.broadcast %cst_112 : f32 to vector<8x32xf32>
    %411 = arith.subf %410, %404 : vector<8x32xf32>
    %412 = arith.mulf %411, %409 : vector<8x32xf32>
    %413 = arith.mulf %404, %376 : vector<8x32xf32>
    %414 = arith.addf %412, %413 : vector<8x32xf32>
    %415 = arith.truncf %414 : vector<8x32xf32> to vector<8x32xbf16>
    %416 = arith.index_cast %381 : i32 to index
    %c0_113 = arith.constant 0 : index
    %417 = vector.load %arg11[%416, %c0_113] : memref<64x32xbf16, #tpu.memory_space<vmem>>, vector<8x32xbf16>
    tpu.vector_store %arg11[%416, %c0_113], %415 {strides = array<i32>} : memref<64x32xbf16, #tpu.memory_space<vmem>>, vector<8x32xbf16>,
    %c2_i32_114 = arith.constant 2 : i32
    %c8_i32_115 = arith.constant 8 : i32
    %418 = arith.muli %c2_i32_114, %c8_i32_115 : i32
    %419 = tpu.assume_multiple %418, 8 : i32
    %420 = arith.index_cast %419 : i32 to index
    %c0_116 = arith.constant 0 : index
    %421 = vector.load %arg12[%420, %c0_116] : memref<64x96xbf16, #tpu.memory_space<vmem>>, vector<8x96xbf16>
    %422 = arith.extf %421 : vector<8x96xbf16> to vector<8x96xf32>
    %423 = arith.truncf %414 : vector<8x32xf32> to vector<8x32xbf16>
    %cst_117 = arith.constant dense<0.000000e+00> : vector<8x96xf32>
    %424 = tpu.matmul %423, %329, %cst_117 {dimension_numbers = #tpu.dot_dimension_numbers<[1], [0], [0], [1], [0, 0, 1, 1], [], []>} : vector<8x32xbf16>, vector<32x96xbf16>, vector<8x96xf32> -> vector<8x96xf32>
    %425 = vector.broadcast %333 : vector<1x96xf32> to vector<8x96xf32>
    %426 = arith.addf %424, %425 : vector<8x96xf32>
    %427 = vector.extract_strided_slice %422 {offsets = [0, 0], sizes = [8, 32], strides = [1, 1]} : vector<8x96xf32> to vector<8x32xf32>
    %428 = vector.extract_strided_slice %426 {offsets = [0, 0], sizes = [8, 32], strides = [1, 1]} : vector<8x96xf32> to vector<8x32xf32>
    %429 = arith.addf %427, %428 : vector<8x32xf32>
    %430 = arith.negf %429 : vector<8x32xf32>
    %431 = math.exp %430 : vector<8x32xf32>
    %cst_118 = arith.constant 1.000000e+00 : f32
    %432 = vector.broadcast %cst_118 : f32 to vector<8x32xf32>
    %433 = arith.addf %432, %431 : vector<8x32xf32>
    %434 = arith.divf %432, %433 : vector<8x32xf32>
    %435 = vector.extract_strided_slice %422 {offsets = [0, 32], sizes = [8, 32], strides = [1, 1]} : vector<8x96xf32> to vector<8x32xf32>
    %436 = vector.extract_strided_slice %426 {offsets = [0, 32], sizes = [8, 32], strides = [1, 1]} : vector<8x96xf32> to vector<8x32xf32>
    %437 = arith.addf %435, %436 : vector<8x32xf32>
    %438 = arith.negf %437 : vector<8x32xf32>
    %439 = math.exp %438 : vector<8x32xf32>
    %cst_119 = arith.constant 1.000000e+00 : f32
    %440 = vector.broadcast %cst_119 : f32 to vector<8x32xf32>
    %441 = arith.addf %440, %439 : vector<8x32xf32>
    %442 = arith.divf %440, %441 : vector<8x32xf32>
    %443 = vector.extract_strided_slice %422 {offsets = [0, 64], sizes = [8, 32], strides = [1, 1]} : vector<8x96xf32> to vector<8x32xf32>
    %444 = vector.extract_strided_slice %426 {offsets = [0, 64], sizes = [8, 32], strides = [1, 1]} : vector<8x96xf32> to vector<8x32xf32>
    %445 = arith.mulf %434, %444 : vector<8x32xf32>
    %446 = arith.addf %443, %445 : vector<8x32xf32>
    %447 = math.tanh %446 : vector<8x32xf32>
    %cst_120 = arith.constant 1.000000e+00 : f32
    %448 = vector.broadcast %cst_120 : f32 to vector<8x32xf32>
    %449 = arith.subf %448, %442 : vector<8x32xf32>
    %450 = arith.mulf %449, %447 : vector<8x32xf32>
    %451 = arith.mulf %442, %414 : vector<8x32xf32>
    %452 = arith.addf %450, %451 : vector<8x32xf32>
    %453 = arith.truncf %452 : vector<8x32xf32> to vector<8x32xbf16>
    %454 = arith.index_cast %419 : i32 to index
    %c0_121 = arith.constant 0 : index
    %455 = vector.load %arg11[%454, %c0_121] : memref<64x32xbf16, #tpu.memory_space<vmem>>, vector<8x32xbf16>
    tpu.vector_store %arg11[%454, %c0_121], %453 {strides = array<i32>} : memref<64x32xbf16, #tpu.memory_space<vmem>>, vector<8x32xbf16>,
    %c3_i32_122 = arith.constant 3 : i32
    %c8_i32_123 = arith.constant 8 : i32
    %456 = arith.muli %c3_i32_122, %c8_i32_123 : i32
    %457 = tpu.assume_multiple %456, 8 : i32
    %458 = arith.index_cast %457 : i32 to index
    %c0_124 = arith.constant 0 : index
    %459 = vector.load %arg12[%458, %c0_124] : memref<64x96xbf16, #tpu.memory_space<vmem>>, vector<8x96xbf16>
    %460 = arith.extf %459 : vector<8x96xbf16> to vector<8x96xf32>
    %461 = arith.truncf %452 : vector<8x32xf32> to vector<8x32xbf16>
    %cst_125 = arith.constant dense<0.000000e+00> : vector<8x96xf32>
    %462 = tpu.matmul %461, %329, %cst_125 {dimension_numbers = #tpu.dot_dimension_numbers<[1], [0], [0], [1], [0, 0, 1, 1], [], []>} : vector<8x32xbf16>, vector<32x96xbf16>, vector<8x96xf32> -> vector<8x96xf32>
    %463 = vector.broadcast %333 : vector<1x96xf32> to vector<8x96xf32>
    %464 = arith.addf %462, %463 : vector<8x96xf32>
    %465 = vector.extract_strided_slice %460 {offsets = [0, 0], sizes = [8, 32], strides = [1, 1]} : vector<8x96xf32> to vector<8x32xf32>
    %466 = vector.extract_strided_slice %464 {offsets = [0, 0], sizes = [8, 32], strides = [1, 1]} : vector<8x96xf32> to vector<8x32xf32>
    %467 = arith.addf %465, %466 : vector<8x32xf32>
    %468 = arith.negf %467 : vector<8x32xf32>
    %469 = math.exp %468 : vector<8x32xf32>
    %cst_126 = arith.constant 1.000000e+00 : f32
    %470 = vector.broadcast %cst_126 : f32 to vector<8x32xf32>
    %471 = arith.addf %470, %469 : vector<8x32xf32>
    %472 = arith.divf %470, %471 : vector<8x32xf32>
    %473 = vector.extract_strided_slice %460 {offsets = [0, 32], sizes = [8, 32], strides = [1, 1]} : vector<8x96xf32> to vector<8x32xf32>
    %474 = vector.extract_strided_slice %464 {offsets = [0, 32], sizes = [8, 32], strides = [1, 1]} : vector<8x96xf32> to vector<8x32xf32>
    %475 = arith.addf %473, %474 : vector<8x32xf32>
    %476 = arith.negf %475 : vector<8x32xf32>
    %477 = math.exp %476 : vector<8x32xf32>
    %cst_127 = arith.constant 1.000000e+00 : f32
    %478 = vector.broadcast %cst_127 : f32 to vector<8x32xf32>
    %479 = arith.addf %478, %477 : vector<8x32xf32>
    %480 = arith.divf %478, %479 : vector<8x32xf32>
    %481 = vector.extract_strided_slice %460 {offsets = [0, 64], sizes = [8, 32], strides = [1, 1]} : vector<8x96xf32> to vector<8x32xf32>
    %482 = vector.extract_strided_slice %464 {offsets = [0, 64], sizes = [8, 32], strides = [1, 1]} : vector<8x96xf32> to vector<8x32xf32>
    %483 = arith.mulf %472, %482 : vector<8x32xf32>
    %484 = arith.addf %481, %483 : vector<8x32xf32>
    %485 = math.tanh %484 : vector<8x32xf32>
    %cst_128 = arith.constant 1.000000e+00 : f32
    %486 = vector.broadcast %cst_128 : f32 to vector<8x32xf32>
    %487 = arith.subf %486, %480 : vector<8x32xf32>
    %488 = arith.mulf %487, %485 : vector<8x32xf32>
    %489 = arith.mulf %480, %452 : vector<8x32xf32>
    %490 = arith.addf %488, %489 : vector<8x32xf32>
    %491 = arith.truncf %490 : vector<8x32xf32> to vector<8x32xbf16>
    %492 = arith.index_cast %457 : i32 to index
    %c0_129 = arith.constant 0 : index
    %493 = vector.load %arg11[%492, %c0_129] : memref<64x32xbf16, #tpu.memory_space<vmem>>, vector<8x32xbf16>
    tpu.vector_store %arg11[%492, %c0_129], %491 {strides = array<i32>} : memref<64x32xbf16, #tpu.memory_space<vmem>>, vector<8x32xbf16>,
    %c4_i32_130 = arith.constant 4 : i32
    %c8_i32_131 = arith.constant 8 : i32
    %494 = arith.muli %c4_i32_130, %c8_i32_131 : i32
    %495 = tpu.assume_multiple %494, 8 : i32
    %496 = arith.index_cast %495 : i32 to index
    %c0_132 = arith.constant 0 : index
    %497 = vector.load %arg12[%496, %c0_132] : memref<64x96xbf16, #tpu.memory_space<vmem>>, vector<8x96xbf16>
    %498 = arith.extf %497 : vector<8x96xbf16> to vector<8x96xf32>
    %499 = arith.truncf %490 : vector<8x32xf32> to vector<8x32xbf16>
    %cst_133 = arith.constant dense<0.000000e+00> : vector<8x96xf32>
    %500 = tpu.matmul %499, %329, %cst_133 {dimension_numbers = #tpu.dot_dimension_numbers<[1], [0], [0], [1], [0, 0, 1, 1], [], []>} : vector<8x32xbf16>, vector<32x96xbf16>, vector<8x96xf32> -> vector<8x96xf32>
    %501 = vector.broadcast %333 : vector<1x96xf32> to vector<8x96xf32>
    %502 = arith.addf %500, %501 : vector<8x96xf32>
    %503 = vector.extract_strided_slice %498 {offsets = [0, 0], sizes = [8, 32], strides = [1, 1]} : vector<8x96xf32> to vector<8x32xf32>
    %504 = vector.extract_strided_slice %502 {offsets = [0, 0], sizes = [8, 32], strides = [1, 1]} : vector<8x96xf32> to vector<8x32xf32>
    %505 = arith.addf %503, %504 : vector<8x32xf32>
    %506 = arith.negf %505 : vector<8x32xf32>
    %507 = math.exp %506 : vector<8x32xf32>
    %cst_134 = arith.constant 1.000000e+00 : f32
    %508 = vector.broadcast %cst_134 : f32 to vector<8x32xf32>
    %509 = arith.addf %508, %507 : vector<8x32xf32>
    %510 = arith.divf %508, %509 : vector<8x32xf32>
    %511 = vector.extract_strided_slice %498 {offsets = [0, 32], sizes = [8, 32], strides = [1, 1]} : vector<8x96xf32> to vector<8x32xf32>
    %512 = vector.extract_strided_slice %502 {offsets = [0, 32], sizes = [8, 32], strides = [1, 1]} : vector<8x96xf32> to vector<8x32xf32>
    %513 = arith.addf %511, %512 : vector<8x32xf32>
    %514 = arith.negf %513 : vector<8x32xf32>
    %515 = math.exp %514 : vector<8x32xf32>
    %cst_135 = arith.constant 1.000000e+00 : f32
    %516 = vector.broadcast %cst_135 : f32 to vector<8x32xf32>
    %517 = arith.addf %516, %515 : vector<8x32xf32>
    %518 = arith.divf %516, %517 : vector<8x32xf32>
    %519 = vector.extract_strided_slice %498 {offsets = [0, 64], sizes = [8, 32], strides = [1, 1]} : vector<8x96xf32> to vector<8x32xf32>
    %520 = vector.extract_strided_slice %502 {offsets = [0, 64], sizes = [8, 32], strides = [1, 1]} : vector<8x96xf32> to vector<8x32xf32>
    %521 = arith.mulf %510, %520 : vector<8x32xf32>
    %522 = arith.addf %519, %521 : vector<8x32xf32>
    %523 = math.tanh %522 : vector<8x32xf32>
    %cst_136 = arith.constant 1.000000e+00 : f32
    %524 = vector.broadcast %cst_136 : f32 to vector<8x32xf32>
    %525 = arith.subf %524, %518 : vector<8x32xf32>
    %526 = arith.mulf %525, %523 : vector<8x32xf32>
    %527 = arith.mulf %518, %490 : vector<8x32xf32>
    %528 = arith.addf %526, %527 : vector<8x32xf32>
    %529 = arith.truncf %528 : vector<8x32xf32> to vector<8x32xbf16>
    %530 = arith.index_cast %495 : i32 to index
    %c0_137 = arith.constant 0 : index
    %531 = vector.load %arg11[%530, %c0_137] : memref<64x32xbf16, #tpu.memory_space<vmem>>, vector<8x32xbf16>
    tpu.vector_store %arg11[%530, %c0_137], %529 {strides = array<i32>} : memref<64x32xbf16, #tpu.memory_space<vmem>>, vector<8x32xbf16>,
    %c5_i32_138 = arith.constant 5 : i32
    %c8_i32_139 = arith.constant 8 : i32
    %532 = arith.muli %c5_i32_138, %c8_i32_139 : i32
    %533 = tpu.assume_multiple %532, 8 : i32
    %534 = arith.index_cast %533 : i32 to index
    %c0_140 = arith.constant 0 : index
    %535 = vector.load %arg12[%534, %c0_140] : memref<64x96xbf16, #tpu.memory_space<vmem>>, vector<8x96xbf16>
    %536 = arith.extf %535 : vector<8x96xbf16> to vector<8x96xf32>
    %537 = arith.truncf %528 : vector<8x32xf32> to vector<8x32xbf16>
    %cst_141 = arith.constant dense<0.000000e+00> : vector<8x96xf32>
    %538 = tpu.matmul %537, %329, %cst_141 {dimension_numbers = #tpu.dot_dimension_numbers<[1], [0], [0], [1], [0, 0, 1, 1], [], []>} : vector<8x32xbf16>, vector<32x96xbf16>, vector<8x96xf32> -> vector<8x96xf32>
    %539 = vector.broadcast %333 : vector<1x96xf32> to vector<8x96xf32>
    %540 = arith.addf %538, %539 : vector<8x96xf32>
    %541 = vector.extract_strided_slice %536 {offsets = [0, 0], sizes = [8, 32], strides = [1, 1]} : vector<8x96xf32> to vector<8x32xf32>
    %542 = vector.extract_strided_slice %540 {offsets = [0, 0], sizes = [8, 32], strides = [1, 1]} : vector<8x96xf32> to vector<8x32xf32>
    %543 = arith.addf %541, %542 : vector<8x32xf32>
    %544 = arith.negf %543 : vector<8x32xf32>
    %545 = math.exp %544 : vector<8x32xf32>
    %cst_142 = arith.constant 1.000000e+00 : f32
    %546 = vector.broadcast %cst_142 : f32 to vector<8x32xf32>
    %547 = arith.addf %546, %545 : vector<8x32xf32>
    %548 = arith.divf %546, %547 : vector<8x32xf32>
    %549 = vector.extract_strided_slice %536 {offsets = [0, 32], sizes = [8, 32], strides = [1, 1]} : vector<8x96xf32> to vector<8x32xf32>
    %550 = vector.extract_strided_slice %540 {offsets = [0, 32], sizes = [8, 32], strides = [1, 1]} : vector<8x96xf32> to vector<8x32xf32>
    %551 = arith.addf %549, %550 : vector<8x32xf32>
    %552 = arith.negf %551 : vector<8x32xf32>
    %553 = math.exp %552 : vector<8x32xf32>
    %cst_143 = arith.constant 1.000000e+00 : f32
    %554 = vector.broadcast %cst_143 : f32 to vector<8x32xf32>
    %555 = arith.addf %554, %553 : vector<8x32xf32>
    %556 = arith.divf %554, %555 : vector<8x32xf32>
    %557 = vector.extract_strided_slice %536 {offsets = [0, 64], sizes = [8, 32], strides = [1, 1]} : vector<8x96xf32> to vector<8x32xf32>
    %558 = vector.extract_strided_slice %540 {offsets = [0, 64], sizes = [8, 32], strides = [1, 1]} : vector<8x96xf32> to vector<8x32xf32>
    %559 = arith.mulf %548, %558 : vector<8x32xf32>
    %560 = arith.addf %557, %559 : vector<8x32xf32>
    %561 = math.tanh %560 : vector<8x32xf32>
    %cst_144 = arith.constant 1.000000e+00 : f32
    %562 = vector.broadcast %cst_144 : f32 to vector<8x32xf32>
    %563 = arith.subf %562, %556 : vector<8x32xf32>
    %564 = arith.mulf %563, %561 : vector<8x32xf32>
    %565 = arith.mulf %556, %528 : vector<8x32xf32>
    %566 = arith.addf %564, %565 : vector<8x32xf32>
    %567 = arith.truncf %566 : vector<8x32xf32> to vector<8x32xbf16>
    %568 = arith.index_cast %533 : i32 to index
    %c0_145 = arith.constant 0 : index
    %569 = vector.load %arg11[%568, %c0_145] : memref<64x32xbf16, #tpu.memory_space<vmem>>, vector<8x32xbf16>
    tpu.vector_store %arg11[%568, %c0_145], %567 {strides = array<i32>} : memref<64x32xbf16, #tpu.memory_space<vmem>>, vector<8x32xbf16>,
    %c6_i32_146 = arith.constant 6 : i32
    %c8_i32_147 = arith.constant 8 : i32
    %570 = arith.muli %c6_i32_146, %c8_i32_147 : i32
    %571 = tpu.assume_multiple %570, 8 : i32
    %572 = arith.index_cast %571 : i32 to index
    %c0_148 = arith.constant 0 : index
    %573 = vector.load %arg12[%572, %c0_148] : memref<64x96xbf16, #tpu.memory_space<vmem>>, vector<8x96xbf16>
    %574 = arith.extf %573 : vector<8x96xbf16> to vector<8x96xf32>
    %575 = arith.truncf %566 : vector<8x32xf32> to vector<8x32xbf16>
    %cst_149 = arith.constant dense<0.000000e+00> : vector<8x96xf32>
    %576 = tpu.matmul %575, %329, %cst_149 {dimension_numbers = #tpu.dot_dimension_numbers<[1], [0], [0], [1], [0, 0, 1, 1], [], []>} : vector<8x32xbf16>, vector<32x96xbf16>, vector<8x96xf32> -> vector<8x96xf32>
    %577 = vector.broadcast %333 : vector<1x96xf32> to vector<8x96xf32>
    %578 = arith.addf %576, %577 : vector<8x96xf32>
    %579 = vector.extract_strided_slice %574 {offsets = [0, 0], sizes = [8, 32], strides = [1, 1]} : vector<8x96xf32> to vector<8x32xf32>
    %580 = vector.extract_strided_slice %578 {offsets = [0, 0], sizes = [8, 32], strides = [1, 1]} : vector<8x96xf32> to vector<8x32xf32>
    %581 = arith.addf %579, %580 : vector<8x32xf32>
    %582 = arith.negf %581 : vector<8x32xf32>
    %583 = math.exp %582 : vector<8x32xf32>
    %cst_150 = arith.constant 1.000000e+00 : f32
    %584 = vector.broadcast %cst_150 : f32 to vector<8x32xf32>
    %585 = arith.addf %584, %583 : vector<8x32xf32>
    %586 = arith.divf %584, %585 : vector<8x32xf32>
    %587 = vector.extract_strided_slice %574 {offsets = [0, 32], sizes = [8, 32], strides = [1, 1]} : vector<8x96xf32> to vector<8x32xf32>
    %588 = vector.extract_strided_slice %578 {offsets = [0, 32], sizes = [8, 32], strides = [1, 1]} : vector<8x96xf32> to vector<8x32xf32>
    %589 = arith.addf %587, %588 : vector<8x32xf32>
    %590 = arith.negf %589 : vector<8x32xf32>
    %591 = math.exp %590 : vector<8x32xf32>
    %cst_151 = arith.constant 1.000000e+00 : f32
    %592 = vector.broadcast %cst_151 : f32 to vector<8x32xf32>
    %593 = arith.addf %592, %591 : vector<8x32xf32>
    %594 = arith.divf %592, %593 : vector<8x32xf32>
    %595 = vector.extract_strided_slice %574 {offsets = [0, 64], sizes = [8, 32], strides = [1, 1]} : vector<8x96xf32> to vector<8x32xf32>
    %596 = vector.extract_strided_slice %578 {offsets = [0, 64], sizes = [8, 32], strides = [1, 1]} : vector<8x96xf32> to vector<8x32xf32>
    %597 = arith.mulf %586, %596 : vector<8x32xf32>
    %598 = arith.addf %595, %597 : vector<8x32xf32>
    %599 = math.tanh %598 : vector<8x32xf32>
    %cst_152 = arith.constant 1.000000e+00 : f32
    %600 = vector.broadcast %cst_152 : f32 to vector<8x32xf32>
    %601 = arith.subf %600, %594 : vector<8x32xf32>
    %602 = arith.mulf %601, %599 : vector<8x32xf32>
    %603 = arith.mulf %594, %566 : vector<8x32xf32>
    %604 = arith.addf %602, %603 : vector<8x32xf32>
    %605 = arith.truncf %604 : vector<8x32xf32> to vector<8x32xbf16>
    %606 = arith.index_cast %571 : i32 to index
    %c0_153 = arith.constant 0 : index
    %607 = vector.load %arg11[%606, %c0_153] : memref<64x32xbf16, #tpu.memory_space<vmem>>, vector<8x32xbf16>
    tpu.vector_store %arg11[%606, %c0_153], %605 {strides = array<i32>} : memref<64x32xbf16, #tpu.memory_space<vmem>>, vector<8x32xbf16>,
    %c7_i32_154 = arith.constant 7 : i32
    %c8_i32_155 = arith.constant 8 : i32
    %608 = arith.muli %c7_i32_154, %c8_i32_155 : i32
    %609 = tpu.assume_multiple %608, 8 : i32
    %610 = arith.index_cast %609 : i32 to index
    %c0_156 = arith.constant 0 : index
    %611 = vector.load %arg12[%610, %c0_156] : memref<64x96xbf16, #tpu.memory_space<vmem>>, vector<8x96xbf16>
    %612 = arith.extf %611 : vector<8x96xbf16> to vector<8x96xf32>
    %613 = arith.truncf %604 : vector<8x32xf32> to vector<8x32xbf16>
    %cst_157 = arith.constant dense<0.000000e+00> : vector<8x96xf32>
    %614 = tpu.matmul %613, %329, %cst_157 {dimension_numbers = #tpu.dot_dimension_numbers<[1], [0], [0], [1], [0, 0, 1, 1], [], []>} : vector<8x32xbf16>, vector<32x96xbf16>, vector<8x96xf32> -> vector<8x96xf32>
    %615 = vector.broadcast %333 : vector<1x96xf32> to vector<8x96xf32>
    %616 = arith.addf %614, %615 : vector<8x96xf32>
    %617 = vector.extract_strided_slice %612 {offsets = [0, 0], sizes = [8, 32], strides = [1, 1]} : vector<8x96xf32> to vector<8x32xf32>
    %618 = vector.extract_strided_slice %616 {offsets = [0, 0], sizes = [8, 32], strides = [1, 1]} : vector<8x96xf32> to vector<8x32xf32>
    %619 = arith.addf %617, %618 : vector<8x32xf32>
    %620 = arith.negf %619 : vector<8x32xf32>
    %621 = math.exp %620 : vector<8x32xf32>
    %cst_158 = arith.constant 1.000000e+00 : f32
    %622 = vector.broadcast %cst_158 : f32 to vector<8x32xf32>
    %623 = arith.addf %622, %621 : vector<8x32xf32>
    %624 = arith.divf %622, %623 : vector<8x32xf32>
    %625 = vector.extract_strided_slice %612 {offsets = [0, 32], sizes = [8, 32], strides = [1, 1]} : vector<8x96xf32> to vector<8x32xf32>
    %626 = vector.extract_strided_slice %616 {offsets = [0, 32], sizes = [8, 32], strides = [1, 1]} : vector<8x96xf32> to vector<8x32xf32>
    %627 = arith.addf %625, %626 : vector<8x32xf32>
    %628 = arith.negf %627 : vector<8x32xf32>
    %629 = math.exp %628 : vector<8x32xf32>
    %cst_159 = arith.constant 1.000000e+00 : f32
    %630 = vector.broadcast %cst_159 : f32 to vector<8x32xf32>
    %631 = arith.addf %630, %629 : vector<8x32xf32>
    %632 = arith.divf %630, %631 : vector<8x32xf32>
    %633 = vector.extract_strided_slice %612 {offsets = [0, 64], sizes = [8, 32], strides = [1, 1]} : vector<8x96xf32> to vector<8x32xf32>
    %634 = vector.extract_strided_slice %616 {offsets = [0, 64], sizes = [8, 32], strides = [1, 1]} : vector<8x96xf32> to vector<8x32xf32>
    %635 = arith.mulf %624, %634 : vector<8x32xf32>
    %636 = arith.addf %633, %635 : vector<8x32xf32>
    %637 = math.tanh %636 : vector<8x32xf32>
    %cst_160 = arith.constant 1.000000e+00 : f32
    %638 = vector.broadcast %cst_160 : f32 to vector<8x32xf32>
    %639 = arith.subf %638, %632 : vector<8x32xf32>
    %640 = arith.mulf %639, %637 : vector<8x32xf32>
    %641 = arith.mulf %632, %604 : vector<8x32xf32>
    %642 = arith.addf %640, %641 : vector<8x32xf32>
    %643 = arith.truncf %642 : vector<8x32xf32> to vector<8x32xbf16>
    %644 = arith.index_cast %609 : i32 to index
    %c0_161 = arith.constant 0 : index
    %645 = vector.load %arg11[%644, %c0_161] : memref<64x32xbf16, #tpu.memory_space<vmem>>, vector<8x32xbf16>
    tpu.vector_store %arg11[%644, %c0_161], %643 {strides = array<i32>} : memref<64x32xbf16, #tpu.memory_space<vmem>>, vector<8x32xbf16>,
    %c8_i32_162 = arith.constant 8 : i32
    %c1_163 = arith.constant 1 : index
    %c0_164 = arith.constant 0 : index
    %c0_165 = arith.constant 0 : index
    %646 = vector.load %arg10[%c1_163, %c0_164, %c0_165] : memref<2x8x32xf32, #tpu.memory_space<vmem>>, vector<1x8x32xf32>
    %647 = vector.shape_cast %646 : vector<1x8x32xf32> to vector<8x32xf32>
    %648 = vector.shape_cast %642 : vector<8x32xf32> to vector<1x8x32xf32>
    tpu.vector_store %arg10[%c1_163, %c0_164, %c0_165], %648 {strides = array<i32>} : memref<2x8x32xf32, #tpu.memory_space<vmem>>, vector<1x8x32xf32>,
    %c0_166 = arith.constant 0 : index
    %c0_167 = arith.constant 0 : index
    %649 = vector.load %arg11[%c0_166, %c0_167] : memref<64x32xbf16, #tpu.memory_space<vmem>>, vector<64x32xbf16>
    %c0_168 = arith.constant 0 : index
    %c0_169 = arith.constant 0 : index
    %650 = vector.load %arg7[%c0_168, %c0_169] : memref<32x128xbf16, #tpu.memory_space<vmem>>, vector<32x128xbf16>
    %cst_170 = arith.constant dense<0.000000e+00> : vector<64x128xf32>
    %651 = tpu.matmul %649, %650, %cst_170 {dimension_numbers = #tpu.dot_dimension_numbers<[1], [0], [0], [1], [0, 0, 1, 1], [], []>} : vector<64x32xbf16>, vector<32x128xbf16>, vector<64x128xf32> -> vector<64x128xf32>
    %c0_171 = arith.constant 0 : index
    %c0_172 = arith.constant 0 : index
    %652 = vector.load %arg8[%c0_171, %c0_172] : memref<1x128xf32, #tpu.memory_space<vmem>>, vector<1x128xf32>
    %653 = vector.broadcast %652 : vector<1x128xf32> to vector<64x128xf32>
    %654 = arith.addf %651, %653 : vector<64x128xf32>
    %cst_173 = arith.constant dense<0xFF800000> : vector<64xf32>
    %655 = vector.multi_reduction <maximumf>, %654, %cst_173 [1] : vector<64x128xf32> to vector<64xf32>
    %656 = vector.shape_cast %655 : vector<64xf32> to vector<64x1xf32>
    %657 = vector.broadcast %656 : vector<64x1xf32> to vector<64x128xf32>
    %658 = arith.subf %654, %657 : vector<64x128xf32>
    %659 = math.exp %658 : vector<64x128xf32>
    %cst_174 = arith.constant dense<0.000000e+00> : vector<64xf32>
    %660 = vector.multi_reduction <add>, %659, %cst_174 [1] : vector<64x128xf32> to vector<64xf32>
    %661 = vector.shape_cast %660 : vector<64xf32> to vector<64x1xf32>
    %662 = vector.broadcast %661 : vector<64x1xf32> to vector<64x128xf32>
    %663 = arith.divf %659, %662 : vector<64x128xf32>
    %c0_175 = arith.constant 0 : index
    %c0_176 = arith.constant 0 : index
    %664 = vector.load %arg9[%c0_175, %c0_176] : memref<64x128xf32, #tpu.memory_space<vmem>>, vector<64x128xf32>
    tpu.vector_store %arg9[%c0_175, %c0_176], %663 {strides = array<i32>} : memref<64x128xf32, #tpu.memory_space<vmem>>, vector<64x128xf32>,
    return
  }
  func.func @transform_0(%arg0: i32) -> (i32, i32) {
    %c0_i32 = arith.constant 0 : i32
    %c0_i32_0 = arith.constant 0 : i32
    return %arg0, %c0_i32 : i32, i32
  }
  func.func @transform_1(%arg0: i32) -> (i32, i32, i32) {
    %c0_i32 = arith.constant 0 : i32
    %c0_i32_0 = arith.constant 0 : i32
    %c0_i32_1 = arith.constant 0 : i32
    %c0_i32_2 = arith.constant 0 : i32
    return %c0_i32, %c0_i32_0, %c0_i32_1 : i32, i32, i32
  }
  func.func @transform_2(%arg0: i32) -> (i32, i32, i32) {
    %c0_i32 = arith.constant 0 : i32
    %c0_i32_0 = arith.constant 0 : i32
    %c0_i32_1 = arith.constant 0 : i32
    %c0_i32_2 = arith.constant 0 : i32
    return %c0_i32, %c0_i32_0, %c0_i32_1 : i32, i32, i32
  }
  func.func @transform_3(%arg0: i32) -> (i32, i32, i32) {
    %c0_i32 = arith.constant 0 : i32
    %c0_i32_0 = arith.constant 0 : i32
    %c0_i32_1 = arith.constant 0 : i32
    %c0_i32_2 = arith.constant 0 : i32
    return %c0_i32, %c0_i32_0, %c0_i32_1 : i32, i32, i32
  }
  func.func @transform_4(%arg0: i32) -> (i32, i32, i32) {
    %c0_i32 = arith.constant 0 : i32
    %c0_i32_0 = arith.constant 0 : i32
    %c0_i32_1 = arith.constant 0 : i32
    %c0_i32_2 = arith.constant 0 : i32
    return %c0_i32, %c0_i32_0, %c0_i32_1 : i32, i32, i32
  }
  func.func @transform_5(%arg0: i32) -> (i32, i32, i32) {
    %c0_i32 = arith.constant 0 : i32
    %c0_i32_0 = arith.constant 0 : i32
    %c0_i32_1 = arith.constant 0 : i32
    %c0_i32_2 = arith.constant 0 : i32
    return %c0_i32, %c0_i32_0, %c0_i32_1 : i32, i32, i32
  }
  func.func @transform_6(%arg0: i32) -> (i32, i32) {
    %c0_i32 = arith.constant 0 : i32
    %c0_i32_0 = arith.constant 0 : i32
    %c0_i32_1 = arith.constant 0 : i32
    return %c0_i32, %c0_i32_0 : i32, i32
  }
  func.func @transform_7(%arg0: i32) -> (i32, i32) {
    %c0_i32 = arith.constant 0 : i32
    %c0_i32_0 = arith.constant 0 : i32
    %c0_i32_1 = arith.constant 0 : i32
    return %c0_i32, %c0_i32_0 : i32, i32
  }
  func.func @transform_8(%arg0: i32) -> (i32, i32) {
    %c0_i32 = arith.constant 0 : i32
    %c0_i32_0 = arith.constant 0 : i32
    return %arg0, %c0_i32 : i32, i32
  }
  func.func @transform_9(%arg0: i32) -> (i32, i32, i32) {
    %c0_i32 = arith.constant 0 : i32
    %c0_i32_0 = arith.constant 0 : i32
    %c0_i32_1 = arith.constant 0 : i32
    %c0_i32_2 = arith.constant 0 : i32
    return %c0_i32, %c0_i32_0, %c0_i32_1 : i32, i32, i32
  }
}

</mosaic_0001>

<bundles_post_ra>
// kernel: char_rnn_forward.1
= control target key start
LH: loop header
LB: loop body
LE: loop exit
PB: predicated region body
PF: predicated region fallthrough
CT: control target
= control target key end

     0   :  { %vm38_vm0 = vcmask 261120   ;;  %vm144_vm1 = vcmask 781312   ;;  %s1989_s15 = smov 64   ;;  %s1990_s16 = smov 96   ;;  %s2530_s2 = inlined_call_operand.vmem [shape: bf16[2,32,96], index: 2, kind: input, shape index: {}]   ;;  %s2531_s1 = inlined_call_operand.vmem [shape: f32[2,8,32], index: 1, kind: input, shape index: {}]   ;;  %s2532_s3 = inlined_call_operand.vmem [shape: bf16[2,32,96], index: 3, kind: input, shape index: {}]   ;;  %s2533_s9 = inlined_call_operand.vmem [shape: f32[2,8,32], index: 9, kind: output, shape index: {1}]   ;;  %s2534_s4 = inlined_call_operand.vmem [shape: f32[2,1,96], index: 4, kind: input, shape index: {}]   ;;  %s2535_s0 = inlined_call_operand.vmem [shape: bf16[64,32], index: 0, kind: input, shape index: {}]   ;;  %s2536_s5 = inlined_call_operand.vmem [shape: f32[2,1,96], index: 5, kind: input, shape index: {}]   ;;  %s2537_s6 = inlined_call_operand.vmem [shape: bf16[32,128], index: 6, kind: input, shape index: {}]   ;;  %s2538_s7 = inlined_call_operand.vmem [shape: f32[1,128], index: 7, kind: input, shape index: {}]   ;;  %s2539_s8 = inlined_call_operand.vmem [shape: f32[64,128], index: 8, kind: output, shape index: {0}]  }
   0x1   :  { %v1825_v0 = vld [vmem:[%s2530_s2 + $0x8] sm:$0xff]  ;;  %v1824_v1 = vld [vmem:[%s2530_s2] sm:$0xff]  ;;  %v1830_v7 = vld [vmem:[%s2535_s0 + $0x10] sm:$0xff]  ;;  %s1991_s17 = smov 32  }
   0x2   :  { %1846 = vmatpush.bf16.msra.mxu1 %v1825_v0  ;;  %113 = vmatpush.bf16.msra.mxu0 %v1825_v0  ;;  %v36_v2 = vld [vmem:[%s2531_s1] sm:$0xff]  ;;  %v37_v3 = vld [vmem:[%s2531_s1 + $0x8] sm:$0xff]  ;;  %v1831_v61 = vld [vmem:[%s2535_s0 + $0x18] sm:$0xff] }
   0x3   :  { %v2057_v4 = vld [vmem:[%s2532_s3 + $0x8] sm:$0xff]  ;;  %39 = vst.msk [vmem:[%s2533_s9] sm:$0xff] %vm38_vm0, %v36_v2  ;;  %1847 = vmatpush.bf16.msra.mxu2 %v1825_v0  ;;  %1848 = vmatpush.bf16.msra.mxu3 %v1825_v0  ;;  %v1828_v6 = vld [vmem:[%s2535_s0] sm:$0xff] }
   0x4   :  { %40 = vst.msk [vmem:[%s2533_s9 + $0x8] sm:$0xff] %vm38_vm0, %v37_v3  ;;  %v1829_v5 = vld [vmem:[%s2535_s0 + $0x8] sm:$0xff]  ;;  %v2080_v8 = vld [vmem:[%s2532_s3] sm:$0xff] }
   0x5   :  { %v2107_v11 = vld [vmem:[%s2534_s4] ss:$0 sm:$0xff] }
   0x6   :  { %1849 = vmatpush.bf16.msra.mxu1 %v1824_v1  ;;  %114 = vmatpush.bf16.msra.mxu0 %v1824_v1  ;;  %v2121_v27 = vld [vmem:[%s2536_s5] ss:$0 sm:$0xff] }
   0x7   :  { %1850 = vmatpush.bf16.msra.mxu2 %v1824_v1  ;;  %1851 = vmatpush.bf16.msra.mxu3 %v1824_v1 }
   0x9   :  { %1705 = vmatmul.msk.bf16.vlgmr.msra.gmra.mxu1 %vm38_vm0, %v1829_v5  ;;  %1704 = vmatmul.msk.bf16.vlgmr.msra.gmra.mxu0 %vm38_vm0, %v1828_v6 }
   0xa   :  { %181 = vmatpush.bf16.msrb.mxu1 %v2057_v4  ;;  %1706 = vmatmul.msk.bf16.vlgmr.msra.gmra.mxu2 %vm38_vm0, %v1830_v7  ;;  %v2097_v9 = vld [vmem:[%s2533_s9] sm:$0xff] }
   0xb   :  { %254 = vmatpush.bf16.msrb.mxu2 %v2057_v4  ;;  %323 = vmatpush.bf16.msrb.mxu3 %v2057_v4  ;;  %v156_v10 = vpack.c.bf16 %v2097_v9, %v2097_v9 }
   0xc   :  { %1707 = vmatmul.msk.bf16.vlgmr.msra.gmra.mxu3 %vm38_vm0, %v1831_v61 }
   0xe   :  { %182 = vmatpush.bf16.msrb.mxu1 %v2080_v8 }
   0xf   :  { %255 = vmatpush.bf16.msrb.mxu2 %v2080_v8  ;;  %324 = vmatpush.bf16.msrb.mxu3 %v2080_v8 }
  0x12   :  { %392 = vmatpush.bf16.msra.mxu1 %v2057_v4 }
  0x13   :  { %461 = vmatpush.bf16.msra.mxu2 %v2057_v4  ;;  %530 = vmatpush.bf16.msra.mxu3 %v2057_v4 }
  0x16   :  { %393 = vmatpush.bf16.msra.mxu1 %v2080_v8 }
  0x17   :  { %462 = vmatpush.bf16.msra.mxu2 %v2080_v8  ;;  %531 = vmatpush.bf16.msra.mxu3 %v2080_v8 }
  0x19   :  { %1716 = vmatmul.msk.bf16.vlgmr.msrb.gmra.mxu1 %vm38_vm0, %v156_v10 }
  0x1a   :  { %599 = vmatpush.bf16.msrb.mxu1 %v2057_v4 }
  0x1e   :  { %600 = vmatpush.bf16.msrb.mxu1 %v2080_v8 }
  0x86   :  { %v121_v12 = vpop.f32.mrf.mxu1  ;;  %v116_v13 = vpop.f32.mrf.mxu0 }
  0x87   :  { %v122_v14 = vadd.f32 %v2107_v11, %v121_v12  ;;  %v117_v15 = vadd.f32 %v2107_v11, %v116_v13 }
  0x89   :  { %v138_v16 = vpack.c.bf16 %v122_v14, %v122_v14  ;;  %v136_v17 = vpack.c.bf16 %v117_v15, %v117_v15 }
  0x8b   :  { %147 = vst.msk [vmem:[#allocation3 + $0x8] sm:$0xf] %vm144_vm1, %v138_v16 }
  0x8c   :  { %145 = vst.msk [vmem:[#allocation3] sm:$0xf] %vm144_vm1, %v136_v17 }
  0x8d   :  { %v126_v18 = vpop.f32.mrf.mxu2 }
  0x8e   :  { %v123_v19 = vpop.f32.mrf.mxu1  ;;  %v118_v20 = vpop.f32.mrf.mxu0  ;;  %v127_v21 = vadd.f32 %v2107_v11, %v126_v18 }
  0x8f   :  { %v124_v22 = vadd.f32 %v2107_v11, %v123_v19  ;;  %v119_v23 = vadd.f32 %v2107_v11, %v118_v20  ;;  %v131_v2 = vpop.f32.mrf.mxu3 }
  0x90   :  { %v140_v24 = vpack.c.bf16 %v127_v21, %v127_v21  ;;  %v132_v3 = vadd.f32 %v2107_v11, %v131_v2 }
  0x91   :  { %v139_v25 = vpack.c.bf16 %v124_v22, %v124_v22  ;;  %v137_v26 = vpack.c.bf16 %v119_v23, %v119_v23 }
  0x92   :  { %149 = vst.msk [vmem:[#allocation3 + $0x10] sm:$0xf] %vm144_vm1, %v140_v24  ;;  %v142_v5 = vpack.c.bf16 %v132_v3, %v132_v3 }
  0x93   :  { %148 = vst.msk [vmem:[#allocation3 + $0xc] sm:$0xf] %vm144_vm1, %v139_v25  ;;  %v154_v31 = vld [vmem:[#allocation3] sm:$0xf] }
  0x94   :  { %146 = vst.msk [vmem:[#allocation3 + $0x4] sm:$0xf] %vm144_vm1, %v137_v26  ;;  %v155_v32 = vunpack.c.l.bf16 %v154_v31 }
  0x95   :  { %v128_v62 = vpop.f32.mrf.mxu2  ;;  %151 = vst.msk [vmem:[#allocation3 + $0x18] sm:$0xf] %vm144_vm1, %v142_v5 }
  0x96   :  { %v184_v28 = vpop.f32.mrf.mxu1  ;;  %v129_v63 = vadd.f32 %v2107_v11, %v128_v62 }
  0x97   :  { %v185_v29 = vadd.f32 %v2121_v27, %v184_v28 }
  0x98   :  { %v141_v0 = vpack.c.bf16 %v129_v63, %v129_v63 }
  0x99   :  { %209 = vrot.lane.b32.xlu0 %v185_v29, %s1989_s15  ;;  %v188_v33 = vadd.f32 %v185_v29, %v155_v32 }
  0x9a   :  { %150 = vst.msk [vmem:[#allocation3 + $0x14] sm:$0xf] %vm144_vm1, %v141_v0 }
  0x9b   :  { %v1717_v34 = vmul.f32 -1.442695, %v188_v33  ;;  %v2149_v10 = vld [vmem:[#allocation3 + $0x4] sm:$0xff]  }
  0x9c   :  { %v240_v12 = vunpack.c.l.bf16 %v2149_v10 }
  0x9d   :  { %1860 = vpow2.f32 %v1717_v34 }
  0x9e   :  { %v186_v30 = vpop.f32.mrf.mxu1 }
  0xa3   :  { %v1861_v35 = vpop.eup %1860 }
  0xa4   :  { %v192_v36 = vadd.f32 1.0, %v1861_v35 }
  0xa6   :  { %1862 = vrcp.f32 %v192_v36  ;;  %v204_v42 = vand.u32 2147483648, %v192_v36  ;;  %vm198_vm3 = vweird.f32 %v192_v36  ;;  %v202_v43 = vand.u32 2147483647, %v192_v36 }
  0xa8   :  { %v205_v45 = vor.u32 1.1754944e-38, %v204_v42  ;;  %vm203_vm5 = vcmp.eq.f32.partialorder %v202_v43, 8.507059e+37 }
  0xac   :  { %v1863_v37 = vpop.eup %1862 }
  0xad   :  { %v194_v38 = vmul.f32 %v1863_v37, %v192_v36  ;;  %vm199_vm2 = vweird.f32 %v1863_v37 }
  0xae   :  { %vm200_vm4 = vmor %vm198_vm3, %vm199_vm2 }
  0xaf   :  { %v195_v39 = vsub.f32 1.0, %v194_v38 }
  0xb1   :  { %v196_v40 = vmul.f32 %v1863_v37, %v195_v39  ;;  %v133_v39 = vpop.f32.mrf.mxu3 }
  0xb3   :  { %v197_v41 = vadd.f32 %v1863_v37, %v196_v40  ;;  %v134_v40 = vadd.f32 %v2107_v11, %v133_v39 }
  0xb5   :  { %v201_v44 = vsel %vm200_vm4, %v1863_v37, %v197_v41  ;;  %v143_v41 = vpack.c.bf16 %v134_v40, %v134_v40 }
  0xb6   :  { %v206_v47 = vsel %vm203_vm5, %v205_v45, %v201_v44 }
  0xb7   :  { %v219_v53 = vsub.f32 1.0, %v206_v47  ;;  %152 = vst.msk [vmem:[#allocation3 + $0x1c] sm:$0xf] %vm144_vm1, %v143_v41 }
 0x10b   :  { %v210_v46 = vpop.permute.xlu0 %209 }
 0x10c   :  { %v212_v48 = vmul.f32 %v210_v46, %v206_v47  ;;  %v309_v46 = vunpack.c.h.bf16 %v2149_v10 }
 0x10e   :  { %214 = vrot.lane.b32.xlu0 %v212_v48, %s1989_s15 }
 0x180   :  { %v215_v49 = vpop.permute.xlu0 %214 }
 0x181   :  { %v217_v50 = vadd.f32 %v215_v49, %v155_v32 }
 0x183   :  { %1864 = vtanh.f32 %v217_v50 }
 0x189   :  { %v1865_v51 = vpop.eup %1864 }
 0x18a   :  { %221 = vrot.lane.b32.xlu1 %v1865_v51, %s1990_s16 }
 0x192   :  { %226 = vrot.lane.b32.xlu1 %v2097_v9, %s1991_s17 }
 0x1fc   :  { %v222_v52 = vpop.permute.xlu1 %221 }
 0x1fd   :  { %v224_v55 = vmul.f32 %v222_v52, %v219_v53 }
 0x204   :  { %v227_v54 = vpop.permute.xlu1 %226 }
 0x205   :  { %v229_v56 = vmul.f32 %v227_v54, %v206_v47 }
 0x207   :  { %v230_v57 = vadd.f32 %v229_v56, %v224_v55 }
 0x209   :  { %v2130_v58 = vpack.c.bf16 %v230_v57, %v230_v57 }
 0x20b   :  { %v241_v59 = vunpack.c.l.b16 %v2130_v58 }
 0x20d   :  { %v242_v60 = vpack.c.b16 %v241_v59, %v241_v59 }
 0x20f   :  { %243 = vrot.lane.b32.xlu2 %v242_v60, %s1990_s16 }
 0x269   :  { %v244_v1 = vpop.permute.xlu2 %243 }
 0x26a   :  { %1718 = vmatmul.msk.bf16.vlgmr.msrb.gmra.mxu2 %vm38_vm0, %v244_v1 }
 0x26b   :  { %668 = vmatpush.bf16.msrb.mxu2 %v2057_v4 }
 0x26f   :  { %669 = vmatpush.bf16.msrb.mxu2 %v2080_v8 }
 0x2ed   :  { %v257_v6 = vpop.f32.mrf.mxu2 }
 0x2ee   :  { %v258_v7 = vadd.f32 %v2121_v27, %v257_v6 }
 0x2f0   :  { %282 = vrot.lane.b32.xlu2 %v258_v7, %s1989_s15  ;;  %v261_v13 = vadd.f32 %v258_v7, %v240_v12 }
 0x2f2   :  { %v1719_v4 = vmul.f32 -1.442695, %v261_v13 }
 0x2f4   :  { %1866 = vpow2.f32 %v1719_v4 }
 0x2f5   :  { %v259_v9 = vpop.f32.mrf.mxu2 }
 0x2fa   :  { %v1867_v8 = vpop.eup %1866 }
 0x2fb   :  { %v265_v14 = vadd.f32 1.0, %v1867_v8 }
 0x2fd   :  { %1868 = vrcp.f32 %v265_v14  ;;  %v277_v20 = vand.u32 2147483648, %v265_v14  ;;  %vm271_vm7 = vweird.f32 %v265_v14  ;;  %v275_v21 = vand.u32 2147483647, %v265_v14 }
 0x2ff   :  { %v278_v23 = vor.u32 1.1754944e-38, %v277_v20  ;;  %vm276_vm9 = vcmp.eq.f32.partialorder %v275_v21, 8.507059e+37 }
 0x303   :  { %v1869_v15 = vpop.eup %1868 }
 0x304   :  { %v267_v16 = vmul.f32 %v1869_v15, %v265_v14  ;;  %vm272_vm6 = vweird.f32 %v1869_v15 }
 0x305   :  { %vm273_vm8 = vmor %vm271_vm7, %vm272_vm6 }
 0x306   :  { %v268_v17 = vsub.f32 1.0, %v267_v16 }
 0x308   :  { %v269_v18 = vmul.f32 %v1869_v15, %v268_v17 }
 0x30a   :  { %v270_v19 = vadd.f32 %v1869_v15, %v269_v18 }
 0x30c   :  { %v274_v22 = vsel %vm273_vm8, %v1869_v15, %v270_v19  ;;  %v2173_v15 = vld [vmem:[#allocation3 + $0xc] sm:$0xff]  }
 0x30d   :  { %v279_v25 = vsel %vm276_vm9, %v278_v23, %v274_v22  ;;  %v378_v16 = vunpack.c.l.bf16 %v2173_v15 }
 0x30e   :  { %v292_v31 = vsub.f32 1.0, %v279_v25  ;;  %v298_v33 = vmul.f32 %v279_v25, %v230_v57 }
 0x34a   :  { %v283_v24 = vpop.permute.xlu2 %282 }
 0x34b   :  { %v285_v26 = vmul.f32 %v283_v24, %v279_v25 }
 0x34d   :  { %287 = vrot.lane.b32.xlu0 %v285_v26, %s1989_s15 }
 0x3bf   :  { %v288_v28 = vpop.permute.xlu0 %287 }
 0x3c0   :  { %v290_v29 = vadd.f32 %v288_v28, %v240_v12 }
 0x3c2   :  { %1870 = vtanh.f32 %v290_v29 }
 0x3c8   :  { %v1871_v30 = vpop.eup %1870 }
 0x3c9   :  { %294 = vrot.lane.b32.xlu1 %v1871_v30, %s1990_s16 }
 0x43b   :  { %v295_v32 = vpop.permute.xlu1 %294 }
 0x43c   :  { %v297_v34 = vmul.f32 %v295_v32, %v292_v31 }
 0x43e   :  { %v299_v35 = vadd.f32 %v298_v33, %v297_v34 }
 0x440   :  { %v2154_v36 = vpack.c.bf16 %v299_v35, %v299_v35 }
 0x442   :  { %v310_v37 = vunpack.c.l.b16 %v2154_v36 }
 0x444   :  { %v311_v38 = vpack.c.b16 %v310_v37, %v310_v37 }
 0x446   :  { %312 = vrot.lane.b32.xlu2 %v311_v38, %s1990_s16 }
 0x4a0   :  { %v313_v42 = vpop.permute.xlu2 %312 }
 0x4a1   :  { %1720 = vmatmul.msk.bf16.vlgmr.msrb.gmra.mxu3 %vm38_vm0, %v313_v42 }
 0x524   :  { %v326_v43 = vpop.f32.mrf.mxu3 }
 0x525   :  { %v327_v44 = vadd.f32 %v2121_v27, %v326_v43 }
 0x527   :  { %351 = vrot.lane.b32.xlu0 %v327_v44, %s1989_s15  ;;  %v330_v47 = vadd.f32 %v327_v44, %v309_v46 }
 0x529   :  { %v1721_v48 = vmul.f32 -1.442695, %v330_v47 }
 0x52b   :  { %1872 = vpow2.f32 %v1721_v48 }
 0x52c   :  { %v328_v45 = vpop.f32.mrf.mxu3 }
 0x531   :  { %v1873_v49 = vpop.eup %1872 }
 0x532   :  { %v334_v50 = vadd.f32 1.0, %v1873_v49 }
 0x534   :  { %1874 = vrcp.f32 %v334_v50  ;;  %v346_v55 = vand.u32 2147483648, %v334_v50  ;;  %vm340_vm11 = vweird.f32 %v334_v50  ;;  %v344_v56 = vand.u32 2147483647, %v334_v50 }
 0x536   :  { %v347_v59 = vor.u32 1.1754944e-38, %v346_v55  ;;  %vm345_vm13 = vcmp.eq.f32.partialorder %v344_v56, 8.507059e+37 }
 0x53a   :  { %v1875_v11 = vpop.eup %1874 }
 0x53b   :  { %v336_v51 = vmul.f32 %v1875_v11, %v334_v50  ;;  %vm341_vm10 = vweird.f32 %v1875_v11  ;;  %v447_v50 = vunpack.c.h.bf16 %v2173_v15 }
 0x53c   :  { %vm342_vm12 = vmor %vm340_vm11, %vm341_vm10 }
 0x53d   :  { %v337_v52 = vsub.f32 1.0, %v336_v51 }
 0x53f   :  { %v338_v53 = vmul.f32 %v1875_v11, %v337_v52 }
 0x541   :  { %v339_v54 = vadd.f32 %v1875_v11, %v338_v53 }
 0x543   :  { %v343_v57 = vsel %vm342_vm12, %v1875_v11, %v339_v54  ;;  %vm236_vm12 = vcmask 257024  }
 0x544   :  { %v348_v61 = vsel %vm345_vm13, %v347_v59, %v343_v57 }
 0x545   :  { %v361_v2 = vsub.f32 1.0, %v348_v61  ;;  %v367_v5 = vmul.f32 %v348_v61, %v299_v35 }
 0x599   :  { %v352_v60 = vpop.permute.xlu0 %351 }
 0x59a   :  { %v354_v62 = vmul.f32 %v352_v60, %v348_v61 }
 0x59c   :  { %356 = vrot.lane.b32.xlu1 %v354_v62, %s1989_s15 }
 0x60e   :  { %v357_v63 = vpop.permute.xlu1 %356 }
 0x60f   :  { %v359_v0 = vadd.f32 %v357_v63, %v309_v46 }
 0x611   :  { %1876 = vtanh.f32 %v359_v0 }
 0x617   :  { %v1877_v1 = vpop.eup %1876 }
 0x618   :  { %363 = vrot.lane.b32.xlu2 %v1877_v1, %s1990_s16 }
 0x672   :  { %v364_v3 = vpop.permute.xlu2 %363 }
 0x673   :  { %v366_v6 = vmul.f32 %v364_v3, %v361_v2 }
 0x675   :  { %v368_v7 = vadd.f32 %v367_v5, %v366_v6 }
 0x677   :  { %v2166_v9 = vpack.c.bf16 %v368_v7, %v368_v7 }
 0x679   :  { %v379_v10 = vunpack.c.l.b16 %v2166_v9 }
 0x67b   :  { %v380_v12 = vpack.c.b16 %v379_v10, %v379_v10 }
 0x67d   :  { %381 = vrot.lane.b32.xlu0 %v380_v12, %s1990_s16 }
 0x6ef   :  { %v382_v13 = vpop.permute.xlu0 %381 }
 0x6f0   :  { %1722 = vmatmul.msk.bf16.vlgmr.msra.gmra.mxu1 %vm38_vm0, %v382_v13 }
 0x76d   :  { %v395_v4 = vpop.f32.mrf.mxu1 }
 0x76e   :  { %v396_v8 = vadd.f32 %v2121_v27, %v395_v4 }
 0x770   :  { %420 = vrot.lane.b32.xlu1 %v396_v8, %s1989_s15  ;;  %v399_v17 = vadd.f32 %v396_v8, %v378_v16 }
 0x772   :  { %v1723_v18 = vmul.f32 -1.442695, %v399_v17 }
 0x774   :  { %1878 = vpow2.f32 %v1723_v18 }
 0x775   :  { %v397_v14 = vpop.f32.mrf.mxu1 }
 0x77a   :  { %v1879_v19 = vpop.eup %1878 }
 0x77b   :  { %v403_v20 = vadd.f32 1.0, %v1879_v19 }
 0x77d   :  { %1880 = vrcp.f32 %v403_v20  ;;  %v415_v26 = vand.u32 2147483648, %v403_v20  ;;  %vm409_vm15 = vweird.f32 %v403_v20  ;;  %v413_v28 = vand.u32 2147483647, %v403_v20 }
 0x77f   :  { %v416_v30 = vor.u32 1.1754944e-38, %v415_v26  ;;  %vm414_vm3 = vcmp.eq.f32.partialorder %v413_v28, 8.507059e+37 }
 0x783   :  { %v1881_v21 = vpop.eup %1880 }
 0x784   :  { %v405_v22 = vmul.f32 %v1881_v21, %v403_v20  ;;  %vm410_vm14 = vweird.f32 %v1881_v21  ;;  %v2197_v20 = vld [vmem:[#allocation3 + $0x14] sm:$0xff]  }
 0x785   :  { %vm411_vm2 = vmor %vm409_vm15, %vm410_vm14 }
 0x786   :  { %v406_v23 = vsub.f32 1.0, %v405_v22 }
 0x788   :  { %v407_v24 = vmul.f32 %v1881_v21, %v406_v23 }
 0x78a   :  { %v408_v25 = vadd.f32 %v1881_v21, %v407_v24 }
 0x78c   :  { %v412_v29 = vsel %vm411_vm2, %v1881_v21, %v408_v25  ;;  %v516_v21 = vunpack.c.l.bf16 %v2197_v20 }
 0x78d   :  { %v417_v32 = vsel %vm414_vm3, %v416_v30, %v412_v29 }
 0x78e   :  { %v430_v38 = vsub.f32 1.0, %v417_v32  ;;  %v436_v40 = vmul.f32 %v417_v32, %v368_v7 }
 0x7e2   :  { %v421_v31 = vpop.permute.xlu1 %420 }
 0x7e3   :  { %v423_v33 = vmul.f32 %v421_v31, %v417_v32 }
 0x7e5   :  { %425 = vrot.lane.b32.xlu2 %v423_v33, %s1989_s15 }
 0x83f   :  { %v426_v34 = vpop.permute.xlu2 %425 }
 0x840   :  { %v428_v35 = vadd.f32 %v426_v34, %v378_v16 }
 0x842   :  { %1882 = vtanh.f32 %v428_v35 }
 0x848   :  { %v1883_v37 = vpop.eup %1882 }
 0x849   :  { %432 = vrot.lane.b32.xlu0 %v1883_v37, %s1990_s16 }
 0x8bb   :  { %v433_v39 = vpop.permute.xlu0 %432 }
 0x8bc   :  { %v435_v41 = vmul.f32 %v433_v39, %v430_v38 }
 0x8be   :  { %v437_v42 = vadd.f32 %v436_v40, %v435_v41  ;;  %v1833_v40 = vld [vmem:[%s2530_s2 + $0x18] sm:$0xff]  ;;  %v1832_v41 = vld [vmem:[%s2530_s2 + $0x10] sm:$0xff] }
 0x8bf   :  { %801 = vmatpush.bf16.msrb.mxu3 %v1833_v40 }
 0x8c0   :  { %v2178_v43 = vpack.c.bf16 %v437_v42, %v437_v42 }
 0x8c2   :  { %v448_v44 = vunpack.c.l.b16 %v2178_v43 }
 0x8c3   :  { %802 = vmatpush.bf16.msrb.mxu3 %v1832_v41 }
 0x8c4   :  { %v449_v45 = vpack.c.b16 %v448_v44, %v448_v44 }
 0x8c6   :  { %450 = vrot.lane.b32.xlu1 %v449_v45, %s1990_s16 }
 0x938   :  { %v451_v46 = vpop.permute.xlu1 %450 }
 0x939   :  { %1724 = vmatmul.msk.bf16.vlgmr.msra.gmra.mxu2 %vm38_vm0, %v451_v46 }
 0x9bc   :  { %v464_v47 = vpop.f32.mrf.mxu2 }
 0x9bd   :  { %v465_v48 = vadd.f32 %v2121_v27, %v464_v47 }
 0x9bf   :  { %489 = vrot.lane.b32.xlu2 %v465_v48, %s1989_s15  ;;  %v468_v11 = vadd.f32 %v465_v48, %v447_v50 }
 0x9c1   :  { %v1725_v51 = vmul.f32 -1.442695, %v468_v11 }
 0x9c3   :  { %1884 = vpow2.f32 %v1725_v51 }
 0x9c4   :  { %v466_v49 = vpop.f32.mrf.mxu2 }
 0x9c9   :  { %v1885_v52 = vpop.eup %1884 }
 0x9ca   :  { %v472_v53 = vadd.f32 1.0, %v1885_v52 }
 0x9cc   :  { %1886 = vrcp.f32 %v472_v53  ;;  %v484_v60 = vand.u32 2147483648, %v472_v53  ;;  %vm478_vm5 = vweird.f32 %v472_v53  ;;  %v482_v61 = vand.u32 2147483647, %v472_v53 }
 0x9ce   :  { %v485_v63 = vor.u32 1.1754944e-38, %v484_v60  ;;  %vm483_vm7 = vcmp.eq.f32.partialorder %v482_v61, 8.507059e+37 }
 0x9d2   :  { %v1887_v54 = vpop.eup %1886 }
 0x9d3   :  { %v474_v55 = vmul.f32 %v1887_v54, %v472_v53  ;;  %vm479_vm4 = vweird.f32 %v1887_v54 }
 0x9d4   :  { %vm480_vm6 = vmor %vm478_vm5, %vm479_vm4 }
 0x9d5   :  { %v475_v56 = vsub.f32 1.0, %v474_v55 }
 0x9d7   :  { %v476_v57 = vmul.f32 %v1887_v54, %v475_v56 }
 0x9d9   :  { %v477_v59 = vadd.f32 %v1887_v54, %v476_v57 }
 0x9db   :  { %v481_v62 = vsel %vm480_vm6, %v1887_v54, %v477_v59  ;;  %v2224_v54 = vld [vmem:[%s2534_s4 + $0x1] ss:$0 sm:$0xff] }
 0x9dc   :  { %v486_v1 = vsel %vm483_vm7, %v485_v63, %v481_v62  ;;  %v2233_v62 = vld [vmem:[%s2532_s3 + $0x18] sm:$0xff]  ;;  %v2239_v63 = vld [vmem:[%s2532_s3 + $0x10] sm:$0xff] }
 0x9dd   :  { %v499_v7 = vsub.f32 1.0, %v486_v1  ;;  %v505_v12 = vmul.f32 %v486_v1, %v437_v42  ;;  %869 = vmatpush.bf16.msra.mxu1 %v2233_v62  ;;  %940 = vmatpush.bf16.msra.mxu2 %v2233_v62 }
 0x9de   :  { %1007 = vmatpush.bf16.msrb.mxu0 %v2233_v62 }
 0x9e1   :  { %870 = vmatpush.bf16.msra.mxu1 %v2239_v63  ;;  %941 = vmatpush.bf16.msra.mxu2 %v2239_v63 }
 0x9e2   :  { %1008 = vmatpush.bf16.msrb.mxu0 %v2239_v63 }
 0x9e6   :  { %1208 = vmatpush.bf16.msra.mxu0 %v2233_v62 }
 0x9ea   :  { %1209 = vmatpush.bf16.msra.mxu0 %v2239_v63 }
 0xa19   :  { %v490_v0 = vpop.permute.xlu2 %489 }
 0xa1a   :  { %v492_v2 = vmul.f32 %v490_v0, %v486_v1  ;;  %v1770_v1 = vld [vmem:[%s2533_s9 + $0x8] sm:$0xff] }
 0xa1c   :  { %494 = vrot.lane.b32.xlu0 %v492_v2, %s1989_s15  ;;  %v844_v2 = vpack.c.bf16 %v1770_v1, %v1770_v1 }
 0xa8e   :  { %v495_v3 = vpop.permute.xlu0 %494 }
 0xa8f   :  { %v497_v5 = vadd.f32 %v495_v3, %v447_v50 }
 0xa91   :  { %1888 = vtanh.f32 %v497_v5 }
 0xa97   :  { %v1889_v6 = vpop.eup %1888 }
 0xa98   :  { %501 = vrot.lane.b32.xlu1 %v1889_v6, %s1990_s16 }
 0xb0a   :  { %v502_v10 = vpop.permute.xlu1 %501 }
 0xb0b   :  { %v504_v13 = vmul.f32 %v502_v10, %v499_v7  ;;  %v2262_v7 = vld [vmem:[%s2536_s5 + $0x1] ss:$0 sm:$0xff] }
 0xb0d   :  { %v506_v4 = vadd.f32 %v505_v12, %v504_v13 }
 0xb0f   :  { %v2188_v8 = vpack.c.bf16 %v506_v4, %v506_v4 }
 0xb11   :  { %v517_v14 = vunpack.c.l.b16 %v2188_v8 }
 0xb13   :  { %v518_v15 = vpack.c.b16 %v517_v14, %v517_v14 }
 0xb15   :  { %519 = vrot.lane.b32.xlu2 %v518_v15, %s1990_s16 }
 0xb6f   :  { %v520_v16 = vpop.permute.xlu2 %519 }
 0xb70   :  { %1726 = vmatmul.msk.bf16.vlgmr.msra.gmra.mxu3 %vm38_vm0, %v520_v16 }
 0xbf3   :  { %v533_v17 = vpop.f32.mrf.mxu3 }
 0xbf4   :  { %v534_v18 = vadd.f32 %v2121_v27, %v533_v17 }
 0xbf6   :  { %558 = vrot.lane.b32.xlu0 %v534_v18, %s1989_s15  ;;  %v537_v22 = vadd.f32 %v534_v18, %v516_v21 }
 0xbf8   :  { %v1727_v23 = vmul.f32 -1.442695, %v537_v22 }
 0xbfa   :  { %1890 = vpow2.f32 %v1727_v23 }
 0xbfb   :  { %v535_v19 = vpop.f32.mrf.mxu3 }
 0xbfe   :  { %233 = vrot.lane.b32.xlu0 %v2130_v58, %s1990_s16 }
 0xc00   :  { %v1891_v24 = vpop.eup %1890 }
 0xc01   :  { %v541_v25 = vadd.f32 1.0, %v1891_v24 }
 0xc03   :  { %1892 = vrcp.f32 %v541_v25  ;;  %v553_v32 = vand.u32 2147483648, %v541_v25  ;;  %vm547_vm9 = vweird.f32 %v541_v25  ;;  %v551_v33 = vand.u32 2147483647, %v541_v25 }
 0xc05   :  { %v554_v34 = vor.u32 1.1754944e-38, %v553_v32  ;;  %vm552_vm11 = vcmp.eq.f32.partialorder %v551_v33, 8.507059e+37 }
 0xc09   :  { %v1893_v26 = vpop.eup %1892 }
 0xc0a   :  { %v543_v28 = vmul.f32 %v1893_v26, %v541_v25  ;;  %vm548_vm8 = vweird.f32 %v1893_v26 }
 0xc0b   :  { %vm549_vm10 = vmor %vm547_vm9, %vm548_vm8 }
 0xc0c   :  { %v544_v29 = vsub.f32 1.0, %v543_v28 }
 0xc0e   :  { %v545_v30 = vmul.f32 %v1893_v26, %v544_v29 }
 0xc10   :  { %v546_v31 = vadd.f32 %v1893_v26, %v545_v30 }
 0xc12   :  { %v550_v58 = vsel %vm549_vm10, %v1893_v26, %v546_v31 }
 0xc13   :  { %v555_v37 = vsel %vm552_vm11, %v554_v34, %v550_v58 }
 0xc14   :  { %v568_v47 = vsub.f32 1.0, %v555_v37  ;;  %v574_v49 = vmul.f32 %v555_v37, %v506_v4  ;;  %v585_v4 = vunpack.c.h.bf16 %v2197_v20 }
 0xc68   :  { %v559_v35 = vpop.permute.xlu0 %558 }
 0xc69   :  { %v561_v38 = vmul.f32 %v559_v35, %v555_v37 }
 0xc6b   :  { %563 = vrot.lane.b32.xlu1 %v561_v38, %s1989_s15 }
 0xc70   :  { %v234_v39 = vpop.permute.xlu0 %233 }
 0xc71   :  { %237 = vst.msk [vmem:[#allocation2] sm:$0xf] %vm236_vm12, %v234_v39 }
 0xc73   :  { %302 = vrot.lane.b32.xlu1 %v2154_v36, %s1990_s16 }
 0xcdd   :  { %v564_v42 = vpop.permute.xlu1 %563 }
 0xcde   :  { %v566_v44 = vadd.f32 %v564_v42, %v516_v21 }
 0xce0   :  { %1894 = vtanh.f32 %v566_v44 }
 0xce5   :  { %v303_v45 = vpop.permute.xlu1 %302 }
 0xce6   :  { %v1895_v46 = vpop.eup %1894  ;;  %306 = vst.msk [vmem:[#allocation2 + $0x4] sm:$0xf] %vm236_vm12, %v303_v45 }
 0xce7   :  { %570 = vrot.lane.b32.xlu2 %v1895_v46, %s1990_s16 }
 0xced   :  { %v1836_v36 = vld [vmem:[#allocation2] sm:$0xff] }
 0xcee   :  { %1766 = vmatmul.msk.bf16.vlgmr.msrb.gmra.mxu3 %vm38_vm0, %v1836_v36 }
 0xd41   :  { %v571_v48 = vpop.permute.xlu2 %570 }
 0xd42   :  { %v573_v50 = vmul.f32 %v571_v48, %v568_v47 }
 0xd44   :  { %v2213_v11 = vadd.f32 %v574_v49, %v573_v50 }
 0xd46   :  { %v2217_v51 = vpack.c.bf16 %v2213_v11, %v2213_v11 }
 0xd48   :  { %v586_v52 = vunpack.c.l.b16 %v2217_v51 }
 0xd4a   :  { %v587_v53 = vpack.c.b16 %v586_v52, %v586_v52 }
 0xd4c   :  { %588 = vrot.lane.b32.xlu2 %v587_v53, %s1990_s16 }
 0xd71   :  { %v804_v55 = vpop.f32.mrf.mxu3 }
 0xd72   :  { %v805_v56 = vadd.f32 %v2224_v54, %v804_v55 }
 0xd74   :  { %v824_v57 = vpack.c.bf16 %v805_v56, %v805_v56 }
 0xd76   :  { %832 = vst.msk [vmem:[#allocation3] sm:$0xf] %vm144_vm1, %v824_v57 }
 0xd79   :  { %v806_v59 = vpop.f32.mrf.mxu3 }
 0xd7a   :  { %v807_v60 = vadd.f32 %v2224_v54, %v806_v59 }
 0xd7c   :  { %v825_v61 = vpack.c.bf16 %v807_v60, %v807_v60 }
 0xd7e   :  { %833 = vst.msk [vmem:[#allocation3 + $0x4] sm:$0xf] %vm144_vm1, %v825_v61 }
 0xda6   :  { %v589_v0 = vpop.permute.xlu2 %588 }
 0xda7   :  { %1728 = vmatmul.msk.bf16.vlgmr.msrb.gmra.mxu1 %vm38_vm0, %v589_v0 }
 0xda8   :  { %1074 = vmatpush.bf16.msrb.mxu1 %v2233_v62 }
 0xdac   :  { %1075 = vmatpush.bf16.msrb.mxu1 %v2239_v63 }
 0xdb7   :  { %1779 = vmatmul.msk.bf16.vlgmr.msra.gmra.mxu1 %vm38_vm0, %v844_v2 }
 0xdb8   :  { %1275 = vmatpush.bf16.msra.mxu1 %v2233_v62 }
 0xdbc   :  { %1276 = vmatpush.bf16.msra.mxu1 %v2239_v63 }
 0xe24   :  { %v602_v3 = vpop.f32.mrf.mxu1 }
 0xe25   :  { %v603_v5 = vadd.f32 %v2121_v27, %v602_v3  ;;  %v2267_v27 = vld [vmem:[#allocation3] sm:$0xff]  }
 0xe26   :  { %v843_v17 = vunpack.c.l.bf16 %v2267_v27 }
 0xe27   :  { %627 = vrot.lane.b32.xlu0 %v603_v5, %s1989_s15  ;;  %v606_v14 = vadd.f32 %v603_v5, %v585_v4 }
 0xe29   :  { %v1729_v15 = vmul.f32 -1.442695, %v606_v14 }
 0xe2b   :  { %1896 = vpow2.f32 %v1729_v15 }
 0xe2c   :  { %v604_v6 = vpop.f32.mrf.mxu1 }
 0xe31   :  { %v1897_v16 = vpop.eup %1896 }
 0xe32   :  { %v610_v19 = vadd.f32 1.0, %v1897_v16 }
 0xe34   :  { %v872_v10 = vpop.f32.mrf.mxu1  ;;  %1898 = vrcp.f32 %v610_v19  ;;  %v622_v30 = vand.u32 2147483648, %v610_v19  ;;  %vm616_vm14 = vweird.f32 %v610_v19  ;;  %v620_v31 = vand.u32 2147483647, %v610_v19 }
 0xe35   :  { %v873_v12 = vadd.f32 %v2262_v7, %v872_v10 }
 0xe36   :  { %v623_v58 = vor.u32 1.1754944e-38, %v622_v30  ;;  %vm621_vm2 = vcmp.eq.f32.partialorder %v620_v31, 8.507059e+37 }
 0xe37   :  { %897 = vrot.lane.b32.xlu1 %v873_v12, %s1989_s15  ;;  %v876_v18 = vadd.f32 %v873_v12, %v843_v17 }
 0xe39   :  { %v1780_v21 = vmul.f32 -1.442695, %v876_v18 }
 0xe3a   :  { %v1899_v22 = vpop.eup %1898 }
 0xe3b   :  { %1900 = vpow2.f32 %v1780_v21  ;;  %v612_v24 = vmul.f32 %v1899_v22, %v610_v19  ;;  %vm617_vm13 = vweird.f32 %v1899_v22 }
 0xe3c   :  { %v874_v13 = vpop.f32.mrf.mxu1  ;;  %vm618_vm15 = vmor %vm616_vm14, %vm617_vm13 }
 0xe3d   :  { %v613_v26 = vsub.f32 1.0, %v612_v24 }
 0xe3f   :  { %v614_v20 = vmul.f32 %v1899_v22, %v613_v26 }
 0xe41   :  { %v1901_v23 = vpop.eup %1900  ;;  %v615_v28 = vadd.f32 %v1899_v22, %v614_v20 }
 0xe42   :  { %v880_v25 = vadd.f32 1.0, %v1901_v23  ;;  %v926_v23 = vunpack.c.h.bf16 %v2267_v27 }
 0xe43   :  { %v619_v32 = vsel %vm618_vm15, %v1899_v22, %v615_v28 }
 0xe44   :  { %1902 = vrcp.f32 %v880_v25  ;;  %v624_v35 = vsel %vm621_vm2, %v623_v58, %v619_v32  ;;  %v892_v41 = vand.u32 2147483648, %v880_v25  ;;  %vm886_vm4 = vweird.f32 %v880_v25 }
 0xe45   :  { %v890_v42 = vand.u32 2147483647, %v880_v25  ;;  %v637_v56 = vsub.f32 1.0, %v624_v35  ;;  %v643_v59 = vmul.f32 %v624_v35, %v2213_v11 }
 0xe46   :  { %v893_v45 = vor.u32 1.1754944e-38, %v892_v41 }
 0xe47   :  { %vm891_vm6 = vcmp.eq.f32.partialorder %v890_v42, 8.507059e+37 }
 0xe4a   :  { %v1903_v29 = vpop.eup %1902 }
 0xe4b   :  { %v882_v33 = vmul.f32 %v1903_v29, %v880_v25  ;;  %vm887_vm3 = vweird.f32 %v1903_v29 }
 0xe4c   :  { %vm888_vm5 = vmor %vm886_vm4, %vm887_vm3 }
 0xe4d   :  { %v883_v38 = vsub.f32 1.0, %v882_v33 }
 0xe4f   :  { %v884_v39 = vmul.f32 %v1903_v29, %v883_v38 }
 0xe51   :  { %v885_v40 = vadd.f32 %v1903_v29, %v884_v39 }
 0xe53   :  { %v889_v44 = vsel %vm888_vm5, %v1903_v29, %v885_v40 }
 0xe54   :  { %v894_v46 = vsel %vm891_vm6, %v893_v45, %v889_v44 }
 0xe55   :  { %v907_v5 = vsub.f32 1.0, %v894_v46 }
 0xe99   :  { %v628_v34 = vpop.permute.xlu0 %627 }
 0xe9a   :  { %v630_v37 = vmul.f32 %v628_v34, %v624_v35 }
 0xe9c   :  { %632 = vrot.lane.b32.xlu2 %v630_v37, %s1989_s15 }
 0xea9   :  { %v898_v36 = vpop.permute.xlu1 %897 }
 0xeaa   :  { %v900_v47 = vmul.f32 %v898_v36, %v894_v46 }
 0xeac   :  { %902 = vrot.lane.b32.xlu0 %v900_v47, %s1989_s15 }
 0xeb4   :  { %914 = vrot.lane.b32.xlu0 %v1770_v1, %s1991_s17 }
 0xef6   :  { %v633_v48 = vpop.permute.xlu2 %632 }
 0xef7   :  { %v635_v49 = vadd.f32 %v633_v48, %v585_v4 }
 0xef9   :  { %1904 = vtanh.f32 %v635_v49 }
 0xeff   :  { %v1905_v50 = vpop.eup %1904 }
 0xf00   :  { %639 = vrot.lane.b32.xlu1 %v1905_v50, %s1990_s16 }
 0xf1e   :  { %v903_v52 = vpop.permute.xlu0 %902 }
 0xf1f   :  { %v905_v53 = vadd.f32 %v903_v52, %v843_v17 }
 0xf21   :  { %1906 = vtanh.f32 %v905_v53 }
 0xf26   :  { %v915_v3 = vpop.permute.xlu0 %914 }
 0xf27   :  { %v1907_v55 = vpop.eup %1906  ;;  %v917_v10 = vmul.f32 %v915_v3, %v894_v46 }
 0xf28   :  { %909 = vrot.lane.b32.xlu2 %v1907_v55, %s1990_s16 }
 0xf72   :  { %v640_v57 = vpop.permute.xlu1 %639 }
 0xf73   :  { %v642_v60 = vmul.f32 %v640_v57, %v637_v56 }
 0xf75   :  { %v2276_v61 = vadd.f32 %v643_v59, %v642_v60 }
 0xf77   :  { %v2280_v0 = vpack.c.bf16 %v2276_v61, %v2276_v61 }
 0xf79   :  { %v655_v1 = vunpack.c.l.b16 %v2280_v0 }
 0xf7b   :  { %v656_v2 = vpack.c.b16 %v655_v1, %v655_v1 }
 0xf7d   :  { %657 = vrot.lane.b32.xlu1 %v656_v2, %s1990_s16 }
 0xf82   :  { %v910_v6 = vpop.permute.xlu2 %909 }
 0xf83   :  { %v912_v12 = vmul.f32 %v910_v6, %v907_v5 }
 0xf85   :  { %v918_v13 = vadd.f32 %v917_v10, %v912_v12 }
 0xf87   :  { %v2284_v4 = vpack.c.bf16 %v918_v13, %v918_v13 }
 0xf89   :  { %v927_v11 = vunpack.c.l.b16 %v2284_v4 }
 0xf8b   :  { %v928_v14 = vpack.c.b16 %v927_v11, %v927_v11 }
 0xf8d   :  { %929 = vrot.lane.b32.xlu2 %v928_v14, %s1990_s16 }
 0xfe7   :  { %v930_v16 = vpop.permute.xlu2 %929 }
 0xfef   :  { %v658_v15 = vpop.permute.xlu1 %657 }
 0xff0   :  { %1730 = vmatmul.msk.bf16.vlgmr.msrb.gmra.mxu2 %vm38_vm0, %v658_v15 }
 0xff1   :  { %1141 = vmatpush.bf16.msrb.mxu2 %v2233_v62 }
 0xff5   :  { %1142 = vmatpush.bf16.msrb.mxu2 %v2239_v63 }
0x1000   :  { %1781 = vmatmul.msk.bf16.vlgmr.msra.gmra.mxu2 %vm38_vm0, %v930_v16 }
0x1001   :  { %1342 = vmatpush.bf16.msra.mxu2 %v2233_v62 }
0x1005   :  { %1343 = vmatpush.bf16.msra.mxu2 %v2239_v63 }
0x1073   :  { %v2294_v17 = vpop.f32.mrf.mxu2 }
0x107b   :  { %v673_v18 = vpop.f32.mrf.mxu2 }
0x1083   :  { %v943_v19 = vpop.f32.mrf.mxu2 }
0x1084   :  { %v944_v21 = vadd.f32 %v2262_v7, %v943_v19 }
0x1086   :  { %968 = vrot.lane.b32.xlu0 %v944_v21, %s1989_s15  ;;  %v947_v24 = vadd.f32 %v944_v21, %v926_v23 }
0x1088   :  { %v1782_v25 = vmul.f32 -1.442695, %v947_v24 }
0x108a   :  { %1908 = vpow2.f32 %v1782_v25 }
0x108b   :  { %v945_v22 = vpop.f32.mrf.mxu2 }
0x108e   :  { %371 = vrot.lane.b32.xlu0 %v2166_v9, %s1990_s16 }
0x1090   :  { %v1909_v62 = vpop.eup %1908 }
0x1091   :  { %v951_v26 = vadd.f32 1.0, %v1909_v62 }
0x1093   :  { %1910 = vrcp.f32 %v951_v26  ;;  %v963_v31 = vand.u32 2147483648, %v951_v26  ;;  %vm957_vm8 = vweird.f32 %v951_v26  ;;  %v961_v32 = vand.u32 2147483647, %v951_v26 }
0x1095   :  { %v964_v9 = vor.u32 1.1754944e-38, %v963_v31  ;;  %vm962_vm10 = vcmp.eq.f32.partialorder %v961_v32, 8.507059e+37 }
0x1099   :  { %v1911_v63 = vpop.eup %1910 }
0x109a   :  { %v953_v20 = vmul.f32 %v1911_v63, %v951_v26  ;;  %vm958_vm7 = vweird.f32 %v1911_v63 }
0x109b   :  { %vm959_vm9 = vmor %vm957_vm8, %vm958_vm7 }
0x109c   :  { %v954_v28 = vsub.f32 1.0, %v953_v20 }
0x109e   :  { %v955_v29 = vmul.f32 %v1911_v63, %v954_v28 }
0x10a0   :  { %v956_v30 = vadd.f32 %v1911_v63, %v955_v29 }
0x10a2   :  { %v960_v33 = vsel %vm959_vm9, %v1911_v63, %v956_v30 }
0x10a3   :  { %v965_v58 = vsel %vm962_vm10, %v964_v9, %v960_v33 }
0x10a4   :  { %v978_v42 = vsub.f32 1.0, %v965_v58  ;;  %v984_v45 = vmul.f32 %v965_v58, %v918_v13 }
0x10f8   :  { %v969_v27 = vpop.permute.xlu0 %968 }
0x10f9   :  { %v971_v34 = vmul.f32 %v969_v27, %v965_v58 }
0x10fb   :  { %973 = vrot.lane.b32.xlu1 %v971_v34, %s1989_s15 }
0x1100   :  { %v372_v35 = vpop.permute.xlu0 %371 }
0x1101   :  { %375 = vst.msk [vmem:[#allocation2 + $0x8] sm:$0xf] %vm236_vm12, %v372_v35 }
0x1103   :  { %440 = vrot.lane.b32.xlu1 %v2178_v43, %s1990_s16 }
0x116d   :  { %v974_v37 = vpop.permute.xlu1 %973 }
0x116e   :  { %v976_v38 = vadd.f32 %v974_v37, %v926_v23 }
0x1170   :  { %1912 = vtanh.f32 %v976_v38 }
0x1175   :  { %v441_v39 = vpop.permute.xlu1 %440 }
0x1176   :  { %v1913_v40 = vpop.eup %1912  ;;  %444 = vst.msk [vmem:[#allocation2 + $0xc] sm:$0xf] %vm236_vm12, %v441_v39 }
0x1177   :  { %980 = vrot.lane.b32.xlu2 %v1913_v40, %s1990_s16 }
0x117d   :  { %v1837_v41 = vld [vmem:[#allocation2 + $0x8] sm:$0xff] }
0x117e   :  { %1767 = vmatmul.msk.bf16.gmra.mxu3 %vm38_vm0, %v1837_v41 }
0x11d1   :  { %v981_v44 = vpop.permute.xlu2 %980 }
0x11d2   :  { %v983_v46 = vmul.f32 %v981_v44, %v978_v42 }
0x11d4   :  { %v985_v36 = vadd.f32 %v984_v45, %v983_v46 }
0x11d6   :  { %v2308_v47 = vpack.c.bf16 %v985_v36, %v985_v36 }
0x11d8   :  { %v994_v43 = vunpack.c.l.b16 %v2308_v47 }
0x11da   :  { %v995_v48 = vpack.c.b16 %v994_v43, %v994_v43 }
0x11dc   :  { %996 = vrot.lane.b32.xlu2 %v995_v48, %s1990_s16 }
0x1201   :  { %v809_v49 = vpop.f32.mrf.mxu3 }
0x1202   :  { %v810_v50 = vadd.f32 %v2224_v54, %v809_v49 }
0x1204   :  { %v826_v52 = vpack.c.bf16 %v810_v50, %v810_v50 }
0x1206   :  { %834 = vst.msk [vmem:[#allocation3 + $0x8] sm:$0xf] %vm144_vm1, %v826_v52 }
0x1209   :  { %v811_v53 = vpop.f32.mrf.mxu3 }
0x120a   :  { %v812_v55 = vadd.f32 %v2224_v54, %v811_v53 }
0x120c   :  { %v827_v56 = vpack.c.bf16 %v812_v55, %v812_v55 }
0x120e   :  { %835 = vst.msk [vmem:[#allocation3 + $0xc] sm:$0xf] %vm144_vm1, %v827_v56 }
0x1215   :  { %v2319_v2 = vld [vmem:[#allocation3 + $0x8] sm:$0xff]  }
0x1216   :  { %v993_v3 = vunpack.c.l.bf16 %v2319_v2  ;;  %v1060_v37 = vunpack.c.h.bf16 %v2319_v2 }
0x1236   :  { %v997_v57 = vpop.permute.xlu2 %996 }
0x1237   :  { %1783 = vmatmul.msk.bf16.vlgmr.msrb.gmra.mxu0 %vm38_vm0, %v997_v57 }
0x12b4   :  { %v1010_v59 = vpop.f32.mrf.mxu0 }
0x12b5   :  { %v1011_v60 = vadd.f32 %v2262_v7, %v1010_v59 }
0x12b7   :  { %1035 = vrot.lane.b32.xlu0 %v1011_v60, %s1989_s15  ;;  %v1014_v5 = vadd.f32 %v1011_v60, %v993_v3 }
0x12b9   :  { %v1784_v6 = vmul.f32 -1.442695, %v1014_v5 }
0x12bb   :  { %1914 = vpow2.f32 %v1784_v6 }
0x12bc   :  { %v1012_v1 = vpop.f32.mrf.mxu0 }
0x12c1   :  { %v1915_v10 = vpop.eup %1914 }
0x12c2   :  { %v1018_v12 = vadd.f32 1.0, %v1915_v10 }
0x12c4   :  { %1916 = vrcp.f32 %v1018_v12  ;;  %v1030_v18 = vand.u32 2147483648, %v1018_v12  ;;  %vm1024_vm13 = vweird.f32 %v1018_v12  ;;  %v1028_v19 = vand.u32 2147483647, %v1018_v12 }
0x12c6   :  { %v1031_v22 = vor.u32 1.1754944e-38, %v1030_v18  ;;  %vm1029_vm15 = vcmp.eq.f32.partialorder %v1028_v19, 8.507059e+37 }
0x12ca   :  { %v1917_v13 = vpop.eup %1916 }
0x12cb   :  { %v1020_v11 = vmul.f32 %v1917_v13, %v1018_v12  ;;  %vm1025_vm11 = vweird.f32 %v1917_v13 }
0x12cc   :  { %vm1026_vm14 = vmor %vm1024_vm13, %vm1025_vm11 }
0x12cd   :  { %v1021_v14 = vsub.f32 1.0, %v1020_v11 }
0x12cf   :  { %v1022_v15 = vmul.f32 %v1917_v13, %v1021_v14 }
0x12d1   :  { %v1023_v16 = vadd.f32 %v1917_v13, %v1022_v15 }
0x12d3   :  { %v1027_v21 = vsel %vm1026_vm14, %v1917_v13, %v1023_v16 }
0x12d4   :  { %v1032_v24 = vsel %vm1029_vm15, %v1031_v22, %v1027_v21 }
0x12d5   :  { %v1045_v20 = vsub.f32 1.0, %v1032_v24  ;;  %v1051_v29 = vmul.f32 %v1032_v24, %v985_v36 }
0x1329   :  { %v1036_v23 = vpop.permute.xlu0 %1035 }
0x132a   :  { %v1038_v25 = vmul.f32 %v1036_v23, %v1032_v24 }
0x132c   :  { %1040 = vrot.lane.b32.xlu1 %v1038_v25, %s1989_s15 }
0x139e   :  { %v1041_v62 = vpop.permute.xlu1 %1040 }
0x139f   :  { %v1043_v26 = vadd.f32 %v1041_v62, %v993_v3 }
0x13a1   :  { %1918 = vtanh.f32 %v1043_v26 }
0x13a7   :  { %v1919_v63 = vpop.eup %1918 }
0x13a8   :  { %1047 = vrot.lane.b32.xlu2 %v1919_v63, %s1990_s16 }
0x1402   :  { %v1048_v28 = vpop.permute.xlu2 %1047 }
0x1403   :  { %v1050_v30 = vmul.f32 %v1048_v28, %v1045_v20 }
0x1405   :  { %v1052_v31 = vadd.f32 %v1051_v29, %v1050_v30 }
0x1407   :  { %v2324_v32 = vpack.c.bf16 %v1052_v31, %v1052_v31 }
0x1409   :  { %v1061_v33 = vunpack.c.l.b16 %v2324_v32 }
0x140b   :  { %v1062_v9 = vpack.c.b16 %v1061_v33, %v1061_v33 }
0x140d   :  { %1063 = vrot.lane.b32.xlu0 %v1062_v9, %s1990_s16 }
0x147f   :  { %v1064_v27 = vpop.permute.xlu0 %1063 }
0x1480   :  { %1785 = vmatmul.msk.bf16.vlgmr.msrb.gmra.mxu1 %vm38_vm0, %v1064_v27 }
0x14fd   :  { %v1077_v58 = vpop.f32.mrf.mxu1 }
0x14fe   :  { %v1078_v34 = vadd.f32 %v2262_v7, %v1077_v58 }
0x1500   :  { %1102 = vrot.lane.b32.xlu1 %v1078_v34, %s1989_s15  ;;  %v1081_v38 = vadd.f32 %v1078_v34, %v1060_v37 }
0x1502   :  { %v1786_v39 = vmul.f32 -1.442695, %v1081_v38 }
0x1504   :  { %1920 = vpow2.f32 %v1786_v39 }
0x1505   :  { %v1079_v35 = vpop.f32.mrf.mxu1 }
0x1508   :  { %509 = vrot.lane.b32.xlu1 %v2188_v8, %s1990_s16 }
0x150a   :  { %v1921_v40 = vpop.eup %1920 }
0x150b   :  { %v1085_v41 = vadd.f32 1.0, %v1921_v40  ;;  %v1988_v40 = vld [vmem:[%s2536_s5] ss:$0 sm:$0xff] }
0x150d   :  { %1922 = vrcp.f32 %v1085_v41  ;;  %v1097_v43 = vand.u32 2147483648, %v1085_v41  ;;  %vm1091_vm3 = vweird.f32 %v1085_v41  ;;  %v1095_v48 = vand.u32 2147483647, %v1085_v41 }
0x150f   :  { %v1098_v8 = vor.u32 1.1754944e-38, %v1097_v43  ;;  %vm1096_vm5 = vcmp.eq.f32.partialorder %v1095_v48, 8.507059e+37 }
0x1513   :  { %v1923_v42 = vpop.eup %1922 }
0x1514   :  { %v1087_v44 = vmul.f32 %v1923_v42, %v1085_v41  ;;  %vm1092_vm2 = vweird.f32 %v1923_v42  ;;  %v672_v41 = vadd.f32 %v1988_v40, %v2294_v17 }
0x1515   :  { %vm1093_vm4 = vmor %vm1091_vm3, %vm1092_vm2 }
0x1516   :  { %v1088_v45 = vsub.f32 1.0, %v1087_v44 }
0x1518   :  { %v1089_v46 = vmul.f32 %v1923_v42, %v1088_v45 }
0x151a   :  { %v1090_v36 = vadd.f32 %v1923_v42, %v1089_v46  ;;  %v653_v46 = vld [vmem:[#allocation3 + $0x1c] sm:$0xf] }
0x151c   :  { %v1094_v49 = vsel %vm1093_vm4, %v1923_v42, %v1090_v36  ;;  %v654_v36 = vunpack.c.l.bf16 %v653_v46 }
0x151d   :  { %v1099_v52 = vsel %vm1096_vm5, %v1098_v8, %v1094_v49 }
0x151e   :  { %v1112_v2 = vsub.f32 1.0, %v1099_v52  ;;  %v1118_v5 = vmul.f32 %v1099_v52, %v1052_v31  ;;  %v675_v43 = vadd.f32 %v672_v41, %v654_v36 }
0x1520   :  { %v1731_v48 = vmul.f32 -1.442695, %v675_v43 }
0x1572   :  { %v1103_v50 = vpop.permute.xlu1 %1102 }
0x1573   :  { %v1105_v53 = vmul.f32 %v1103_v50, %v1099_v52 }
0x1575   :  { %1107 = vrot.lane.b32.xlu2 %v1105_v53, %s1989_s15 }
0x157a   :  { %v510_v55 = vpop.permute.xlu1 %509 }
0x157b   :  { %513 = vst.msk [vmem:[#allocation2 + $0x10] sm:$0xf] %vm236_vm12, %v510_v55 }
0x157d   :  { %578 = vrot.lane.b32.xlu2 %v2217_v51, %s1990_s16 }
0x15cf   :  { %v1108_v56 = vpop.permute.xlu2 %1107 }
0x15d0   :  { %v1110_v57 = vadd.f32 %v1108_v56, %v1060_v37 }
0x15d2   :  { %1924 = vtanh.f32 %v1110_v57 }
0x15d7   :  { %v579_v59 = vpop.permute.xlu2 %578 }
0x15d8   :  { %v1925_v60 = vpop.eup %1924  ;;  %582 = vst.msk [vmem:[#allocation2 + $0x14] sm:$0xf] %vm236_vm12, %v579_v59 }
0x15d9   :  { %1114 = vrot.lane.b32.xlu0 %v1925_v60, %s1990_s16 }
0x15df   :  { %v1838_v1 = vld [vmem:[#allocation2 + $0x10] sm:$0xff] }
0x15e0   :  { %1768 = vmatmul.msk.bf16.gmra.mxu3 %vm38_vm0, %v1838_v1 }
0x164b   :  { %v1115_v3 = vpop.permute.xlu0 %1114 }
0x164c   :  { %v1117_v6 = vmul.f32 %v1115_v3, %v1112_v2 }
0x164e   :  { %v2341_v10 = vadd.f32 %v1118_v5, %v1117_v6 }
0x1650   :  { %v2345_v51 = vpack.c.bf16 %v2341_v10, %v2341_v10 }
0x1652   :  { %v1128_v12 = vunpack.c.l.b16 %v2345_v51 }
0x1654   :  { %v1129_v13 = vpack.c.b16 %v1128_v12, %v1128_v12 }
0x1656   :  { %1130 = vrot.lane.b32.xlu0 %v1129_v13, %s1990_s16 }
0x1663   :  { %v814_v11 = vpop.f32.mrf.mxu3 }
0x1664   :  { %v815_v14 = vadd.f32 %v2224_v54, %v814_v11 }
0x1666   :  { %v828_v15 = vpack.c.bf16 %v815_v14, %v815_v14 }
0x1668   :  { %836 = vst.msk [vmem:[#allocation3 + $0x10] sm:$0xf] %vm144_vm1, %v828_v15 }
0x166b   :  { %v816_v16 = vpop.f32.mrf.mxu3 }
0x166c   :  { %v817_v18 = vadd.f32 %v2224_v54, %v816_v16 }
0x166e   :  { %v829_v19 = vpack.c.bf16 %v817_v18, %v817_v18 }
0x1670   :  { %837 = vst.msk [vmem:[#allocation3 + $0x14] sm:$0xf] %vm144_vm1, %v829_v19 }
0x1677   :  { %v2356_v25 = vld [vmem:[#allocation3 + $0x10] sm:$0xff]  }
0x1678   :  { %v1127_v62 = vunpack.c.l.bf16 %v2356_v25 }
0x16c8   :  { %v1131_v21 = vpop.permute.xlu0 %1130 }
0x16c9   :  { %1787 = vmatmul.msk.bf16.vlgmr.msrb.gmra.mxu2 %vm38_vm0, %v1131_v21 }
0x174c   :  { %v1144_v22 = vpop.f32.mrf.mxu2 }
0x174d   :  { %v1145_v23 = vadd.f32 %v2262_v7, %v1144_v22 }
0x174f   :  { %1169 = vrot.lane.b32.xlu1 %v1145_v23, %s1989_s15  ;;  %v1148_v26 = vadd.f32 %v1145_v23, %v1127_v62 }
0x1751   :  { %v1788_v63 = vmul.f32 -1.442695, %v1148_v26 }
0x1753   :  { %1926 = vpow2.f32 %v1788_v63 }
0x1754   :  { %v1146_v24 = vpop.f32.mrf.mxu2 }
0x1759   :  { %v1927_v20 = vpop.eup %1926 }
0x175a   :  { %v1152_v28 = vadd.f32 1.0, %v1927_v20 }
0x175c   :  { %1928 = vrcp.f32 %v1152_v28  ;;  %v1164_v27 = vand.u32 2147483648, %v1152_v28  ;;  %vm1158_vm7 = vweird.f32 %v1152_v28  ;;  %v1162_v58 = vand.u32 2147483647, %v1152_v28 }
0x175e   :  { %v1165_v35 = vor.u32 1.1754944e-38, %v1164_v27  ;;  %vm1163_vm9 = vcmp.eq.f32.partialorder %v1162_v58, 8.507059e+37 }
0x1762   :  { %v1929_v29 = vpop.eup %1928 }
0x1763   :  { %v1154_v30 = vmul.f32 %v1929_v29, %v1152_v28  ;;  %vm1159_vm6 = vweird.f32 %v1929_v29 }
0x1764   :  { %vm1160_vm8 = vmor %vm1158_vm7, %vm1159_vm6 }
0x1765   :  { %v1155_v31 = vsub.f32 1.0, %v1154_v30 }
0x1767   :  { %v1156_v33 = vmul.f32 %v1929_v29, %v1155_v31 }
0x1769   :  { %v1157_v9 = vadd.f32 %v1929_v29, %v1156_v33 }
0x176b   :  { %v1161_v34 = vsel %vm1160_vm8, %v1929_v29, %v1157_v9 }
0x176c   :  { %v1166_v38 = vsel %vm1163_vm9, %v1165_v35, %v1161_v34 }
0x176d   :  { %v1179_v53 = vsub.f32 1.0, %v1166_v38  ;;  %v1185_v56 = vmul.f32 %v1166_v38, %v2341_v10 }
0x17c1   :  { %v1170_v37 = vpop.permute.xlu1 %1169 }
0x17c2   :  { %v1172_v39 = vmul.f32 %v1170_v37, %v1166_v38 }
0x17c4   :  { %1174 = vrot.lane.b32.xlu2 %v1172_v39, %s1989_s15 }
0x17cc   :  { %696 = vrot.lane.b32.xlu2 %v672_v41, %s1989_s15 }
0x181e   :  { %v1175_v42 = vpop.permute.xlu2 %1174 }
0x181f   :  { %v1177_v44 = vadd.f32 %v1175_v42, %v1127_v62  ;;  %v1194_v62 = vunpack.c.h.bf16 %v2356_v25 }
0x1821   :  { %1930 = vtanh.f32 %v1177_v44 }
0x1822   :  { %1932 = vpow2.f32 %v1731_v48 }
0x1826   :  { %v697_v13 = vpop.permute.xlu2 %696 }
0x1827   :  { %v1931_v45 = vpop.eup %1930 }
0x1828   :  { %1181 = vrot.lane.b32.xlu0 %v1931_v45, %s1990_s16  ;;  %v1933_v49 = vpop.eup %1932 }
0x1829   :  { %v679_v8 = vadd.f32 1.0, %v1933_v49 }
0x182b   :  { %1934 = vrcp.f32 %v679_v8  ;;  %v691_v6 = vand.u32 2147483648, %v679_v8  ;;  %vm685_vm11 = vweird.f32 %v679_v8  ;;  %v689_v12 = vand.u32 2147483647, %v679_v8 }
0x182d   :  { %v692_v11 = vor.u32 1.1754944e-38, %v691_v6  ;;  %vm690_vm14 = vcmp.eq.f32.partialorder %v689_v12, 8.507059e+37 }
0x1831   :  { %v1935_v50 = vpop.eup %1934 }
0x1832   :  { %v681_v52 = vmul.f32 %v1935_v50, %v679_v8  ;;  %vm686_vm10 = vweird.f32 %v1935_v50 }
0x1833   :  { %vm687_vm13 = vmor %vm685_vm11, %vm686_vm10 }
0x1834   :  { %v682_v55 = vsub.f32 1.0, %v681_v52 }
0x1836   :  { %v683_v60 = vmul.f32 %v1935_v50, %v682_v55 }
0x1838   :  { %v684_v3 = vadd.f32 %v1935_v50, %v683_v60 }
0x183a   :  { %v688_v10 = vsel %vm687_vm13, %v1935_v50, %v684_v3 }
0x183b   :  { %v693_v14 = vsel %vm690_vm14, %v692_v11, %v688_v10 }
0x183c   :  { %v699_v15 = vmul.f32 %v697_v13, %v693_v14  ;;  %v706_v39 = vsub.f32 1.0, %v693_v14  ;;  %v712_v41 = vmul.f32 %v693_v14, %v2276_v61 }
0x189a   :  { %v1182_v17 = vpop.permute.xlu0 %1181 }
0x189b   :  { %v1184_v57 = vmul.f32 %v1182_v17, %v1179_v53 }
0x189d   :  { %v2367_v59 = vadd.f32 %v1185_v56, %v1184_v57 }
0x189f   :  { %v2371_v1 = vpack.c.bf16 %v2367_v59, %v2367_v59 }
0x18a1   :  { %v1195_v2 = vunpack.c.l.b16 %v2371_v1 }
0x18a3   :  { %v1196_v5 = vpack.c.b16 %v1195_v2, %v1195_v2 }
0x18a5   :  { %1197 = vrot.lane.b32.xlu1 %v1196_v5, %s1990_s16 }
0x18ad   :  { %701 = vrot.lane.b32.xlu1 %v699_v15, %s1989_s15 }
0x1917   :  { %v1198_v16 = vpop.permute.xlu1 %1197 }
0x1918   :  { %1789 = vmatmul.msk.bf16.vlgmr.msra.gmra.mxu0 %vm38_vm0, %v1198_v16 }
0x191f   :  { %v702_v18 = vpop.permute.xlu1 %701 }
0x1920   :  { %v704_v19 = vadd.f32 %v702_v18, %v654_v36 }
0x1922   :  { %1936 = vtanh.f32 %v704_v19 }
0x1928   :  { %v1937_v24 = vpop.eup %1936 }
0x1995   :  { %v1211_v21 = vpop.f32.mrf.mxu0 }
0x1996   :  { %v1212_v22 = vadd.f32 %v2262_v7, %v1211_v21 }
0x1998   :  { %1236 = vrot.lane.b32.xlu0 %v1212_v22, %s1989_s15  ;;  %v1215_v26 = vadd.f32 %v1212_v22, %v1194_v62 }
0x199a   :  { %v1790_v63 = vmul.f32 -1.442695, %v1215_v26 }
0x199c   :  { %1938 = vpow2.f32 %v1790_v63 }
0x199d   :  { %v1213_v23 = vpop.f32.mrf.mxu0 }
0x19a0   :  { %708 = vrot.lane.b32.xlu0 %v1937_v24, %s1990_s16 }
0x19a2   :  { %v1939_v20 = vpop.eup %1938 }
0x19a3   :  { %v1219_v28 = vadd.f32 1.0, %v1939_v20 }
0x19a5   :  { %1940 = vrcp.f32 %v1219_v28  ;;  %v1231_v27 = vand.u32 2147483648, %v1219_v28  ;;  %vm1225_vm2 = vweird.f32 %v1219_v28  ;;  %v1229_v58 = vand.u32 2147483647, %v1219_v28 }
0x19a7   :  { %v1232_v35 = vor.u32 1.1754944e-38, %v1231_v27  ;;  %vm1230_vm4 = vcmp.eq.f32.partialorder %v1229_v58, 8.507059e+37 }
0x19ab   :  { %v1941_v29 = vpop.eup %1940 }
0x19ac   :  { %v1221_v30 = vmul.f32 %v1941_v29, %v1219_v28  ;;  %vm1226_vm15 = vweird.f32 %v1941_v29 }
0x19ad   :  { %vm1227_vm3 = vmor %vm1225_vm2, %vm1226_vm15 }
0x19ae   :  { %v1222_v31 = vsub.f32 1.0, %v1221_v30 }
0x19b0   :  { %v1223_v33 = vmul.f32 %v1941_v29, %v1222_v31 }
0x19b2   :  { %v1224_v9 = vadd.f32 %v1941_v29, %v1223_v33 }
0x19b4   :  { %v1228_v34 = vsel %vm1227_vm3, %v1941_v29, %v1224_v9 }
0x19b5   :  { %v1233_v37 = vsel %vm1230_vm4, %v1232_v35, %v1228_v34 }
0x19b6   :  { %v1252_v50 = vmul.f32 %v1233_v37, %v2367_v59 }
0x1a0a   :  { %v1237_v25 = vpop.permute.xlu0 %1236 }
0x1a0b   :  { %v1239_v38 = vmul.f32 %v1237_v25, %v1233_v37 }
0x1a0d   :  { %1241 = vrot.lane.b32.xlu2 %v1239_v38, %s1989_s15 }
0x1a12   :  { %v709_v40 = vpop.permute.xlu0 %708 }
0x1a13   :  { %v711_v42 = vmul.f32 %v709_v40, %v706_v39 }
0x1a15   :  { %v2383_v44 = vadd.f32 %v712_v41, %v711_v42  ;;  %647 = vrot.lane.b32.xlu2 %v2280_v0, %s1990_s16  ;;  %v1246_v0 = vsub.f32 1.0, %v1233_v37 }
0x1a17   :  { %v714_v45 = vpack.c.bf16 %v2383_v44, %v2383_v44 }
0x1a19   :  { %716 = vrot.lane.b32.xlu0 %v714_v45, %s1990_s16 }
0x1a67   :  { %v1242_v46 = vpop.permute.xlu2 %1241 }
0x1a68   :  { %v1244_v36 = vadd.f32 %v1242_v46, %v1194_v62 }
0x1a6a   :  { %1942 = vtanh.f32 %v1244_v36 }
0x1a6f   :  { %v648_v43 = vpop.permute.xlu2 %647 }
0x1a70   :  { %v1943_v48 = vpop.eup %1942  ;;  %651 = vst.msk [vmem:[#allocation2 + $0x18] sm:$0xf] %vm236_vm12, %v648_v43 }
0x1a71   :  { %1248 = vrot.lane.b32.xlu1 %v1943_v48, %s1990_s16 }
0x1a8b   :  { %v717_v61 = vpop.permute.xlu0 %716 }
0x1a8c   :  { %720 = vst.msk [vmem:[#allocation2 + $0x1c] sm:$0xf] %vm236_vm12, %v717_v61 }
0x1a93   :  { %v1839_v49 = vld [vmem:[#allocation2 + $0x18] sm:$0xff] }
0x1a94   :  { %1769 = vmatmul.msk.bf16.gmra.mxu3 %vm38_vm0, %v1839_v49 }
0x1ae3   :  { %v1249_v8 = vpop.permute.xlu1 %1248 }
0x1ae4   :  { %v1251_v52 = vmul.f32 %v1249_v8, %v1246_v0 }
0x1ae6   :  { %v1253_v53 = vadd.f32 %v1252_v50, %v1251_v52 }
0x1ae8   :  { %v1254_v17 = vpack.c.bf16 %v1253_v53, %v1253_v53 }
0x1aea   :  { %v1262_v55 = vunpack.c.l.b16 %v1254_v17 }
0x1aec   :  { %v1263_v56 = vpack.c.b16 %v1262_v55, %v1262_v55 }
0x1aee   :  { %1264 = vrot.lane.b32.xlu1 %v1263_v56, %s1990_s16 }
0x1b17   :  { %v819_v57 = vpop.f32.mrf.mxu3 }
0x1b18   :  { %v820_v60 = vadd.f32 %v2224_v54, %v819_v57 }
0x1b1a   :  { %v830_v2 = vpack.c.bf16 %v820_v60, %v820_v60 }
0x1b1c   :  { %838 = vst.msk [vmem:[#allocation3 + $0x18] sm:$0xf] %vm144_vm1, %v830_v2 }
0x1b1f   :  { %v821_v3 = vpop.f32.mrf.mxu3 }
0x1b20   :  { %v822_v5 = vadd.f32 %v2224_v54, %v821_v3 }
0x1b22   :  { %v831_v6 = vpack.c.bf16 %v822_v5, %v822_v5 }
0x1b24   :  { %839 = vst.msk [vmem:[#allocation3 + $0x1c] sm:$0xf] %vm144_vm1, %v831_v6 }
0x1b2b   :  { %v2403_v11 = vld [vmem:[#allocation3 + $0x18] sm:$0xff]  }
0x1b2c   :  { %v1261_v14 = vunpack.c.l.bf16 %v2403_v11  ;;  %v1328_v36 = vunpack.c.h.bf16 %v2403_v11 }
0x1b60   :  { %v1265_v59 = vpop.permute.xlu1 %1264 }
0x1b61   :  { %1791 = vmatmul.msk.bf16.vlgmr.msra.gmra.mxu1 %vm38_vm0, %v1265_v59 }
0x1bde   :  { %v1278_v12 = vpop.f32.mrf.mxu1 }
0x1bdf   :  { %v1279_v10 = vadd.f32 %v2262_v7, %v1278_v12 }
0x1be1   :  { %1303 = vrot.lane.b32.xlu2 %v1279_v10, %s1989_s15  ;;  %v1282_v15 = vadd.f32 %v1279_v10, %v1261_v14 }
0x1be3   :  { %v1792_v16 = vmul.f32 -1.442695, %v1282_v15 }
0x1be5   :  { %1944 = vpow2.f32 %v1792_v16 }
0x1be6   :  { %v1280_v13 = vpop.f32.mrf.mxu1 }
0x1beb   :  { %v1945_v54 = vpop.eup %1944 }
0x1bec   :  { %v1286_v18 = vadd.f32 1.0, %v1945_v54 }
0x1bee   :  { %1946 = vrcp.f32 %v1286_v18  ;;  %v1298_v62 = vand.u32 2147483648, %v1286_v18  ;;  %vm1292_vm5 = vweird.f32 %v1286_v18  ;;  %v1296_v26 = vand.u32 2147483647, %v1286_v18 }
0x1bf0   :  { %v1299_v20 = vor.u32 1.1754944e-38, %v1298_v62  ;;  %vm1297_vm7 = vcmp.eq.f32.partialorder %v1296_v26, 8.507059e+37 }
0x1bf4   :  { %v1947_v19 = vpop.eup %1946 }
0x1bf5   :  { %v1288_v21 = vmul.f32 %v1947_v19, %v1286_v18  ;;  %vm1293_vm1 = vweird.f32 %v1947_v19 }
0x1bf6   :  { %vm1294_vm6 = vmor %vm1292_vm5, %vm1293_vm1 }
0x1bf7   :  { %v1289_v22 = vsub.f32 1.0, %v1288_v21 }
0x1bf9   :  { %v1290_v23 = vmul.f32 %v1947_v19, %v1289_v22 }
0x1bfb   :  { %v1291_v24 = vadd.f32 %v1947_v19, %v1290_v23 }
0x1bfd   :  { %v1295_v63 = vsel %vm1294_vm6, %v1947_v19, %v1291_v24 }
0x1bfe   :  { %v1300_v29 = vsel %vm1297_vm7, %v1299_v20, %v1295_v63 }
0x1bff   :  { %v1313_v27 = vsub.f32 1.0, %v1300_v29  ;;  %v1319_v34 = vmul.f32 %v1300_v29, %v1253_v53 }
0x1c3b   :  { %v1304_v28 = vpop.permute.xlu2 %1303 }
0x1c3c   :  { %v1306_v30 = vmul.f32 %v1304_v28, %v1300_v29 }
0x1c3e   :  { %1308 = vrot.lane.b32.xlu0 %v1306_v30, %s1989_s15 }
0x1cb0   :  { %v1309_v31 = vpop.permute.xlu0 %1308 }
0x1cb1   :  { %v1311_v33 = vadd.f32 %v1309_v31, %v1261_v14  ;;  %v1859_v14 = vld [vmem:[%s2538_s7] ss:$0 sm:$0xff] }
0x1cb3   :  { %1948 = vtanh.f32 %v1311_v33 }
0x1cb9   :  { %v1949_v9 = vpop.eup %1948 }
0x1cba   :  { %1315 = vrot.lane.b32.xlu1 %v1949_v9, %s1990_s16 }
0x1d2c   :  { %v1316_v58 = vpop.permute.xlu1 %1315 }
0x1d2d   :  { %v1318_v35 = vmul.f32 %v1316_v58, %v1313_v27 }
0x1d2f   :  { %v2408_v25 = vadd.f32 %v1319_v34, %v1318_v35 }
0x1d31   :  { %v1321_v37 = vpack.c.bf16 %v2408_v25, %v2408_v25 }
0x1d33   :  { %v1329_v38 = vunpack.c.l.b16 %v1321_v37 }
0x1d35   :  { %v1330_v39 = vpack.c.b16 %v1329_v38, %v1329_v38 }
0x1d37   :  { %1331 = vrot.lane.b32.xlu2 %v1330_v39, %s1990_s16 }
0x1d3f   :  { %921 = vrot.lane.b32.xlu2 %v2284_v4, %s1990_s16 }
0x1d47   :  { %1055 = vrot.lane.b32.xlu2 %v2324_v32, %s1990_s16 }
0x1d4f   :  { %1256 = vrot.lane.b32.xlu2 %v1254_v17, %s1990_s16 }
0x1d91   :  { %v1332_v40 = vpop.permute.xlu2 %1331 }
0x1d92   :  { %1793 = vmatmul.msk.bf16.vlgmr.msra.gmra.mxu2 %vm38_vm0, %v1332_v40 }
0x1d99   :  { %v922_v41 = vpop.permute.xlu2 %921 }
0x1d9a   :  { %924 = vst.msk [vmem:[#allocation2] sm:$0xf] %vm236_vm12, %v922_v41 }
0x1da1   :  { %v1056_v42 = vpop.permute.xlu2 %1055 }
0x1da2   :  { %1058 = vst.msk [vmem:[#allocation2 + $0x8] sm:$0xf] %vm236_vm12, %v1056_v42 }
0x1da9   :  { %v1257_v45 = vpop.permute.xlu2 %1256 }
0x1daa   :  { %1259 = vst.msk [vmem:[#allocation2 + $0x14] sm:$0xf] %vm236_vm12, %v1257_v45 }
0x1e15   :  { %v1345_v46 = vpop.f32.mrf.mxu2 }
0x1e16   :  { %v1346_v4 = vadd.f32 %v2262_v7, %v1345_v46  ;;  %v1845_v7 = vld [vmem:[%s2537_s6 + $0x8] sm:$0xff] }
0x1e17   :  { %1465 = vmatpush.bf16.msrb.mxu0 %v1845_v7 }
0x1e18   :  { %1370 = vrot.lane.b32.xlu0 %v1346_v4, %s1989_s15  ;;  %v1349_v43 = vadd.f32 %v1346_v4, %v1328_v36 }
0x1e1a   :  { %v1794_v48 = vmul.f32 -1.442695, %v1349_v43 }
0x1e1c   :  { %1950 = vpow2.f32 %v1794_v48 }
0x1e1d   :  { %v1347_v32 = vpop.f32.mrf.mxu2 }
0x1e20   :  { %988 = vrot.lane.b32.xlu0 %v2308_v47, %s1990_s16  ;;  %v1844_v47 = vld [vmem:[%s2537_s6] sm:$0xff] }
0x1e21   :  { %1466 = vmatpush.bf16.msrb.mxu0 %v1844_v47 }
0x1e22   :  { %v1951_v61 = vpop.eup %1950 }
0x1e23   :  { %v1353_v49 = vadd.f32 1.0, %v1951_v61 }
0x1e25   :  { %1952 = vrcp.f32 %v1353_v49  ;;  %v1365_v53 = vand.u32 2147483648, %v1353_v49  ;;  %vm1359_vm9 = vweird.f32 %v1353_v49  ;;  %v1363_v17 = vand.u32 2147483647, %v1353_v49 }
0x1e27   :  { %v1366_v56 = vor.u32 1.1754944e-38, %v1365_v53  ;;  %vm1364_vm11 = vcmp.eq.f32.partialorder %v1363_v17, 8.507059e+37 }
0x1e28   :  { %1122 = vrot.lane.b32.xlu0 %v2345_v51, %s1990_s16 }
0x1e2b   :  { %v1953_v0 = vpop.eup %1952 }
0x1e2c   :  { %v1355_v51 = vmul.f32 %v1953_v0, %v1353_v49  ;;  %vm1360_vm8 = vweird.f32 %v1953_v0 }
0x1e2d   :  { %vm1361_vm10 = vmor %vm1359_vm9, %vm1360_vm8 }
0x1e2e   :  { %v1356_v8 = vsub.f32 1.0, %v1355_v51 }
0x1e30   :  { %1323 = vrot.lane.b32.xlu0 %v1321_v37, %s1990_s16  ;;  %v1357_v50 = vmul.f32 %v1953_v0, %v1356_v8 }
0x1e32   :  { %v1358_v52 = vadd.f32 %v1953_v0, %v1357_v50 }
0x1e34   :  { %v1362_v55 = vsel %vm1361_vm10, %v1953_v0, %v1358_v52 }
0x1e35   :  { %v1367_v60 = vsel %vm1364_vm11, %v1366_v56, %v1362_v55 }
0x1e36   :  { %v1380_v23 = vsub.f32 1.0, %v1367_v60  ;;  %v1386_v62 = vmul.f32 %v1367_v60, %v2408_v25 }
0x1e8a   :  { %v1371_v57 = vpop.permute.xlu0 %1370 }
0x1e8b   :  { %v1373_v2 = vmul.f32 %v1371_v57, %v1367_v60 }
0x1e8d   :  { %1375 = vrot.lane.b32.xlu1 %v1373_v2, %s1989_s15 }
0x1e92   :  { %v989_v3 = vpop.permute.xlu0 %988 }
0x1e93   :  { %991 = vst.msk [vmem:[#allocation2 + $0x4] sm:$0xf] %vm236_vm12, %v989_v3 }
0x1e9a   :  { %v1123_v5 = vpop.permute.xlu0 %1122  ;;  %v1840_v6 = vld [vmem:[#allocation2] sm:$0xff] }
0x1e9b   :  { %1125 = vst.msk [vmem:[#allocation2 + $0xc] sm:$0xf] %vm236_vm12, %v1123_v5  ;;  %1820 = vmatmul.msk.bf16.vlgmr.msrb.gmra.mxu0 %vm38_vm0, %v1840_v6 }
0x1ea2   :  { %v1324_v59 = vpop.permute.xlu0 %1323  ;;  %v1841_v12 = vld [vmem:[#allocation2 + $0x8] sm:$0xff] }
0x1ea3   :  { %1326 = vst.msk [vmem:[#allocation2 + $0x18] sm:$0xf] %vm236_vm12, %v1324_v59 }
0x1eab   :  { %1821 = vmatmul.msk.bf16.gmra.mxu0 %vm38_vm0, %v1841_v12 }
0x1eff   :  { %v1376_v10 = vpop.permute.xlu1 %1375 }
0x1f00   :  { %v1378_v13 = vadd.f32 %v1376_v10, %v1328_v36 }
0x1f02   :  { %1954 = vtanh.f32 %v1378_v13 }
0x1f08   :  { %v1955_v11 = vpop.eup %1954 }
0x1f09   :  { %1382 = vrot.lane.b32.xlu1 %v1955_v11, %s1990_s16 }
0x1f11   :  { %1189 = vrot.lane.b32.xlu1 %v2371_v1, %s1990_s16 }
0x1f18   :  { %v1468_v15 = vpop.f32.mrf.mxu0 }
0x1f19   :  { %v1469_v16 = vadd.f32 %v1859_v14, %v1468_v15 }
0x1f1b   :  { %1488 = vmax.xlane.f32.xlu2 %v1469_v16 }
0x1f20   :  { %v1470_v54 = vpop.f32.mrf.mxu0 }
0x1f21   :  { %v1471_v18 = vadd.f32 %v1859_v14, %v1470_v54 }
0x1f23   :  { %1490 = vmax.xlane.f32.xlu0 %v1471_v18 }
0x1f28   :  { %v1473_v19 = vpop.f32.mrf.mxu0 }
0x1f29   :  { %v1474_v29 = vadd.f32 %v1859_v14, %v1473_v19 }
0x1f30   :  { %v1475_v21 = vpop.f32.mrf.mxu0 }
0x1f31   :  { %v1476_v22 = vadd.f32 %v1859_v14, %v1475_v21 }
0x1f33   :  { %1494 = vmax.xlane.f32.xlu2 %v1476_v22 }
0x1f7b   :  { %v1383_v24 = vpop.permute.xlu1 %1382 }
0x1f7c   :  { %v1385_v26 = vmul.f32 %v1383_v24, %v1380_v23 }
0x1f7e   :  { %v2449_v1 = vadd.f32 %v1386_v62, %v1385_v26 }
0x1f80   :  { %v1388_v63 = vpack.c.bf16 %v2449_v1, %v2449_v1 }
0x1f82   :  { %1390 = vrot.lane.b32.xlu1 %v1388_v63, %s1990_s16 }
0x1f83   :  { %v1190_v20 = vpop.permute.xlu1 %1189 }
0x1f84   :  { %1192 = vst.msk [vmem:[#allocation2 + $0x10] sm:$0xf] %vm236_vm12, %v1190_v20 }
0x1f8b   :  { %v1842_v28 = vld [vmem:[#allocation2 + $0x10] sm:$0xff] }
0x1f8c   :  { %1822 = vmatmul.msk.bf16.gmra.mxu0 %vm38_vm0, %v1842_v28 }
0x1f8e   :  { %v1489_v9 = vpop.xlane.xlu2 %1488 }
0x1f8f   :  { %v1504_v58 = vsub.f32 %v1469_v16, %v1489_v9 }
0x1f91   :  { %v1512_v34 = vmul.f32 1.442695, %v1504_v58 }
0x1f93   :  { %1956 = vpow2.f32 %v1512_v34 }
0x1f96   :  { %v1491_v42 = vpop.xlane.xlu0 %1490 }
0x1f97   :  { %v1505_v45 = vsub.f32 %v1471_v18, %v1491_v42 }
0x1f99   :  { %v1957_v40 = vpop.eup %1956  ;;  %v1514_v46 = vmul.f32 1.442695, %v1505_v45 }
0x1fa6   :  { %v1495_v25 = vpop.xlane.xlu2 %1494 }
0x1fa7   :  { %v1507_v38 = vsub.f32 %v1476_v22, %v1495_v25 }
0x1fa9   :  { %v1518_v39 = vmul.f32 1.442695, %v1507_v38 }
0x1fab   :  { %1958 = vpow2.f32 %v1518_v39 }
0x1fac   :  { %1492 = vmax.xlane.f32.xlu1 %v1474_v29  ;;  %1960 = vpow2.f32 %v1514_v46 }
0x1fb1   :  { %v2458_v41 = vpop.eup %1958 }
0x1fb2   :  { %v2466_v51 = vpop.eup %1960 }
0x1ff4   :  { %v1391_v30 = vpop.permute.xlu1 %1390 }
0x1ff5   :  { %1393 = vst.msk [vmem:[#allocation2 + $0x1c] sm:$0xf] %vm236_vm12, %v1391_v30 }
0x1ffc   :  { %v1843_v31 = vld [vmem:[#allocation2 + $0x18] sm:$0xff] }
0x1ffd   :  { %1823 = vmatmul.msk.bf16.gmra.mxu0 %vm38_vm0, %v1843_v31 }
0x2009   :  { %v1478_v33 = vpop.f32.mrf.mxu0 }
0x200a   :  { %v1479_v27 = vadd.f32 %v1859_v14, %v1478_v33 }
0x200c   :  { %1496 = vmax.xlane.f32.xlu2 %v1479_v27 }
0x2011   :  { %v1480_v35 = vpop.f32.mrf.mxu0 }
0x2012   :  { %v1481_v37 = vadd.f32 %v1859_v14, %v1480_v35 }
0x2014   :  { %1498 = vmax.xlane.f32.xlu0 %v1481_v37 }
0x201c   :  { %1528 = vadd.xlane.f32.xlu0 %v1957_v40 }
0x201f   :  { %v1493_v4 = vpop.xlane.xlu1 %1492 }
0x2020   :  { %v1506_v43 = vsub.f32 %v1474_v29, %v1493_v4 }
0x2022   :  { %v1516_v49 = vmul.f32 1.442695, %v1506_v43 }
0x2024   :  { %1534 = vadd.xlane.f32.xlu0 %v2458_v41  ;;  %1962 = vpow2.f32 %v1516_v49 }
0x202a   :  { %v2470_v53 = vpop.eup %1962 }
0x207a   :  { %v1483_v32 = vpop.f32.mrf.mxu0 }
0x207b   :  { %v2461_v36 = vadd.f32 %v1859_v14, %v1483_v32 }
0x207d   :  { %1500 = vmax.xlane.f32.xlu1 %v2461_v36 }
0x207f   :  { %v1497_v48 = vpop.xlane.xlu2 %1496 }
0x2080   :  { %v1508_v61 = vsub.f32 %v1479_v27, %v1497_v48 }
0x2082   :  { %v1520_v7 = vmul.f32 1.442695, %v1508_v61  ;;  %v1485_v0 = vpop.f32.mrf.mxu0 }
0x2083   :  { %v2464_v47 = vadd.f32 %v1859_v14, %v1485_v0 }
0x2084   :  { %1964 = vpow2.f32 %v1520_v7 }
0x2085   :  { %1530 = vadd.xlane.f32.xlu1 %v2466_v51  ;;  %1502 = vmax.xlane.f32.xlu2 %v2464_v47 }
0x2087   :  { %v1499_v8 = vpop.xlane.xlu0 %1498 }
0x2088   :  { %v1509_v50 = vsub.f32 %v1481_v37, %v1499_v8 }
0x208a   :  { %v1522_v52 = vmul.f32 1.442695, %v1509_v50  ;;  %v2472_v17 = vpop.eup %1964 }
0x208c   :  { %1966 = vpow2.f32 %v1522_v52 }
0x208d   :  { %1532 = vadd.xlane.f32.xlu2 %v2470_v53  ;;  %1536 = vadd.xlane.f32.xlu1 %v2472_v17 }
0x208f   :  { %v1529_v55 = vpop.xlane.xlu0 %1528 }
0x2090   :  { %1968 = vrcp.f32 %v1529_v55  ;;  %v1555_v5 = vand.u32 2147483648, %v1529_v55  ;;  %v1553_v59 = vand.u32 2147483647, %v1529_v55  ;;  %vm1549_vm13 = vweird.f32 %v1529_v55 }
0x2092   :  { %v2476_v56 = vpop.eup %1966  ;;  %v1556_v13 = vor.u32 1.1754944e-38, %v1555_v5  ;;  %vm1554_vm15 = vcmp.eq.f32.partialorder %v1553_v59, 8.507059e+37 }
0x2095   :  { %1538 = vadd.xlane.f32.xlu2 %v2476_v56 }
0x2096   :  { %v1969_v57 = vpop.eup %1968 }
0x2097   :  { %v1545_v60 = vmul.f32 %v1969_v57, %v1529_v55  ;;  %v1535_v2 = vpop.xlane.xlu0 %1534  ;;  %vm1550_vm12 = vweird.f32 %v1969_v57 }
0x2098   :  { %1970 = vrcp.f32 %v1535_v2  ;;  %vm1551_vm14 = vmor %vm1549_vm13, %vm1550_vm12  ;;  %v1600_v18 = vand.u32 2147483648, %v1535_v2  ;;  %v1598_v21 = vand.u32 2147483647, %v1535_v2  ;;  %vm1594_vm3 = vweird.f32 %v1535_v2 }
0x2099   :  { %v1546_v3 = vsub.f32 1.0, %v1545_v60 }
0x209a   :  { %v1601_v23 = vor.u32 1.1754944e-38, %v1600_v18  ;;  %vm1599_vm1 = vcmp.eq.f32.partialorder %v1598_v21, 8.507059e+37 }
0x209b   :  { %v1547_v6 = vmul.f32 %v1969_v57, %v1546_v3 }
0x209d   :  { %v1548_v12 = vadd.f32 %v1969_v57, %v1547_v6 }
0x209e   :  { %v1971_v10 = vpop.eup %1970 }
0x209f   :  { %v1552_v11 = vsel %vm1551_vm14, %v1969_v57, %v1548_v12  ;;  %v1590_v14 = vmul.f32 %v1971_v10, %v1535_v2  ;;  %vm1595_vm2 = vweird.f32 %v1971_v10 }
0x20a0   :  { %v1557_v15 = vsel %vm1554_vm15, %v1556_v13, %v1552_v11  ;;  %vm1596_vm4 = vmor %vm1594_vm3, %vm1595_vm2 }
0x20a1   :  { %v1558_v16 = vmul.f32 %v1957_v40, %v1557_v15  ;;  %v1591_v54 = vsub.f32 1.0, %v1590_v14 }
0x20a3   :  { %1664 = vst [vmem:[%s2539_s8] sm:$0xff] %v1558_v16  ;;  %v1592_v19 = vmul.f32 %v1971_v10, %v1591_v54 }
0x20a5   :  { %v1593_v22 = vadd.f32 %v1971_v10, %v1592_v19 }
0x20a7   :  { %v1597_v24 = vsel %vm1596_vm4, %v1971_v10, %v1593_v22 }
0x20a8   :  { %v1602_v62 = vsel %vm1599_vm1, %v1601_v23, %v1597_v24 }
0x20a9   :  { %v1603_v26 = vmul.f32 %v2458_v41, %v1602_v62 }
0x20ab   :  { %1667 = vst [vmem:[%s2539_s8 + $0x18] sm:$0xff] %v1603_v26 }
0x20ad   :  { %722 = vrot.lane.b32.xlu2 %v2383_v44, %s1990_s16 }
0x20f0   :  { %v1501_v63 = vpop.xlane.xlu1 %1500 }
0x20f1   :  { %v1510_v20 = vsub.f32 %v2461_v36, %v1501_v63 }
0x20f3   :  { %v1524_v28 = vmul.f32 1.442695, %v1510_v20 }
0x20f5   :  { %1972 = vpow2.f32 %v1524_v28 }
0x20f8   :  { %v1531_v29 = vpop.xlane.xlu1 %1530  ;;  %v1503_v30 = vpop.xlane.xlu2 %1502 }
0x20f9   :  { %1974 = vrcp.f32 %v1531_v29  ;;  %v1511_v31 = vsub.f32 %v2464_v47, %v1503_v30  ;;  %v1570_v25 = vand.u32 2147483648, %v1531_v29  ;;  %v1568_v39 = vand.u32 2147483647, %v1531_v29 }
0x20fa   :  { %vm1564_vm6 = vweird.f32 %v1531_v29 }
0x20fb   :  { %v2490_v33 = vpop.eup %1972  ;;  %v1526_v9 = vmul.f32 1.442695, %v1511_v31  ;;  %v1571_v42 = vor.u32 1.1754944e-38, %v1570_v25  ;;  %vm1569_vm8 = vcmp.eq.f32.partialorder %v1568_v39, 8.507059e+37 }
0x20fc   :  { %1540 = vadd.xlane.f32.xlu0 %v2490_v33 }
0x20fd   :  { %1976 = vpow2.f32 %v1526_v9 }
0x20ff   :  { %v1975_v27 = vpop.eup %1974 }
0x2100   :  { %v1560_v58 = vmul.f32 %v1975_v27, %v1531_v29  ;;  %v1537_v34 = vpop.xlane.xlu1 %1536  ;;  %v1533_v44 = vpop.xlane.xlu2 %1532  ;;  %vm1565_vm5 = vweird.f32 %v1975_v27 }
0x2101   :  { %1978 = vrcp.f32 %v1537_v34  ;;  %vm1566_vm7 = vmor %vm1564_vm6, %vm1565_vm5  ;;  %v1615_v49 = vand.u32 2147483648, %v1537_v34  ;;  %v1613_v47 = vand.u32 2147483647, %v1537_v34  ;;  %v1585_v8 = vand.u32 2147483648, %v1533_v44 }
0x2102   :  { %v1561_v35 = vsub.f32 1.0, %v1560_v58  ;;  %1980 = vrcp.f32 %v1533_v44  ;;  %v1583_v52 = vand.u32 2147483647, %v1533_v44  ;;  %vm1609_vm11 = vweird.f32 %v1537_v34 }
0x2103   :  { %v2493_v37 = vpop.eup %1976  ;;  %v1616_v60 = vor.u32 1.1754944e-38, %v1615_v49  ;;  %vm1579_vm13 = vweird.f32 %v1533_v44  ;;  %vm1614_vm14 = vcmp.eq.f32.partialorder %v1613_v47, 8.507059e+37  ;;  %v1586_v3 = vor.u32 1.1754944e-38, %v1585_v8 }
0x2104   :  { %v1562_v38 = vmul.f32 %v1975_v27, %v1561_v35  ;;  %1542 = vadd.xlane.f32.xlu1 %v2493_v37  ;;  %vm1584_vm2 = vcmp.eq.f32.partialorder %v1583_v52, 8.507059e+37 }
0x2106   :  { %v1563_v40 = vadd.f32 %v1975_v27, %v1562_v38 }
0x2107   :  { %v1979_v41 = vpop.eup %1978 }
0x2108   :  { %v1981_v45 = vpop.eup %1980  ;;  %v1567_v46 = vsel %vm1566_vm7, %v1975_v27, %v1563_v40  ;;  %v1605_v4 = vmul.f32 %v1979_v41, %v1537_v34  ;;  %v1539_v32 = vpop.xlane.xlu2 %1538  ;;  %vm1610_vm9 = vweird.f32 %v1979_v41 }
0x2109   :  { %v1572_v36 = vsel %vm1569_vm8, %v1571_v42, %v1567_v46  ;;  %v1575_v43 = vmul.f32 %v1981_v45, %v1533_v44  ;;  %1982 = vrcp.f32 %v1539_v32  ;;  %vm1580_vm10 = vweird.f32 %v1981_v45  ;;  %vm1611_vm12 = vmor %vm1609_vm11, %vm1610_vm9 }
0x210a   :  { %v1573_v48 = vmul.f32 %v2466_v51, %v1572_v36  ;;  %v1606_v61 = vsub.f32 1.0, %v1605_v4  ;;  %vm1581_vm15 = vmor %vm1579_vm13, %vm1580_vm10  ;;  %v1630_v15 = vand.u32 2147483648, %v1539_v32  ;;  %v1628_v16 = vand.u32 2147483647, %v1539_v32 }
0x210b   :  { %v1576_v7 = vsub.f32 1.0, %v1575_v43  ;;  %vm1624_vm4 = vweird.f32 %v1539_v32 }
0x210c   :  { %1665 = vst [vmem:[%s2539_s8 + $0x8] sm:$0xff] %v1573_v48  ;;  %v1607_v0 = vmul.f32 %v1979_v41, %v1606_v61  ;;  %vm1629_vm5 = vcmp.eq.f32.partialorder %v1628_v16, 8.507059e+37 }
0x210d   :  { %v1577_v50 = vmul.f32 %v1981_v45, %v1576_v7 }
0x210e   :  { %v1608_v55 = vadd.f32 %v1979_v41, %v1607_v0 }
0x210f   :  { %v1983_v57 = vpop.eup %1982  ;;  %v1578_v51 = vadd.f32 %v1981_v45, %v1577_v50 }
0x2110   :  { %v1612_v2 = vsel %vm1611_vm12, %v1979_v41, %v1608_v55  ;;  %v1620_v5 = vmul.f32 %v1983_v57, %v1539_v32  ;;  %1395 = vrot.lane.b32.xlu0 %v2449_v1, %s1990_s16  ;;  %v723_v6 = vpop.permute.xlu2 %722  ;;  %vm1625_vm3 = vweird.f32 %v1983_v57 }
0x2111   :  { %v1617_v59 = vsel %vm1614_vm14, %v1616_v60, %v1612_v2  ;;  %v1582_v12 = vsel %vm1581_vm15, %v1981_v45, %v1578_v51  ;;  %725 = vst.msk [vmem:[%s2533_s9] sm:$0xff] %vm38_vm0, %v723_v6  ;;  %vm1626_vm1 = vmor %vm1624_vm4, %vm1625_vm3 }
0x2112   :  { %v1618_v10 = vmul.f32 %v2472_v17, %v1617_v59  ;;  %v1587_v13 = vsel %vm1584_vm2, %v1586_v3, %v1582_v12  ;;  %v1621_v11 = vsub.f32 1.0, %v1620_v5  ;;  %v1631_v17 = vor.u32 1.1754944e-38, %v1630_v15 }
0x2113   :  { %v1588_v14 = vmul.f32 %v2470_v53, %v1587_v13 }
0x2114   :  { %1668 = vst [vmem:[%s2539_s8 + $0x20] sm:$0xff] %v1618_v10  ;;  %v1622_v1 = vmul.f32 %v1983_v57, %v1621_v11 }
0x2115   :  { %1666 = vst [vmem:[%s2539_s8 + $0x10] sm:$0xff] %v1588_v14 }
0x2116   :  { %v1623_v54 = vadd.f32 %v1983_v57, %v1622_v1 }
0x2118   :  { %v1627_v18 = vsel %vm1626_vm1, %v1983_v57, %v1623_v54 }
0x2119   :  { %v1632_v19 = vsel %vm1629_vm5, %v1631_v17, %v1627_v18 }
0x211a   :  { %v1633_v53 = vmul.f32 %v2476_v56, %v1632_v19 }
0x211c   :  { %1669 = vst [vmem:[%s2539_s8 + $0x28] sm:$0xff] %v1633_v53 }
0x216f   :  { %v1541_v21 = vpop.xlane.xlu0 %1540 }
0x2170   :  { %1984 = vrcp.f32 %v1541_v21  ;;  %v1645_v26 = vand.u32 2147483648, %v1541_v21  ;;  %v1643_v20 = vand.u32 2147483647, %v1541_v21  ;;  %vm1639_vm7 = vweird.f32 %v1541_v21 }
0x2172   :  { %v1646_v29 = vor.u32 1.1754944e-38, %v1645_v26  ;;  %vm1644_vm9 = vcmp.eq.f32.partialorder %v1643_v20, 8.507059e+37 }
0x2176   :  { %v1985_v22 = vpop.eup %1984 }
0x2177   :  { %v1635_v23 = vmul.f32 %v1985_v22, %v1541_v21  ;;  %v1543_v24 = vpop.xlane.xlu1 %1542  ;;  %vm1640_vm6 = vweird.f32 %v1985_v22 }
0x2178   :  { %1986 = vrcp.f32 %v1543_v24  ;;  %vm1641_vm8 = vmor %vm1639_vm7, %vm1640_vm6  ;;  %v1660_v44 = vand.u32 2147483648, %v1543_v24  ;;  %v1658_v25 = vand.u32 2147483647, %v1543_v24  ;;  %vm1654_vm11 = vweird.f32 %v1543_v24 }
0x2179   :  { %v1636_v62 = vsub.f32 1.0, %v1635_v23 }
0x217a   :  { %v1661_v39 = vor.u32 1.1754944e-38, %v1660_v44  ;;  %vm1659_vm13 = vcmp.eq.f32.partialorder %v1658_v25, 8.507059e+37 }
0x217b   :  { %v1637_v63 = vmul.f32 %v1985_v22, %v1636_v62 }
0x217d   :  { %v1638_v28 = vadd.f32 %v1985_v22, %v1637_v63 }
0x217e   :  { %v1987_v56 = vpop.eup %1986 }
0x217f   :  { %v1642_v30 = vsel %vm1641_vm8, %v1985_v22, %v1638_v28  ;;  %v1650_v9 = vmul.f32 %v1987_v56, %v1543_v24  ;;  %vm1655_vm10 = vweird.f32 %v1987_v56 }
0x2180   :  { %v1647_v31 = vsel %vm1644_vm9, %v1646_v29, %v1642_v30  ;;  %vm1656_vm12 = vmor %vm1654_vm11, %vm1655_vm10 }
0x2181   :  { %v1648_v27 = vmul.f32 %v2490_v33, %v1647_v31  ;;  %v1651_v58 = vsub.f32 1.0, %v1650_v9 }
0x2182   :  { %v1396_v34 = vpop.permute.xlu0 %1395 }
0x2183   :  { %1670 = vst [vmem:[%s2539_s8 + $0x30] sm:$0xff] %v1648_v27  ;;  %v1652_v35 = vmul.f32 %v1987_v56, %v1651_v58 }
0x2184   :  { %1795 = vst.msk [vmem:[%s2533_s9 + $0x8] sm:$0xff] %vm38_vm0, %v1396_v34 }
0x2185   :  { %v1653_v38 = vadd.f32 %v1987_v56, %v1652_v35 }
0x2187   :  { %v1657_v33 = vsel %vm1656_vm12, %v1987_v56, %v1653_v38 }
0x2188   :  { %v1662_v40 = vsel %vm1659_vm13, %v1661_v39, %v1657_v33 }
0x2189   :  { %v1663_v41 = vmul.f32 %v2493_v37, %v1662_v40 }
0x218b   :  { %1671 = vst [vmem:[%s2539_s8 + $0x38] sm:$0xff] %v1663_v41 }

// kernel: char_rnn_forward.1
= control target key start
LH: loop header
LB: loop body
LE: loop exit
PB: predicated region body
PF: predicated region fallthrough
CT: control target
= control target key end

     0   :  { %vm38_vm0 = vcmask 261120   ;;  %vm144_vm1 = vcmask 781312   ;;  %s1989_s15 = smov 64   ;;  %s1990_s16 = smov 96   ;;  %s2530_s2 = inlined_call_operand.vmem [shape: bf16[2,32,96], index: 2, kind: input, shape index: {}]   ;;  %s2531_s1 = inlined_call_operand.vmem [shape: f32[2,8,32], index: 1, kind: input, shape index: {}]   ;;  %s2532_s3 = inlined_call_operand.vmem [shape: bf16[2,32,96], index: 3, kind: input, shape index: {}]   ;;  %s2533_s9 = inlined_call_operand.vmem [shape: f32[2,8,32], index: 9, kind: output, shape index: {1}]   ;;  %s2534_s4 = inlined_call_operand.vmem [shape: f32[2,1,96], index: 4, kind: input, shape index: {}]   ;;  %s2535_s0 = inlined_call_operand.vmem [shape: bf16[64,32], index: 0, kind: input, shape index: {}]   ;;  %s2536_s5 = inlined_call_operand.vmem [shape: f32[2,1,96], index: 5, kind: input, shape index: {}]   ;;  %s2537_s6 = inlined_call_operand.vmem [shape: bf16[32,128], index: 6, kind: input, shape index: {}]   ;;  %s2538_s7 = inlined_call_operand.vmem [shape: f32[1,128], index: 7, kind: input, shape index: {}]   ;;  %s2539_s8 = inlined_call_operand.vmem [shape: f32[64,128], index: 8, kind: output, shape index: {0}]  }
   0x1   :  { %v1825_v0 = vld [vmem:[%s2530_s2 + $0x8] sm:$0xff]  ;;  %v1824_v1 = vld [vmem:[%s2530_s2] sm:$0xff]  ;;  %v1830_v7 = vld [vmem:[%s2535_s0 + $0x10] sm:$0xff]  ;;  %s1991_s17 = smov 32  }
   0x2   :  { %1846 = vmatpush.bf16.msra.mxu1 %v1825_v0  ;;  %113 = vmatpush.bf16.msra.mxu0 %v1825_v0  ;;  %v36_v2 = vld [vmem:[%s2531_s1] sm:$0xff]  ;;  %v37_v3 = vld [vmem:[%s2531_s1 + $0x8] sm:$0xff]  ;;  %v1831_v61 = vld [vmem:[%s2535_s0 + $0x18] sm:$0xff] }
   0x3   :  { %v2057_v4 = vld [vmem:[%s2532_s3 + $0x8] sm:$0xff]  ;;  %39 = vst.msk [vmem:[%s2533_s9] sm:$0xff] %vm38_vm0, %v36_v2  ;;  %1847 = vmatpush.bf16.msra.mxu2 %v1825_v0  ;;  %1848 = vmatpush.bf16.msra.mxu3 %v1825_v0  ;;  %v1828_v6 = vld [vmem:[%s2535_s0] sm:$0xff] }
   0x4   :  { %40 = vst.msk [vmem:[%s2533_s9 + $0x8] sm:$0xff] %vm38_vm0, %v37_v3  ;;  %v1829_v5 = vld [vmem:[%s2535_s0 + $0x8] sm:$0xff]  ;;  %v2080_v8 = vld [vmem:[%s2532_s3] sm:$0xff] }
   0x5   :  { %v2107_v11 = vld [vmem:[%s2534_s4] ss:$0 sm:$0xff] }
   0x6   :  { %1849 = vmatpush.bf16.msra.mxu1 %v1824_v1  ;;  %114 = vmatpush.bf16.msra.mxu0 %v1824_v1  ;;  %v2121_v27 = vld [vmem:[%s2536_s5] ss:$0 sm:$0xff] }
   0x7   :  { %1850 = vmatpush.bf16.msra.mxu2 %v1824_v1  ;;  %1851 = vmatpush.bf16.msra.mxu3 %v1824_v1 }
   0x9   :  { %1705 = vmatmul.msk.bf16.vlgmr.msra.gmra.mxu1 %vm38_vm0, %v1829_v5  ;;  %1704 = vmatmul.msk.bf16.vlgmr.msra.gmra.mxu0 %vm38_vm0, %v1828_v6 }
   0xa   :  { %181 = vmatpush.bf16.msrb.mxu1 %v2057_v4  ;;  %1706 = vmatmul.msk.bf16.vlgmr.msra.gmra.mxu2 %vm38_vm0, %v1830_v7  ;;  %v2097_v9 = vld [vmem:[%s2533_s9] sm:$0xff] }
   0xb   :  { %254 = vmatpush.bf16.msrb.mxu2 %v2057_v4  ;;  %323 = vmatpush.bf16.msrb.mxu3 %v2057_v4  ;;  %v156_v10 = vpack.c.bf16 %v2097_v9, %v2097_v9 }
   0xc   :  { %1707 = vmatmul.msk.bf16.vlgmr.msra.gmra.mxu3 %vm38_vm0, %v1831_v61 }
   0xe   :  { %182 = vmatpush.bf16.msrb.mxu1 %v2080_v8 }
   0xf   :  { %255 = vmatpush.bf16.msrb.mxu2 %v2080_v8  ;;  %324 = vmatpush.bf16.msrb.mxu3 %v2080_v8 }
  0x12   :  { %392 = vmatpush.bf16.msra.mxu1 %v2057_v4 }
  0x13   :  { %461 = vmatpush.bf16.msra.mxu2 %v2057_v4  ;;  %530 = vmatpush.bf16.msra.mxu3 %v2057_v4 }
  0x16   :  { %393 = vmatpush.bf16.msra.mxu1 %v2080_v8 }
  0x17   :  { %462 = vmatpush.bf16.msra.mxu2 %v2080_v8  ;;  %531 = vmatpush.bf16.msra.mxu3 %v2080_v8 }
  0x19   :  { %1716 = vmatmul.msk.bf16.vlgmr.msrb.gmra.mxu1 %vm38_vm0, %v156_v10 }
  0x1a   :  { %599 = vmatpush.bf16.msrb.mxu1 %v2057_v4 }
  0x1e   :  { %600 = vmatpush.bf16.msrb.mxu1 %v2080_v8 }
  0x86   :  { %v121_v12 = vpop.f32.mrf.mxu1  ;;  %v116_v13 = vpop.f32.mrf.mxu0 }
  0x87   :  { %v122_v14 = vadd.f32 %v2107_v11, %v121_v12  ;;  %v117_v15 = vadd.f32 %v2107_v11, %v116_v13 }
  0x89   :  { %v138_v16 = vpack.c.bf16 %v122_v14, %v122_v14  ;;  %v136_v17 = vpack.c.bf16 %v117_v15, %v117_v15 }
  0x8b   :  { %147 = vst.msk [vmem:[#allocation3 + $0x8] sm:$0xf] %vm144_vm1, %v138_v16 }
  0x8c   :  { %145 = vst.msk [vmem:[#allocation3] sm:$0xf] %vm144_vm1, %v136_v17 }
  0x8d   :  { %v126_v18 = vpop.f32.mrf.mxu2 }
  0x8e   :  { %v123_v19 = vpop.f32.mrf.mxu1  ;;  %v118_v20 = vpop.f32.mrf.mxu0  ;;  %v127_v21 = vadd.f32 %v2107_v11, %v126_v18 }
  0x8f   :  { %v124_v22 = vadd.f32 %v2107_v11, %v123_v19  ;;  %v119_v23 = vadd.f32 %v2107_v11, %v118_v20  ;;  %v131_v2 = vpop.f32.mrf.mxu3 }
  0x90   :  { %v140_v24 = vpack.c.bf16 %v127_v21, %v127_v21  ;;  %v132_v3 = vadd.f32 %v2107_v11, %v131_v2 }
  0x91   :  { %v139_v25 = vpack.c.bf16 %v124_v22, %v124_v22  ;;  %v137_v26 = vpack.c.bf16 %v119_v23, %v119_v23 }
  0x92   :  { %149 = vst.msk [vmem:[#allocation3 + $0x10] sm:$0xf] %vm144_vm1, %v140_v24  ;;  %v142_v5 = vpack.c.bf16 %v132_v3, %v132_v3 }
  0x93   :  { %148 = vst.msk [vmem:[#allocation3 + $0xc] sm:$0xf] %vm144_vm1, %v139_v25  ;;  %v154_v31 = vld [vmem:[#allocation3] sm:$0xf] }
  0x94   :  { %146 = vst.msk [vmem:[#allocation3 + $0x4] sm:$0xf] %vm144_vm1, %v137_v26  ;;  %v155_v32 = vunpack.c.l.bf16 %v154_v31 }
  0x95   :  { %v128_v62 = vpop.f32.mrf.mxu2  ;;  %151 = vst.msk [vmem:[#allocation3 + $0x18] sm:$0xf] %vm144_vm1, %v142_v5 }
  0x96   :  { %v184_v28 = vpop.f32.mrf.mxu1  ;;  %v129_v63 = vadd.f32 %v2107_v11, %v128_v62 }
  0x97   :  { %v185_v29 = vadd.f32 %v2121_v27, %v184_v28 }
  0x98   :  { %v141_v0 = vpack.c.bf16 %v129_v63, %v129_v63 }
  0x99   :  { %209 = vrot.lane.b32.xlu0 %v185_v29, %s1989_s15  ;;  %v188_v33 = vadd.f32 %v185_v29, %v155_v32 }
  0x9a   :  { %150 = vst.msk [vmem:[#allocation3 + $0x14] sm:$0xf] %vm144_vm1, %v141_v0 }
  0x9b   :  { %v1717_v34 = vmul.f32 -1.442695, %v188_v33  ;;  %v2149_v10 = vld [vmem:[#allocation3 + $0x4] sm:$0xff]  }
  0x9c   :  { %v240_v12 = vunpack.c.l.bf16 %v2149_v10 }
  0x9d   :  { %1860 = vpow2.f32 %v1717_v34 }
  0x9e   :  { %v186_v30 = vpop.f32.mrf.mxu1 }
  0xa3   :  { %v1861_v35 = vpop.eup %1860 }
  0xa4   :  { %v192_v36 = vadd.f32 1.0, %v1861_v35 }
  0xa6   :  { %1862 = vrcp.f32 %v192_v36  ;;  %v204_v42 = vand.u32 2147483648, %v192_v36  ;;  %vm198_vm3 = vweird.f32 %v192_v36  ;;  %v202_v43 = vand.u32 2147483647, %v192_v36 }
  0xa8   :  { %v205_v45 = vor.u32 1.1754944e-38, %v204_v42  ;;  %vm203_vm5 = vcmp.eq.f32.partialorder %v202_v43, 8.507059e+37 }
  0xac   :  { %v1863_v37 = vpop.eup %1862 }
  0xad   :  { %v194_v38 = vmul.f32 %v1863_v37, %v192_v36  ;;  %vm199_vm2 = vweird.f32 %v1863_v37 }
  0xae   :  { %vm200_vm4 = vmor %vm198_vm3, %vm199_vm2 }
  0xaf   :  { %v195_v39 = vsub.f32 1.0, %v194_v38 }
  0xb1   :  { %v196_v40 = vmul.f32 %v1863_v37, %v195_v39  ;;  %v133_v39 = vpop.f32.mrf.mxu3 }
  0xb3   :  { %v197_v41 = vadd.f32 %v1863_v37, %v196_v40  ;;  %v134_v40 = vadd.f32 %v2107_v11, %v133_v39 }
  0xb5   :  { %v201_v44 = vsel %vm200_vm4, %v1863_v37, %v197_v41  ;;  %v143_v41 = vpack.c.bf16 %v134_v40, %v134_v40 }
  0xb6   :  { %v206_v47 = vsel %vm203_vm5, %v205_v45, %v201_v44 }
  0xb7   :  { %v219_v53 = vsub.f32 1.0, %v206_v47  ;;  %152 = vst.msk [vmem:[#allocation3 + $0x1c] sm:$0xf] %vm144_vm1, %v143_v41 }
 0x10b   :  { %v210_v46 = vpop.permute.xlu0 %209 }
 0x10c   :  { %v212_v48 = vmul.f32 %v210_v46, %v206_v47  ;;  %v309_v46 = vunpack.c.h.bf16 %v2149_v10 }
 0x10e   :  { %214 = vrot.lane.b32.xlu0 %v212_v48, %s1989_s15 }
 0x180   :  { %v215_v49 = vpop.permute.xlu0 %214 }
 0x181   :  { %v217_v50 = vadd.f32 %v215_v49, %v155_v32 }
 0x183   :  { %1864 = vtanh.f32 %v217_v50 }
 0x189   :  { %v1865_v51 = vpop.eup %1864 }
 0x18a   :  { %221 = vrot.lane.b32.xlu1 %v1865_v51, %s1990_s16 }
 0x192   :  { %226 = vrot.lane.b32.xlu1 %v2097_v9, %s1991_s17 }
 0x1fc   :  { %v222_v52 = vpop.permute.xlu1 %221 }
 0x1fd   :  { %v224_v55 = vmul.f32 %v222_v52, %v219_v53 }
 0x204   :  { %v227_v54 = vpop.permute.xlu1 %226 }
 0x205   :  { %v229_v56 = vmul.f32 %v227_v54, %v206_v47 }
 0x207   :  { %v230_v57 = vadd.f32 %v229_v56, %v224_v55 }
 0x209   :  { %v2130_v58 = vpack.c.bf16 %v230_v57, %v230_v57 }
 0x20b   :  { %v241_v59 = vunpack.c.l.b16 %v2130_v58 }
 0x20d   :  { %v242_v60 = vpack.c.b16 %v241_v59, %v241_v59 }
 0x20f   :  { %243 = vrot.lane.b32.xlu2 %v242_v60, %s1990_s16 }
 0x269   :  { %v244_v1 = vpop.permute.xlu2 %243 }
 0x26a   :  { %1718 = vmatmul.msk.bf16.vlgmr.msrb.gmra.mxu2 %vm38_vm0, %v244_v1 }
 0x26b   :  { %668 = vmatpush.bf16.msrb.mxu2 %v2057_v4 }
 0x26f   :  { %669 = vmatpush.bf16.msrb.mxu2 %v2080_v8 }
 0x2ed   :  { %v257_v6 = vpop.f32.mrf.mxu2 }
 0x2ee   :  { %v258_v7 = vadd.f32 %v2121_v27, %v257_v6 }
 0x2f0   :  { %282 = vrot.lane.b32.xlu2 %v258_v7, %s1989_s15  ;;  %v261_v13 = vadd.f32 %v258_v7, %v240_v12 }
 0x2f2   :  { %v1719_v4 = vmul.f32 -1.442695, %v261_v13 }
 0x2f4   :  { %1866 = vpow2.f32 %v1719_v4 }
 0x2f5   :  { %v259_v9 = vpop.f32.mrf.mxu2 }
 0x2fa   :  { %v1867_v8 = vpop.eup %1866 }
 0x2fb   :  { %v265_v14 = vadd.f32 1.0, %v1867_v8 }
 0x2fd   :  { %1868 = vrcp.f32 %v265_v14  ;;  %v277_v20 = vand.u32 2147483648, %v265_v14  ;;  %vm271_vm7 = vweird.f32 %v265_v14  ;;  %v275_v21 = vand.u32 2147483647, %v265_v14 }
 0x2ff   :  { %v278_v23 = vor.u32 1.1754944e-38, %v277_v20  ;;  %vm276_vm9 = vcmp.eq.f32.partialorder %v275_v21, 8.507059e+37 }
 0x303   :  { %v1869_v15 = vpop.eup %1868 }
 0x304   :  { %v267_v16 = vmul.f32 %v1869_v15, %v265_v14  ;;  %vm272_vm6 = vweird.f32 %v1869_v15 }
 0x305   :  { %vm273_vm8 = vmor %vm271_vm7, %vm272_vm6 }
 0x306   :  { %v268_v17 = vsub.f32 1.0, %v267_v16 }
 0x308   :  { %v269_v18 = vmul.f32 %v1869_v15, %v268_v17 }
 0x30a   :  { %v270_v19 = vadd.f32 %v1869_v15, %v269_v18 }
 0x30c   :  { %v274_v22 = vsel %vm273_vm8, %v1869_v15, %v270_v19  ;;  %v2173_v15 = vld [vmem:[#allocation3 + $0xc] sm:$0xff]  }
 0x30d   :  { %v279_v25 = vsel %vm276_vm9, %v278_v23, %v274_v22  ;;  %v378_v16 = vunpack.c.l.bf16 %v2173_v15 }
 0x30e   :  { %v292_v31 = vsub.f32 1.0, %v279_v25  ;;  %v298_v33 = vmul.f32 %v279_v25, %v230_v57 }
 0x34a   :  { %v283_v24 = vpop.permute.xlu2 %282 }
 0x34b   :  { %v285_v26 = vmul.f32 %v283_v24, %v279_v25 }
 0x34d   :  { %287 = vrot.lane.b32.xlu0 %v285_v26, %s1989_s15 }
 0x3bf   :  { %v288_v28 = vpop.permute.xlu0 %287 }
 0x3c0   :  { %v290_v29 = vadd.f32 %v288_v28, %v240_v12 }
 0x3c2   :  { %1870 = vtanh.f32 %v290_v29 }
 0x3c8   :  { %v1871_v30 = vpop.eup %1870 }
 0x3c9   :  { %294 = vrot.lane.b32.xlu1 %v1871_v30, %s1990_s16 }
 0x43b   :  { %v295_v32 = vpop.permute.xlu1 %294 }
 0x43c   :  { %v297_v34 = vmul.f32 %v295_v32, %v292_v31 }
 0x43e   :  { %v299_v35 = vadd.f32 %v298_v33, %v297_v34 }
 0x440   :  { %v2154_v36 = vpack.c.bf16 %v299_v35, %v299_v35 }
 0x442   :  { %v310_v37 = vunpack.c.l.b16 %v2154_v36 }
 0x444   :  { %v311_v38 = vpack.c.b16 %v310_v37, %v310_v37 }
 0x446   :  { %312 = vrot.lane.b32.xlu2 %v311_v38, %s1990_s16 }
 0x4a0   :  { %v313_v42 = vpop.permute.xlu2 %312 }
 0x4a1   :  { %1720 = vmatmul.msk.bf16.vlgmr.msrb.gmra.mxu3 %vm38_vm0, %v313_v42 }
 0x524   :  { %v326_v43 = vpop.f32.mrf.mxu3 }
 0x525   :  { %v327_v44 = vadd.f32 %v2121_v27, %v326_v43 }
 0x527   :  { %351 = vrot.lane.b32.xlu0 %v327_v44, %s1989_s15  ;;  %v330_v47 = vadd.f32 %v327_v44, %v309_v46 }
 0x529   :  { %v1721_v48 = vmul.f32 -1.442695, %v330_v47 }
 0x52b   :  { %1872 = vpow2.f32 %v1721_v48 }
 0x52c   :  { %v328_v45 = vpop.f32.mrf.mxu3 }
 0x531   :  { %v1873_v49 = vpop.eup %1872 }
 0x532   :  { %v334_v50 = vadd.f32 1.0, %v1873_v49 }
 0x534   :  { %1874 = vrcp.f32 %v334_v50  ;;  %v346_v55 = vand.u32 2147483648, %v334_v50  ;;  %vm340_vm11 = vweird.f32 %v334_v50  ;;  %v344_v56 = vand.u32 2147483647, %v334_v50 }
 0x536   :  { %v347_v59 = vor.u32 1.1754944e-38, %v346_v55  ;;  %vm345_vm13 = vcmp.eq.f32.partialorder %v344_v56, 8.507059e+37 }
 0x53a   :  { %v1875_v11 = vpop.eup %1874 }
 0x53b   :  { %v336_v51 = vmul.f32 %v1875_v11, %v334_v50  ;;  %vm341_vm10 = vweird.f32 %v1875_v11  ;;  %v447_v50 = vunpack.c.h.bf16 %v2173_v15 }
 0x53c   :  { %vm342_vm12 = vmor %vm340_vm11, %vm341_vm10 }
 0x53d   :  { %v337_v52 = vsub.f32 1.0, %v336_v51 }
 0x53f   :  { %v338_v53 = vmul.f32 %v1875_v11, %v337_v52 }
 0x541   :  { %v339_v54 = vadd.f32 %v1875_v11, %v338_v53 }
 0x543   :  { %v343_v57 = vsel %vm342_vm12, %v1875_v11, %v339_v54  ;;  %vm236_vm12 = vcmask 257024  }
 0x544   :  { %v348_v61 = vsel %vm345_vm13, %v347_v59, %v343_v57 }
 0x545   :  { %v361_v2 = vsub.f32 1.0, %v348_v61  ;;  %v367_v5 = vmul.f32 %v348_v61, %v299_v35 }
 0x599   :  { %v352_v60 = vpop.permute.xlu0 %351 }
 0x59a   :  { %v354_v62 = vmul.f32 %v352_v60, %v348_v61 }
 0x59c   :  { %356 = vrot.lane.b32.xlu1 %v354_v62, %s1989_s15 }
 0x60e   :  { %v357_v63 = vpop.permute.xlu1 %356 }
 0x60f   :  { %v359_v0 = vadd.f32 %v357_v63, %v309_v46 }
 0x611   :  { %1876 = vtanh.f32 %v359_v0 }
 0x617   :  { %v1877_v1 = vpop.eup %1876 }
 0x618   :  { %363 = vrot.lane.b32.xlu2 %v1877_v1, %s1990_s16 }
 0x672   :  { %v364_v3 = vpop.permute.xlu2 %363 }
 0x673   :  { %v366_v6 = vmul.f32 %v364_v3, %v361_v2 }
 0x675   :  { %v368_v7 = vadd.f32 %v367_v5, %v366_v6 }
 0x677   :  { %v2166_v9 = vpack.c.bf16 %v368_v7, %v368_v7 }
 0x679   :  { %v379_v10 = vunpack.c.l.b16 %v2166_v9 }
 0x67b   :  { %v380_v12 = vpack.c.b16 %v379_v10, %v379_v10 }
 0x67d   :  { %381 = vrot.lane.b32.xlu0 %v380_v12, %s1990_s16 }
 0x6ef   :  { %v382_v13 = vpop.permute.xlu0 %381 }
 0x6f0   :  { %1722 = vmatmul.msk.bf16.vlgmr.msra.gmra.mxu1 %vm38_vm0, %v382_v13 }
 0x76d   :  { %v395_v4 = vpop.f32.mrf.mxu1 }
 0x76e   :  { %v396_v8 = vadd.f32 %v2121_v27, %v395_v4 }
 0x770   :  { %420 = vrot.lane.b32.xlu1 %v396_v8, %s1989_s15  ;;  %v399_v17 = vadd.f32 %v396_v8, %v378_v16 }
 0x772   :  { %v1723_v18 = vmul.f32 -1.442695, %v399_v17 }
 0x774   :  { %1878 = vpow2.f32 %v1723_v18 }
 0x775   :  { %v397_v14 = vpop.f32.mrf.mxu1 }
 0x77a   :  { %v1879_v19 = vpop.eup %1878 }
 0x77b   :  { %v403_v20 = vadd.f32 1.0, %v1879_v19 }
 0x77d   :  { %1880 = vrcp.f32 %v403_v20  ;;  %v415_v26 = vand.u32 2147483648, %v403_v20  ;;  %vm409_vm15 = vweird.f32 %v403_v20  ;;  %v413_v28 = vand.u32 2147483647, %v403_v20 }
 0x77f   :  { %v416_v30 = vor.u32 1.1754944e-38, %v415_v26  ;;  %vm414_vm3 = vcmp.eq.f32.partialorder %v413_v28, 8.507059e+37 }
 0x783   :  { %v1881_v21 = vpop.eup %1880 }
 0x784   :  { %v405_v22 = vmul.f32 %v1881_v21, %v403_v20  ;;  %vm410_vm14 = vweird.f32 %v1881_v21  ;;  %v2197_v20 = vld [vmem:[#allocation3 + $0x14] sm:$0xff]  }
 0x785   :  { %vm411_vm2 = vmor %vm409_vm15, %vm410_vm14 }
 0x786   :  { %v406_v23 = vsub.f32 1.0, %v405_v22 }
 0x788   :  { %v407_v24 = vmul.f32 %v1881_v21, %v406_v23 }
 0x78a   :  { %v408_v25 = vadd.f32 %v1881_v21, %v407_v24 }
 0x78c   :  { %v412_v29 = vsel %vm411_vm2, %v1881_v21, %v408_v25  ;;  %v516_v21 = vunpack.c.l.bf16 %v2197_v20 }
 0x78d   :  { %v417_v32 = vsel %vm414_vm3, %v416_v30, %v412_v29 }
 0x78e   :  { %v430_v38 = vsub.f32 1.0, %v417_v32  ;;  %v436_v40 = vmul.f32 %v417_v32, %v368_v7 }
 0x7e2   :  { %v421_v31 = vpop.permute.xlu1 %420 }
 0x7e3   :  { %v423_v33 = vmul.f32 %v421_v31, %v417_v32 }
 0x7e5   :  { %425 = vrot.lane.b32.xlu2 %v423_v33, %s1989_s15 }
 0x83f   :  { %v426_v34 = vpop.permute.xlu2 %425 }
 0x840   :  { %v428_v35 = vadd.f32 %v426_v34, %v378_v16 }
 0x842   :  { %1882 = vtanh.f32 %v428_v35 }
 0x848   :  { %v1883_v37 = vpop.eup %1882 }
 0x849   :  { %432 = vrot.lane.b32.xlu0 %v1883_v37, %s1990_s16 }
 0x8bb   :  { %v433_v39 = vpop.permute.xlu0 %432 }
 0x8bc   :  { %v435_v41 = vmul.f32 %v433_v39, %v430_v38 }
 0x8be   :  { %v437_v42 = vadd.f32 %v436_v40, %v435_v41  ;;  %v1833_v40 = vld [vmem:[%s2530_s2 + $0x18] sm:$0xff]  ;;  %v1832_v41 = vld [vmem:[%s2530_s2 + $0x10] sm:$0xff] }
 0x8bf   :  { %801 = vmatpush.bf16.msrb.mxu3 %v1833_v40 }
 0x8c0   :  { %v2178_v43 = vpack.c.bf16 %v437_v42, %v437_v42 }
 0x8c2   :  { %v448_v44 = vunpack.c.l.b16 %v2178_v43 }
 0x8c3   :  { %802 = vmatpush.bf16.msrb.mxu3 %v1832_v41 }
 0x8c4   :  { %v449_v45 = vpack.c.b16 %v448_v44, %v448_v44 }
 0x8c6   :  { %450 = vrot.lane.b32.xlu1 %v449_v45, %s1990_s16 }
 0x938   :  { %v451_v46 = vpop.permute.xlu1 %450 }
 0x939   :  { %1724 = vmatmul.msk.bf16.vlgmr.msra.gmra.mxu2 %vm38_vm0, %v451_v46 }
 0x9bc   :  { %v464_v47 = vpop.f32.mrf.mxu2 }
 0x9bd   :  { %v465_v48 = vadd.f32 %v2121_v27, %v464_v47 }
 0x9bf   :  { %489 = vrot.lane.b32.xlu2 %v465_v48, %s1989_s15  ;;  %v468_v11 = vadd.f32 %v465_v48, %v447_v50 }
 0x9c1   :  { %v1725_v51 = vmul.f32 -1.442695, %v468_v11 }
 0x9c3   :  { %1884 = vpow2.f32 %v1725_v51 }
 0x9c4   :  { %v466_v49 = vpop.f32.mrf.mxu2 }
 0x9c9   :  { %v1885_v52 = vpop.eup %1884 }
 0x9ca   :  { %v472_v53 = vadd.f32 1.0, %v1885_v52 }
 0x9cc   :  { %1886 = vrcp.f32 %v472_v53  ;;  %v484_v60 = vand.u32 2147483648, %v472_v53  ;;  %vm478_vm5 = vweird.f32 %v472_v53  ;;  %v482_v61 = vand.u32 2147483647, %v472_v53 }
 0x9ce   :  { %v485_v63 = vor.u32 1.1754944e-38, %v484_v60  ;;  %vm483_vm7 = vcmp.eq.f32.partialorder %v482_v61, 8.507059e+37 }
 0x9d2   :  { %v1887_v54 = vpop.eup %1886 }
 0x9d3   :  { %v474_v55 = vmul.f32 %v1887_v54, %v472_v53  ;;  %vm479_vm4 = vweird.f32 %v1887_v54 }
 0x9d4   :  { %vm480_vm6 = vmor %vm478_vm5, %vm479_vm4 }
 0x9d5   :  { %v475_v56 = vsub.f32 1.0, %v474_v55 }
 0x9d7   :  { %v476_v57 = vmul.f32 %v1887_v54, %v475_v56 }
 0x9d9   :  { %v477_v59 = vadd.f32 %v1887_v54, %v476_v57 }
 0x9db   :  { %v481_v62 = vsel %vm480_vm6, %v1887_v54, %v477_v59  ;;  %v2224_v54 = vld [vmem:[%s2534_s4 + $0x1] ss:$0 sm:$0xff] }
 0x9dc   :  { %v486_v1 = vsel %vm483_vm7, %v485_v63, %v481_v62  ;;  %v2233_v62 = vld [vmem:[%s2532_s3 + $0x18] sm:$0xff]  ;;  %v2239_v63 = vld [vmem:[%s2532_s3 + $0x10] sm:$0xff] }
 0x9dd   :  { %v499_v7 = vsub.f32 1.0, %v486_v1  ;;  %v505_v12 = vmul.f32 %v486_v1, %v437_v42  ;;  %869 = vmatpush.bf16.msra.mxu1 %v2233_v62  ;;  %940 = vmatpush.bf16.msra.mxu2 %v2233_v62 }
 0x9de   :  { %1007 = vmatpush.bf16.msrb.mxu0 %v2233_v62 }
 0x9e1   :  { %870 = vmatpush.bf16.msra.mxu1 %v2239_v63  ;;  %941 = vmatpush.bf16.msra.mxu2 %v2239_v63 }
 0x9e2   :  { %1008 = vmatpush.bf16.msrb.mxu0 %v2239_v63 }
 0x9e6   :  { %1208 = vmatpush.bf16.msra.mxu0 %v2233_v62 }
 0x9ea   :  { %1209 = vmatpush.bf16.msra.mxu0 %v2239_v63 }
 0xa19   :  { %v490_v0 = vpop.permute.xlu2 %489 }
 0xa1a   :  { %v492_v2 = vmul.f32 %v490_v0, %v486_v1  ;;  %v1770_v1 = vld [vmem:[%s2533_s9 + $0x8] sm:$0xff] }
 0xa1c   :  { %494 = vrot.lane.b32.xlu0 %v492_v2, %s1989_s15  ;;  %v844_v2 = vpack.c.bf16 %v1770_v1, %v1770_v1 }
 0xa8e   :  { %v495_v3 = vpop.permute.xlu0 %494 }
 0xa8f   :  { %v497_v5 = vadd.f32 %v495_v3, %v447_v50 }
 0xa91   :  { %1888 = vtanh.f32 %v497_v5 }
 0xa97   :  { %v1889_v6 = vpop.eup %1888 }
 0xa98   :  { %501 = vrot.lane.b32.xlu1 %v1889_v6, %s1990_s16 }
 0xb0a   :  { %v502_v10 = vpop.permute.xlu1 %501 }
 0xb0b   :  { %v504_v13 = vmul.f32 %v502_v10, %v499_v7  ;;  %v2262_v7 = vld [vmem:[%s2536_s5 + $0x1] ss:$0 sm:$0xff] }
 0xb0d   :  { %v506_v4 = vadd.f32 %v505_v12, %v504_v13 }
 0xb0f   :  { %v2188_v8 = vpack.c.bf16 %v506_v4, %v506_v4 }
 0xb11   :  { %v517_v14 = vunpack.c.l.b16 %v2188_v8 }
 0xb13   :  { %v518_v15 = vpack.c.b16 %v517_v14, %v517_v14 }
 0xb15   :  { %519 = vrot.lane.b32.xlu2 %v518_v15, %s1990_s16 }
 0xb6f   :  { %v520_v16 = vpop.permute.xlu2 %519 }
 0xb70   :  { %1726 = vmatmul.msk.bf16.vlgmr.msra.gmra.mxu3 %vm38_vm0, %v520_v16 }
 0xbf3   :  { %v533_v17 = vpop.f32.mrf.mxu3 }
 0xbf4   :  { %v534_v18 = vadd.f32 %v2121_v27, %v533_v17 }
 0xbf6   :  { %558 = vrot.lane.b32.xlu0 %v534_v18, %s1989_s15  ;;  %v537_v22 = vadd.f32 %v534_v18, %v516_v21 }
 0xbf8   :  { %v1727_v23 = vmul.f32 -1.442695, %v537_v22 }
 0xbfa   :  { %1890 = vpow2.f32 %v1727_v23 }
 0xbfb   :  { %v535_v19 = vpop.f32.mrf.mxu3 }
 0xbfe   :  { %233 = vrot.lane.b32.xlu0 %v2130_v58, %s1990_s16 }
 0xc00   :  { %v1891_v24 = vpop.eup %1890 }
 0xc01   :  { %v541_v25 = vadd.f32 1.0, %v1891_v24 }
 0xc03   :  { %1892 = vrcp.f32 %v541_v25  ;;  %v553_v32 = vand.u32 2147483648, %v541_v25  ;;  %vm547_vm9 = vweird.f32 %v541_v25  ;;  %v551_v33 = vand.u32 2147483647, %v541_v25 }
 0xc05   :  { %v554_v34 = vor.u32 1.1754944e-38, %v553_v32  ;;  %vm552_vm11 = vcmp.eq.f32.partialorder %v551_v33, 8.507059e+37 }
 0xc09   :  { %v1893_v26 = vpop.eup %1892 }
 0xc0a   :  { %v543_v28 = vmul.f32 %v1893_v26, %v541_v25  ;;  %vm548_vm8 = vweird.f32 %v1893_v26 }
 0xc0b   :  { %vm549_vm10 = vmor %vm547_vm9, %vm548_vm8 }
 0xc0c   :  { %v544_v29 = vsub.f32 1.0, %v543_v28 }
 0xc0e   :  { %v545_v30 = vmul.f32 %v1893_v26, %v544_v29 }
 0xc10   :  { %v546_v31 = vadd.f32 %v1893_v26, %v545_v30 }
 0xc12   :  { %v550_v58 = vsel %vm549_vm10, %v1893_v26, %v546_v31 }
 0xc13   :  { %v555_v37 = vsel %vm552_vm11, %v554_v34, %v550_v58 }
 0xc14   :  { %v568_v47 = vsub.f32 1.0, %v555_v37  ;;  %v574_v49 = vmul.f32 %v555_v37, %v506_v4  ;;  %v585_v4 = vunpack.c.h.bf16 %v2197_v20 }
 0xc68   :  { %v559_v35 = vpop.permute.xlu0 %558 }
 0xc69   :  { %v561_v38 = vmul.f32 %v559_v35, %v555_v37 }
 0xc6b   :  { %563 = vrot.lane.b32.xlu1 %v561_v38, %s1989_s15 }
 0xc70   :  { %v234_v39 = vpop.permute.xlu0 %233 }
 0xc71   :  { %237 = vst.msk [vmem:[#allocation2] sm:$0xf] %vm236_vm12, %v234_v39 }
 0xc73   :  { %302 = vrot.lane.b32.xlu1 %v2154_v36, %s1990_s16 }
 0xcdd   :  { %v564_v42 = vpop.permute.xlu1 %563 }
 0xcde   :  { %v566_v44 = vadd.f32 %v564_v42, %v516_v21 }
 0xce0   :  { %1894 = vtanh.f32 %v566_v44 }
 0xce5   :  { %v303_v45 = vpop.permute.xlu1 %302 }
 0xce6   :  { %v1895_v46 = vpop.eup %1894  ;;  %306 = vst.msk [vmem:[#allocation2 + $0x4] sm:$0xf] %vm236_vm12, %v303_v45 }
 0xce7   :  { %570 = vrot.lane.b32.xlu2 %v1895_v46, %s1990_s16 }
 0xced   :  { %v1836_v36 = vld [vmem:[#allocation2] sm:$0xff] }
 0xcee   :  { %1766 = vmatmul.msk.bf16.vlgmr.msrb.gmra.mxu3 %vm38_vm0, %v1836_v36 }
 0xd41   :  { %v571_v48 = vpop.permute.xlu2 %570 }
 0xd42   :  { %v573_v50 = vmul.f32 %v571_v48, %v568_v47 }
 0xd44   :  { %v2213_v11 = vadd.f32 %v574_v49, %v573_v50 }
 0xd46   :  { %v2217_v51 = vpack.c.bf16 %v2213_v11, %v2213_v11 }
 0xd48   :  { %v586_v52 = vunpack.c.l.b16 %v2217_v51 }
 0xd4a   :  { %v587_v53 = vpack.c.b16 %v586_v52, %v586_v52 }
 0xd4c   :  { %588 = vrot.lane.b32.xlu2 %v587_v53, %s1990_s16 }
 0xd71   :  { %v804_v55 = vpop.f32.mrf.mxu3 }
 0xd72   :  { %v805_v56 = vadd.f32 %v2224_v54, %v804_v55 }
 0xd74   :  { %v824_v57 = vpack.c.bf16 %v805_v56, %v805_v56 }
 0xd76   :  { %832 = vst.msk [vmem:[#allocation3] sm:$0xf] %vm144_vm1, %v824_v57 }
 0xd79   :  { %v806_v59 = vpop.f32.mrf.mxu3 }
 0xd7a   :  { %v807_v60 = vadd.f32 %v2224_v54, %v806_v59 }
 0xd7c   :  { %v825_v61 = vpack.c.bf16 %v807_v60, %v807_v60 }
 0xd7e   :  { %833 = vst.msk [vmem:[#allocation3 + $0x4] sm:$0xf] %vm144_vm1, %v825_v61 }
 0xda6   :  { %v589_v0 = vpop.permute.xlu2 %588 }
 0xda7   :  { %1728 = vmatmul.msk.bf16.vlgmr.msrb.gmra.mxu1 %vm38_vm0, %v589_v0 }
 0xda8   :  { %1074 = vmatpush.bf16.msrb.mxu1 %v2233_v62 }
 0xdac   :  { %1075 = vmatpush.bf16.msrb.mxu1 %v2239_v63 }
 0xdb7   :  { %1779 = vmatmul.msk.bf16.vlgmr.msra.gmra.mxu1 %vm38_vm0, %v844_v2 }
 0xdb8   :  { %1275 = vmatpush.bf16.msra.mxu1 %v2233_v62 }
 0xdbc   :  { %1276 = vmatpush.bf16.msra.mxu1 %v2239_v63 }
 0xe24   :  { %v602_v3 = vpop.f32.mrf.mxu1 }
 0xe25   :  { %v603_v5 = vadd.f32 %v2121_v27, %v602_v3  ;;  %v2267_v27 = vld [vmem:[#allocation3] sm:$0xff]  }
 0xe26   :  { %v843_v17 = vunpack.c.l.bf16 %v2267_v27 }
 0xe27   :  { %627 = vrot.lane.b32.xlu0 %v603_v5, %s1989_s15  ;;  %v606_v14 = vadd.f32 %v603_v5, %v585_v4 }
 0xe29   :  { %v1729_v15 = vmul.f32 -1.442695, %v606_v14 }
 0xe2b   :  { %1896 = vpow2.f32 %v1729_v15 }
 0xe2c   :  { %v604_v6 = vpop.f32.mrf.mxu1 }
 0xe31   :  { %v1897_v16 = vpop.eup %1896 }
 0xe32   :  { %v610_v19 = vadd.f32 1.0, %v1897_v16 }
 0xe34   :  { %v872_v10 = vpop.f32.mrf.mxu1  ;;  %1898 = vrcp.f32 %v610_v19  ;;  %v622_v30 = vand.u32 2147483648, %v610_v19  ;;  %vm616_vm14 = vweird.f32 %v610_v19  ;;  %v620_v31 = vand.u32 2147483647, %v610_v19 }
 0xe35   :  { %v873_v12 = vadd.f32 %v2262_v7, %v872_v10 }
 0xe36   :  { %v623_v58 = vor.u32 1.1754944e-38, %v622_v30  ;;  %vm621_vm2 = vcmp.eq.f32.partialorder %v620_v31, 8.507059e+37 }
 0xe37   :  { %897 = vrot.lane.b32.xlu1 %v873_v12, %s1989_s15  ;;  %v876_v18 = vadd.f32 %v873_v12, %v843_v17 }
 0xe39   :  { %v1780_v21 = vmul.f32 -1.442695, %v876_v18 }
 0xe3a   :  { %v1899_v22 = vpop.eup %1898 }
 0xe3b   :  { %1900 = vpow2.f32 %v1780_v21  ;;  %v612_v24 = vmul.f32 %v1899_v22, %v610_v19  ;;  %vm617_vm13 = vweird.f32 %v1899_v22 }
 0xe3c   :  { %v874_v13 = vpop.f32.mrf.mxu1  ;;  %vm618_vm15 = vmor %vm616_vm14, %vm617_vm13 }
 0xe3d   :  { %v613_v26 = vsub.f32 1.0, %v612_v24 }
 0xe3f   :  { %v614_v20 = vmul.f32 %v1899_v22, %v613_v26 }
 0xe41   :  { %v1901_v23 = vpop.eup %1900  ;;  %v615_v28 = vadd.f32 %v1899_v22, %v614_v20 }
 0xe42   :  { %v880_v25 = vadd.f32 1.0, %v1901_v23  ;;  %v926_v23 = vunpack.c.h.bf16 %v2267_v27 }
 0xe43   :  { %v619_v32 = vsel %vm618_vm15, %v1899_v22, %v615_v28 }
 0xe44   :  { %1902 = vrcp.f32 %v880_v25  ;;  %v624_v35 = vsel %vm621_vm2, %v623_v58, %v619_v32  ;;  %v892_v41 = vand.u32 2147483648, %v880_v25  ;;  %vm886_vm4 = vweird.f32 %v880_v25 }
 0xe45   :  { %v890_v42 = vand.u32 2147483647, %v880_v25  ;;  %v637_v56 = vsub.f32 1.0, %v624_v35  ;;  %v643_v59 = vmul.f32 %v624_v35, %v2213_v11 }
 0xe46   :  { %v893_v45 = vor.u32 1.1754944e-38, %v892_v41 }
 0xe47   :  { %vm891_vm6 = vcmp.eq.f32.partialorder %v890_v42, 8.507059e+37 }
 0xe4a   :  { %v1903_v29 = vpop.eup %1902 }
 0xe4b   :  { %v882_v33 = vmul.f32 %v1903_v29, %v880_v25  ;;  %vm887_vm3 = vweird.f32 %v1903_v29 }
 0xe4c   :  { %vm888_vm5 = vmor %vm886_vm4, %vm887_vm3 }
 0xe4d   :  { %v883_v38 = vsub.f32 1.0, %v882_v33 }
 0xe4f   :  { %v884_v39 = vmul.f32 %v1903_v29, %v883_v38 }
 0xe51   :  { %v885_v40 = vadd.f32 %v1903_v29, %v884_v39 }
 0xe53   :  { %v889_v44 = vsel %vm888_vm5, %v1903_v29, %v885_v40 }
 0xe54   :  { %v894_v46 = vsel %vm891_vm6, %v893_v45, %v889_v44 }
 0xe55   :  { %v907_v5 = vsub.f32 1.0, %v894_v46 }
 0xe99   :  { %v628_v34 = vpop.permute.xlu0 %627 }
 0xe9a   :  { %v630_v37 = vmul.f32 %v628_v34, %v624_v35 }
 0xe9c   :  { %632 = vrot.lane.b32.xlu2 %v630_v37, %s1989_s15 }
 0xea9   :  { %v898_v36 = vpop.permute.xlu1 %897 }
 0xeaa   :  { %v900_v47 = vmul.f32 %v898_v36, %v894_v46 }
 0xeac   :  { %902 = vrot.lane.b32.xlu0 %v900_v47, %s1989_s15 }
 0xeb4   :  { %914 = vrot.lane.b32.xlu0 %v1770_v1, %s1991_s17 }
 0xef6   :  { %v633_v48 = vpop.permute.xlu2 %632 }
 0xef7   :  { %v635_v49 = vadd.f32 %v633_v48, %v585_v4 }
 0xef9   :  { %1904 = vtanh.f32 %v635_v49 }
 0xeff   :  { %v1905_v50 = vpop.eup %1904 }
 0xf00   :  { %639 = vrot.lane.b32.xlu1 %v1905_v50, %s1990_s16 }
 0xf1e   :  { %v903_v52 = vpop.permute.xlu0 %902 }
 0xf1f   :  { %v905_v53 = vadd.f32 %v903_v52, %v843_v17 }
 0xf21   :  { %1906 = vtanh.f32 %v905_v53 }
 0xf26   :  { %v915_v3 = vpop.permute.xlu0 %914 }
 0xf27   :  { %v1907_v55 = vpop.eup %1906  ;;  %v917_v10 = vmul.f32 %v915_v3, %v894_v46 }
 0xf28   :  { %909 = vrot.lane.b32.xlu2 %v1907_v55, %s1990_s16 }
 0xf72   :  { %v640_v57 = vpop.permute.xlu1 %639 }
 0xf73   :  { %v642_v60 = vmul.f32 %v640_v57, %v637_v56 }
 0xf75   :  { %v2276_v61 = vadd.f32 %v643_v59, %v642_v60 }
 0xf77   :  { %v2280_v0 = vpack.c.bf16 %v2276_v61, %v2276_v61 }
 0xf79   :  { %v655_v1 = vunpack.c.l.b16 %v2280_v0 }
 0xf7b   :  { %v656_v2 = vpack.c.b16 %v655_v1, %v655_v1 }
 0xf7d   :  { %657 = vrot.lane.b32.xlu1 %v656_v2, %s1990_s16 }
 0xf82   :  { %v910_v6 = vpop.permute.xlu2 %909 }
 0xf83   :  { %v912_v12 = vmul.f32 %v910_v6, %v907_v5 }
 0xf85   :  { %v918_v13 = vadd.f32 %v917_v10, %v912_v12 }
 0xf87   :  { %v2284_v4 = vpack.c.bf16 %v918_v13, %v918_v13 }
 0xf89   :  { %v927_v11 = vunpack.c.l.b16 %v2284_v4 }
 0xf8b   :  { %v928_v14 = vpack.c.b16 %v927_v11, %v927_v11 }
 0xf8d   :  { %929 = vrot.lane.b32.xlu2 %v928_v14, %s1990_s16 }
 0xfe7   :  { %v930_v16 = vpop.permute.xlu2 %929 }
 0xfef   :  { %v658_v15 = vpop.permute.xlu1 %657 }
 0xff0   :  { %1730 = vmatmul.msk.bf16.vlgmr.msrb.gmra.mxu2 %vm38_vm0, %v658_v15 }
 0xff1   :  { %1141 = vmatpush.bf16.msrb.mxu2 %v2233_v62 }
 0xff5   :  { %1142 = vmatpush.bf16.msrb.mxu2 %v2239_v63 }
0x1000   :  { %1781 = vmatmul.msk.bf16.vlgmr.msra.gmra.mxu2 %vm38_vm0, %v930_v16 }
0x1001   :  { %1342 = vmatpush.bf16.msra.mxu2 %v2233_v62 }
0x1005   :  { %1343 = vmatpush.bf16.msra.mxu2 %v2239_v63 }
0x1073   :  { %v2294_v17 = vpop.f32.mrf.mxu2 }
0x107b   :  { %v673_v18 = vpop.f32.mrf.mxu2 }
0x1083   :  { %v943_v19 = vpop.f32.mrf.mxu2 }
0x1084   :  { %v944_v21 = vadd.f32 %v2262_v7, %v943_v19 }
0x1086   :  { %968 = vrot.lane.b32.xlu0 %v944_v21, %s1989_s15  ;;  %v947_v24 = vadd.f32 %v944_v21, %v926_v23 }
0x1088   :  { %v1782_v25 = vmul.f32 -1.442695, %v947_v24 }
0x108a   :  { %1908 = vpow2.f32 %v1782_v25 }
0x108b   :  { %v945_v22 = vpop.f32.mrf.mxu2 }
0x108e   :  { %371 = vrot.lane.b32.xlu0 %v2166_v9, %s1990_s16 }
0x1090   :  { %v1909_v62 = vpop.eup %1908 }
0x1091   :  { %v951_v26 = vadd.f32 1.0, %v1909_v62 }
0x1093   :  { %1910 = vrcp.f32 %v951_v26  ;;  %v963_v31 = vand.u32 2147483648, %v951_v26  ;;  %vm957_vm8 = vweird.f32 %v951_v26  ;;  %v961_v32 = vand.u32 2147483647, %v951_v26 }
0x1095   :  { %v964_v9 = vor.u32 1.1754944e-38, %v963_v31  ;;  %vm962_vm10 = vcmp.eq.f32.partialorder %v961_v32, 8.507059e+37 }
0x1099   :  { %v1911_v63 = vpop.eup %1910 }
0x109a   :  { %v953_v20 = vmul.f32 %v1911_v63, %v951_v26  ;;  %vm958_vm7 = vweird.f32 %v1911_v63 }
0x109b   :  { %vm959_vm9 = vmor %vm957_vm8, %vm958_vm7 }
0x109c   :  { %v954_v28 = vsub.f32 1.0, %v953_v20 }
0x109e   :  { %v955_v29 = vmul.f32 %v1911_v63, %v954_v28 }
0x10a0   :  { %v956_v30 = vadd.f32 %v1911_v63, %v955_v29 }
0x10a2   :  { %v960_v33 = vsel %vm959_vm9, %v1911_v63, %v956_v30 }
0x10a3   :  { %v965_v58 = vsel %vm962_vm10, %v964_v9, %v960_v33 }
0x10a4   :  { %v978_v42 = vsub.f32 1.0, %v965_v58  ;;  %v984_v45 = vmul.f32 %v965_v58, %v918_v13 }
0x10f8   :  { %v969_v27 = vpop.permute.xlu0 %968 }
0x10f9   :  { %v971_v34 = vmul.f32 %v969_v27, %v965_v58 }
0x10fb   :  { %973 = vrot.lane.b32.xlu1 %v971_v34, %s1989_s15 }
0x1100   :  { %v372_v35 = vpop.permute.xlu0 %371 }
0x1101   :  { %375 = vst.msk [vmem:[#allocation2 + $0x8] sm:$0xf] %vm236_vm12, %v372_v35 }
0x1103   :  { %440 = vrot.lane.b32.xlu1 %v2178_v43, %s1990_s16 }
0x116d   :  { %v974_v37 = vpop.permute.xlu1 %973 }
0x116e   :  { %v976_v38 = vadd.f32 %v974_v37, %v926_v23 }
0x1170   :  { %1912 = vtanh.f32 %v976_v38 }
0x1175   :  { %v441_v39 = vpop.permute.xlu1 %440 }
0x1176   :  { %v1913_v40 = vpop.eup %1912  ;;  %444 = vst.msk [vmem:[#allocation2 + $0xc] sm:$0xf] %vm236_vm12, %v441_v39 }
0x1177   :  { %980 = vrot.lane.b32.xlu2 %v1913_v40, %s1990_s16 }
0x117d   :  { %v1837_v41 = vld [vmem:[#allocation2 + $0x8] sm:$0xff] }
0x117e   :  { %1767 = vmatmul.msk.bf16.gmra.mxu3 %vm38_vm0, %v1837_v41 }
0x11d1   :  { %v981_v44 = vpop.permute.xlu2 %980 }
0x11d2   :  { %v983_v46 = vmul.f32 %v981_v44, %v978_v42 }
0x11d4   :  { %v985_v36 = vadd.f32 %v984_v45, %v983_v46 }
0x11d6   :  { %v2308_v47 = vpack.c.bf16 %v985_v36, %v985_v36 }
0x11d8   :  { %v994_v43 = vunpack.c.l.b16 %v2308_v47 }
0x11da   :  { %v995_v48 = vpack.c.b16 %v994_v43, %v994_v43 }
0x11dc   :  { %996 = vrot.lane.b32.xlu2 %v995_v48, %s1990_s16 }
0x1201   :  { %v809_v49 = vpop.f32.mrf.mxu3 }
0x1202   :  { %v810_v50 = vadd.f32 %v2224_v54, %v809_v49 }
0x1204   :  { %v826_v52 = vpack.c.bf16 %v810_v50, %v810_v50 }
0x1206   :  { %834 = vst.msk [vmem:[#allocation3 + $0x8] sm:$0xf] %vm144_vm1, %v826_v52 }
0x1209   :  { %v811_v53 = vpop.f32.mrf.mxu3 }
0x120a   :  { %v812_v55 = vadd.f32 %v2224_v54, %v811_v53 }
0x120c   :  { %v827_v56 = vpack.c.bf16 %v812_v55, %v812_v55 }
0x120e   :  { %835 = vst.msk [vmem:[#allocation3 + $0xc] sm:$0xf] %vm144_vm1, %v827_v56 }
0x1215   :  { %v2319_v2 = vld [vmem:[#allocation3 + $0x8] sm:$0xff]  }
0x1216   :  { %v993_v3 = vunpack.c.l.bf16 %v2319_v2  ;;  %v1060_v37 = vunpack.c.h.bf16 %v2319_v2 }
0x1236   :  { %v997_v57 = vpop.permute.xlu2 %996 }
0x1237   :  { %1783 = vmatmul.msk.bf16.vlgmr.msrb.gmra.mxu0 %vm38_vm0, %v997_v57 }
0x12b4   :  { %v1010_v59 = vpop.f32.mrf.mxu0 }
0x12b5   :  { %v1011_v60 = vadd.f32 %v2262_v7, %v1010_v59 }
0x12b7   :  { %1035 = vrot.lane.b32.xlu0 %v1011_v60, %s1989_s15  ;;  %v1014_v5 = vadd.f32 %v1011_v60, %v993_v3 }
0x12b9   :  { %v1784_v6 = vmul.f32 -1.442695, %v1014_v5 }
0x12bb   :  { %1914 = vpow2.f32 %v1784_v6 }
0x12bc   :  { %v1012_v1 = vpop.f32.mrf.mxu0 }
0x12c1   :  { %v1915_v10 = vpop.eup %1914 }
0x12c2   :  { %v1018_v12 = vadd.f32 1.0, %v1915_v10 }
0x12c4   :  { %1916 = vrcp.f32 %v1018_v12  ;;  %v1030_v18 = vand.u32 2147483648, %v1018_v12  ;;  %vm1024_vm13 = vweird.f32 %v1018_v12  ;;  %v1028_v19 = vand.u32 2147483647, %v1018_v12 }
0x12c6   :  { %v1031_v22 = vor.u32 1.1754944e-38, %v1030_v18  ;;  %vm1029_vm15 = vcmp.eq.f32.partialorder %v1028_v19, 8.507059e+37 }
0x12ca   :  { %v1917_v13 = vpop.eup %1916 }
0x12cb   :  { %v1020_v11 = vmul.f32 %v1917_v13, %v1018_v12  ;;  %vm1025_vm11 = vweird.f32 %v1917_v13 }
0x12cc   :  { %vm1026_vm14 = vmor %vm1024_vm13, %vm1025_vm11 }
0x12cd   :  { %v1021_v14 = vsub.f32 1.0, %v1020_v11 }
0x12cf   :  { %v1022_v15 = vmul.f32 %v1917_v13, %v1021_v14 }
0x12d1   :  { %v1023_v16 = vadd.f32 %v1917_v13, %v1022_v15 }
0x12d3   :  { %v1027_v21 = vsel %vm1026_vm14, %v1917_v13, %v1023_v16 }
0x12d4   :  { %v1032_v24 = vsel %vm1029_vm15, %v1031_v22, %v1027_v21 }
0x12d5   :  { %v1045_v20 = vsub.f32 1.0, %v1032_v24  ;;  %v1051_v29 = vmul.f32 %v1032_v24, %v985_v36 }
0x1329   :  { %v1036_v23 = vpop.permute.xlu0 %1035 }
0x132a   :  { %v1038_v25 = vmul.f32 %v1036_v23, %v1032_v24 }
0x132c   :  { %1040 = vrot.lane.b32.xlu1 %v1038_v25, %s1989_s15 }
0x139e   :  { %v1041_v62 = vpop.permute.xlu1 %1040 }
0x139f   :  { %v1043_v26 = vadd.f32 %v1041_v62, %v993_v3 }
0x13a1   :  { %1918 = vtanh.f32 %v1043_v26 }
0x13a7   :  { %v1919_v63 = vpop.eup %1918 }
0x13a8   :  { %1047 = vrot.lane.b32.xlu2 %v1919_v63, %s1990_s16 }
0x1402   :  { %v1048_v28 = vpop.permute.xlu2 %1047 }
0x1403   :  { %v1050_v30 = vmul.f32 %v1048_v28, %v1045_v20 }
0x1405   :  { %v1052_v31 = vadd.f32 %v1051_v29, %v1050_v30 }
0x1407   :  { %v2324_v32 = vpack.c.bf16 %v1052_v31, %v1052_v31 }
0x1409   :  { %v1061_v33 = vunpack.c.l.b16 %v2324_v32 }
0x140b   :  { %v1062_v9 = vpack.c.b16 %v1061_v33, %v1061_v33 }
0x140d   :  { %1063 = vrot.lane.b32.xlu0 %v1062_v9, %s1990_s16 }
0x147f   :  { %v1064_v27 = vpop.permute.xlu0 %1063 }
0x1480   :  { %1785 = vmatmul.msk.bf16.vlgmr.msrb.gmra.mxu1 %vm38_vm0, %v1064_v27 }
0x14fd   :  { %v1077_v58 = vpop.f32.mrf.mxu1 }
0x14fe   :  { %v1078_v34 = vadd.f32 %v2262_v7, %v1077_v58 }
0x1500   :  { %1102 = vrot.lane.b32.xlu1 %v1078_v34, %s1989_s15  ;;  %v1081_v38 = vadd.f32 %v1078_v34, %v1060_v37 }
0x1502   :  { %v1786_v39 = vmul.f32 -1.442695, %v1081_v38 }
0x1504   :  { %1920 = vpow2.f32 %v1786_v39 }
0x1505   :  { %v1079_v35 = vpop.f32.mrf.mxu1 }
0x1508   :  { %509 = vrot.lane.b32.xlu1 %v2188_v8, %s1990_s16 }
0x150a   :  { %v1921_v40 = vpop.eup %1920 }
0x150b   :  { %v1085_v41 = vadd.f32 1.0, %v1921_v40  ;;  %v1988_v40 = vld [vmem:[%s2536_s5] ss:$0 sm:$0xff] }
0x150d   :  { %1922 = vrcp.f32 %v1085_v41  ;;  %v1097_v43 = vand.u32 2147483648, %v1085_v41  ;;  %vm1091_vm3 = vweird.f32 %v1085_v41  ;;  %v1095_v48 = vand.u32 2147483647, %v1085_v41 }
0x150f   :  { %v1098_v8 = vor.u32 1.1754944e-38, %v1097_v43  ;;  %vm1096_vm5 = vcmp.eq.f32.partialorder %v1095_v48, 8.507059e+37 }
0x1513   :  { %v1923_v42 = vpop.eup %1922 }
0x1514   :  { %v1087_v44 = vmul.f32 %v1923_v42, %v1085_v41  ;;  %vm1092_vm2 = vweird.f32 %v1923_v42  ;;  %v672_v41 = vadd.f32 %v1988_v40, %v2294_v17 }
0x1515   :  { %vm1093_vm4 = vmor %vm1091_vm3, %vm1092_vm2 }
0x1516   :  { %v1088_v45 = vsub.f32 1.0, %v1087_v44 }
0x1518   :  { %v1089_v46 = vmul.f32 %v1923_v42, %v1088_v45 }
0x151a   :  { %v1090_v36 = vadd.f32 %v1923_v42, %v1089_v46  ;;  %v653_v46 = vld [vmem:[#allocation3 + $0x1c] sm:$0xf] }
0x151c   :  { %v1094_v49 = vsel %vm1093_vm4, %v1923_v42, %v1090_v36  ;;  %v654_v36 = vunpack.c.l.bf16 %v653_v46 }
0x151d   :  { %v1099_v52 = vsel %vm1096_vm5, %v1098_v8, %v1094_v49 }
0x151e   :  { %v1112_v2 = vsub.f32 1.0, %v1099_v52  ;;  %v1118_v5 = vmul.f32 %v1099_v52, %v1052_v31  ;;  %v675_v43 = vadd.f32 %v672_v41, %v654_v36 }
0x1520   :  { %v1731_v48 = vmul.f32 -1.442695, %v675_v43 }
0x1572   :  { %v1103_v50 = vpop.permute.xlu1 %1102 }
0x1573   :  { %v1105_v53 = vmul.f32 %v1103_v50, %v1099_v52 }
0x1575   :  { %1107 = vrot.lane.b32.xlu2 %v1105_v53, %s1989_s15 }
0x157a   :  { %v510_v55 = vpop.permute.xlu1 %509 }
0x157b   :  { %513 = vst.msk [vmem:[#allocation2 + $0x10] sm:$0xf] %vm236_vm12, %v510_v55 }
0x157d   :  { %578 = vrot.lane.b32.xlu2 %v2217_v51, %s1990_s16 }
0x15cf   :  { %v1108_v56 = vpop.permute.xlu2 %1107 }
0x15d0   :  { %v1110_v57 = vadd.f32 %v1108_v56, %v1060_v37 }
0x15d2   :  { %1924 = vtanh.f32 %v1110_v57 }
0x15d7   :  { %v579_v59 = vpop.permute.xlu2 %578 }
0x15d8   :  { %v1925_v60 = vpop.eup %1924  ;;  %582 = vst.msk [vmem:[#allocation2 + $0x14] sm:$0xf] %vm236_vm12, %v579_v59 }
0x15d9   :  { %1114 = vrot.lane.b32.xlu0 %v1925_v60, %s1990_s16 }
0x15df   :  { %v1838_v1 = vld [vmem:[#allocation2 + $0x10] sm:$0xff] }
0x15e0   :  { %1768 = vmatmul.msk.bf16.gmra.mxu3 %vm38_vm0, %v1838_v1 }
0x164b   :  { %v1115_v3 = vpop.permute.xlu0 %1114 }
0x164c   :  { %v1117_v6 = vmul.f32 %v1115_v3, %v1112_v2 }
0x164e   :  { %v2341_v10 = vadd.f32 %v1118_v5, %v1117_v6 }
0x1650   :  { %v2345_v51 = vpack.c.bf16 %v2341_v10, %v2341_v10 }
0x1652   :  { %v1128_v12 = vunpack.c.l.b16 %v2345_v51 }
0x1654   :  { %v1129_v13 = vpack.c.b16 %v1128_v12, %v1128_v12 }
0x1656   :  { %1130 = vrot.lane.b32.xlu0 %v1129_v13, %s1990_s16 }
0x1663   :  { %v814_v11 = vpop.f32.mrf.mxu3 }
0x1664   :  { %v815_v14 = vadd.f32 %v2224_v54, %v814_v11 }
0x1666   :  { %v828_v15 = vpack.c.bf16 %v815_v14, %v815_v14 }
0x1668   :  { %836 = vst.msk [vmem:[#allocation3 + $0x10] sm:$0xf] %vm144_vm1, %v828_v15 }
0x166b   :  { %v816_v16 = vpop.f32.mrf.mxu3 }
0x166c   :  { %v817_v18 = vadd.f32 %v2224_v54, %v816_v16 }
0x166e   :  { %v829_v19 = vpack.c.bf16 %v817_v18, %v817_v18 }
0x1670   :  { %837 = vst.msk [vmem:[#allocation3 + $0x14] sm:$0xf] %vm144_vm1, %v829_v19 }
0x1677   :  { %v2356_v25 = vld [vmem:[#allocation3 + $0x10] sm:$0xff]  }
0x1678   :  { %v1127_v62 = vunpack.c.l.bf16 %v2356_v25 }
0x16c8   :  { %v1131_v21 = vpop.permute.xlu0 %1130 }
0x16c9   :  { %1787 = vmatmul.msk.bf16.vlgmr.msrb.gmra.mxu2 %vm38_vm0, %v1131_v21 }
0x174c   :  { %v1144_v22 = vpop.f32.mrf.mxu2 }
0x174d   :  { %v1145_v23 = vadd.f32 %v2262_v7, %v1144_v22 }
0x174f   :  { %1169 = vrot.lane.b32.xlu1 %v1145_v23, %s1989_s15  ;;  %v1148_v26 = vadd.f32 %v1145_v23, %v1127_v62 }
0x1751   :  { %v1788_v63 = vmul.f32 -1.442695, %v1148_v26 }
0x1753   :  { %1926 = vpow2.f32 %v1788_v63 }
0x1754   :  { %v1146_v24 = vpop.f32.mrf.mxu2 }
0x1759   :  { %v1927_v20 = vpop.eup %1926 }
0x175a   :  { %v1152_v28 = vadd.f32 1.0, %v1927_v20 }
0x175c   :  { %1928 = vrcp.f32 %v1152_v28  ;;  %v1164_v27 = vand.u32 2147483648, %v1152_v28  ;;  %vm1158_vm7 = vweird.f32 %v1152_v28  ;;  %v1162_v58 = vand.u32 2147483647, %v1152_v28 }
0x175e   :  { %v1165_v35 = vor.u32 1.1754944e-38, %v1164_v27  ;;  %vm1163_vm9 = vcmp.eq.f32.partialorder %v1162_v58, 8.507059e+37 }
0x1762   :  { %v1929_v29 = vpop.eup %1928 }
0x1763   :  { %v1154_v30 = vmul.f32 %v1929_v29, %v1152_v28  ;;  %vm1159_vm6 = vweird.f32 %v1929_v29 }
0x1764   :  { %vm1160_vm8 = vmor %vm1158_vm7, %vm1159_vm6 }
0x1765   :  { %v1155_v31 = vsub.f32 1.0, %v1154_v30 }
0x1767   :  { %v1156_v33 = vmul.f32 %v1929_v29, %v1155_v31 }
0x1769   :  { %v1157_v9 = vadd.f32 %v1929_v29, %v1156_v33 }
0x176b   :  { %v1161_v34 = vsel %vm1160_vm8, %v1929_v29, %v1157_v9 }
0x176c   :  { %v1166_v38 = vsel %vm1163_vm9, %v1165_v35, %v1161_v34 }
0x176d   :  { %v1179_v53 = vsub.f32 1.0, %v1166_v38  ;;  %v1185_v56 = vmul.f32 %v1166_v38, %v2341_v10 }
0x17c1   :  { %v1170_v37 = vpop.permute.xlu1 %1169 }
0x17c2   :  { %v1172_v39 = vmul.f32 %v1170_v37, %v1166_v38 }
0x17c4   :  { %1174 = vrot.lane.b32.xlu2 %v1172_v39, %s1989_s15 }
0x17cc   :  { %696 = vrot.lane.b32.xlu2 %v672_v41, %s1989_s15 }
0x181e   :  { %v1175_v42 = vpop.permute.xlu2 %1174 }
0x181f   :  { %v1177_v44 = vadd.f32 %v1175_v42, %v1127_v62  ;;  %v1194_v62 = vunpack.c.h.bf16 %v2356_v25 }
0x1821   :  { %1930 = vtanh.f32 %v1177_v44 }
0x1822   :  { %1932 = vpow2.f32 %v1731_v48 }
0x1826   :  { %v697_v13 = vpop.permute.xlu2 %696 }
0x1827   :  { %v1931_v45 = vpop.eup %1930 }
0x1828   :  { %1181 = vrot.lane.b32.xlu0 %v1931_v45, %s1990_s16  ;;  %v1933_v49 = vpop.eup %1932 }
0x1829   :  { %v679_v8 = vadd.f32 1.0, %v1933_v49 }
0x182b   :  { %1934 = vrcp.f32 %v679_v8  ;;  %v691_v6 = vand.u32 2147483648, %v679_v8  ;;  %vm685_vm11 = vweird.f32 %v679_v8  ;;  %v689_v12 = vand.u32 2147483647, %v679_v8 }
0x182d   :  { %v692_v11 = vor.u32 1.1754944e-38, %v691_v6  ;;  %vm690_vm14 = vcmp.eq.f32.partialorder %v689_v12, 8.507059e+37 }
0x1831   :  { %v1935_v50 = vpop.eup %1934 }
0x1832   :  { %v681_v52 = vmul.f32 %v1935_v50, %v679_v8  ;;  %vm686_vm10 = vweird.f32 %v1935_v50 }
0x1833   :  { %vm687_vm13 = vmor %vm685_vm11, %vm686_vm10 }
0x1834   :  { %v682_v55 = vsub.f32 1.0, %v681_v52 }
0x1836   :  { %v683_v60 = vmul.f32 %v1935_v50, %v682_v55 }
0x1838   :  { %v684_v3 = vadd.f32 %v1935_v50, %v683_v60 }
0x183a   :  { %v688_v10 = vsel %vm687_vm13, %v1935_v50, %v684_v3 }
0x183b   :  { %v693_v14 = vsel %vm690_vm14, %v692_v11, %v688_v10 }
0x183c   :  { %v699_v15 = vmul.f32 %v697_v13, %v693_v14  ;;  %v706_v39 = vsub.f32 1.0, %v693_v14  ;;  %v712_v41 = vmul.f32 %v693_v14, %v2276_v61 }
0x189a   :  { %v1182_v17 = vpop.permute.xlu0 %1181 }
0x189b   :  { %v1184_v57 = vmul.f32 %v1182_v17, %v1179_v53 }
0x189d   :  { %v2367_v59 = vadd.f32 %v1185_v56, %v1184_v57 }
0x189f   :  { %v2371_v1 = vpack.c.bf16 %v2367_v59, %v2367_v59 }
0x18a1   :  { %v1195_v2 = vunpack.c.l.b16 %v2371_v1 }
0x18a3   :  { %v1196_v5 = vpack.c.b16 %v1195_v2, %v1195_v2 }
0x18a5   :  { %1197 = vrot.lane.b32.xlu1 %v1196_v5, %s1990_s16 }
0x18ad   :  { %701 = vrot.lane.b32.xlu1 %v699_v15, %s1989_s15 }
0x1917   :  { %v1198_v16 = vpop.permute.xlu1 %1197 }
0x1918   :  { %1789 = vmatmul.msk.bf16.vlgmr.msra.gmra.mxu0 %vm38_vm0, %v1198_v16 }
0x191f   :  { %v702_v18 = vpop.permute.xlu1 %701 }
0x1920   :  { %v704_v19 = vadd.f32 %v702_v18, %v654_v36 }
0x1922   :  { %1936 = vtanh.f32 %v704_v19 }
0x1928   :  { %v1937_v24 = vpop.eup %1936 }
0x1995   :  { %v1211_v21 = vpop.f32.mrf.mxu0 }
0x1996   :  { %v1212_v22 = vadd.f32 %v2262_v7, %v1211_v21 }
0x1998   :  { %1236 = vrot.lane.b32.xlu0 %v1212_v22, %s1989_s15  ;;  %v1215_v26 = vadd.f32 %v1212_v22, %v1194_v62 }
0x199a   :  { %v1790_v63 = vmul.f32 -1.442695, %v1215_v26 }
0x199c   :  { %1938 = vpow2.f32 %v1790_v63 }
0x199d   :  { %v1213_v23 = vpop.f32.mrf.mxu0 }
0x19a0   :  { %708 = vrot.lane.b32.xlu0 %v1937_v24, %s1990_s16 }
0x19a2   :  { %v1939_v20 = vpop.eup %1938 }
0x19a3   :  { %v1219_v28 = vadd.f32 1.0, %v1939_v20 }
0x19a5   :  { %1940 = vrcp.f32 %v1219_v28  ;;  %v1231_v27 = vand.u32 2147483648, %v1219_v28  ;;  %vm1225_vm2 = vweird.f32 %v1219_v28  ;;  %v1229_v58 = vand.u32 2147483647, %v1219_v28 }
0x19a7   :  { %v1232_v35 = vor.u32 1.1754944e-38, %v1231_v27  ;;  %vm1230_vm4 = vcmp.eq.f32.partialorder %v1229_v58, 8.507059e+37 }
0x19ab   :  { %v1941_v29 = vpop.eup %1940 }
0x19ac   :  { %v1221_v30 = vmul.f32 %v1941_v29, %v1219_v28  ;;  %vm1226_vm15 = vweird.f32 %v1941_v29 }
0x19ad   :  { %vm1227_vm3 = vmor %vm1225_vm2, %vm1226_vm15 }
0x19ae   :  { %v1222_v31 = vsub.f32 1.0, %v1221_v30 }
0x19b0   :  { %v1223_v33 = vmul.f32 %v1941_v29, %v1222_v31 }
0x19b2   :  { %v1224_v9 = vadd.f32 %v1941_v29, %v1223_v33 }
0x19b4   :  { %v1228_v34 = vsel %vm1227_vm3, %v1941_v29, %v1224_v9 }
0x19b5   :  { %v1233_v37 = vsel %vm1230_vm4, %v1232_v35, %v1228_v34 }
0x19b6   :  { %v1252_v50 = vmul.f32 %v1233_v37, %v2367_v59 }
0x1a0a   :  { %v1237_v25 = vpop.permute.xlu0 %1236 }
0x1a0b   :  { %v1239_v38 = vmul.f32 %v1237_v25, %v1233_v37 }
0x1a0d   :  { %1241 = vrot.lane.b32.xlu2 %v1239_v38, %s1989_s15 }
0x1a12   :  { %v709_v40 = vpop.permute.xlu0 %708 }
0x1a13   :  { %v711_v42 = vmul.f32 %v709_v40, %v706_v39 }
0x1a15   :  { %v2383_v44 = vadd.f32 %v712_v41, %v711_v42  ;;  %647 = vrot.lane.b32.xlu2 %v2280_v0, %s1990_s16  ;;  %v1246_v0 = vsub.f32 1.0, %v1233_v37 }
0x1a17   :  { %v714_v45 = vpack.c.bf16 %v2383_v44, %v2383_v44 }
0x1a19   :  { %716 = vrot.lane.b32.xlu0 %v714_v45, %s1990_s16 }
0x1a67   :  { %v1242_v46 = vpop.permute.xlu2 %1241 }
0x1a68   :  { %v1244_v36 = vadd.f32 %v1242_v46, %v1194_v62 }
0x1a6a   :  { %1942 = vtanh.f32 %v1244_v36 }
0x1a6f   :  { %v648_v43 = vpop.permute.xlu2 %647 }
0x1a70   :  { %v1943_v48 = vpop.eup %1942  ;;  %651 = vst.msk [vmem:[#allocation2 + $0x18] sm:$0xf] %vm236_vm12, %v648_v43 }
0x1a71   :  { %1248 = vrot.lane.b32.xlu1 %v1943_v48, %s1990_s16 }
0x1a8b   :  { %v717_v61 = vpop.permute.xlu0 %716 }
0x1a8c   :  { %720 = vst.msk [vmem:[#allocation2 + $0x1c] sm:$0xf] %vm236_vm12, %v717_v61 }
0x1a93   :  { %v1839_v49 = vld [vmem:[#allocation2 + $0x18] sm:$0xff] }
0x1a94   :  { %1769 = vmatmul.msk.bf16.gmra.mxu3 %vm38_vm0, %v1839_v49 }
0x1ae3   :  { %v1249_v8 = vpop.permute.xlu1 %1248 }
0x1ae4   :  { %v1251_v52 = vmul.f32 %v1249_v8, %v1246_v0 }
0x1ae6   :  { %v1253_v53 = vadd.f32 %v1252_v50, %v1251_v52 }
0x1ae8   :  { %v1254_v17 = vpack.c.bf16 %v1253_v53, %v1253_v53 }
0x1aea   :  { %v1262_v55 = vunpack.c.l.b16 %v1254_v17 }
0x1aec   :  { %v1263_v56 = vpack.c.b16 %v1262_v55, %v1262_v55 }
0x1aee   :  { %1264 = vrot.lane.b32.xlu1 %v1263_v56, %s1990_s16 }
0x1b17   :  { %v819_v57 = vpop.f32.mrf.mxu3 }
0x1b18   :  { %v820_v60 = vadd.f32 %v2224_v54, %v819_v57 }
0x1b1a   :  { %v830_v2 = vpack.c.bf16 %v820_v60, %v820_v60 }
0x1b1c   :  { %838 = vst.msk [vmem:[#allocation3 + $0x18] sm:$0xf] %vm144_vm1, %v830_v2 }
0x1b1f   :  { %v821_v3 = vpop.f32.mrf.mxu3 }
0x1b20   :  { %v822_v5 = vadd.f32 %v2224_v54, %v821_v3 }
0x1b22   :  { %v831_v6 = vpack.c.bf16 %v822_v5, %v822_v5 }
0x1b24   :  { %839 = vst.msk [vmem:[#allocation3 + $0x1c] sm:$0xf] %vm144_vm1, %v831_v6 }
0x1b2b   :  { %v2403_v11 = vld [vmem:[#allocation3 + $0x18] sm:$0xff]  }
0x1b2c   :  { %v1261_v14 = vunpack.c.l.bf16 %v2403_v11  ;;  %v1328_v36 = vunpack.c.h.bf16 %v2403_v11 }
0x1b60   :  { %v1265_v59 = vpop.permute.xlu1 %1264 }
0x1b61   :  { %1791 = vmatmul.msk.bf16.vlgmr.msra.gmra.mxu1 %vm38_vm0, %v1265_v59 }
0x1bde   :  { %v1278_v12 = vpop.f32.mrf.mxu1 }
0x1bdf   :  { %v1279_v10 = vadd.f32 %v2262_v7, %v1278_v12 }
0x1be1   :  { %1303 = vrot.lane.b32.xlu2 %v1279_v10, %s1989_s15  ;;  %v1282_v15 = vadd.f32 %v1279_v10, %v1261_v14 }
0x1be3   :  { %v1792_v16 = vmul.f32 -1.442695, %v1282_v15 }
0x1be5   :  { %1944 = vpow2.f32 %v1792_v16 }
0x1be6   :  { %v1280_v13 = vpop.f32.mrf.mxu1 }
0x1beb   :  { %v1945_v54 = vpop.eup %1944 }
0x1bec   :  { %v1286_v18 = vadd.f32 1.0, %v1945_v54 }
0x1bee   :  { %1946 = vrcp.f32 %v1286_v18  ;;  %v1298_v62 = vand.u32 2147483648, %v1286_v18  ;;  %vm1292_vm5 = vweird.f32 %v1286_v18  ;;  %v1296_v26 = vand.u32 2147483647, %v1286_v18 }
0x1bf0   :  { %v1299_v20 = vor.u32 1.1754944e-38, %v1298_v62  ;;  %vm1297_vm7 = vcmp.eq.f32.partialorder %v1296_v26, 8.507059e+37 }
0x1bf4   :  { %v1947_v19 = vpop.eup %1946 }
0x1bf5   :  { %v1288_v21 = vmul.f32 %v1947_v19, %v1286_v18  ;;  %vm1293_vm1 = vweird.f32 %v1947_v19 }
0x1bf6   :  { %vm1294_vm6 = vmor %vm1292_vm5, %vm1293_vm1 }
0x1bf7   :  { %v1289_v22 = vsub.f32 1.0, %v1288_v21 }
0x1bf9   :  { %v1290_v23 = vmul.f32 %v1947_v19, %v1289_v22 }
0x1bfb   :  { %v1291_v24 = vadd.f32 %v1947_v19, %v1290_v23 }
0x1bfd   :  { %v1295_v63 = vsel %vm1294_vm6, %v1947_v19, %v1291_v24 }
0x1bfe   :  { %v1300_v29 = vsel %vm1297_vm7, %v1299_v20, %v1295_v63 }
0x1bff   :  { %v1313_v27 = vsub.f32 1.0, %v1300_v29  ;;  %v1319_v34 = vmul.f32 %v1300_v29, %v1253_v53 }
0x1c3b   :  { %v1304_v28 = vpop.permute.xlu2 %1303 }
0x1c3c   :  { %v1306_v30 = vmul.f32 %v1304_v28, %v1300_v29 }
0x1c3e   :  { %1308 = vrot.lane.b32.xlu0 %v1306_v30, %s1989_s15 }
0x1cb0   :  { %v1309_v31 = vpop.permute.xlu0 %1308 }
0x1cb1   :  { %v1311_v33 = vadd.f32 %v1309_v31, %v1261_v14  ;;  %v1859_v14 = vld [vmem:[%s2538_s7] ss:$0 sm:$0xff] }
0x1cb3   :  { %1948 = vtanh.f32 %v1311_v33 }
0x1cb9   :  { %v1949_v9 = vpop.eup %1948 }
0x1cba   :  { %1315 = vrot.lane.b32.xlu1 %v1949_v9, %s1990_s16 }
0x1d2c   :  { %v1316_v58 = vpop.permute.xlu1 %1315 }
0x1d2d   :  { %v1318_v35 = vmul.f32 %v1316_v58, %v1313_v27 }
0x1d2f   :  { %v2408_v25 = vadd.f32 %v1319_v34, %v1318_v35 }
0x1d31   :  { %v1321_v37 = vpack.c.bf16 %v2408_v25, %v2408_v25 }
0x1d33   :  { %v1329_v38 = vunpack.c.l.b16 %v1321_v37 }
0x1d35   :  { %v1330_v39 = vpack.c.b16 %v1329_v38, %v1329_v38 }
0x1d37   :  { %1331 = vrot.lane.b32.xlu2 %v1330_v39, %s1990_s16 }
0x1d3f   :  { %921 = vrot.lane.b32.xlu2 %v2284_v4, %s1990_s16 }
0x1d47   :  { %1055 = vrot.lane.b32.xlu2 %v2324_v32, %s1990_s16 }
0x1d4f   :  { %1256 = vrot.lane.b32.xlu2 %v1254_v17, %s1990_s16 }
0x1d91   :  { %v1332_v40 = vpop.permute.xlu2 %1331 }
0x1d92   :  { %1793 = vmatmul.msk.bf16.vlgmr.msra.gmra.mxu2 %vm38_vm0, %v1332_v40 }
0x1d99   :  { %v922_v41 = vpop.permute.xlu2 %921 }
0x1d9a   :  { %924 = vst.msk [vmem:[#allocation2] sm:$0xf] %vm236_vm12, %v922_v41 }
0x1da1   :  { %v1056_v42 = vpop.permute.xlu2 %1055 }
0x1da2   :  { %1058 = vst.msk [vmem:[#allocation2 + $0x8] sm:$0xf] %vm236_vm12, %v1056_v42 }
0x1da9   :  { %v1257_v45 = vpop.permute.xlu2 %1256 }
0x1daa   :  { %1259 = vst.msk [vmem:[#allocation2 + $0x14] sm:$0xf] %vm236_vm12, %v1257_v45 }
0x1e15   :  { %v1345_v46 = vpop.f32.mrf.mxu2 }
0x1e16   :  { %v1346_v4 = vadd.f32 %v2262_v7, %v1345_v46  ;;  %v1845_v7 = vld [vmem:[%s2537_s6 + $0x8] sm:$0xff] }
0x1e17   :  { %1465 = vmatpush.bf16.msrb.mxu0 %v1845_v7 }
0x1e18   :  { %1370 = vrot.lane.b32.xlu0 %v1346_v4, %s1989_s15  ;;  %v1349_v43 = vadd.f32 %v1346_v4, %v1328_v36 }
0x1e1a   :  { %v1794_v48 = vmul.f32 -1.442695, %v1349_v43 }
0x1e1c   :  { %1950 = vpow2.f32 %v1794_v48 }
0x1e1d   :  { %v1347_v32 = vpop.f32.mrf.mxu2 }
0x1e20   :  { %988 = vrot.lane.b32.xlu0 %v2308_v47, %s1990_s16  ;;  %v1844_v47 = vld [vmem:[%s2537_s6] sm:$0xff] }
0x1e21   :  { %1466 = vmatpush.bf16.msrb.mxu0 %v1844_v47 }
0x1e22   :  { %v1951_v61 = vpop.eup %1950 }
0x1e23   :  { %v1353_v49 = vadd.f32 1.0, %v1951_v61 }
0x1e25   :  { %1952 = vrcp.f32 %v1353_v49  ;;  %v1365_v53 = vand.u32 2147483648, %v1353_v49  ;;  %vm1359_vm9 = vweird.f32 %v1353_v49  ;;  %v1363_v17 = vand.u32 2147483647, %v1353_v49 }
0x1e27   :  { %v1366_v56 = vor.u32 1.1754944e-38, %v1365_v53  ;;  %vm1364_vm11 = vcmp.eq.f32.partialorder %v1363_v17, 8.507059e+37 }
0x1e28   :  { %1122 = vrot.lane.b32.xlu0 %v2345_v51, %s1990_s16 }
0x1e2b   :  { %v1953_v0 = vpop.eup %1952 }
0x1e2c   :  { %v1355_v51 = vmul.f32 %v1953_v0, %v1353_v49  ;;  %vm1360_vm8 = vweird.f32 %v1953_v0 }
0x1e2d   :  { %vm1361_vm10 = vmor %vm1359_vm9, %vm1360_vm8 }
0x1e2e   :  { %v1356_v8 = vsub.f32 1.0, %v1355_v51 }
0x1e30   :  { %1323 = vrot.lane.b32.xlu0 %v1321_v37, %s1990_s16  ;;  %v1357_v50 = vmul.f32 %v1953_v0, %v1356_v8 }
0x1e32   :  { %v1358_v52 = vadd.f32 %v1953_v0, %v1357_v50 }
0x1e34   :  { %v1362_v55 = vsel %vm1361_vm10, %v1953_v0, %v1358_v52 }
0x1e35   :  { %v1367_v60 = vsel %vm1364_vm11, %v1366_v56, %v1362_v55 }
0x1e36   :  { %v1380_v23 = vsub.f32 1.0, %v1367_v60  ;;  %v1386_v62 = vmul.f32 %v1367_v60, %v2408_v25 }
0x1e8a   :  { %v1371_v57 = vpop.permute.xlu0 %1370 }
0x1e8b   :  { %v1373_v2 = vmul.f32 %v1371_v57, %v1367_v60 }
0x1e8d   :  { %1375 = vrot.lane.b32.xlu1 %v1373_v2, %s1989_s15 }
0x1e92   :  { %v989_v3 = vpop.permute.xlu0 %988 }
0x1e93   :  { %991 = vst.msk [vmem:[#allocation2 + $0x4] sm:$0xf] %vm236_vm12, %v989_v3 }
0x1e9a   :  { %v1123_v5 = vpop.permute.xlu0 %1122  ;;  %v1840_v6 = vld [vmem:[#allocation2] sm:$0xff] }
0x1e9b   :  { %1125 = vst.msk [vmem:[#allocation2 + $0xc] sm:$0xf] %vm236_vm12, %v1123_v5  ;;  %1820 = vmatmul.msk.bf16.vlgmr.msrb.gmra.mxu0 %vm38_vm0, %v1840_v6 }
0x1ea2   :  { %v1324_v59 = vpop.permute.xlu0 %1323  ;;  %v1841_v12 = vld [vmem:[#allocation2 + $0x8] sm:$0xff] }
0x1ea3   :  { %1326 = vst.msk [vmem:[#allocation2 + $0x18] sm:$0xf] %vm236_vm12, %v1324_v59 }
0x1eab   :  { %1821 = vmatmul.msk.bf16.gmra.mxu0 %vm38_vm0, %v1841_v12 }
0x1eff   :  { %v1376_v10 = vpop.permute.xlu1 %1375 }
0x1f00   :  { %v1378_v13 = vadd.f32 %v1376_v10, %v1328_v36 }
0x1f02   :  { %1954 = vtanh.f32 %v1378_v13 }
0x1f08   :  { %v1955_v11 = vpop.eup %1954 }
0x1f09   :  { %1382 = vrot.lane.b32.xlu1 %v1955_v11, %s1990_s16 }
0x1f11   :  { %1189 = vrot.lane.b32.xlu1 %v2371_v1, %s1990_s16 }
0x1f18   :  { %v1468_v15 = vpop.f32.mrf.mxu0 }
0x1f19   :  { %v1469_v16 = vadd.f32 %v1859_v14, %v1468_v15 }
0x1f1b   :  { %1488 = vmax.xlane.f32.xlu2 %v1469_v16 }
0x1f20   :  { %v1470_v54 = vpop.f32.mrf.mxu0 }
0x1f21   :  { %v1471_v18 = vadd.f32 %v1859_v14, %v1470_v54 }
0x1f23   :  { %1490 = vmax.xlane.f32.xlu0 %v1471_v18 }
0x1f28   :  { %v1473_v19 = vpop.f32.mrf.mxu0 }
0x1f29   :  { %v1474_v29 = vadd.f32 %v1859_v14, %v1473_v19 }
0x1f30   :  { %v1475_v21 = vpop.f32.mrf.mxu0 }
0x1f31   :  { %v1476_v22 = vadd.f32 %v1859_v14, %v1475_v21 }
0x1f33   :  { %1494 = vmax.xlane.f32.xlu2 %v1476_v22 }
0x1f7b   :  { %v1383_v24 = vpop.permute.xlu1 %1382 }
0x1f7c   :  { %v1385_v26 = vmul.f32 %v1383_v24, %v1380_v23 }
0x1f7e   :  { %v2449_v1 = vadd.f32 %v1386_v62, %v1385_v26 }
0x1f80   :  { %v1388_v63 = vpack.c.bf16 %v2449_v1, %v2449_v1 }
0x1f82   :  { %1390 = vrot.lane.b32.xlu1 %v1388_v63, %s1990_s16 }
0x1f83   :  { %v1190_v20 = vpop.permute.xlu1 %1189 }
0x1f84   :  { %1192 = vst.msk [vmem:[#allocation2 + $0x10] sm:$0xf] %vm236_vm12, %v1190_v20 }
0x1f8b   :  { %v1842_v28 = vld [vmem:[#allocation2 + $0x10] sm:$0xff] }
0x1f8c   :  { %1822 = vmatmul.msk.bf16.gmra.mxu0 %vm38_vm0, %v1842_v28 }
0x1f8e   :  { %v1489_v9 = vpop.xlane.xlu2 %1488 }
0x1f8f   :  { %v1504_v58 = vsub.f32 %v1469_v16, %v1489_v9 }
0x1f91   :  { %v1512_v34 = vmul.f32 1.442695, %v1504_v58 }
0x1f93   :  { %1956 = vpow2.f32 %v1512_v34 }
0x1f96   :  { %v1491_v42 = vpop.xlane.xlu0 %1490 }
0x1f97   :  { %v1505_v45 = vsub.f32 %v1471_v18, %v1491_v42 }
0x1f99   :  { %v1957_v40 = vpop.eup %1956  ;;  %v1514_v46 = vmul.f32 1.442695, %v1505_v45 }
0x1fa6   :  { %v1495_v25 = vpop.xlane.xlu2 %1494 }
0x1fa7   :  { %v1507_v38 = vsub.f32 %v1476_v22, %v1495_v25 }
0x1fa9   :  { %v1518_v39 = vmul.f32 1.442695, %v1507_v38 }
0x1fab   :  { %1958 = vpow2.f32 %v1518_v39 }
0x1fac   :  { %1492 = vmax.xlane.f32.xlu1 %v1474_v29  ;;  %1960 = vpow2.f32 %v1514_v46 }
0x1fb1   :  { %v2458_v41 = vpop.eup %1958 }
0x1fb2   :  { %v2466_v51 = vpop.eup %1960 }
0x1ff4   :  { %v1391_v30 = vpop.permute.xlu1 %1390 }
0x1ff5   :  { %1393 = vst.msk [vmem:[#allocation2 + $0x1c] sm:$0xf] %vm236_vm12, %v1391_v30 }
0x1ffc   :  { %v1843_v31 = vld [vmem:[#allocation2 + $0x18] sm:$0xff] }
0x1ffd   :  { %1823 = vmatmul.msk.bf16.gmra.mxu0 %vm38_vm0, %v1843_v31 }
0x2009   :  { %v1478_v33 = vpop.f32.mrf.mxu0 }
0x200a   :  { %v1479_v27 = vadd.f32 %v1859_v14, %v1478_v33 }
0x200c   :  { %1496 = vmax.xlane.f32.xlu2 %v1479_v27 }
0x2011   :  { %v1480_v35 = vpop.f32.mrf.mxu0 }
0x2012   :  { %v1481_v37 = vadd.f32 %v1859_v14, %v1480_v35 }
0x2014   :  { %1498 = vmax.xlane.f32.xlu0 %v1481_v37 }
0x201c   :  { %1528 = vadd.xlane.f32.xlu0 %v1957_v40 }
0x201f   :  { %v1493_v4 = vpop.xlane.xlu1 %1492 }
0x2020   :  { %v1506_v43 = vsub.f32 %v1474_v29, %v1493_v4 }
0x2022   :  { %v1516_v49 = vmul.f32 1.442695, %v1506_v43 }
0x2024   :  { %1534 = vadd.xlane.f32.xlu0 %v2458_v41  ;;  %1962 = vpow2.f32 %v1516_v49 }
0x202a   :  { %v2470_v53 = vpop.eup %1962 }
0x207a   :  { %v1483_v32 = vpop.f32.mrf.mxu0 }
0x207b   :  { %v2461_v36 = vadd.f32 %v1859_v14, %v1483_v32 }
0x207d   :  { %1500 = vmax.xlane.f32.xlu1 %v2461_v36 }
0x207f   :  { %v1497_v48 = vpop.xlane.xlu2 %1496 }
0x2080   :  { %v1508_v61 = vsub.f32 %v1479_v27, %v1497_v48 }
0x2082   :  { %v1520_v7 = vmul.f32 1.442695, %v1508_v61  ;;  %v1485_v0 = vpop.f32.mrf.mxu0 }
0x2083   :  { %v2464_v47 = vadd.f32 %v1859_v14, %v1485_v0 }
0x2084   :  { %1964 = vpow2.f32 %v1520_v7 }
0x2085   :  { %1530 = vadd.xlane.f32.xlu1 %v2466_v51  ;;  %1502 = vmax.xlane.f32.xlu2 %v2464_v47 }
0x2087   :  { %v1499_v8 = vpop.xlane.xlu0 %1498 }
0x2088   :  { %v1509_v50 = vsub.f32 %v1481_v37, %v1499_v8 }
0x208a   :  { %v1522_v52 = vmul.f32 1.442695, %v1509_v50  ;;  %v2472_v17 = vpop.eup %1964 }
0x208c   :  { %1966 = vpow2.f32 %v1522_v52 }
0x208d   :  { %1532 = vadd.xlane.f32.xlu2 %v2470_v53  ;;  %1536 = vadd.xlane.f32.xlu1 %v2472_v17 }
0x208f   :  { %v1529_v55 = vpop.xlane.xlu0 %1528 }
0x2090   :  { %1968 = vrcp.f32 %v1529_v55  ;;  %v1555_v5 = vand.u32 2147483648, %v1529_v55  ;;  %v1553_v59 = vand.u32 2147483647, %v1529_v55  ;;  %vm1549_vm13 = vweird.f32 %v1529_v55 }
0x2092   :  { %v2476_v56 = vpop.eup %1966  ;;  %v1556_v13 = vor.u32 1.1754944e-38, %v1555_v5  ;;  %vm1554_vm15 = vcmp.eq.f32.partialorder %v1553_v59, 8.507059e+37 }
0x2095   :  { %1538 = vadd.xlane.f32.xlu2 %v2476_v56 }
0x2096   :  { %v1969_v57 = vpop.eup %1968 }
0x2097   :  { %v1545_v60 = vmul.f32 %v1969_v57, %v1529_v55  ;;  %v1535_v2 = vpop.xlane.xlu0 %1534  ;;  %vm1550_vm12 = vweird.f32 %v1969_v57 }
0x2098   :  { %1970 = vrcp.f32 %v1535_v2  ;;  %vm1551_vm14 = vmor %vm1549_vm13, %vm1550_vm12  ;;  %v1600_v18 = vand.u32 2147483648, %v1535_v2  ;;  %v1598_v21 = vand.u32 2147483647, %v1535_v2  ;;  %vm1594_vm3 = vweird.f32 %v1535_v2 }
0x2099   :  { %v1546_v3 = vsub.f32 1.0, %v1545_v60 }
0x209a   :  { %v1601_v23 = vor.u32 1.1754944e-38, %v1600_v18  ;;  %vm1599_vm1 = vcmp.eq.f32.partialorder %v1598_v21, 8.507059e+37 }
0x209b   :  { %v1547_v6 = vmul.f32 %v1969_v57, %v1546_v3 }
0x209d   :  { %v1548_v12 = vadd.f32 %v1969_v57, %v1547_v6 }
0x209e   :  { %v1971_v10 = vpop.eup %1970 }
0x209f   :  { %v1552_v11 = vsel %vm1551_vm14, %v1969_v57, %v1548_v12  ;;  %v1590_v14 = vmul.f32 %v1971_v10, %v1535_v2  ;;  %vm1595_vm2 = vweird.f32 %v1971_v10 }
0x20a0   :  { %v1557_v15 = vsel %vm1554_vm15, %v1556_v13, %v1552_v11  ;;  %vm1596_vm4 = vmor %vm1594_vm3, %vm1595_vm2 }
0x20a1   :  { %v1558_v16 = vmul.f32 %v1957_v40, %v1557_v15  ;;  %v1591_v54 = vsub.f32 1.0, %v1590_v14 }
0x20a3   :  { %1664 = vst [vmem:[%s2539_s8] sm:$0xff] %v1558_v16  ;;  %v1592_v19 = vmul.f32 %v1971_v10, %v1591_v54 }
0x20a5   :  { %v1593_v22 = vadd.f32 %v1971_v10, %v1592_v19 }
0x20a7   :  { %v1597_v24 = vsel %vm1596_vm4, %v1971_v10, %v1593_v22 }
0x20a8   :  { %v1602_v62 = vsel %vm1599_vm1, %v1601_v23, %v1597_v24 }
0x20a9   :  { %v1603_v26 = vmul.f32 %v2458_v41, %v1602_v62 }
0x20ab   :  { %1667 = vst [vmem:[%s2539_s8 + $0x18] sm:$0xff] %v1603_v26 }
0x20ad   :  { %722 = vrot.lane.b32.xlu2 %v2383_v44, %s1990_s16 }
0x20f0   :  { %v1501_v63 = vpop.xlane.xlu1 %1500 }
0x20f1   :  { %v1510_v20 = vsub.f32 %v2461_v36, %v1501_v63 }
0x20f3   :  { %v1524_v28 = vmul.f32 1.442695, %v1510_v20 }
0x20f5   :  { %1972 = vpow2.f32 %v1524_v28 }
0x20f8   :  { %v1531_v29 = vpop.xlane.xlu1 %1530  ;;  %v1503_v30 = vpop.xlane.xlu2 %1502 }
0x20f9   :  { %1974 = vrcp.f32 %v1531_v29  ;;  %v1511_v31 = vsub.f32 %v2464_v47, %v1503_v30  ;;  %v1570_v25 = vand.u32 2147483648, %v1531_v29  ;;  %v1568_v39 = vand.u32 2147483647, %v1531_v29 }
0x20fa   :  { %vm1564_vm6 = vweird.f32 %v1531_v29 }
0x20fb   :  { %v2490_v33 = vpop.eup %1972  ;;  %v1526_v9 = vmul.f32 1.442695, %v1511_v31  ;;  %v1571_v42 = vor.u32 1.1754944e-38, %v1570_v25  ;;  %vm1569_vm8 = vcmp.eq.f32.partialorder %v1568_v39, 8.507059e+37 }
0x20fc   :  { %1540 = vadd.xlane.f32.xlu0 %v2490_v33 }
0x20fd   :  { %1976 = vpow2.f32 %v1526_v9 }
0x20ff   :  { %v1975_v27 = vpop.eup %1974 }
0x2100   :  { %v1560_v58 = vmul.f32 %v1975_v27, %v1531_v29  ;;  %v1537_v34 = vpop.xlane.xlu1 %1536  ;;  %v1533_v44 = vpop.xlane.xlu2 %1532  ;;  %vm1565_vm5 = vweird.f32 %v1975_v27 }
0x2101   :  { %1978 = vrcp.f32 %v1537_v34  ;;  %vm1566_vm7 = vmor %vm1564_vm6, %vm1565_vm5  ;;  %v1615_v49 = vand.u32 2147483648, %v1537_v34  ;;  %v1613_v47 = vand.u32 2147483647, %v1537_v34  ;;  %v1585_v8 = vand.u32 2147483648, %v1533_v44 }
0x2102   :  { %v1561_v35 = vsub.f32 1.0, %v1560_v58  ;;  %1980 = vrcp.f32 %v1533_v44  ;;  %v1583_v52 = vand.u32 2147483647, %v1533_v44  ;;  %vm1609_vm11 = vweird.f32 %v1537_v34 }
0x2103   :  { %v2493_v37 = vpop.eup %1976  ;;  %v1616_v60 = vor.u32 1.1754944e-38, %v1615_v49  ;;  %vm1579_vm13 = vweird.f32 %v1533_v44  ;;  %vm1614_vm14 = vcmp.eq.f32.partialorder %v1613_v47, 8.507059e+37  ;;  %v1586_v3 = vor.u32 1.1754944e-38, %v1585_v8 }
0x2104   :  { %v1562_v38 = vmul.f32 %v1975_v27, %v1561_v35  ;;  %1542 = vadd.xlane.f32.xlu1 %v2493_v37  ;;  %vm1584_vm2 = vcmp.eq.f32.partialorder %v1583_v52, 8.507059e+37 }
0x2106   :  { %v1563_v40 = vadd.f32 %v1975_v27, %v1562_v38 }
0x2107   :  { %v1979_v41 = vpop.eup %1978 }
0x2108   :  { %v1981_v45 = vpop.eup %1980  ;;  %v1567_v46 = vsel %vm1566_vm7, %v1975_v27, %v1563_v40  ;;  %v1605_v4 = vmul.f32 %v1979_v41, %v1537_v34  ;;  %v1539_v32 = vpop.xlane.xlu2 %1538  ;;  %vm1610_vm9 = vweird.f32 %v1979_v41 }
0x2109   :  { %v1572_v36 = vsel %vm1569_vm8, %v1571_v42, %v1567_v46  ;;  %v1575_v43 = vmul.f32 %v1981_v45, %v1533_v44  ;;  %1982 = vrcp.f32 %v1539_v32  ;;  %vm1580_vm10 = vweird.f32 %v1981_v45  ;;  %vm1611_vm12 = vmor %vm1609_vm11, %vm1610_vm9 }
0x210a   :  { %v1573_v48 = vmul.f32 %v2466_v51, %v1572_v36  ;;  %v1606_v61 = vsub.f32 1.0, %v1605_v4  ;;  %vm1581_vm15 = vmor %vm1579_vm13, %vm1580_vm10  ;;  %v1630_v15 = vand.u32 2147483648, %v1539_v32  ;;  %v1628_v16 = vand.u32 2147483647, %v1539_v32 }
0x210b   :  { %v1576_v7 = vsub.f32 1.0, %v1575_v43  ;;  %vm1624_vm4 = vweird.f32 %v1539_v32 }
0x210c   :  { %1665 = vst [vmem:[%s2539_s8 + $0x8] sm:$0xff] %v1573_v48  ;;  %v1607_v0 = vmul.f32 %v1979_v41, %v1606_v61  ;;  %vm1629_vm5 = vcmp.eq.f32.partialorder %v1628_v16, 8.507059e+37 }
0x210d   :  { %v1577_v50 = vmul.f32 %v1981_v45, %v1576_v7 }
0x210e   :  { %v1608_v55 = vadd.f32 %v1979_v41, %v1607_v0 }
0x210f   :  { %v1983_v57 = vpop.eup %1982  ;;  %v1578_v51 = vadd.f32 %v1981_v45, %v1577_v50 }
0x2110   :  { %v1612_v2 = vsel %vm1611_vm12, %v1979_v41, %v1608_v55  ;;  %v1620_v5 = vmul.f32 %v1983_v57, %v1539_v32  ;;  %1395 = vrot.lane.b32.xlu0 %v2449_v1, %s1990_s16  ;;  %v723_v6 = vpop.permute.xlu2 %722  ;;  %vm1625_vm3 = vweird.f32 %v1983_v57 }
0x2111   :  { %v1617_v59 = vsel %vm1614_vm14, %v1616_v60, %v1612_v2  ;;  %v1582_v12 = vsel %vm1581_vm15, %v1981_v45, %v1578_v51  ;;  %725 = vst.msk [vmem:[%s2533_s9] sm:$0xff] %vm38_vm0, %v723_v6  ;;  %vm1626_vm1 = vmor %vm1624_vm4, %vm1625_vm3 }
0x2112   :  { %v1618_v10 = vmul.f32 %v2472_v17, %v1617_v59  ;;  %v1587_v13 = vsel %vm1584_vm2, %v1586_v3, %v1582_v12  ;;  %v1621_v11 = vsub.f32 1.0, %v1620_v5  ;;  %v1631_v17 = vor.u32 1.1754944e-38, %v1630_v15 }
0x2113   :  { %v1588_v14 = vmul.f32 %v2470_v53, %v1587_v13 }
0x2114   :  { %1668 = vst [vmem:[%s2539_s8 + $0x20] sm:$0xff] %v1618_v10  ;;  %v1622_v1 = vmul.f32 %v1983_v57, %v1621_v11 }
0x2115   :  { %1666 = vst [vmem:[%s2539_s8 + $0x10] sm:$0xff] %v1588_v14 }
0x2116   :  { %v1623_v54 = vadd.f32 %v1983_v57, %v1622_v1 }
0x2118   :  { %v1627_v18 = vsel %vm1626_vm1, %v1983_v57, %v1623_v54 }
0x2119   :  { %v1632_v19 = vsel %vm1629_vm5, %v1631_v17, %v1627_v18 }
0x211a   :  { %v1633_v53 = vmul.f32 %v2476_v56, %v1632_v19 }
0x211c   :  { %1669 = vst [vmem:[%s2539_s8 + $0x28] sm:$0xff] %v1633_v53 }
0x216f   :  { %v1541_v21 = vpop.xlane.xlu0 %1540 }
0x2170   :  { %1984 = vrcp.f32 %v1541_v21  ;;  %v1645_v26 = vand.u32 2147483648, %v1541_v21  ;;  %v1643_v20 = vand.u32 2147483647, %v1541_v21  ;;  %vm1639_vm7 = vweird.f32 %v1541_v21 }
0x2172   :  { %v1646_v29 = vor.u32 1.1754944e-38, %v1645_v26  ;;  %vm1644_vm9 = vcmp.eq.f32.partialorder %v1643_v20, 8.507059e+37 }
0x2176   :  { %v1985_v22 = vpop.eup %1984 }
0x2177   :  { %v1635_v23 = vmul.f32 %v1985_v22, %v1541_v21  ;;  %v1543_v24 = vpop.xlane.xlu1 %1542  ;;  %vm1640_vm6 = vweird.f32 %v1985_v22 }
0x2178   :  { %1986 = vrcp.f32 %v1543_v24  ;;  %vm1641_vm8 = vmor %vm1639_vm7, %vm1640_vm6  ;;  %v1660_v44 = vand.u32 2147483648, %v1543_v24  ;;  %v1658_v25 = vand.u32 2147483647, %v1543_v24  ;;  %vm1654_vm11 = vweird.f32 %v1543_v24 }
0x2179   :  { %v1636_v62 = vsub.f32 1.0, %v1635_v23 }
0x217a   :  { %v1661_v39 = vor.u32 1.1754944e-38, %v1660_v44  ;;  %vm1659_vm13 = vcmp.eq.f32.partialorder %v1658_v25, 8.507059e+37 }
0x217b   :  { %v1637_v63 = vmul.f32 %v1985_v22, %v1636_v62 }
0x217d   :  { %v1638_v28 = vadd.f32 %v1985_v22, %v1637_v63 }
0x217e   :  { %v1987_v56 = vpop.eup %1986 }
0x217f   :  { %v1642_v30 = vsel %vm1641_vm8, %v1985_v22, %v1638_v28  ;;  %v1650_v9 = vmul.f32 %v1987_v56, %v1543_v24  ;;  %vm1655_vm10 = vweird.f32 %v1987_v56 }
0x2180   :  { %v1647_v31 = vsel %vm1644_vm9, %v1646_v29, %v1642_v30  ;;  %vm1656_vm12 = vmor %vm1654_vm11, %vm1655_vm10 }
0x2181   :  { %v1648_v27 = vmul.f32 %v2490_v33, %v1647_v31  ;;  %v1651_v58 = vsub.f32 1.0, %v1650_v9 }
0x2182   :  { %v1396_v34 = vpop.permute.xlu0 %1395 }
0x2183   :  { %1670 = vst [vmem:[%s2539_s8 + $0x30] sm:$0xff] %v1648_v27  ;;  %v1652_v35 = vmul.f32 %v1987_v56, %v1651_v58 }
0x2184   :  { %1795 = vst.msk [vmem:[%s2533_s9 + $0x8] sm:$0xff] %vm38_vm0, %v1396_v34 }
0x2185   :  { %v1653_v38 = vadd.f32 %v1987_v56, %v1652_v35 }
0x2187   :  { %v1657_v33 = vsel %vm1656_vm12, %v1987_v56, %v1653_v38 }
0x2188   :  { %v1662_v40 = vsel %vm1659_vm13, %v1661_v39, %v1657_v33 }
0x2189   :  { %v1663_v41 = vmul.f32 %v2493_v37, %v1662_v40 }
0x218b   :  { %1671 = vst [vmem:[%s2539_s8 + $0x38] sm:$0xff] %v1663_v41 }

</bundles_post_ra>
